<compile_context>
chip_gen: v7x
topology: tpu7x:2x2x1
jax: 0.10.0
libtpu: 0.0.40
codegen_flags: <defaults>
</compile_context>

<pallas_src>
import numpy as np
import jax
import jax.numpy as jnp
from jax import lax
from jax.experimental import pallas as pl
from jax.experimental.pallas import tpu as pltpu

# ----------------------------- model configuration -----------------------------
SHORT_KERNELS = [3, 5, 7]
LONG_KERNELS = [9, 11]
ALL_KERNELS = SHORT_KERNELS + LONG_KERNELS
IN_CHANNELS = 4
FIXED_KERNEL_SIZE = 5
BRANCH_PLANES = 8            # per-branch conv output channels
FE_OUT = 16                  # per-extractor feature size (fixed conv + GAP)
HID = 32                     # GRU hidden size (small, consistent with module)
POOL_OUT = 256               # self.pooling_out_size
NUM_CLASSES = 6
BATCH = 2
TIME = 128

KMAX = max(ALL_KERNELS)                        # 11
PAD1 = KMAX // 2                               # 5
K2 = FIXED_KERNEL_SIZE                         # 5
PAD2 = K2 // 2                                 # 2
COUT1 = BRANCH_PLANES * len(ALL_KERNELS)       # 40 merged branch channels
N_SHORT = BRANCH_PLANES * len(SHORT_KERNELS)   # 24 of them feed the short FE
COUT2 = 2 * FE_OUT                             # 32 = cat([short_hidden, long_hidden])
SEQ = COUT2                                    # GRU sequence length (input_size=1)
G2 = 2 * HID                                   # bidirectional state width (64)
G6 = 6 * HID                                   # gate-grouped width [r_f,r_b,z_f,z_b,n_f,n_b]
BT = BATCH * TIME                              # 256 lane-batched time axis


# ------------------------------- fused kernel ----------------------------------
def _fused_forward_kernel(x_ref, wbr_ref, bbr_ref, wfx_ref, bfx_ref,
                          whh_ref, vecs_ref, wc_ref, bhd_ref, o_ref,
                          gi_ref, hh_ref):
    # ======= Stage 1: both feature extractors, batched across the lane axis =======
    xb = x_ref[...].astype(jnp.bfloat16)                      # (Cin, B*T)
    zp1 = jnp.zeros((IN_CHANNELS, PAD1), jnp.bfloat16)
    xp = jnp.concatenate([zp1, xb, zp1], axis=1)              # (Cin, B*T + 2*PAD1)
    tl1 = lax.broadcasted_iota(jnp.int32, (IN_CHANNELS, BT), 1) & (TIME - 1)
    pieces = []
    for k in range(KMAX):                                     # static, 11 taps
        sl = xp[:, k:k + BT]                                  # value at local time t+k-PAD1
        lo, hi = PAD1 - k, TIME + PAD1 - k
        if lo > 0 or hi < TIME:                               # zero out-of-range / cross-batch
            sl = jnp.where((tl1 >= lo) & (tl1 < hi), sl, 0.0)
        pieces.append(sl)
    xcol = jnp.concatenate(pieces, axis=0)                    # (Cin*KMAX, B*T) bf16
    h1 = jnp.dot(wbr_ref[...], xcol,
                 preferred_element_type=jnp.float32) + bbr_ref[...]
    h1 = jnp.maximum(h1, 0.0)                                 # (COUT1, B*T)

    h1b = h1.astype(jnp.bfloat16)
    zp2 = jnp.zeros((COUT1, PAD2), jnp.bfloat16)
    h1p = jnp.concatenate([zp2, h1b, zp2], axis=1)            # (COUT1, B*T + 2*PAD2)
    tl2 = lax.broadcasted_iota(jnp.int32, (COUT1, BT), 1) & (TIME - 1)
    pieces2 = []
    for k in range(K2):                                       # static, 5 taps
        sl = h1p[:, k:k + BT]
        lo, hi = PAD2 - k, TIME + PAD2 - k
        if lo > 0 or hi < TIME:
            sl = jnp.where((tl2 >= lo) & (tl2 < hi), sl, 0.0)
        pieces2.append(sl)
    xcol2 = jnp.concatenate(pieces2, axis=0)                  # (COUT1*K2, B*T) bf16
    h2 = jnp.dot(wfx_ref[...], xcol2,
                 preferred_element_type=jnp.float32) + bfx_ref[...]
    h2 = jnp.maximum(h2, 0.0)                                 # (COUT2, B*T)

    # per-batch global average pool over time (aligned 128-lane slices)
    fc0 = jnp.mean(h2[:, :TIME], axis=1, keepdims=True)       # (SEQ, 1) batch 0
    fc1 = jnp.mean(h2[:, TIME:], axis=1, keepdims=True)       # (SEQ, 1) batch 1
    fc = jnp.concatenate([fc0, fc1], axis=1)                  # (SEQ, B)

    # ======= Stage 2: hoisted GRU input-gate contributions for every step =======
    # backward direction consumes the time-reversed sequence (anti-identity built
    # in-kernel from iotas; no extra input / DMA).
    ri = lax.broadcasted_iota(jnp.int32, (SEQ, SEQ), 0)
    ci = lax.broadcasted_iota(jnp.int32, (SEQ, SEQ), 1)
    revm = jnp.where(ri + ci == SEQ - 1, 1.0, 0.0)
    fr = jnp.dot(revm, fc, preferred_element_type=jnp.float32)   # (SEQ, B)

    w_if = vecs_ref[0:1, :]                                   # (1, G6)
    w_ib = vecs_ref[1:2, :]
    b_in = vecs_ref[2:3, :]                                   # b_ih + b_hh(r,z) folded
    b_hn = vecs_ref[3:4, 2 * G2:3 * G2]                       # (1, G2) stays inside r*(...)
    for b in range(BATCH):                                    # static, B = 2
        gi_ref[:, b, :] = (fc[:, b:b + 1] * w_if + fr[:, b:b + 1] * w_ib + b_in)

    # ======= Stage 3: fused bidirectional GRU recurrence (head hoisted out) =======
    whh = whh_ref[...]                                        # (G2, G6) bf16 block-diag
    h = jnp.zeros((BATCH, G2), jnp.float32)                   # [fwd H | bwd H]
    for t in range(SEQ):                                      # static unroll, SEQ = 32
        g = gi_ref[t]                                         # (B, G6) single aligned load
        gh = jnp.dot(h.astype(jnp.bfloat16), whh,
                     preferred_element_type=jnp.float32)      # (B, G6)
        rz = jax.nn.sigmoid(g[:, :2 * G2] + gh[:, :2 * G2])   # one sigmoid, lanes 0..127
        r = rz[:, :G2]
        z = rz[:, G2:]
        n = jnp.tanh(g[:, 2 * G2:] + r * (gh[:, 2 * G2:] + b_hn))
        h = (1.0 - z) * n + z * h
        hh_ref[BATCH * t:BATCH * t + BATCH, :] = h            # off the dependent chain

    # ======= Stage 4: folded AdaptiveAvgPool1d(256) + Linear head, post-loop =======
    # logits[b, c] = sum_t h_loop[t, b, :] . Wfold[t, :, c]   (time reversal of the
    # backward half is baked into Wc host-side).  Computed with dense MXU dots:
    #   Q  = hh @ Wc              rows = t*B + b, cols = c*SEQ + t'
    #   Qm = Q where t == t'      (diagonal-block select, iota mask)
    #   tmp = Srow @ Qm           per-batch row sums (row parity selector)
    #   out = tmp @ Scol          per-class column-group sums
    hh = hh_ref[...]                                          # (B*SEQ, G2) f32
    q = jnp.dot(hh.astype(jnp.bfloat16), wc_ref[...],
                preferred_element_type=jnp.float32)           # (B*SEQ, C*SEQ)
    rq = lax.broadcasted_iota(jnp.int32, (BATCH * SEQ, NUM_CLASSES * SEQ), 0)
    cq = lax.broadcasted_iota(jnp.int32, (BATCH * SEQ, NUM_CLASSES * SEQ), 1)
    qm = jnp.where(jnp.right_shift(rq, 1) == (cq & (SEQ - 1)), q, 0.0)

    bi = lax.broadcasted_iota(jnp.int32, (BATCH, BATCH * SEQ), 0)
    ri2 = lax.broadcasted_iota(jnp.int32, (BATCH, BATCH * SEQ), 1)
    srow = jnp.where((ri2 & (BATCH - 1)) == bi, 1.0, 0.0)     # (B, B*SEQ)
    tmp = jnp.dot(srow, qm, preferred_element_type=jnp.float32)   # (B, C*SEQ)

    ai = lax.broadcasted_iota(jnp.int32, (NUM_CLASSES * SEQ, NUM_CLASSES), 0)
    ci2 = lax.broadcasted_iota(jnp.int32, (NUM_CLASSES * SEQ, NUM_CLASSES), 1)
    scol = jnp.where((ai >= ci2 * SEQ) & (ai < (ci2 + 1) * SEQ), 1.0, 0.0)
    o_ref[...] = jnp.dot(tmp, scol,
                         preferred_element_type=jnp.float32) + bhd_ref[...]


def forward(params, x):
    # layout plumbing only: present the batch lane-dense to Stage 1
    x2 = jnp.transpose(x, (1, 0, 2)).reshape(IN_CHANNELS, BATCH * TIME)
    logits = pl.pallas_call(
        _fused_forward_kernel,
        out_shape=jax.ShapeDtypeStruct((BATCH, NUM_CLASSES), jnp.float32),
        grid=(1,),
        in_specs=[
            pl.BlockSpec((IN_CHANNELS, BT), lambda i: (0, 0)),
            pl.BlockSpec((COUT1, KMAX * IN_CHANNELS), lambda i: (0, 0)),
            pl.BlockSpec((COUT1, 1), lambda i: (0, 0)),
            pl.BlockSpec((COUT2, K2 * COUT1), lambda i: (0, 0)),
            pl.BlockSpec((COUT2, 1), lambda i: (0, 0)),
            pl.BlockSpec((G2, G6), lambda i: (0, 0)),
            pl.BlockSpec((4, G6), lambda i: (0, 0)),
            pl.BlockSpec((G2, NUM_CLASSES * SEQ), lambda i: (0, 0)),
            pl.BlockSpec((1, NUM_CLASSES), lambda i: (0, 0)),
        ],
        out_specs=pl.BlockSpec((BATCH, NUM_CLASSES), lambda i: (0, 0)),
        scratch_shapes=[
            pltpu.VMEM((SEQ, BATCH, G6), jnp.float32),        # hoisted GRU gate inputs
            pltpu.VMEM((BATCH * SEQ, G2), jnp.float32),       # per-step hidden history
        ],
        compiler_params=pltpu.CompilerParams(dimension_semantics=("arbitrary",)),
        cost_estimate=pl.CostEstimate(flops=7_500_000, transcendentals=12_500,
                                      bytes_accessed=80_000),
    )(x2, params["w_branch"], params["b_branch"], params["w_fixed"], params["b_fixed"],
      params["w_hh"], params["vecs"], params["w_head"], params["b_head"])
    return {"logits": logits}


# ------------------------------ parameter setup ---------------------------------
def _uniform(key, shape, fan_in):
    bound = 1.0 / float(np.sqrt(fan_in))
    return jax.random.uniform(key, shape, jnp.float32, -bound, bound)


def init_raw_params(key):
    """PyTorch-layout parameters (branch convs, fixed convs, bidir GRU, head)."""
    ks = iter(jax.random.split(key, 32))
    branches = []
    for k in ALL_KERNELS:
        w = _uniform(next(ks), (BRANCH_PLANES, IN_CHANNELS, k), IN_CHANNELS * k)
        b = _uniform(next(ks), (BRANCH_PLANES,), IN_CHANNELS * k)
        branches.append((np.asarray(w), np.asarray(b)))
    n_long = BRANCH_PLANES * len(LONG_KERNELS)
    wfs = np.asarray(_uniform(next(ks), (FE_OUT, N_SHORT, K2), N_SHORT * K2))
    bfs = np.asarray(_uniform(next(ks), (FE_OUT,), N_SHORT * K2))
    wfl = np.asarray(_uniform(next(ks), (FE_OUT, n_long, K2), n_long * K2))
    bfl = np.asarray(_uniform(next(ks), (FE_OUT,), n_long * K2))

    def gru_dir():  # PyTorch layout: rows ordered [r; z; n]
        w_ih = np.asarray(_uniform(next(ks), (3 * HID, 1), HID))
        w_hh = np.asarray(_uniform(next(ks), (3 * HID, HID), HID))
        b_ih = np.asarray(_uniform(next(ks), (3 * HID,), HID))
        b_hh = np.asarray(_uniform(next(ks), (3 * HID,), HID))
        return w_ih, w_hh, b_ih, b_hh

    gru_f = gru_dir()
    gru_b = gru_dir()
    head_in = 2 * HID * POOL_OUT
    head_w = np.asarray(_uniform(next(ks), (NUM_CLASSES, head_in), head_in))
    head_b = np.asarray(_uniform(next(ks), (NUM_CLASSES,), head_in))
    return {"branches": branches, "fixed_short": (wfs, bfs), "fixed_long": (wfl, bfl),
            "gru_f": gru_f, "gru_b": gru_b, "head_w": head_w, "head_b": head_b}


def adaptive_avg_pool_matrix(L, out_size):
    """Exact AdaptiveAvgPool1d(out_size) as an (L, out_size) matrix."""
    P = np.zeros((L, out_size), np.float32)
    for o in range(out_size):
        s = (o * L) // out_size
        e = -(-((o + 1) * L) // out_size)  # ceil
        P[s:e, o] = 1.0 / (e - s)
    return P


def pack_params(raw):
    """Repack PyTorch-layout weights into the fused-kernel layouts (host side)."""
    H = HID
    # merged branch conv (all 5 branches), taps center-embedded into KMAX, im2col layout
    Wb = np.zeros((COUT1, IN_CHANNELS, KMAX), np.float32)
    bb = np.zeros((COUT1,), np.float32)
    for i, (k, (w, b)) in enumerate(zip(ALL_KERNELS, raw["branches"])):
        off = (KMAX - k) // 2
        Wb[i * BRANCH_PLANES:(i + 1) * BRANCH_PLANES, :, off:off + k] = w
        bb[i * BRANCH_PLANES:(i + 1) * BRANCH_PLANES] = b
    w_branch = Wb.transpose(0, 2, 1).reshape(COUT1, KMAX * IN_CHANNELS)

    # merged fixed conv: block-diagonal over input channels, im2col layout
    Wf = np.zeros((COUT2, COUT1, K2), np.float32)
    bf = np.zeros((COUT2,), np.float32)
    Wf[:FE_OUT, :N_SHORT, :] = raw["fixed_short"][0]
    bf[:FE_OUT] = raw["fixed_short"][1]
    Wf[FE_OUT:, N_SHORT:, :] = raw["fixed_long"][0]
    bf[FE_OUT:] = raw["fixed_long"][1]
    w_fixed = Wf.transpose(0, 2, 1).reshape(COUT2, K2 * COUT1)

    # fused bidirectional GRU, gate-grouped columns [r_f, r_b, z_f, z_b, n_f, n_b]
    wih_f, whh_f, bih_f, bhh_f = raw["gru_f"]
    wih_b, whh_b, bih_b, bhh_b = raw["gru_b"]

    def gates(a):
        return a[0:H], a[H:2 * H], a[2 * H:3 * H]

    zH = np.zeros((H,), np.float32)
    irf, izf, inf_ = gates(wih_f[:, 0])
    irb, izb, inb = gates(wih_b[:, 0])
    w_in_f = np.concatenate([irf, zH, izf, zH, inf_, zH])
    w_in_b = np.concatenate([zH, irb, zH, izb, zH, inb])
    birf, bizf, binf = gates(bih_f)
    birb, bizb, binb = gates(bih_b)
    bhrf, bhzf, bhnf = gates(bhh_f)
    bhrb, bhzb, bhnb = gates(bhh_b)
    # fold the r/z halves of b_hh into the precomputed input bias; b_hn must stay
    # inside the r*(W_hn h + b_hn) term (PyTorch GRU semantics) -> separate row.
    b_in = np.concatenate([birf + bhrf, birb + bhrb, bizf + bhzf, bizb + bhzb,
                           binf, binb])
    b_hn_row = np.concatenate([np.zeros((4 * H,), np.float32), bhnf, bhnb])
    vecs = np.stack([w_in_f, w_in_b, b_in, b_hn_row]).astype(np.float32)   # (4, G6)

    w_hh = np.zeros((G2, G6), np.float32)
    ghf = gates(whh_f)          # each (H, H)
    ghb = gates(whh_b)
    for g in range(3):
        w_hh[0:H, (2 * g) * H:(2 * g + 1) * H] = ghf[g].T
        w_hh[H:2 * H, (2 * g + 1) * H:(2 * g + 2) * H] = ghb[g].T

    # fold AdaptiveAvgPool1d + Linear head into a per-step (G2, C) weight; bake the
    # backward-direction time reversal into the backward half, then lay it out
    # lane-dense as (G2, C*SEQ) with column index = c*SEQ + t.
    pool = adaptive_avg_pool_matrix(SEQ, POOL_OUT)                       # (SEQ, 256)
    Wr = raw["head_w"].reshape(NUM_CLASSES, 2 * H, POOL_OUT)             # (C, 2H, 256)
    fw = np.einsum("lp,chp->lhc", pool, Wr).astype(np.float32)           # (SEQ, 2H, C)
    fw2 = fw.copy()
    fw2[:, H:, :] = fw[::-1, H:, :]
    w_head = fw2.transpose(1, 2, 0).reshape(G2, NUM_CLASSES * SEQ)       # (G2, C*SEQ)

    return {
        "w_branch": jnp.asarray(w_branch, jnp.bfloat16),
        "b_branch": jnp.asarray(bb.reshape(COUT1, 1)),
        "w_fixed": jnp.asarray(w_fixed, jnp.bfloat16),
        "b_fixed": jnp.asarray(bf.reshape(COUT2, 1)),
        "w_hh": jnp.asarray(w_hh, jnp.bfloat16),
        "vecs": jnp.asarray(vecs),
        "w_head": jnp.asarray(w_head, jnp.bfloat16),
        "b_head": jnp.asarray(raw["head_b"].reshape(1, NUM_CLASSES)),
    }


# ------------------------------------ main ---------------------------------------
if __name__ == "__main__":
    key = jax.random.PRNGKey(0)
    kp, kx = jax.random.split(key)
    params = pack_params(init_raw_params(kp))
    x = jax.random.normal(kx, (BATCH, IN_CHANNELS, TIME), jnp.float32)

    out = jax.jit(forward)(params, x)
    logits = out["logits"]
    jax.block_until_ready(logits)
    assert logits.shape == (BATCH, NUM_CLASSES)
    assert bool(jnp.all(jnp.isfinite(logits)))
    print("KERNEL_OK")
</pallas_src>

<mosaic_0001>
module attributes {stable_mosaic.version = 11 : i64} {
  func.func @_fused_forward_kernel(%arg0: i32, %arg1: memref<4x256xf32, #tpu.memory_space<vmem>>, %arg2: memref<40x44xbf16, #tpu.memory_space<vmem>>, %arg3: memref<40x1xf32, #tpu.memory_space<vmem>>, %arg4: memref<32x200xbf16, #tpu.memory_space<vmem>>, %arg5: memref<32x1xf32, #tpu.memory_space<vmem>>, %arg6: memref<64x192xbf16, #tpu.memory_space<vmem>>, %arg7: memref<4x192xf32, #tpu.memory_space<vmem>>, %arg8: memref<64x192xbf16, #tpu.memory_space<vmem>>, %arg9: memref<1x6xf32, #tpu.memory_space<vmem>>, %arg10: memref<2x6xf32, #tpu.memory_space<vmem>>, %arg11: memref<32x2x192xf32, #tpu.memory_space<vmem>>, %arg12: memref<64x64xf32, #tpu.memory_space<vmem>>) attributes {dimension_semantics = [#tpu.dimension_semantics<arbitrary>], iteration_bounds = array<i64: 1>, scalar_prefetch = 0 : i64, scratch_operands = 2 : i64, tpu.core_type = #tpu.core_type<tc>, window_params = [{pipeline_mode = #tpu.pipeline_mode<synchronous>, transform_indices = @transform_0, window_bounds = array<i64: 4, 256>}, {pipeline_mode = #tpu.pipeline_mode<synchronous>, transform_indices = @transform_1, window_bounds = array<i64: 40, 44>}, {pipeline_mode = #tpu.pipeline_mode<synchronous>, transform_indices = @transform_2, window_bounds = array<i64: 40, 1>}, {pipeline_mode = #tpu.pipeline_mode<synchronous>, transform_indices = @transform_3, window_bounds = array<i64: 32, 200>}, {pipeline_mode = #tpu.pipeline_mode<synchronous>, transform_indices = @transform_4, window_bounds = array<i64: 32, 1>}, {pipeline_mode = #tpu.pipeline_mode<synchronous>, transform_indices = @transform_5, window_bounds = array<i64: 64, 192>}, {pipeline_mode = #tpu.pipeline_mode<synchronous>, transform_indices = @transform_6, window_bounds = array<i64: 4, 192>}, {pipeline_mode = #tpu.pipeline_mode<synchronous>, transform_indices = @transform_7, window_bounds = array<i64: 64, 192>}, {pipeline_mode = #tpu.pipeline_mode<synchronous>, transform_indices = @transform_8, window_bounds = array<i64: 1, 6>}, {pipeline_mode = #tpu.pipeline_mode<synchronous>, transform_indices = @transform_9, window_bounds = array<i64: 2, 6>}]} {
    %c0 = arith.constant 0 : index
    %c0_0 = arith.constant 0 : index
    %0 = vector.load %arg1[%c0, %c0_0] : memref<4x256xf32, #tpu.memory_space<vmem>>, vector<4x256xf32>
    %1 = arith.truncf %0 : vector<4x256xf32> to vector<4x256xbf16>
    %cst = arith.constant 0.000000e+00 : bf16
    %2 = vector.broadcast %cst : bf16 to vector<4x5xbf16>
    %3 = tpu.concatenate %2, %1, %2 in 1 : vector<4x5xbf16>, vector<4x256xbf16>, vector<4x5xbf16> -> vector<4x266xbf16>
    %4 = tpu.iota {dimensions = array<i32: 1>} : vector<4x256xi32>
    %c127_i32 = arith.constant 127 : i32
    %5 = vector.broadcast %c127_i32 : i32 to vector<4x256xi32>
    %6 = arith.andi %4, %5 : vector<4x256xi32>
    %7 = vector.extract_strided_slice %3 {offsets = [0, 0], sizes = [4, 256], strides = [1, 1]} : vector<4x266xbf16> to vector<4x256xbf16>
    %c5_i32 = arith.constant 5 : i32
    %8 = vector.broadcast %c5_i32 : i32 to vector<4x256xi32>
    %9 = arith.cmpi sge, %6, %8 : vector<4x256xi32>
    %c133_i32 = arith.constant 133 : i32
    %10 = vector.broadcast %c133_i32 : i32 to vector<4x256xi32>
    %11 = arith.cmpi slt, %6, %10 : vector<4x256xi32>
    %12 = arith.andi %9, %11 : vector<4x256xi1>
    %cst_1 = arith.constant 0.000000e+00 : f32
    %13 = arith.truncf %cst_1 : f32 to bf16
    %14 = vector.broadcast %13 : bf16 to vector<4x256xbf16>
    %15 = arith.select %12, %7, %14 : vector<4x256xi1>, vector<4x256xbf16>
    %16 = vector.extract_strided_slice %3 {offsets = [0, 1], sizes = [4, 256], strides = [1, 1]} : vector<4x266xbf16> to vector<4x256xbf16>
    %c4_i32 = arith.constant 4 : i32
    %17 = vector.broadcast %c4_i32 : i32 to vector<4x256xi32>
    %18 = arith.cmpi sge, %6, %17 : vector<4x256xi32>
    %c132_i32 = arith.constant 132 : i32
    %19 = vector.broadcast %c132_i32 : i32 to vector<4x256xi32>
    %20 = arith.cmpi slt, %6, %19 : vector<4x256xi32>
    %21 = arith.andi %18, %20 : vector<4x256xi1>
    %cst_2 = arith.constant 0.000000e+00 : f32
    %22 = arith.truncf %cst_2 : f32 to bf16
    %23 = vector.broadcast %22 : bf16 to vector<4x256xbf16>
    %24 = arith.select %21, %16, %23 : vector<4x256xi1>, vector<4x256xbf16>
    %25 = vector.extract_strided_slice %3 {offsets = [0, 2], sizes = [4, 256], strides = [1, 1]} : vector<4x266xbf16> to vector<4x256xbf16>
    %c3_i32 = arith.constant 3 : i32
    %26 = vector.broadcast %c3_i32 : i32 to vector<4x256xi32>
    %27 = arith.cmpi sge, %6, %26 : vector<4x256xi32>
    %c131_i32 = arith.constant 131 : i32
    %28 = vector.broadcast %c131_i32 : i32 to vector<4x256xi32>
    %29 = arith.cmpi slt, %6, %28 : vector<4x256xi32>
    %30 = arith.andi %27, %29 : vector<4x256xi1>
    %cst_3 = arith.constant 0.000000e+00 : f32
    %31 = arith.truncf %cst_3 : f32 to bf16
    %32 = vector.broadcast %31 : bf16 to vector<4x256xbf16>
    %33 = arith.select %30, %25, %32 : vector<4x256xi1>, vector<4x256xbf16>
    %34 = vector.extract_strided_slice %3 {offsets = [0, 3], sizes = [4, 256], strides = [1, 1]} : vector<4x266xbf16> to vector<4x256xbf16>
    %c2_i32 = arith.constant 2 : i32
    %35 = vector.broadcast %c2_i32 : i32 to vector<4x256xi32>
    %36 = arith.cmpi sge, %6, %35 : vector<4x256xi32>
    %c130_i32 = arith.constant 130 : i32
    %37 = vector.broadcast %c130_i32 : i32 to vector<4x256xi32>
    %38 = arith.cmpi slt, %6, %37 : vector<4x256xi32>
    %39 = arith.andi %36, %38 : vector<4x256xi1>
    %cst_4 = arith.constant 0.000000e+00 : f32
    %40 = arith.truncf %cst_4 : f32 to bf16
    %41 = vector.broadcast %40 : bf16 to vector<4x256xbf16>
    %42 = arith.select %39, %34, %41 : vector<4x256xi1>, vector<4x256xbf16>
    %43 = vector.extract_strided_slice %3 {offsets = [0, 4], sizes = [4, 256], strides = [1, 1]} : vector<4x266xbf16> to vector<4x256xbf16>
    %c1_i32 = arith.constant 1 : i32
    %44 = vector.broadcast %c1_i32 : i32 to vector<4x256xi32>
    %45 = arith.cmpi sge, %6, %44 : vector<4x256xi32>
    %c129_i32 = arith.constant 129 : i32
    %46 = vector.broadcast %c129_i32 : i32 to vector<4x256xi32>
    %47 = arith.cmpi slt, %6, %46 : vector<4x256xi32>
    %48 = arith.andi %45, %47 : vector<4x256xi1>
    %cst_5 = arith.constant 0.000000e+00 : f32
    %49 = arith.truncf %cst_5 : f32 to bf16
    %50 = vector.broadcast %49 : bf16 to vector<4x256xbf16>
    %51 = arith.select %48, %43, %50 : vector<4x256xi1>, vector<4x256xbf16>
    %52 = vector.extract_strided_slice %3 {offsets = [0, 5], sizes = [4, 256], strides = [1, 1]} : vector<4x266xbf16> to vector<4x256xbf16>
    %53 = vector.extract_strided_slice %3 {offsets = [0, 6], sizes = [4, 256], strides = [1, 1]} : vector<4x266xbf16> to vector<4x256xbf16>
    %c-1_i32 = arith.constant -1 : i32
    %54 = vector.broadcast %c-1_i32 : i32 to vector<4x256xi32>
    %55 = arith.cmpi sge, %6, %54 : vector<4x256xi32>
    %c127_i32_6 = arith.constant 127 : i32
    %56 = vector.broadcast %c127_i32_6 : i32 to vector<4x256xi32>
    %57 = arith.cmpi slt, %6, %56 : vector<4x256xi32>
    %58 = arith.andi %55, %57 : vector<4x256xi1>
    %cst_7 = arith.constant 0.000000e+00 : f32
    %59 = arith.truncf %cst_7 : f32 to bf16
    %60 = vector.broadcast %59 : bf16 to vector<4x256xbf16>
    %61 = arith.select %58, %53, %60 : vector<4x256xi1>, vector<4x256xbf16>
    %62 = vector.extract_strided_slice %3 {offsets = [0, 7], sizes = [4, 256], strides = [1, 1]} : vector<4x266xbf16> to vector<4x256xbf16>
    %c-2_i32 = arith.constant -2 : i32
    %63 = vector.broadcast %c-2_i32 : i32 to vector<4x256xi32>
    %64 = arith.cmpi sge, %6, %63 : vector<4x256xi32>
    %c126_i32 = arith.constant 126 : i32
    %65 = vector.broadcast %c126_i32 : i32 to vector<4x256xi32>
    %66 = arith.cmpi slt, %6, %65 : vector<4x256xi32>
    %67 = arith.andi %64, %66 : vector<4x256xi1>
    %cst_8 = arith.constant 0.000000e+00 : f32
    %68 = arith.truncf %cst_8 : f32 to bf16
    %69 = vector.broadcast %68 : bf16 to vector<4x256xbf16>
    %70 = arith.select %67, %62, %69 : vector<4x256xi1>, vector<4x256xbf16>
    %71 = vector.extract_strided_slice %3 {offsets = [0, 8], sizes = [4, 256], strides = [1, 1]} : vector<4x266xbf16> to vector<4x256xbf16>
    %c-3_i32 = arith.constant -3 : i32
    %72 = vector.broadcast %c-3_i32 : i32 to vector<4x256xi32>
    %73 = arith.cmpi sge, %6, %72 : vector<4x256xi32>
    %c125_i32 = arith.constant 125 : i32
    %74 = vector.broadcast %c125_i32 : i32 to vector<4x256xi32>
    %75 = arith.cmpi slt, %6, %74 : vector<4x256xi32>
    %76 = arith.andi %73, %75 : vector<4x256xi1>
    %cst_9 = arith.constant 0.000000e+00 : f32
    %77 = arith.truncf %cst_9 : f32 to bf16
    %78 = vector.broadcast %77 : bf16 to vector<4x256xbf16>
    %79 = arith.select %76, %71, %78 : vector<4x256xi1>, vector<4x256xbf16>
    %80 = vector.extract_strided_slice %3 {offsets = [0, 9], sizes = [4, 256], strides = [1, 1]} : vector<4x266xbf16> to vector<4x256xbf16>
    %c-4_i32 = arith.constant -4 : i32
    %81 = vector.broadcast %c-4_i32 : i32 to vector<4x256xi32>
    %82 = arith.cmpi sge, %6, %81 : vector<4x256xi32>
    %c124_i32 = arith.constant 124 : i32
    %83 = vector.broadcast %c124_i32 : i32 to vector<4x256xi32>
    %84 = arith.cmpi slt, %6, %83 : vector<4x256xi32>
    %85 = arith.andi %82, %84 : vector<4x256xi1>
    %cst_10 = arith.constant 0.000000e+00 : f32
    %86 = arith.truncf %cst_10 : f32 to bf16
    %87 = vector.broadcast %86 : bf16 to vector<4x256xbf16>
    %88 = arith.select %85, %80, %87 : vector<4x256xi1>, vector<4x256xbf16>
    %89 = vector.extract_strided_slice %3 {offsets = [0, 10], sizes = [4, 256], strides = [1, 1]} : vector<4x266xbf16> to vector<4x256xbf16>
    %c-5_i32 = arith.constant -5 : i32
    %90 = vector.broadcast %c-5_i32 : i32 to vector<4x256xi32>
    %91 = arith.cmpi sge, %6, %90 : vector<4x256xi32>
    %c123_i32 = arith.constant 123 : i32
    %92 = vector.broadcast %c123_i32 : i32 to vector<4x256xi32>
    %93 = arith.cmpi slt, %6, %92 : vector<4x256xi32>
    %94 = arith.andi %91, %93 : vector<4x256xi1>
    %cst_11 = arith.constant 0.000000e+00 : f32
    %95 = arith.truncf %cst_11 : f32 to bf16
    %96 = vector.broadcast %95 : bf16 to vector<4x256xbf16>
    %97 = arith.select %94, %89, %96 : vector<4x256xi1>, vector<4x256xbf16>
    %98 = tpu.concatenate %15, %24, %33, %42, %51, %52, %61, %70, %79, %88, %97 in 0 : vector<4x256xbf16>, vector<4x256xbf16>, vector<4x256xbf16>, vector<4x256xbf16>, vector<4x256xbf16>, vector<4x256xbf16>, vector<4x256xbf16>, vector<4x256xbf16>, vector<4x256xbf16>, vector<4x256xbf16>, vector<4x256xbf16> -> vector<44x256xbf16>
    %c0_12 = arith.constant 0 : index
    %c0_13 = arith.constant 0 : index
    %99 = vector.load %arg2[%c0_12, %c0_13] : memref<40x44xbf16, #tpu.memory_space<vmem>>, vector<40x44xbf16>
    %cst_14 = arith.constant dense<0.000000e+00> : vector<40x256xf32>
    %100 = tpu.matmul %99, %98, %cst_14 {dimension_numbers = #tpu.dot_dimension_numbers<[1], [0], [0], [1], [0, 0, 1, 1], [], []>} : vector<40x44xbf16>, vector<44x256xbf16>, vector<40x256xf32> -> vector<40x256xf32>
    %c0_15 = arith.constant 0 : index
    %c0_16 = arith.constant 0 : index
    %101 = vector.load %arg3[%c0_15, %c0_16] : memref<40x1xf32, #tpu.memory_space<vmem>>, vector<40x1xf32>
    %102 = vector.broadcast %101 : vector<40x1xf32> to vector<40x256xf32>
    %103 = arith.addf %100, %102 : vector<40x256xf32>
    %cst_17 = arith.constant 0.000000e+00 : f32
    %104 = vector.broadcast %cst_17 : f32 to vector<40x256xf32>
    %105 = arith.maximumf %103, %104 : vector<40x256xf32>
    %106 = arith.truncf %105 : vector<40x256xf32> to vector<40x256xbf16>
    %cst_18 = arith.constant 0.000000e+00 : bf16
    %107 = vector.broadcast %cst_18 : bf16 to vector<40x2xbf16>
    %108 = tpu.concatenate %107, %106, %107 in 1 : vector<40x2xbf16>, vector<40x256xbf16>, vector<40x2xbf16> -> vector<40x260xbf16>
    %109 = tpu.iota {dimensions = array<i32: 1>} : vector<40x256xi32>
    %c127_i32_19 = arith.constant 127 : i32
    %110 = vector.broadcast %c127_i32_19 : i32 to vector<40x256xi32>
    %111 = arith.andi %109, %110 : vector<40x256xi32>
    %112 = vector.extract_strided_slice %108 {offsets = [0, 0], sizes = [40, 256], strides = [1, 1]} : vector<40x260xbf16> to vector<40x256xbf16>
    %c2_i32_20 = arith.constant 2 : i32
    %113 = vector.broadcast %c2_i32_20 : i32 to vector<40x256xi32>
    %114 = arith.cmpi sge, %111, %113 : vector<40x256xi32>
    %c130_i32_21 = arith.constant 130 : i32
    %115 = vector.broadcast %c130_i32_21 : i32 to vector<40x256xi32>
    %116 = arith.cmpi slt, %111, %115 : vector<40x256xi32>
    %117 = arith.andi %114, %116 : vector<40x256xi1>
    %cst_22 = arith.constant 0.000000e+00 : f32
    %118 = arith.truncf %cst_22 : f32 to bf16
    %119 = vector.broadcast %118 : bf16 to vector<40x256xbf16>
    %120 = arith.select %117, %112, %119 : vector<40x256xi1>, vector<40x256xbf16>
    %121 = vector.extract_strided_slice %108 {offsets = [0, 1], sizes = [40, 256], strides = [1, 1]} : vector<40x260xbf16> to vector<40x256xbf16>
    %c1_i32_23 = arith.constant 1 : i32
    %122 = vector.broadcast %c1_i32_23 : i32 to vector<40x256xi32>
    %123 = arith.cmpi sge, %111, %122 : vector<40x256xi32>
    %c129_i32_24 = arith.constant 129 : i32
    %124 = vector.broadcast %c129_i32_24 : i32 to vector<40x256xi32>
    %125 = arith.cmpi slt, %111, %124 : vector<40x256xi32>
    %126 = arith.andi %123, %125 : vector<40x256xi1>
    %cst_25 = arith.constant 0.000000e+00 : f32
    %127 = arith.truncf %cst_25 : f32 to bf16
    %128 = vector.broadcast %127 : bf16 to vector<40x256xbf16>
    %129 = arith.select %126, %121, %128 : vector<40x256xi1>, vector<40x256xbf16>
    %130 = vector.extract_strided_slice %108 {offsets = [0, 2], sizes = [40, 256], strides = [1, 1]} : vector<40x260xbf16> to vector<40x256xbf16>
    %131 = vector.extract_strided_slice %108 {offsets = [0, 3], sizes = [40, 256], strides = [1, 1]} : vector<40x260xbf16> to vector<40x256xbf16>
    %c-1_i32_26 = arith.constant -1 : i32
    %132 = vector.broadcast %c-1_i32_26 : i32 to vector<40x256xi32>
    %133 = arith.cmpi sge, %111, %132 : vector<40x256xi32>
    %c127_i32_27 = arith.constant 127 : i32
    %134 = vector.broadcast %c127_i32_27 : i32 to vector<40x256xi32>
    %135 = arith.cmpi slt, %111, %134 : vector<40x256xi32>
    %136 = arith.andi %133, %135 : vector<40x256xi1>
    %cst_28 = arith.constant 0.000000e+00 : f32
    %137 = arith.truncf %cst_28 : f32 to bf16
    %138 = vector.broadcast %137 : bf16 to vector<40x256xbf16>
    %139 = arith.select %136, %131, %138 : vector<40x256xi1>, vector<40x256xbf16>
    %140 = vector.extract_strided_slice %108 {offsets = [0, 4], sizes = [40, 256], strides = [1, 1]} : vector<40x260xbf16> to vector<40x256xbf16>
    %c-2_i32_29 = arith.constant -2 : i32
    %141 = vector.broadcast %c-2_i32_29 : i32 to vector<40x256xi32>
    %142 = arith.cmpi sge, %111, %141 : vector<40x256xi32>
    %c126_i32_30 = arith.constant 126 : i32
    %143 = vector.broadcast %c126_i32_30 : i32 to vector<40x256xi32>
    %144 = arith.cmpi slt, %111, %143 : vector<40x256xi32>
    %145 = arith.andi %142, %144 : vector<40x256xi1>
    %cst_31 = arith.constant 0.000000e+00 : f32
    %146 = arith.truncf %cst_31 : f32 to bf16
    %147 = vector.broadcast %146 : bf16 to vector<40x256xbf16>
    %148 = arith.select %145, %140, %147 : vector<40x256xi1>, vector<40x256xbf16>
    %149 = tpu.concatenate %120, %129, %130, %139, %148 in 0 : vector<40x256xbf16>, vector<40x256xbf16>, vector<40x256xbf16>, vector<40x256xbf16>, vector<40x256xbf16> -> vector<200x256xbf16>
    %c0_32 = arith.constant 0 : index
    %c0_33 = arith.constant 0 : index
    %150 = vector.load %arg4[%c0_32, %c0_33] : memref<32x200xbf16, #tpu.memory_space<vmem>>, vector<32x200xbf16>
    %cst_34 = arith.constant dense<0.000000e+00> : vector<32x256xf32>
    %151 = tpu.matmul %150, %149, %cst_34 {dimension_numbers = #tpu.dot_dimension_numbers<[1], [0], [0], [1], [0, 0, 1, 1], [], []>} : vector<32x200xbf16>, vector<200x256xbf16>, vector<32x256xf32> -> vector<32x256xf32>
    %c0_35 = arith.constant 0 : index
    %c0_36 = arith.constant 0 : index
    %152 = vector.load %arg5[%c0_35, %c0_36] : memref<32x1xf32, #tpu.memory_space<vmem>>, vector<32x1xf32>
    %153 = vector.broadcast %152 : vector<32x1xf32> to vector<32x256xf32>
    %154 = arith.addf %151, %153 : vector<32x256xf32>
    %cst_37 = arith.constant 0.000000e+00 : f32
    %155 = vector.broadcast %cst_37 : f32 to vector<32x256xf32>
    %156 = arith.maximumf %154, %155 : vector<32x256xf32>
    %157 = vector.extract_strided_slice %156 {offsets = [0, 0], sizes = [32, 128], strides = [1, 1]} : vector<32x256xf32> to vector<32x128xf32>
    %cst_38 = arith.constant dense<0.000000e+00> : vector<32xf32>
    %158 = vector.multi_reduction <add>, %157, %cst_38 [1] : vector<32x128xf32> to vector<32xf32>
    %159 = vector.shape_cast %158 : vector<32xf32> to vector<32x1xf32>
    %cst_39 = arith.constant 1.280000e+02 : f32
    %160 = vector.broadcast %cst_39 : f32 to vector<32x1xf32>
    %161 = arith.divf %159, %160 : vector<32x1xf32>
    %162 = vector.extract_strided_slice %156 {offsets = [0, 128], sizes = [32, 128], strides = [1, 1]} : vector<32x256xf32> to vector<32x128xf32>
    %cst_40 = arith.constant dense<0.000000e+00> : vector<32xf32>
    %163 = vector.multi_reduction <add>, %162, %cst_40 [1] : vector<32x128xf32> to vector<32xf32>
    %164 = vector.shape_cast %163 : vector<32xf32> to vector<32x1xf32>
    %cst_41 = arith.constant 1.280000e+02 : f32
    %165 = vector.broadcast %cst_41 : f32 to vector<32x1xf32>
    %166 = arith.divf %164, %165 : vector<32x1xf32>
    %167 = tpu.concatenate %161, %166 in 1 : vector<32x1xf32>, vector<32x1xf32> -> vector<32x2xf32>
    %168 = tpu.iota {dimensions = array<i32: 0>} : vector<32x32xi32>
    %169 = tpu.iota {dimensions = array<i32: 1>} : vector<32x32xi32>
    %170 = arith.addi %168, %169 : vector<32x32xi32>
    %c31_i32 = arith.constant 31 : i32
    %171 = vector.broadcast %c31_i32 : i32 to vector<32x32xi32>
    %172 = arith.cmpi eq, %170, %171 : vector<32x32xi32>
    %cst_42 = arith.constant 1.000000e+00 : f32
    %cst_43 = arith.constant 0.000000e+00 : f32
    %173 = vector.broadcast %cst_42 : f32 to vector<32x32xf32>
    %174 = vector.broadcast %cst_43 : f32 to vector<32x32xf32>
    %175 = arith.select %172, %173, %174 : vector<32x32xi1>, vector<32x32xf32>
    %cst_44 = arith.constant dense<0.000000e+00> : vector<32x2xf32>
    %176 = tpu.matmul %175, %167, %cst_44 {dimension_numbers = #tpu.dot_dimension_numbers<[1], [0], [0], [1], [0, 0, 1, 1], [], []>} : vector<32x32xf32>, vector<32x2xf32>, vector<32x2xf32> -> vector<32x2xf32>
    %c0_45 = arith.constant 0 : index
    %c0_46 = arith.constant 0 : index
    %177 = vector.load %arg7[%c0_45, %c0_46] : memref<4x192xf32, #tpu.memory_space<vmem>>, vector<1x192xf32>
    %c1 = arith.constant 1 : index
    %c0_47 = arith.constant 0 : index
    %178 = vector.load %arg7[%c1, %c0_47] : memref<4x192xf32, #tpu.memory_space<vmem>>, vector<1x192xf32>
    %c2 = arith.constant 2 : index
    %c0_48 = arith.constant 0 : index
    %179 = vector.load %arg7[%c2, %c0_48] : memref<4x192xf32, #tpu.memory_space<vmem>>, vector<1x192xf32>
    %c3 = arith.constant 3 : index
    %c128 = arith.constant 128 : index
    %180 = vector.load %arg7[%c3, %c128] : memref<4x192xf32, #tpu.memory_space<vmem>>, vector<1x64xf32>
    %181 = vector.extract_strided_slice %167 {offsets = [0, 0], sizes = [32, 1], strides = [1, 1]} : vector<32x2xf32> to vector<32x1xf32>
    %182 = vector.broadcast %181 : vector<32x1xf32> to vector<32x192xf32>
    %183 = vector.broadcast %177 : vector<1x192xf32> to vector<32x192xf32>
    %184 = arith.mulf %182, %183 : vector<32x192xf32>
    %185 = vector.extract_strided_slice %176 {offsets = [0, 0], sizes = [32, 1], strides = [1, 1]} : vector<32x2xf32> to vector<32x1xf32>
    %186 = vector.broadcast %185 : vector<32x1xf32> to vector<32x192xf32>
    %187 = vector.broadcast %178 : vector<1x192xf32> to vector<32x192xf32>
    %188 = arith.mulf %186, %187 : vector<32x192xf32>
    %189 = arith.addf %184, %188 : vector<32x192xf32>
    %190 = vector.broadcast %179 : vector<1x192xf32> to vector<32x192xf32>
    %191 = arith.addf %189, %190 : vector<32x192xf32>
    %c0_49 = arith.constant 0 : index
    %c0_50 = arith.constant 0 : index
    %c0_51 = arith.constant 0 : index
    %192 = vector.load %arg11[%c0_49, %c0_50, %c0_51] : memref<32x2x192xf32, #tpu.memory_space<vmem>>, vector<32x1x192xf32>
    %193 = vector.shape_cast %192 : vector<32x1x192xf32> to vector<32x192xf32>
    %194 = vector.shape_cast %191 : vector<32x192xf32> to vector<32x1x192xf32>
    tpu.vector_store %arg11[%c0_49, %c0_50, %c0_51], %194 {strides = array<i32>} : memref<32x2x192xf32, #tpu.memory_space<vmem>>, vector<32x1x192xf32>,
    %195 = vector.extract_strided_slice %167 {offsets = [0, 1], sizes = [32, 1], strides = [1, 1]} : vector<32x2xf32> to vector<32x1xf32>
    %196 = vector.broadcast %195 : vector<32x1xf32> to vector<32x192xf32>
    %197 = vector.broadcast %177 : vector<1x192xf32> to vector<32x192xf32>
    %198 = arith.mulf %196, %197 : vector<32x192xf32>
    %199 = vector.extract_strided_slice %176 {offsets = [0, 1], sizes = [32, 1], strides = [1, 1]} : vector<32x2xf32> to vector<32x1xf32>
    %200 = vector.broadcast %199 : vector<32x1xf32> to vector<32x192xf32>
    %201 = vector.broadcast %178 : vector<1x192xf32> to vector<32x192xf32>
    %202 = arith.mulf %200, %201 : vector<32x192xf32>
    %203 = arith.addf %198, %202 : vector<32x192xf32>
    %204 = vector.broadcast %179 : vector<1x192xf32> to vector<32x192xf32>
    %205 = arith.addf %203, %204 : vector<32x192xf32>
    %c0_52 = arith.constant 0 : index
    %c1_53 = arith.constant 1 : index
    %c0_54 = arith.constant 0 : index
    %206 = vector.load %arg11[%c0_52, %c1_53, %c0_54] : memref<32x2x192xf32, #tpu.memory_space<vmem>>, vector<32x1x192xf32>
    %207 = vector.shape_cast %206 : vector<32x1x192xf32> to vector<32x192xf32>
    %208 = vector.shape_cast %205 : vector<32x192xf32> to vector<32x1x192xf32>
    tpu.vector_store %arg11[%c0_52, %c1_53, %c0_54], %208 {strides = array<i32>} : memref<32x2x192xf32, #tpu.memory_space<vmem>>, vector<32x1x192xf32>,
    %c0_55 = arith.constant 0 : index
    %c0_56 = arith.constant 0 : index
    %209 = vector.load %arg6[%c0_55, %c0_56] : memref<64x192xbf16, #tpu.memory_space<vmem>>, vector<64x192xbf16>
    %cst_57 = arith.constant 0.000000e+00 : f32
    %210 = vector.broadcast %cst_57 : f32 to vector<2x64xf32>
    %c0_58 = arith.constant 0 : index
    %c0_59 = arith.constant 0 : index
    %c0_60 = arith.constant 0 : index
    %211 = vector.load %arg11[%c0_58, %c0_59, %c0_60] : memref<32x2x192xf32, #tpu.memory_space<vmem>>, vector<1x2x192xf32>
    %212 = vector.shape_cast %211 : vector<1x2x192xf32> to vector<2x192xf32>
    %213 = arith.truncf %210 : vector<2x64xf32> to vector<2x64xbf16>
    %cst_61 = arith.constant dense<0.000000e+00> : vector<2x192xf32>
    %214 = tpu.matmul %213, %209, %cst_61 {dimension_numbers = #tpu.dot_dimension_numbers<[1], [0], [0], [1], [0, 0, 1, 1], [], []>} : vector<2x64xbf16>, vector<64x192xbf16>, vector<2x192xf32> -> vector<2x192xf32>
    %215 = vector.extract_strided_slice %212 {offsets = [0, 0], sizes = [2, 128], strides = [1, 1]} : vector<2x192xf32> to vector<2x128xf32>
    %216 = vector.extract_strided_slice %214 {offsets = [0, 0], sizes = [2, 128], strides = [1, 1]} : vector<2x192xf32> to vector<2x128xf32>
    %217 = arith.addf %215, %216 : vector<2x128xf32>
    %218 = arith.negf %217 : vector<2x128xf32>
    %219 = math.exp %218 : vector<2x128xf32>
    %cst_62 = arith.constant 1.000000e+00 : f32
    %220 = vector.broadcast %cst_62 : f32 to vector<2x128xf32>
    %221 = arith.addf %220, %219 : vector<2x128xf32>
    %222 = arith.divf %220, %221 : vector<2x128xf32>
    %223 = vector.extract_strided_slice %222 {offsets = [0, 0], sizes = [2, 64], strides = [1, 1]} : vector<2x128xf32> to vector<2x64xf32>
    %224 = vector.extract_strided_slice %222 {offsets = [0, 64], sizes = [2, 64], strides = [1, 1]} : vector<2x128xf32> to vector<2x64xf32>
    %225 = vector.extract_strided_slice %212 {offsets = [0, 128], sizes = [2, 64], strides = [1, 1]} : vector<2x192xf32> to vector<2x64xf32>
    %226 = vector.extract_strided_slice %214 {offsets = [0, 128], sizes = [2, 64], strides = [1, 1]} : vector<2x192xf32> to vector<2x64xf32>
    %227 = vector.broadcast %180 : vector<1x64xf32> to vector<2x64xf32>
    %228 = arith.addf %226, %227 : vector<2x64xf32>
    %229 = arith.mulf %223, %228 : vector<2x64xf32>
    %230 = arith.addf %225, %229 : vector<2x64xf32>
    %231 = math.tanh %230 : vector<2x64xf32>
    %cst_63 = arith.constant 1.000000e+00 : f32
    %232 = vector.broadcast %cst_63 : f32 to vector<2x64xf32>
    %233 = arith.subf %232, %224 : vector<2x64xf32>
    %234 = arith.mulf %233, %231 : vector<2x64xf32>
    %235 = arith.mulf %224, %210 : vector<2x64xf32>
    %236 = arith.addf %234, %235 : vector<2x64xf32>
    %c0_64 = arith.constant 0 : index
    %c0_65 = arith.constant 0 : index
    %237 = vector.load %arg12[%c0_64, %c0_65] : memref<64x64xf32, #tpu.memory_space<vmem>>, vector<2x64xf32>
    tpu.vector_store %arg12[%c0_64, %c0_65], %236 {strides = array<i32>} : memref<64x64xf32, #tpu.memory_space<vmem>>, vector<2x64xf32>,
    %c1_66 = arith.constant 1 : index
    %c0_67 = arith.constant 0 : index
    %c0_68 = arith.constant 0 : index
    %238 = vector.load %arg11[%c1_66, %c0_67, %c0_68] : memref<32x2x192xf32, #tpu.memory_space<vmem>>, vector<1x2x192xf32>
    %239 = vector.shape_cast %238 : vector<1x2x192xf32> to vector<2x192xf32>
    %240 = arith.truncf %236 : vector<2x64xf32> to vector<2x64xbf16>
    %cst_69 = arith.constant dense<0.000000e+00> : vector<2x192xf32>
    %241 = tpu.matmul %240, %209, %cst_69 {dimension_numbers = #tpu.dot_dimension_numbers<[1], [0], [0], [1], [0, 0, 1, 1], [], []>} : vector<2x64xbf16>, vector<64x192xbf16>, vector<2x192xf32> -> vector<2x192xf32>
    %242 = vector.extract_strided_slice %239 {offsets = [0, 0], sizes = [2, 128], strides = [1, 1]} : vector<2x192xf32> to vector<2x128xf32>
    %243 = vector.extract_strided_slice %241 {offsets = [0, 0], sizes = [2, 128], strides = [1, 1]} : vector<2x192xf32> to vector<2x128xf32>
    %244 = arith.addf %242, %243 : vector<2x128xf32>
    %245 = arith.negf %244 : vector<2x128xf32>
    %246 = math.exp %245 : vector<2x128xf32>
    %cst_70 = arith.constant 1.000000e+00 : f32
    %247 = vector.broadcast %cst_70 : f32 to vector<2x128xf32>
    %248 = arith.addf %247, %246 : vector<2x128xf32>
    %249 = arith.divf %247, %248 : vector<2x128xf32>
    %250 = vector.extract_strided_slice %249 {offsets = [0, 0], sizes = [2, 64], strides = [1, 1]} : vector<2x128xf32> to vector<2x64xf32>
    %251 = vector.extract_strided_slice %249 {offsets = [0, 64], sizes = [2, 64], strides = [1, 1]} : vector<2x128xf32> to vector<2x64xf32>
    %252 = vector.extract_strided_slice %239 {offsets = [0, 128], sizes = [2, 64], strides = [1, 1]} : vector<2x192xf32> to vector<2x64xf32>
    %253 = vector.extract_strided_slice %241 {offsets = [0, 128], sizes = [2, 64], strides = [1, 1]} : vector<2x192xf32> to vector<2x64xf32>
    %254 = vector.broadcast %180 : vector<1x64xf32> to vector<2x64xf32>
    %255 = arith.addf %253, %254 : vector<2x64xf32>
    %256 = arith.mulf %250, %255 : vector<2x64xf32>
    %257 = arith.addf %252, %256 : vector<2x64xf32>
    %258 = math.tanh %257 : vector<2x64xf32>
    %cst_71 = arith.constant 1.000000e+00 : f32
    %259 = vector.broadcast %cst_71 : f32 to vector<2x64xf32>
    %260 = arith.subf %259, %251 : vector<2x64xf32>
    %261 = arith.mulf %260, %258 : vector<2x64xf32>
    %262 = arith.mulf %251, %236 : vector<2x64xf32>
    %263 = arith.addf %261, %262 : vector<2x64xf32>
    %c2_72 = arith.constant 2 : index
    %c0_73 = arith.constant 0 : index
    %264 = vector.load %arg12[%c2_72, %c0_73] : memref<64x64xf32, #tpu.memory_space<vmem>>, vector<2x64xf32>
    tpu.vector_store %arg12[%c2_72, %c0_73], %263 {strides = array<i32>} : memref<64x64xf32, #tpu.memory_space<vmem>>, vector<2x64xf32>,
    %c2_74 = arith.constant 2 : index
    %c0_75 = arith.constant 0 : index
    %c0_76 = arith.constant 0 : index
    %265 = vector.load %arg11[%c2_74, %c0_75, %c0_76] : memref<32x2x192xf32, #tpu.memory_space<vmem>>, vector<1x2x192xf32>
    %266 = vector.shape_cast %265 : vector<1x2x192xf32> to vector<2x192xf32>
    %267 = arith.truncf %263 : vector<2x64xf32> to vector<2x64xbf16>
    %cst_77 = arith.constant dense<0.000000e+00> : vector<2x192xf32>
    %268 = tpu.matmul %267, %209, %cst_77 {dimension_numbers = #tpu.dot_dimension_numbers<[1], [0], [0], [1], [0, 0, 1, 1], [], []>} : vector<2x64xbf16>, vector<64x192xbf16>, vector<2x192xf32> -> vector<2x192xf32>
    %269 = vector.extract_strided_slice %266 {offsets = [0, 0], sizes = [2, 128], strides = [1, 1]} : vector<2x192xf32> to vector<2x128xf32>
    %270 = vector.extract_strided_slice %268 {offsets = [0, 0], sizes = [2, 128], strides = [1, 1]} : vector<2x192xf32> to vector<2x128xf32>
    %271 = arith.addf %269, %270 : vector<2x128xf32>
    %272 = arith.negf %271 : vector<2x128xf32>
    %273 = math.exp %272 : vector<2x128xf32>
    %cst_78 = arith.constant 1.000000e+00 : f32
    %274 = vector.broadcast %cst_78 : f32 to vector<2x128xf32>
    %275 = arith.addf %274, %273 : vector<2x128xf32>
    %276 = arith.divf %274, %275 : vector<2x128xf32>
    %277 = vector.extract_strided_slice %276 {offsets = [0, 0], sizes = [2, 64], strides = [1, 1]} : vector<2x128xf32> to vector<2x64xf32>
    %278 = vector.extract_strided_slice %276 {offsets = [0, 64], sizes = [2, 64], strides = [1, 1]} : vector<2x128xf32> to vector<2x64xf32>
    %279 = vector.extract_strided_slice %266 {offsets = [0, 128], sizes = [2, 64], strides = [1, 1]} : vector<2x192xf32> to vector<2x64xf32>
    %280 = vector.extract_strided_slice %268 {offsets = [0, 128], sizes = [2, 64], strides = [1, 1]} : vector<2x192xf32> to vector<2x64xf32>
    %281 = vector.broadcast %180 : vector<1x64xf32> to vector<2x64xf32>
    %282 = arith.addf %280, %281 : vector<2x64xf32>
    %283 = arith.mulf %277, %282 : vector<2x64xf32>
    %284 = arith.addf %279, %283 : vector<2x64xf32>
    %285 = math.tanh %284 : vector<2x64xf32>
    %cst_79 = arith.constant 1.000000e+00 : f32
    %286 = vector.broadcast %cst_79 : f32 to vector<2x64xf32>
    %287 = arith.subf %286, %278 : vector<2x64xf32>
    %288 = arith.mulf %287, %285 : vector<2x64xf32>
    %289 = arith.mulf %278, %263 : vector<2x64xf32>
    %290 = arith.addf %288, %289 : vector<2x64xf32>
    %c4 = arith.constant 4 : index
    %c0_80 = arith.constant 0 : index
    %291 = vector.load %arg12[%c4, %c0_80] : memref<64x64xf32, #tpu.memory_space<vmem>>, vector<2x64xf32>
    tpu.vector_store %arg12[%c4, %c0_80], %290 {strides = array<i32>} : memref<64x64xf32, #tpu.memory_space<vmem>>, vector<2x64xf32>,
    %c3_81 = arith.constant 3 : index
    %c0_82 = arith.constant 0 : index
    %c0_83 = arith.constant 0 : index
    %292 = vector.load %arg11[%c3_81, %c0_82, %c0_83] : memref<32x2x192xf32, #tpu.memory_space<vmem>>, vector<1x2x192xf32>
    %293 = vector.shape_cast %292 : vector<1x2x192xf32> to vector<2x192xf32>
    %294 = arith.truncf %290 : vector<2x64xf32> to vector<2x64xbf16>
    %cst_84 = arith.constant dense<0.000000e+00> : vector<2x192xf32>
    %295 = tpu.matmul %294, %209, %cst_84 {dimension_numbers = #tpu.dot_dimension_numbers<[1], [0], [0], [1], [0, 0, 1, 1], [], []>} : vector<2x64xbf16>, vector<64x192xbf16>, vector<2x192xf32> -> vector<2x192xf32>
    %296 = vector.extract_strided_slice %293 {offsets = [0, 0], sizes = [2, 128], strides = [1, 1]} : vector<2x192xf32> to vector<2x128xf32>
    %297 = vector.extract_strided_slice %295 {offsets = [0, 0], sizes = [2, 128], strides = [1, 1]} : vector<2x192xf32> to vector<2x128xf32>
    %298 = arith.addf %296, %297 : vector<2x128xf32>
    %299 = arith.negf %298 : vector<2x128xf32>
    %300 = math.exp %299 : vector<2x128xf32>
    %cst_85 = arith.constant 1.000000e+00 : f32
    %301 = vector.broadcast %cst_85 : f32 to vector<2x128xf32>
    %302 = arith.addf %301, %300 : vector<2x128xf32>
    %303 = arith.divf %301, %302 : vector<2x128xf32>
    %304 = vector.extract_strided_slice %303 {offsets = [0, 0], sizes = [2, 64], strides = [1, 1]} : vector<2x128xf32> to vector<2x64xf32>
    %305 = vector.extract_strided_slice %303 {offsets = [0, 64], sizes = [2, 64], strides = [1, 1]} : vector<2x128xf32> to vector<2x64xf32>
    %306 = vector.extract_strided_slice %293 {offsets = [0, 128], sizes = [2, 64], strides = [1, 1]} : vector<2x192xf32> to vector<2x64xf32>
    %307 = vector.extract_strided_slice %295 {offsets = [0, 128], sizes = [2, 64], strides = [1, 1]} : vector<2x192xf32> to vector<2x64xf32>
    %308 = vector.broadcast %180 : vector<1x64xf32> to vector<2x64xf32>
    %309 = arith.addf %307, %308 : vector<2x64xf32>
    %310 = arith.mulf %304, %309 : vector<2x64xf32>
    %311 = arith.addf %306, %310 : vector<2x64xf32>
    %312 = math.tanh %311 : vector<2x64xf32>
    %cst_86 = arith.constant 1.000000e+00 : f32
    %313 = vector.broadcast %cst_86 : f32 to vector<2x64xf32>
    %314 = arith.subf %313, %305 : vector<2x64xf32>
    %315 = arith.mulf %314, %312 : vector<2x64xf32>
    %316 = arith.mulf %305, %290 : vector<2x64xf32>
    %317 = arith.addf %315, %316 : vector<2x64xf32>
    %c6 = arith.constant 6 : index
    %c0_87 = arith.constant 0 : index
    %318 = vector.load %arg12[%c6, %c0_87] : memref<64x64xf32, #tpu.memory_space<vmem>>, vector<2x64xf32>
    tpu.vector_store %arg12[%c6, %c0_87], %317 {strides = array<i32>} : memref<64x64xf32, #tpu.memory_space<vmem>>, vector<2x64xf32>,
    %c4_88 = arith.constant 4 : index
    %c0_89 = arith.constant 0 : index
    %c0_90 = arith.constant 0 : index
    %319 = vector.load %arg11[%c4_88, %c0_89, %c0_90] : memref<32x2x192xf32, #tpu.memory_space<vmem>>, vector<1x2x192xf32>
    %320 = vector.shape_cast %319 : vector<1x2x192xf32> to vector<2x192xf32>
    %321 = arith.truncf %317 : vector<2x64xf32> to vector<2x64xbf16>
    %cst_91 = arith.constant dense<0.000000e+00> : vector<2x192xf32>
    %322 = tpu.matmul %321, %209, %cst_91 {dimension_numbers = #tpu.dot_dimension_numbers<[1], [0], [0], [1], [0, 0, 1, 1], [], []>} : vector<2x64xbf16>, vector<64x192xbf16>, vector<2x192xf32> -> vector<2x192xf32>
    %323 = vector.extract_strided_slice %320 {offsets = [0, 0], sizes = [2, 128], strides = [1, 1]} : vector<2x192xf32> to vector<2x128xf32>
    %324 = vector.extract_strided_slice %322 {offsets = [0, 0], sizes = [2, 128], strides = [1, 1]} : vector<2x192xf32> to vector<2x128xf32>
    %325 = arith.addf %323, %324 : vector<2x128xf32>
    %326 = arith.negf %325 : vector<2x128xf32>
    %327 = math.exp %326 : vector<2x128xf32>
    %cst_92 = arith.constant 1.000000e+00 : f32
    %328 = vector.broadcast %cst_92 : f32 to vector<2x128xf32>
    %329 = arith.addf %328, %327 : vector<2x128xf32>
    %330 = arith.divf %328, %329 : vector<2x128xf32>
    %331 = vector.extract_strided_slice %330 {offsets = [0, 0], sizes = [2, 64], strides = [1, 1]} : vector<2x128xf32> to vector<2x64xf32>
    %332 = vector.extract_strided_slice %330 {offsets = [0, 64], sizes = [2, 64], strides = [1, 1]} : vector<2x128xf32> to vector<2x64xf32>
    %333 = vector.extract_strided_slice %320 {offsets = [0, 128], sizes = [2, 64], strides = [1, 1]} : vector<2x192xf32> to vector<2x64xf32>
    %334 = vector.extract_strided_slice %322 {offsets = [0, 128], sizes = [2, 64], strides = [1, 1]} : vector<2x192xf32> to vector<2x64xf32>
    %335 = vector.broadcast %180 : vector<1x64xf32> to vector<2x64xf32>
    %336 = arith.addf %334, %335 : vector<2x64xf32>
    %337 = arith.mulf %331, %336 : vector<2x64xf32>
    %338 = arith.addf %333, %337 : vector<2x64xf32>
    %339 = math.tanh %338 : vector<2x64xf32>
    %cst_93 = arith.constant 1.000000e+00 : f32
    %340 = vector.broadcast %cst_93 : f32 to vector<2x64xf32>
    %341 = arith.subf %340, %332 : vector<2x64xf32>
    %342 = arith.mulf %341, %339 : vector<2x64xf32>
    %343 = arith.mulf %332, %317 : vector<2x64xf32>
    %344 = arith.addf %342, %343 : vector<2x64xf32>
    %c8 = arith.constant 8 : index
    %c0_94 = arith.constant 0 : index
    %345 = vector.load %arg12[%c8, %c0_94] : memref<64x64xf32, #tpu.memory_space<vmem>>, vector<2x64xf32>
    tpu.vector_store %arg12[%c8, %c0_94], %344 {strides = array<i32>} : memref<64x64xf32, #tpu.memory_space<vmem>>, vector<2x64xf32>,
    %c5 = arith.constant 5 : index
    %c0_95 = arith.constant 0 : index
    %c0_96 = arith.constant 0 : index
    %346 = vector.load %arg11[%c5, %c0_95, %c0_96] : memref<32x2x192xf32, #tpu.memory_space<vmem>>, vector<1x2x192xf32>
    %347 = vector.shape_cast %346 : vector<1x2x192xf32> to vector<2x192xf32>
    %348 = arith.truncf %344 : vector<2x64xf32> to vector<2x64xbf16>
    %cst_97 = arith.constant dense<0.000000e+00> : vector<2x192xf32>
    %349 = tpu.matmul %348, %209, %cst_97 {dimension_numbers = #tpu.dot_dimension_numbers<[1], [0], [0], [1], [0, 0, 1, 1], [], []>} : vector<2x64xbf16>, vector<64x192xbf16>, vector<2x192xf32> -> vector<2x192xf32>
    %350 = vector.extract_strided_slice %347 {offsets = [0, 0], sizes = [2, 128], strides = [1, 1]} : vector<2x192xf32> to vector<2x128xf32>
    %351 = vector.extract_strided_slice %349 {offsets = [0, 0], sizes = [2, 128], strides = [1, 1]} : vector<2x192xf32> to vector<2x128xf32>
    %352 = arith.addf %350, %351 : vector<2x128xf32>
    %353 = arith.negf %352 : vector<2x128xf32>
    %354 = math.exp %353 : vector<2x128xf32>
    %cst_98 = arith.constant 1.000000e+00 : f32
    %355 = vector.broadcast %cst_98 : f32 to vector<2x128xf32>
    %356 = arith.addf %355, %354 : vector<2x128xf32>
    %357 = arith.divf %355, %356 : vector<2x128xf32>
    %358 = vector.extract_strided_slice %357 {offsets = [0, 0], sizes = [2, 64], strides = [1, 1]} : vector<2x128xf32> to vector<2x64xf32>
    %359 = vector.extract_strided_slice %357 {offsets = [0, 64], sizes = [2, 64], strides = [1, 1]} : vector<2x128xf32> to vector<2x64xf32>
    %360 = vector.extract_strided_slice %347 {offsets = [0, 128], sizes = [2, 64], strides = [1, 1]} : vector<2x192xf32> to vector<2x64xf32>
    %361 = vector.extract_strided_slice %349 {offsets = [0, 128], sizes = [2, 64], strides = [1, 1]} : vector<2x192xf32> to vector<2x64xf32>
    %362 = vector.broadcast %180 : vector<1x64xf32> to vector<2x64xf32>
    %363 = arith.addf %361, %362 : vector<2x64xf32>
    %364 = arith.mulf %358, %363 : vector<2x64xf32>
    %365 = arith.addf %360, %364 : vector<2x64xf32>
    %366 = math.tanh %365 : vector<2x64xf32>
    %cst_99 = arith.constant 1.000000e+00 : f32
    %367 = vector.broadcast %cst_99 : f32 to vector<2x64xf32>
    %368 = arith.subf %367, %359 : vector<2x64xf32>
    %369 = arith.mulf %368, %366 : vector<2x64xf32>
    %370 = arith.mulf %359, %344 : vector<2x64xf32>
    %371 = arith.addf %369, %370 : vector<2x64xf32>
    %c10 = arith.constant 10 : index
    %c0_100 = arith.constant 0 : index
    %372 = vector.load %arg12[%c10, %c0_100] : memref<64x64xf32, #tpu.memory_space<vmem>>, vector<2x64xf32>
    tpu.vector_store %arg12[%c10, %c0_100], %371 {strides = array<i32>} : memref<64x64xf32, #tpu.memory_space<vmem>>, vector<2x64xf32>,
    %c6_101 = arith.constant 6 : index
    %c0_102 = arith.constant 0 : index
    %c0_103 = arith.constant 0 : index
    %373 = vector.load %arg11[%c6_101, %c0_102, %c0_103] : memref<32x2x192xf32, #tpu.memory_space<vmem>>, vector<1x2x192xf32>
    %374 = vector.shape_cast %373 : vector<1x2x192xf32> to vector<2x192xf32>
    %375 = arith.truncf %371 : vector<2x64xf32> to vector<2x64xbf16>
    %cst_104 = arith.constant dense<0.000000e+00> : vector<2x192xf32>
    %376 = tpu.matmul %375, %209, %cst_104 {dimension_numbers = #tpu.dot_dimension_numbers<[1], [0], [0], [1], [0, 0, 1, 1], [], []>} : vector<2x64xbf16>, vector<64x192xbf16>, vector<2x192xf32> -> vector<2x192xf32>
    %377 = vector.extract_strided_slice %374 {offsets = [0, 0], sizes = [2, 128], strides = [1, 1]} : vector<2x192xf32> to vector<2x128xf32>
    %378 = vector.extract_strided_slice %376 {offsets = [0, 0], sizes = [2, 128], strides = [1, 1]} : vector<2x192xf32> to vector<2x128xf32>
    %379 = arith.addf %377, %378 : vector<2x128xf32>
    %380 = arith.negf %379 : vector<2x128xf32>
    %381 = math.exp %380 : vector<2x128xf32>
    %cst_105 = arith.constant 1.000000e+00 : f32
    %382 = vector.broadcast %cst_105 : f32 to vector<2x128xf32>
    %383 = arith.addf %382, %381 : vector<2x128xf32>
    %384 = arith.divf %382, %383 : vector<2x128xf32>
    %385 = vector.extract_strided_slice %384 {offsets = [0, 0], sizes = [2, 64], strides = [1, 1]} : vector<2x128xf32> to vector<2x64xf32>
    %386 = vector.extract_strided_slice %384 {offsets = [0, 64], sizes = [2, 64], strides = [1, 1]} : vector<2x128xf32> to vector<2x64xf32>
    %387 = vector.extract_strided_slice %374 {offsets = [0, 128], sizes = [2, 64], strides = [1, 1]} : vector<2x192xf32> to vector<2x64xf32>
    %388 = vector.extract_strided_slice %376 {offsets = [0, 128], sizes = [2, 64], strides = [1, 1]} : vector<2x192xf32> to vector<2x64xf32>
    %389 = vector.broadcast %180 : vector<1x64xf32> to vector<2x64xf32>
    %390 = arith.addf %388, %389 : vector<2x64xf32>
    %391 = arith.mulf %385, %390 : vector<2x64xf32>
    %392 = arith.addf %387, %391 : vector<2x64xf32>
    %393 = math.tanh %392 : vector<2x64xf32>
    %cst_106 = arith.constant 1.000000e+00 : f32
    %394 = vector.broadcast %cst_106 : f32 to vector<2x64xf32>
    %395 = arith.subf %394, %386 : vector<2x64xf32>
    %396 = arith.mulf %395, %393 : vector<2x64xf32>
    %397 = arith.mulf %386, %371 : vector<2x64xf32>
    %398 = arith.addf %396, %397 : vector<2x64xf32>
    %c12 = arith.constant 12 : index
    %c0_107 = arith.constant 0 : index
    %399 = vector.load %arg12[%c12, %c0_107] : memref<64x64xf32, #tpu.memory_space<vmem>>, vector<2x64xf32>
    tpu.vector_store %arg12[%c12, %c0_107], %398 {strides = array<i32>} : memref<64x64xf32, #tpu.memory_space<vmem>>, vector<2x64xf32>,
    %c7 = arith.constant 7 : index
    %c0_108 = arith.constant 0 : index
    %c0_109 = arith.constant 0 : index
    %400 = vector.load %arg11[%c7, %c0_108, %c0_109] : memref<32x2x192xf32, #tpu.memory_space<vmem>>, vector<1x2x192xf32>
    %401 = vector.shape_cast %400 : vector<1x2x192xf32> to vector<2x192xf32>
    %402 = arith.truncf %398 : vector<2x64xf32> to vector<2x64xbf16>
    %cst_110 = arith.constant dense<0.000000e+00> : vector<2x192xf32>
    %403 = tpu.matmul %402, %209, %cst_110 {dimension_numbers = #tpu.dot_dimension_numbers<[1], [0], [0], [1], [0, 0, 1, 1], [], []>} : vector<2x64xbf16>, vector<64x192xbf16>, vector<2x192xf32> -> vector<2x192xf32>
    %404 = vector.extract_strided_slice %401 {offsets = [0, 0], sizes = [2, 128], strides = [1, 1]} : vector<2x192xf32> to vector<2x128xf32>
    %405 = vector.extract_strided_slice %403 {offsets = [0, 0], sizes = [2, 128], strides = [1, 1]} : vector<2x192xf32> to vector<2x128xf32>
    %406 = arith.addf %404, %405 : vector<2x128xf32>
    %407 = arith.negf %406 : vector<2x128xf32>
    %408 = math.exp %407 : vector<2x128xf32>
    %cst_111 = arith.constant 1.000000e+00 : f32
    %409 = vector.broadcast %cst_111 : f32 to vector<2x128xf32>
    %410 = arith.addf %409, %408 : vector<2x128xf32>
    %411 = arith.divf %409, %410 : vector<2x128xf32>
    %412 = vector.extract_strided_slice %411 {offsets = [0, 0], sizes = [2, 64], strides = [1, 1]} : vector<2x128xf32> to vector<2x64xf32>
    %413 = vector.extract_strided_slice %411 {offsets = [0, 64], sizes = [2, 64], strides = [1, 1]} : vector<2x128xf32> to vector<2x64xf32>
    %414 = vector.extract_strided_slice %401 {offsets = [0, 128], sizes = [2, 64], strides = [1, 1]} : vector<2x192xf32> to vector<2x64xf32>
    %415 = vector.extract_strided_slice %403 {offsets = [0, 128], sizes = [2, 64], strides = [1, 1]} : vector<2x192xf32> to vector<2x64xf32>
    %416 = vector.broadcast %180 : vector<1x64xf32> to vector<2x64xf32>
    %417 = arith.addf %415, %416 : vector<2x64xf32>
    %418 = arith.mulf %412, %417 : vector<2x64xf32>
    %419 = arith.addf %414, %418 : vector<2x64xf32>
    %420 = math.tanh %419 : vector<2x64xf32>
    %cst_112 = arith.constant 1.000000e+00 : f32
    %421 = vector.broadcast %cst_112 : f32 to vector<2x64xf32>
    %422 = arith.subf %421, %413 : vector<2x64xf32>
    %423 = arith.mulf %422, %420 : vector<2x64xf32>
    %424 = arith.mulf %413, %398 : vector<2x64xf32>
    %425 = arith.addf %423, %424 : vector<2x64xf32>
    %c14 = arith.constant 14 : index
    %c0_113 = arith.constant 0 : index
    %426 = vector.load %arg12[%c14, %c0_113] : memref<64x64xf32, #tpu.memory_space<vmem>>, vector<2x64xf32>
    tpu.vector_store %arg12[%c14, %c0_113], %425 {strides = array<i32>} : memref<64x64xf32, #tpu.memory_space<vmem>>, vector<2x64xf32>,
    %c8_114 = arith.constant 8 : index
    %c0_115 = arith.constant 0 : index
    %c0_116 = arith.constant 0 : index
    %427 = vector.load %arg11[%c8_114, %c0_115, %c0_116] : memref<32x2x192xf32, #tpu.memory_space<vmem>>, vector<1x2x192xf32>
    %428 = vector.shape_cast %427 : vector<1x2x192xf32> to vector<2x192xf32>
    %429 = arith.truncf %425 : vector<2x64xf32> to vector<2x64xbf16>
    %cst_117 = arith.constant dense<0.000000e+00> : vector<2x192xf32>
    %430 = tpu.matmul %429, %209, %cst_117 {dimension_numbers = #tpu.dot_dimension_numbers<[1], [0], [0], [1], [0, 0, 1, 1], [], []>} : vector<2x64xbf16>, vector<64x192xbf16>, vector<2x192xf32> -> vector<2x192xf32>
    %431 = vector.extract_strided_slice %428 {offsets = [0, 0], sizes = [2, 128], strides = [1, 1]} : vector<2x192xf32> to vector<2x128xf32>
    %432 = vector.extract_strided_slice %430 {offsets = [0, 0], sizes = [2, 128], strides = [1, 1]} : vector<2x192xf32> to vector<2x128xf32>
    %433 = arith.addf %431, %432 : vector<2x128xf32>
    %434 = arith.negf %433 : vector<2x128xf32>
    %435 = math.exp %434 : vector<2x128xf32>
    %cst_118 = arith.constant 1.000000e+00 : f32
    %436 = vector.broadcast %cst_118 : f32 to vector<2x128xf32>
    %437 = arith.addf %436, %435 : vector<2x128xf32>
    %438 = arith.divf %436, %437 : vector<2x128xf32>
    %439 = vector.extract_strided_slice %438 {offsets = [0, 0], sizes = [2, 64], strides = [1, 1]} : vector<2x128xf32> to vector<2x64xf32>
    %440 = vector.extract_strided_slice %438 {offsets = [0, 64], sizes = [2, 64], strides = [1, 1]} : vector<2x128xf32> to vector<2x64xf32>
    %441 = vector.extract_strided_slice %428 {offsets = [0, 128], sizes = [2, 64], strides = [1, 1]} : vector<2x192xf32> to vector<2x64xf32>
    %442 = vector.extract_strided_slice %430 {offsets = [0, 128], sizes = [2, 64], strides = [1, 1]} : vector<2x192xf32> to vector<2x64xf32>
    %443 = vector.broadcast %180 : vector<1x64xf32> to vector<2x64xf32>
    %444 = arith.addf %442, %443 : vector<2x64xf32>
    %445 = arith.mulf %439, %444 : vector<2x64xf32>
    %446 = arith.addf %441, %445 : vector<2x64xf32>
    %447 = math.tanh %446 : vector<2x64xf32>
    %cst_119 = arith.constant 1.000000e+00 : f32
    %448 = vector.broadcast %cst_119 : f32 to vector<2x64xf32>
    %449 = arith.subf %448, %440 : vector<2x64xf32>
    %450 = arith.mulf %449, %447 : vector<2x64xf32>
    %451 = arith.mulf %440, %425 : vector<2x64xf32>
    %452 = arith.addf %450, %451 : vector<2x64xf32>
    %c16 = arith.constant 16 : index
    %c0_120 = arith.constant 0 : index
    %453 = vector.load %arg12[%c16, %c0_120] : memref<64x64xf32, #tpu.memory_space<vmem>>, vector<2x64xf32>
    tpu.vector_store %arg12[%c16, %c0_120], %452 {strides = array<i32>} : memref<64x64xf32, #tpu.memory_space<vmem>>, vector<2x64xf32>,
    %c9 = arith.constant 9 : index
    %c0_121 = arith.constant 0 : index
    %c0_122 = arith.constant 0 : index
    %454 = vector.load %arg11[%c9, %c0_121, %c0_122] : memref<32x2x192xf32, #tpu.memory_space<vmem>>, vector<1x2x192xf32>
    %455 = vector.shape_cast %454 : vector<1x2x192xf32> to vector<2x192xf32>
    %456 = arith.truncf %452 : vector<2x64xf32> to vector<2x64xbf16>
    %cst_123 = arith.constant dense<0.000000e+00> : vector<2x192xf32>
    %457 = tpu.matmul %456, %209, %cst_123 {dimension_numbers = #tpu.dot_dimension_numbers<[1], [0], [0], [1], [0, 0, 1, 1], [], []>} : vector<2x64xbf16>, vector<64x192xbf16>, vector<2x192xf32> -> vector<2x192xf32>
    %458 = vector.extract_strided_slice %455 {offsets = [0, 0], sizes = [2, 128], strides = [1, 1]} : vector<2x192xf32> to vector<2x128xf32>
    %459 = vector.extract_strided_slice %457 {offsets = [0, 0], sizes = [2, 128], strides = [1, 1]} : vector<2x192xf32> to vector<2x128xf32>
    %460 = arith.addf %458, %459 : vector<2x128xf32>
    %461 = arith.negf %460 : vector<2x128xf32>
    %462 = math.exp %461 : vector<2x128xf32>
    %cst_124 = arith.constant 1.000000e+00 : f32
    %463 = vector.broadcast %cst_124 : f32 to vector<2x128xf32>
    %464 = arith.addf %463, %462 : vector<2x128xf32>
    %465 = arith.divf %463, %464 : vector<2x128xf32>
    %466 = vector.extract_strided_slice %465 {offsets = [0, 0], sizes = [2, 64], strides = [1, 1]} : vector<2x128xf32> to vector<2x64xf32>
    %467 = vector.extract_strided_slice %465 {offsets = [0, 64], sizes = [2, 64], strides = [1, 1]} : vector<2x128xf32> to vector<2x64xf32>
    %468 = vector.extract_strided_slice %455 {offsets = [0, 128], sizes = [2, 64], strides = [1, 1]} : vector<2x192xf32> to vector<2x64xf32>
    %469 = vector.extract_strided_slice %457 {offsets = [0, 128], sizes = [2, 64], strides = [1, 1]} : vector<2x192xf32> to vector<2x64xf32>
    %470 = vector.broadcast %180 : vector<1x64xf32> to vector<2x64xf32>
    %471 = arith.addf %469, %470 : vector<2x64xf32>
    %472 = arith.mulf %466, %471 : vector<2x64xf32>
    %473 = arith.addf %468, %472 : vector<2x64xf32>
    %474 = math.tanh %473 : vector<2x64xf32>
    %cst_125 = arith.constant 1.000000e+00 : f32
    %475 = vector.broadcast %cst_125 : f32 to vector<2x64xf32>
    %476 = arith.subf %475, %467 : vector<2x64xf32>
    %477 = arith.mulf %476, %474 : vector<2x64xf32>
    %478 = arith.mulf %467, %452 : vector<2x64xf32>
    %479 = arith.addf %477, %478 : vector<2x64xf32>
    %c18 = arith.constant 18 : index
    %c0_126 = arith.constant 0 : index
    %480 = vector.load %arg12[%c18, %c0_126] : memref<64x64xf32, #tpu.memory_space<vmem>>, vector<2x64xf32>
    tpu.vector_store %arg12[%c18, %c0_126], %479 {strides = array<i32>} : memref<64x64xf32, #tpu.memory_space<vmem>>, vector<2x64xf32>,
    %c10_127 = arith.constant 10 : index
    %c0_128 = arith.constant 0 : index
    %c0_129 = arith.constant 0 : index
    %481 = vector.load %arg11[%c10_127, %c0_128, %c0_129] : memref<32x2x192xf32, #tpu.memory_space<vmem>>, vector<1x2x192xf32>
    %482 = vector.shape_cast %481 : vector<1x2x192xf32> to vector<2x192xf32>
    %483 = arith.truncf %479 : vector<2x64xf32> to vector<2x64xbf16>
    %cst_130 = arith.constant dense<0.000000e+00> : vector<2x192xf32>
    %484 = tpu.matmul %483, %209, %cst_130 {dimension_numbers = #tpu.dot_dimension_numbers<[1], [0], [0], [1], [0, 0, 1, 1], [], []>} : vector<2x64xbf16>, vector<64x192xbf16>, vector<2x192xf32> -> vector<2x192xf32>
    %485 = vector.extract_strided_slice %482 {offsets = [0, 0], sizes = [2, 128], strides = [1, 1]} : vector<2x192xf32> to vector<2x128xf32>
    %486 = vector.extract_strided_slice %484 {offsets = [0, 0], sizes = [2, 128], strides = [1, 1]} : vector<2x192xf32> to vector<2x128xf32>
    %487 = arith.addf %485, %486 : vector<2x128xf32>
    %488 = arith.negf %487 : vector<2x128xf32>
    %489 = math.exp %488 : vector<2x128xf32>
    %cst_131 = arith.constant 1.000000e+00 : f32
    %490 = vector.broadcast %cst_131 : f32 to vector<2x128xf32>
    %491 = arith.addf %490, %489 : vector<2x128xf32>
    %492 = arith.divf %490, %491 : vector<2x128xf32>
    %493 = vector.extract_strided_slice %492 {offsets = [0, 0], sizes = [2, 64], strides = [1, 1]} : vector<2x128xf32> to vector<2x64xf32>
    %494 = vector.extract_strided_slice %492 {offsets = [0, 64], sizes = [2, 64], strides = [1, 1]} : vector<2x128xf32> to vector<2x64xf32>
    %495 = vector.extract_strided_slice %482 {offsets = [0, 128], sizes = [2, 64], strides = [1, 1]} : vector<2x192xf32> to vector<2x64xf32>
    %496 = vector.extract_strided_slice %484 {offsets = [0, 128], sizes = [2, 64], strides = [1, 1]} : vector<2x192xf32> to vector<2x64xf32>
    %497 = vector.broadcast %180 : vector<1x64xf32> to vector<2x64xf32>
    %498 = arith.addf %496, %497 : vector<2x64xf32>
    %499 = arith.mulf %493, %498 : vector<2x64xf32>
    %500 = arith.addf %495, %499 : vector<2x64xf32>
    %501 = math.tanh %500 : vector<2x64xf32>
    %cst_132 = arith.constant 1.000000e+00 : f32
    %502 = vector.broadcast %cst_132 : f32 to vector<2x64xf32>
    %503 = arith.subf %502, %494 : vector<2x64xf32>
    %504 = arith.mulf %503, %501 : vector<2x64xf32>
    %505 = arith.mulf %494, %479 : vector<2x64xf32>
    %506 = arith.addf %504, %505 : vector<2x64xf32>
    %c20 = arith.constant 20 : index
    %c0_133 = arith.constant 0 : index
    %507 = vector.load %arg12[%c20, %c0_133] : memref<64x64xf32, #tpu.memory_space<vmem>>, vector<2x64xf32>
    tpu.vector_store %arg12[%c20, %c0_133], %506 {strides = array<i32>} : memref<64x64xf32, #tpu.memory_space<vmem>>, vector<2x64xf32>,
    %c11 = arith.constant 11 : index
    %c0_134 = arith.constant 0 : index
    %c0_135 = arith.constant 0 : index
    %508 = vector.load %arg11[%c11, %c0_134, %c0_135] : memref<32x2x192xf32, #tpu.memory_space<vmem>>, vector<1x2x192xf32>
    %509 = vector.shape_cast %508 : vector<1x2x192xf32> to vector<2x192xf32>
    %510 = arith.truncf %506 : vector<2x64xf32> to vector<2x64xbf16>
    %cst_136 = arith.constant dense<0.000000e+00> : vector<2x192xf32>
    %511 = tpu.matmul %510, %209, %cst_136 {dimension_numbers = #tpu.dot_dimension_numbers<[1], [0], [0], [1], [0, 0, 1, 1], [], []>} : vector<2x64xbf16>, vector<64x192xbf16>, vector<2x192xf32> -> vector<2x192xf32>
    %512 = vector.extract_strided_slice %509 {offsets = [0, 0], sizes = [2, 128], strides = [1, 1]} : vector<2x192xf32> to vector<2x128xf32>
    %513 = vector.extract_strided_slice %511 {offsets = [0, 0], sizes = [2, 128], strides = [1, 1]} : vector<2x192xf32> to vector<2x128xf32>
    %514 = arith.addf %512, %513 : vector<2x128xf32>
    %515 = arith.negf %514 : vector<2x128xf32>
    %516 = math.exp %515 : vector<2x128xf32>
    %cst_137 = arith.constant 1.000000e+00 : f32
    %517 = vector.broadcast %cst_137 : f32 to vector<2x128xf32>
    %518 = arith.addf %517, %516 : vector<2x128xf32>
    %519 = arith.divf %517, %518 : vector<2x128xf32>
    %520 = vector.extract_strided_slice %519 {offsets = [0, 0], sizes = [2, 64], strides = [1, 1]} : vector<2x128xf32> to vector<2x64xf32>
    %521 = vector.extract_strided_slice %519 {offsets = [0, 64], sizes = [2, 64], strides = [1, 1]} : vector<2x128xf32> to vector<2x64xf32>
    %522 = vector.extract_strided_slice %509 {offsets = [0, 128], sizes = [2, 64], strides = [1, 1]} : vector<2x192xf32> to vector<2x64xf32>
    %523 = vector.extract_strided_slice %511 {offsets = [0, 128], sizes = [2, 64], strides = [1, 1]} : vector<2x192xf32> to vector<2x64xf32>
    %524 = vector.broadcast %180 : vector<1x64xf32> to vector<2x64xf32>
    %525 = arith.addf %523, %524 : vector<2x64xf32>
    %526 = arith.mulf %520, %525 : vector<2x64xf32>
    %527 = arith.addf %522, %526 : vector<2x64xf32>
    %528 = math.tanh %527 : vector<2x64xf32>
    %cst_138 = arith.constant 1.000000e+00 : f32
    %529 = vector.broadcast %cst_138 : f32 to vector<2x64xf32>
    %530 = arith.subf %529, %521 : vector<2x64xf32>
    %531 = arith.mulf %530, %528 : vector<2x64xf32>
    %532 = arith.mulf %521, %506 : vector<2x64xf32>
    %533 = arith.addf %531, %532 : vector<2x64xf32>
    %c22 = arith.constant 22 : index
    %c0_139 = arith.constant 0 : index
    %534 = vector.load %arg12[%c22, %c0_139] : memref<64x64xf32, #tpu.memory_space<vmem>>, vector<2x64xf32>
    tpu.vector_store %arg12[%c22, %c0_139], %533 {strides = array<i32>} : memref<64x64xf32, #tpu.memory_space<vmem>>, vector<2x64xf32>,
    %c12_140 = arith.constant 12 : index
    %c0_141 = arith.constant 0 : index
    %c0_142 = arith.constant 0 : index
    %535 = vector.load %arg11[%c12_140, %c0_141, %c0_142] : memref<32x2x192xf32, #tpu.memory_space<vmem>>, vector<1x2x192xf32>
    %536 = vector.shape_cast %535 : vector<1x2x192xf32> to vector<2x192xf32>
    %537 = arith.truncf %533 : vector<2x64xf32> to vector<2x64xbf16>
    %cst_143 = arith.constant dense<0.000000e+00> : vector<2x192xf32>
    %538 = tpu.matmul %537, %209, %cst_143 {dimension_numbers = #tpu.dot_dimension_numbers<[1], [0], [0], [1], [0, 0, 1, 1], [], []>} : vector<2x64xbf16>, vector<64x192xbf16>, vector<2x192xf32> -> vector<2x192xf32>
    %539 = vector.extract_strided_slice %536 {offsets = [0, 0], sizes = [2, 128], strides = [1, 1]} : vector<2x192xf32> to vector<2x128xf32>
    %540 = vector.extract_strided_slice %538 {offsets = [0, 0], sizes = [2, 128], strides = [1, 1]} : vector<2x192xf32> to vector<2x128xf32>
    %541 = arith.addf %539, %540 : vector<2x128xf32>
    %542 = arith.negf %541 : vector<2x128xf32>
    %543 = math.exp %542 : vector<2x128xf32>
    %cst_144 = arith.constant 1.000000e+00 : f32
    %544 = vector.broadcast %cst_144 : f32 to vector<2x128xf32>
    %545 = arith.addf %544, %543 : vector<2x128xf32>
    %546 = arith.divf %544, %545 : vector<2x128xf32>
    %547 = vector.extract_strided_slice %546 {offsets = [0, 0], sizes = [2, 64], strides = [1, 1]} : vector<2x128xf32> to vector<2x64xf32>
    %548 = vector.extract_strided_slice %546 {offsets = [0, 64], sizes = [2, 64], strides = [1, 1]} : vector<2x128xf32> to vector<2x64xf32>
    %549 = vector.extract_strided_slice %536 {offsets = [0, 128], sizes = [2, 64], strides = [1, 1]} : vector<2x192xf32> to vector<2x64xf32>
    %550 = vector.extract_strided_slice %538 {offsets = [0, 128], sizes = [2, 64], strides = [1, 1]} : vector<2x192xf32> to vector<2x64xf32>
    %551 = vector.broadcast %180 : vector<1x64xf32> to vector<2x64xf32>
    %552 = arith.addf %550, %551 : vector<2x64xf32>
    %553 = arith.mulf %547, %552 : vector<2x64xf32>
    %554 = arith.addf %549, %553 : vector<2x64xf32>
    %555 = math.tanh %554 : vector<2x64xf32>
    %cst_145 = arith.constant 1.000000e+00 : f32
    %556 = vector.broadcast %cst_145 : f32 to vector<2x64xf32>
    %557 = arith.subf %556, %548 : vector<2x64xf32>
    %558 = arith.mulf %557, %555 : vector<2x64xf32>
    %559 = arith.mulf %548, %533 : vector<2x64xf32>
    %560 = arith.addf %558, %559 : vector<2x64xf32>
    %c24 = arith.constant 24 : index
    %c0_146 = arith.constant 0 : index
    %561 = vector.load %arg12[%c24, %c0_146] : memref<64x64xf32, #tpu.memory_space<vmem>>, vector<2x64xf32>
    tpu.vector_store %arg12[%c24, %c0_146], %560 {strides = array<i32>} : memref<64x64xf32, #tpu.memory_space<vmem>>, vector<2x64xf32>,
    %c13 = arith.constant 13 : index
    %c0_147 = arith.constant 0 : index
    %c0_148 = arith.constant 0 : index
    %562 = vector.load %arg11[%c13, %c0_147, %c0_148] : memref<32x2x192xf32, #tpu.memory_space<vmem>>, vector<1x2x192xf32>
    %563 = vector.shape_cast %562 : vector<1x2x192xf32> to vector<2x192xf32>
    %564 = arith.truncf %560 : vector<2x64xf32> to vector<2x64xbf16>
    %cst_149 = arith.constant dense<0.000000e+00> : vector<2x192xf32>
    %565 = tpu.matmul %564, %209, %cst_149 {dimension_numbers = #tpu.dot_dimension_numbers<[1], [0], [0], [1], [0, 0, 1, 1], [], []>} : vector<2x64xbf16>, vector<64x192xbf16>, vector<2x192xf32> -> vector<2x192xf32>
    %566 = vector.extract_strided_slice %563 {offsets = [0, 0], sizes = [2, 128], strides = [1, 1]} : vector<2x192xf32> to vector<2x128xf32>
    %567 = vector.extract_strided_slice %565 {offsets = [0, 0], sizes = [2, 128], strides = [1, 1]} : vector<2x192xf32> to vector<2x128xf32>
    %568 = arith.addf %566, %567 : vector<2x128xf32>
    %569 = arith.negf %568 : vector<2x128xf32>
    %570 = math.exp %569 : vector<2x128xf32>
    %cst_150 = arith.constant 1.000000e+00 : f32
    %571 = vector.broadcast %cst_150 : f32 to vector<2x128xf32>
    %572 = arith.addf %571, %570 : vector<2x128xf32>
    %573 = arith.divf %571, %572 : vector<2x128xf32>
    %574 = vector.extract_strided_slice %573 {offsets = [0, 0], sizes = [2, 64], strides = [1, 1]} : vector<2x128xf32> to vector<2x64xf32>
    %575 = vector.extract_strided_slice %573 {offsets = [0, 64], sizes = [2, 64], strides = [1, 1]} : vector<2x128xf32> to vector<2x64xf32>
    %576 = vector.extract_strided_slice %563 {offsets = [0, 128], sizes = [2, 64], strides = [1, 1]} : vector<2x192xf32> to vector<2x64xf32>
    %577 = vector.extract_strided_slice %565 {offsets = [0, 128], sizes = [2, 64], strides = [1, 1]} : vector<2x192xf32> to vector<2x64xf32>
    %578 = vector.broadcast %180 : vector<1x64xf32> to vector<2x64xf32>
    %579 = arith.addf %577, %578 : vector<2x64xf32>
    %580 = arith.mulf %574, %579 : vector<2x64xf32>
    %581 = arith.addf %576, %580 : vector<2x64xf32>
    %582 = math.tanh %581 : vector<2x64xf32>
    %cst_151 = arith.constant 1.000000e+00 : f32
    %583 = vector.broadcast %cst_151 : f32 to vector<2x64xf32>
    %584 = arith.subf %583, %575 : vector<2x64xf32>
    %585 = arith.mulf %584, %582 : vector<2x64xf32>
    %586 = arith.mulf %575, %560 : vector<2x64xf32>
    %587 = arith.addf %585, %586 : vector<2x64xf32>
    %c26 = arith.constant 26 : index
    %c0_152 = arith.constant 0 : index
    %588 = vector.load %arg12[%c26, %c0_152] : memref<64x64xf32, #tpu.memory_space<vmem>>, vector<2x64xf32>
    tpu.vector_store %arg12[%c26, %c0_152], %587 {strides = array<i32>} : memref<64x64xf32, #tpu.memory_space<vmem>>, vector<2x64xf32>,
    %c14_153 = arith.constant 14 : index
    %c0_154 = arith.constant 0 : index
    %c0_155 = arith.constant 0 : index
    %589 = vector.load %arg11[%c14_153, %c0_154, %c0_155] : memref<32x2x192xf32, #tpu.memory_space<vmem>>, vector<1x2x192xf32>
    %590 = vector.shape_cast %589 : vector<1x2x192xf32> to vector<2x192xf32>
    %591 = arith.truncf %587 : vector<2x64xf32> to vector<2x64xbf16>
    %cst_156 = arith.constant dense<0.000000e+00> : vector<2x192xf32>
    %592 = tpu.matmul %591, %209, %cst_156 {dimension_numbers = #tpu.dot_dimension_numbers<[1], [0], [0], [1], [0, 0, 1, 1], [], []>} : vector<2x64xbf16>, vector<64x192xbf16>, vector<2x192xf32> -> vector<2x192xf32>
    %593 = vector.extract_strided_slice %590 {offsets = [0, 0], sizes = [2, 128], strides = [1, 1]} : vector<2x192xf32> to vector<2x128xf32>
    %594 = vector.extract_strided_slice %592 {offsets = [0, 0], sizes = [2, 128], strides = [1, 1]} : vector<2x192xf32> to vector<2x128xf32>
    %595 = arith.addf %593, %594 : vector<2x128xf32>
    %596 = arith.negf %595 : vector<2x128xf32>
    %597 = math.exp %596 : vector<2x128xf32>
    %cst_157 = arith.constant 1.000000e+00 : f32
    %598 = vector.broadcast %cst_157 : f32 to vector<2x128xf32>
    %599 = arith.addf %598, %597 : vector<2x128xf32>
    %600 = arith.divf %598, %599 : vector<2x128xf32>
    %601 = vector.extract_strided_slice %600 {offsets = [0, 0], sizes = [2, 64], strides = [1, 1]} : vector<2x128xf32> to vector<2x64xf32>
    %602 = vector.extract_strided_slice %600 {offsets = [0, 64], sizes = [2, 64], strides = [1, 1]} : vector<2x128xf32> to vector<2x64xf32>
    %603 = vector.extract_strided_slice %590 {offsets = [0, 128], sizes = [2, 64], strides = [1, 1]} : vector<2x192xf32> to vector<2x64xf32>
    %604 = vector.extract_strided_slice %592 {offsets = [0, 128], sizes = [2, 64], strides = [1, 1]} : vector<2x192xf32> to vector<2x64xf32>
    %605 = vector.broadcast %180 : vector<1x64xf32> to vector<2x64xf32>
    %606 = arith.addf %604, %605 : vector<2x64xf32>
    %607 = arith.mulf %601, %606 : vector<2x64xf32>
    %608 = arith.addf %603, %607 : vector<2x64xf32>
    %609 = math.tanh %608 : vector<2x64xf32>
    %cst_158 = arith.constant 1.000000e+00 : f32
    %610 = vector.broadcast %cst_158 : f32 to vector<2x64xf32>
    %611 = arith.subf %610, %602 : vector<2x64xf32>
    %612 = arith.mulf %611, %609 : vector<2x64xf32>
    %613 = arith.mulf %602, %587 : vector<2x64xf32>
    %614 = arith.addf %612, %613 : vector<2x64xf32>
    %c28 = arith.constant 28 : index
    %c0_159 = arith.constant 0 : index
    %615 = vector.load %arg12[%c28, %c0_159] : memref<64x64xf32, #tpu.memory_space<vmem>>, vector<2x64xf32>
    tpu.vector_store %arg12[%c28, %c0_159], %614 {strides = array<i32>} : memref<64x64xf32, #tpu.memory_space<vmem>>, vector<2x64xf32>,
    %c15 = arith.constant 15 : index
    %c0_160 = arith.constant 0 : index
    %c0_161 = arith.constant 0 : index
    %616 = vector.load %arg11[%c15, %c0_160, %c0_161] : memref<32x2x192xf32, #tpu.memory_space<vmem>>, vector<1x2x192xf32>
    %617 = vector.shape_cast %616 : vector<1x2x192xf32> to vector<2x192xf32>
    %618 = arith.truncf %614 : vector<2x64xf32> to vector<2x64xbf16>
    %cst_162 = arith.constant dense<0.000000e+00> : vector<2x192xf32>
    %619 = tpu.matmul %618, %209, %cst_162 {dimension_numbers = #tpu.dot_dimension_numbers<[1], [0], [0], [1], [0, 0, 1, 1], [], []>} : vector<2x64xbf16>, vector<64x192xbf16>, vector<2x192xf32> -> vector<2x192xf32>
    %620 = vector.extract_strided_slice %617 {offsets = [0, 0], sizes = [2, 128], strides = [1, 1]} : vector<2x192xf32> to vector<2x128xf32>
    %621 = vector.extract_strided_slice %619 {offsets = [0, 0], sizes = [2, 128], strides = [1, 1]} : vector<2x192xf32> to vector<2x128xf32>
    %622 = arith.addf %620, %621 : vector<2x128xf32>
    %623 = arith.negf %622 : vector<2x128xf32>
    %624 = math.exp %623 : vector<2x128xf32>
    %cst_163 = arith.constant 1.000000e+00 : f32
    %625 = vector.broadcast %cst_163 : f32 to vector<2x128xf32>
    %626 = arith.addf %625, %624 : vector<2x128xf32>
    %627 = arith.divf %625, %626 : vector<2x128xf32>
    %628 = vector.extract_strided_slice %627 {offsets = [0, 0], sizes = [2, 64], strides = [1, 1]} : vector<2x128xf32> to vector<2x64xf32>
    %629 = vector.extract_strided_slice %627 {offsets = [0, 64], sizes = [2, 64], strides = [1, 1]} : vector<2x128xf32> to vector<2x64xf32>
    %630 = vector.extract_strided_slice %617 {offsets = [0, 128], sizes = [2, 64], strides = [1, 1]} : vector<2x192xf32> to vector<2x64xf32>
    %631 = vector.extract_strided_slice %619 {offsets = [0, 128], sizes = [2, 64], strides = [1, 1]} : vector<2x192xf32> to vector<2x64xf32>
    %632 = vector.broadcast %180 : vector<1x64xf32> to vector<2x64xf32>
    %633 = arith.addf %631, %632 : vector<2x64xf32>
    %634 = arith.mulf %628, %633 : vector<2x64xf32>
    %635 = arith.addf %630, %634 : vector<2x64xf32>
    %636 = math.tanh %635 : vector<2x64xf32>
    %cst_164 = arith.constant 1.000000e+00 : f32
    %637 = vector.broadcast %cst_164 : f32 to vector<2x64xf32>
    %638 = arith.subf %637, %629 : vector<2x64xf32>
    %639 = arith.mulf %638, %636 : vector<2x64xf32>
    %640 = arith.mulf %629, %614 : vector<2x64xf32>
    %641 = arith.addf %639, %640 : vector<2x64xf32>
    %c30 = arith.constant 30 : index
    %c0_165 = arith.constant 0 : index
    %642 = vector.load %arg12[%c30, %c0_165] : memref<64x64xf32, #tpu.memory_space<vmem>>, vector<2x64xf32>
    tpu.vector_store %arg12[%c30, %c0_165], %641 {strides = array<i32>} : memref<64x64xf32, #tpu.memory_space<vmem>>, vector<2x64xf32>,
    %c16_166 = arith.constant 16 : index
    %c0_167 = arith.constant 0 : index
    %c0_168 = arith.constant 0 : index
    %643 = vector.load %arg11[%c16_166, %c0_167, %c0_168] : memref<32x2x192xf32, #tpu.memory_space<vmem>>, vector<1x2x192xf32>
    %644 = vector.shape_cast %643 : vector<1x2x192xf32> to vector<2x192xf32>
    %645 = arith.truncf %641 : vector<2x64xf32> to vector<2x64xbf16>
    %cst_169 = arith.constant dense<0.000000e+00> : vector<2x192xf32>
    %646 = tpu.matmul %645, %209, %cst_169 {dimension_numbers = #tpu.dot_dimension_numbers<[1], [0], [0], [1], [0, 0, 1, 1], [], []>} : vector<2x64xbf16>, vector<64x192xbf16>, vector<2x192xf32> -> vector<2x192xf32>
    %647 = vector.extract_strided_slice %644 {offsets = [0, 0], sizes = [2, 128], strides = [1, 1]} : vector<2x192xf32> to vector<2x128xf32>
    %648 = vector.extract_strided_slice %646 {offsets = [0, 0], sizes = [2, 128], strides = [1, 1]} : vector<2x192xf32> to vector<2x128xf32>
    %649 = arith.addf %647, %648 : vector<2x128xf32>
    %650 = arith.negf %649 : vector<2x128xf32>
    %651 = math.exp %650 : vector<2x128xf32>
    %cst_170 = arith.constant 1.000000e+00 : f32
    %652 = vector.broadcast %cst_170 : f32 to vector<2x128xf32>
    %653 = arith.addf %652, %651 : vector<2x128xf32>
    %654 = arith.divf %652, %653 : vector<2x128xf32>
    %655 = vector.extract_strided_slice %654 {offsets = [0, 0], sizes = [2, 64], strides = [1, 1]} : vector<2x128xf32> to vector<2x64xf32>
    %656 = vector.extract_strided_slice %654 {offsets = [0, 64], sizes = [2, 64], strides = [1, 1]} : vector<2x128xf32> to vector<2x64xf32>
    %657 = vector.extract_strided_slice %644 {offsets = [0, 128], sizes = [2, 64], strides = [1, 1]} : vector<2x192xf32> to vector<2x64xf32>
    %658 = vector.extract_strided_slice %646 {offsets = [0, 128], sizes = [2, 64], strides = [1, 1]} : vector<2x192xf32> to vector<2x64xf32>
    %659 = vector.broadcast %180 : vector<1x64xf32> to vector<2x64xf32>
    %660 = arith.addf %658, %659 : vector<2x64xf32>
    %661 = arith.mulf %655, %660 : vector<2x64xf32>
    %662 = arith.addf %657, %661 : vector<2x64xf32>
    %663 = math.tanh %662 : vector<2x64xf32>
    %cst_171 = arith.constant 1.000000e+00 : f32
    %664 = vector.broadcast %cst_171 : f32 to vector<2x64xf32>
    %665 = arith.subf %664, %656 : vector<2x64xf32>
    %666 = arith.mulf %665, %663 : vector<2x64xf32>
    %667 = arith.mulf %656, %641 : vector<2x64xf32>
    %668 = arith.addf %666, %667 : vector<2x64xf32>
    %c32 = arith.constant 32 : index
    %c0_172 = arith.constant 0 : index
    %669 = vector.load %arg12[%c32, %c0_172] : memref<64x64xf32, #tpu.memory_space<vmem>>, vector<2x64xf32>
    tpu.vector_store %arg12[%c32, %c0_172], %668 {strides = array<i32>} : memref<64x64xf32, #tpu.memory_space<vmem>>, vector<2x64xf32>,
    %c17 = arith.constant 17 : index
    %c0_173 = arith.constant 0 : index
    %c0_174 = arith.constant 0 : index
    %670 = vector.load %arg11[%c17, %c0_173, %c0_174] : memref<32x2x192xf32, #tpu.memory_space<vmem>>, vector<1x2x192xf32>
    %671 = vector.shape_cast %670 : vector<1x2x192xf32> to vector<2x192xf32>
    %672 = arith.truncf %668 : vector<2x64xf32> to vector<2x64xbf16>
    %cst_175 = arith.constant dense<0.000000e+00> : vector<2x192xf32>
    %673 = tpu.matmul %672, %209, %cst_175 {dimension_numbers = #tpu.dot_dimension_numbers<[1], [0], [0], [1], [0, 0, 1, 1], [], []>} : vector<2x64xbf16>, vector<64x192xbf16>, vector<2x192xf32> -> vector<2x192xf32>
    %674 = vector.extract_strided_slice %671 {offsets = [0, 0], sizes = [2, 128], strides = [1, 1]} : vector<2x192xf32> to vector<2x128xf32>
    %675 = vector.extract_strided_slice %673 {offsets = [0, 0], sizes = [2, 128], strides = [1, 1]} : vector<2x192xf32> to vector<2x128xf32>
    %676 = arith.addf %674, %675 : vector<2x128xf32>
    %677 = arith.negf %676 : vector<2x128xf32>
    %678 = math.exp %677 : vector<2x128xf32>
    %cst_176 = arith.constant 1.000000e+00 : f32
    %679 = vector.broadcast %cst_176 : f32 to vector<2x128xf32>
    %680 = arith.addf %679, %678 : vector<2x128xf32>
    %681 = arith.divf %679, %680 : vector<2x128xf32>
    %682 = vector.extract_strided_slice %681 {offsets = [0, 0], sizes = [2, 64], strides = [1, 1]} : vector<2x128xf32> to vector<2x64xf32>
    %683 = vector.extract_strided_slice %681 {offsets = [0, 64], sizes = [2, 64], strides = [1, 1]} : vector<2x128xf32> to vector<2x64xf32>
    %684 = vector.extract_strided_slice %671 {offsets = [0, 128], sizes = [2, 64], strides = [1, 1]} : vector<2x192xf32> to vector<2x64xf32>
    %685 = vector.extract_strided_slice %673 {offsets = [0, 128], sizes = [2, 64], strides = [1, 1]} : vector<2x192xf32> to vector<2x64xf32>
    %686 = vector.broadcast %180 : vector<1x64xf32> to vector<2x64xf32>
    %687 = arith.addf %685, %686 : vector<2x64xf32>
    %688 = arith.mulf %682, %687 : vector<2x64xf32>
    %689 = arith.addf %684, %688 : vector<2x64xf32>
    %690 = math.tanh %689 : vector<2x64xf32>
    %cst_177 = arith.constant 1.000000e+00 : f32
    %691 = vector.broadcast %cst_177 : f32 to vector<2x64xf32>
    %692 = arith.subf %691, %683 : vector<2x64xf32>
    %693 = arith.mulf %692, %690 : vector<2x64xf32>
    %694 = arith.mulf %683, %668 : vector<2x64xf32>
    %695 = arith.addf %693, %694 : vector<2x64xf32>
    %c34 = arith.constant 34 : index
    %c0_178 = arith.constant 0 : index
    %696 = vector.load %arg12[%c34, %c0_178] : memref<64x64xf32, #tpu.memory_space<vmem>>, vector<2x64xf32>
    tpu.vector_store %arg12[%c34, %c0_178], %695 {strides = array<i32>} : memref<64x64xf32, #tpu.memory_space<vmem>>, vector<2x64xf32>,
    %c18_179 = arith.constant 18 : index
    %c0_180 = arith.constant 0 : index
    %c0_181 = arith.constant 0 : index
    %697 = vector.load %arg11[%c18_179, %c0_180, %c0_181] : memref<32x2x192xf32, #tpu.memory_space<vmem>>, vector<1x2x192xf32>
    %698 = vector.shape_cast %697 : vector<1x2x192xf32> to vector<2x192xf32>
    %699 = arith.truncf %695 : vector<2x64xf32> to vector<2x64xbf16>
    %cst_182 = arith.constant dense<0.000000e+00> : vector<2x192xf32>
    %700 = tpu.matmul %699, %209, %cst_182 {dimension_numbers = #tpu.dot_dimension_numbers<[1], [0], [0], [1], [0, 0, 1, 1], [], []>} : vector<2x64xbf16>, vector<64x192xbf16>, vector<2x192xf32> -> vector<2x192xf32>
    %701 = vector.extract_strided_slice %698 {offsets = [0, 0], sizes = [2, 128], strides = [1, 1]} : vector<2x192xf32> to vector<2x128xf32>
    %702 = vector.extract_strided_slice %700 {offsets = [0, 0], sizes = [2, 128], strides = [1, 1]} : vector<2x192xf32> to vector<2x128xf32>
    %703 = arith.addf %701, %702 : vector<2x128xf32>
    %704 = arith.negf %703 : vector<2x128xf32>
    %705 = math.exp %704 : vector<2x128xf32>
    %cst_183 = arith.constant 1.000000e+00 : f32
    %706 = vector.broadcast %cst_183 : f32 to vector<2x128xf32>
    %707 = arith.addf %706, %705 : vector<2x128xf32>
    %708 = arith.divf %706, %707 : vector<2x128xf32>
    %709 = vector.extract_strided_slice %708 {offsets = [0, 0], sizes = [2, 64], strides = [1, 1]} : vector<2x128xf32> to vector<2x64xf32>
    %710 = vector.extract_strided_slice %708 {offsets = [0, 64], sizes = [2, 64], strides = [1, 1]} : vector<2x128xf32> to vector<2x64xf32>
    %711 = vector.extract_strided_slice %698 {offsets = [0, 128], sizes = [2, 64], strides = [1, 1]} : vector<2x192xf32> to vector<2x64xf32>
    %712 = vector.extract_strided_slice %700 {offsets = [0, 128], sizes = [2, 64], strides = [1, 1]} : vector<2x192xf32> to vector<2x64xf32>
    %713 = vector.broadcast %180 : vector<1x64xf32> to vector<2x64xf32>
    %714 = arith.addf %712, %713 : vector<2x64xf32>
    %715 = arith.mulf %709, %714 : vector<2x64xf32>
    %716 = arith.addf %711, %715 : vector<2x64xf32>
    %717 = math.tanh %716 : vector<2x64xf32>
    %cst_184 = arith.constant 1.000000e+00 : f32
    %718 = vector.broadcast %cst_184 : f32 to vector<2x64xf32>
    %719 = arith.subf %718, %710 : vector<2x64xf32>
    %720 = arith.mulf %719, %717 : vector<2x64xf32>
    %721 = arith.mulf %710, %695 : vector<2x64xf32>
    %722 = arith.addf %720, %721 : vector<2x64xf32>
    %c36 = arith.constant 36 : index
    %c0_185 = arith.constant 0 : index
    %723 = vector.load %arg12[%c36, %c0_185] : memref<64x64xf32, #tpu.memory_space<vmem>>, vector<2x64xf32>
    tpu.vector_store %arg12[%c36, %c0_185], %722 {strides = array<i32>} : memref<64x64xf32, #tpu.memory_space<vmem>>, vector<2x64xf32>,
    %c19 = arith.constant 19 : index
    %c0_186 = arith.constant 0 : index
    %c0_187 = arith.constant 0 : index
    %724 = vector.load %arg11[%c19, %c0_186, %c0_187] : memref<32x2x192xf32, #tpu.memory_space<vmem>>, vector<1x2x192xf32>
    %725 = vector.shape_cast %724 : vector<1x2x192xf32> to vector<2x192xf32>
    %726 = arith.truncf %722 : vector<2x64xf32> to vector<2x64xbf16>
    %cst_188 = arith.constant dense<0.000000e+00> : vector<2x192xf32>
    %727 = tpu.matmul %726, %209, %cst_188 {dimension_numbers = #tpu.dot_dimension_numbers<[1], [0], [0], [1], [0, 0, 1, 1], [], []>} : vector<2x64xbf16>, vector<64x192xbf16>, vector<2x192xf32> -> vector<2x192xf32>
    %728 = vector.extract_strided_slice %725 {offsets = [0, 0], sizes = [2, 128], strides = [1, 1]} : vector<2x192xf32> to vector<2x128xf32>
    %729 = vector.extract_strided_slice %727 {offsets = [0, 0], sizes = [2, 128], strides = [1, 1]} : vector<2x192xf32> to vector<2x128xf32>
    %730 = arith.addf %728, %729 : vector<2x128xf32>
    %731 = arith.negf %730 : vector<2x128xf32>
    %732 = math.exp %731 : vector<2x128xf32>
    %cst_189 = arith.constant 1.000000e+00 : f32
    %733 = vector.broadcast %cst_189 : f32 to vector<2x128xf32>
    %734 = arith.addf %733, %732 : vector<2x128xf32>
    %735 = arith.divf %733, %734 : vector<2x128xf32>
    %736 = vector.extract_strided_slice %735 {offsets = [0, 0], sizes = [2, 64], strides = [1, 1]} : vector<2x128xf32> to vector<2x64xf32>
    %737 = vector.extract_strided_slice %735 {offsets = [0, 64], sizes = [2, 64], strides = [1, 1]} : vector<2x128xf32> to vector<2x64xf32>
    %738 = vector.extract_strided_slice %725 {offsets = [0, 128], sizes = [2, 64], strides = [1, 1]} : vector<2x192xf32> to vector<2x64xf32>
    %739 = vector.extract_strided_slice %727 {offsets = [0, 128], sizes = [2, 64], strides = [1, 1]} : vector<2x192xf32> to vector<2x64xf32>
    %740 = vector.broadcast %180 : vector<1x64xf32> to vector<2x64xf32>
    %741 = arith.addf %739, %740 : vector<2x64xf32>
    %742 = arith.mulf %736, %741 : vector<2x64xf32>
    %743 = arith.addf %738, %742 : vector<2x64xf32>
    %744 = math.tanh %743 : vector<2x64xf32>
    %cst_190 = arith.constant 1.000000e+00 : f32
    %745 = vector.broadcast %cst_190 : f32 to vector<2x64xf32>
    %746 = arith.subf %745, %737 : vector<2x64xf32>
    %747 = arith.mulf %746, %744 : vector<2x64xf32>
    %748 = arith.mulf %737, %722 : vector<2x64xf32>
    %749 = arith.addf %747, %748 : vector<2x64xf32>
    %c38 = arith.constant 38 : index
    %c0_191 = arith.constant 0 : index
    %750 = vector.load %arg12[%c38, %c0_191] : memref<64x64xf32, #tpu.memory_space<vmem>>, vector<2x64xf32>
    tpu.vector_store %arg12[%c38, %c0_191], %749 {strides = array<i32>} : memref<64x64xf32, #tpu.memory_space<vmem>>, vector<2x64xf32>,
    %c20_192 = arith.constant 20 : index
    %c0_193 = arith.constant 0 : index
    %c0_194 = arith.constant 0 : index
    %751 = vector.load %arg11[%c20_192, %c0_193, %c0_194] : memref<32x2x192xf32, #tpu.memory_space<vmem>>, vector<1x2x192xf32>
    %752 = vector.shape_cast %751 : vector<1x2x192xf32> to vector<2x192xf32>
    %753 = arith.truncf %749 : vector<2x64xf32> to vector<2x64xbf16>
    %cst_195 = arith.constant dense<0.000000e+00> : vector<2x192xf32>
    %754 = tpu.matmul %753, %209, %cst_195 {dimension_numbers = #tpu.dot_dimension_numbers<[1], [0], [0], [1], [0, 0, 1, 1], [], []>} : vector<2x64xbf16>, vector<64x192xbf16>, vector<2x192xf32> -> vector<2x192xf32>
    %755 = vector.extract_strided_slice %752 {offsets = [0, 0], sizes = [2, 128], strides = [1, 1]} : vector<2x192xf32> to vector<2x128xf32>
    %756 = vector.extract_strided_slice %754 {offsets = [0, 0], sizes = [2, 128], strides = [1, 1]} : vector<2x192xf32> to vector<2x128xf32>
    %757 = arith.addf %755, %756 : vector<2x128xf32>
    %758 = arith.negf %757 : vector<2x128xf32>
    %759 = math.exp %758 : vector<2x128xf32>
    %cst_196 = arith.constant 1.000000e+00 : f32
    %760 = vector.broadcast %cst_196 : f32 to vector<2x128xf32>
    %761 = arith.addf %760, %759 : vector<2x128xf32>
    %762 = arith.divf %760, %761 : vector<2x128xf32>
    %763 = vector.extract_strided_slice %762 {offsets = [0, 0], sizes = [2, 64], strides = [1, 1]} : vector<2x128xf32> to vector<2x64xf32>
    %764 = vector.extract_strided_slice %762 {offsets = [0, 64], sizes = [2, 64], strides = [1, 1]} : vector<2x128xf32> to vector<2x64xf32>
    %765 = vector.extract_strided_slice %752 {offsets = [0, 128], sizes = [2, 64], strides = [1, 1]} : vector<2x192xf32> to vector<2x64xf32>
    %766 = vector.extract_strided_slice %754 {offsets = [0, 128], sizes = [2, 64], strides = [1, 1]} : vector<2x192xf32> to vector<2x64xf32>
    %767 = vector.broadcast %180 : vector<1x64xf32> to vector<2x64xf32>
    %768 = arith.addf %766, %767 : vector<2x64xf32>
    %769 = arith.mulf %763, %768 : vector<2x64xf32>
    %770 = arith.addf %765, %769 : vector<2x64xf32>
    %771 = math.tanh %770 : vector<2x64xf32>
    %cst_197 = arith.constant 1.000000e+00 : f32
    %772 = vector.broadcast %cst_197 : f32 to vector<2x64xf32>
    %773 = arith.subf %772, %764 : vector<2x64xf32>
    %774 = arith.mulf %773, %771 : vector<2x64xf32>
    %775 = arith.mulf %764, %749 : vector<2x64xf32>
    %776 = arith.addf %774, %775 : vector<2x64xf32>
    %c40 = arith.constant 40 : index
    %c0_198 = arith.constant 0 : index
    %777 = vector.load %arg12[%c40, %c0_198] : memref<64x64xf32, #tpu.memory_space<vmem>>, vector<2x64xf32>
    tpu.vector_store %arg12[%c40, %c0_198], %776 {strides = array<i32>} : memref<64x64xf32, #tpu.memory_space<vmem>>, vector<2x64xf32>,
    %c21 = arith.constant 21 : index
    %c0_199 = arith.constant 0 : index
    %c0_200 = arith.constant 0 : index
    %778 = vector.load %arg11[%c21, %c0_199, %c0_200] : memref<32x2x192xf32, #tpu.memory_space<vmem>>, vector<1x2x192xf32>
    %779 = vector.shape_cast %778 : vector<1x2x192xf32> to vector<2x192xf32>
    %780 = arith.truncf %776 : vector<2x64xf32> to vector<2x64xbf16>
    %cst_201 = arith.constant dense<0.000000e+00> : vector<2x192xf32>
    %781 = tpu.matmul %780, %209, %cst_201 {dimension_numbers = #tpu.dot_dimension_numbers<[1], [0], [0], [1], [0, 0, 1, 1], [], []>} : vector<2x64xbf16>, vector<64x192xbf16>, vector<2x192xf32> -> vector<2x192xf32>
    %782 = vector.extract_strided_slice %779 {offsets = [0, 0], sizes = [2, 128], strides = [1, 1]} : vector<2x192xf32> to vector<2x128xf32>
    %783 = vector.extract_strided_slice %781 {offsets = [0, 0], sizes = [2, 128], strides = [1, 1]} : vector<2x192xf32> to vector<2x128xf32>
    %784 = arith.addf %782, %783 : vector<2x128xf32>
    %785 = arith.negf %784 : vector<2x128xf32>
    %786 = math.exp %785 : vector<2x128xf32>
    %cst_202 = arith.constant 1.000000e+00 : f32
    %787 = vector.broadcast %cst_202 : f32 to vector<2x128xf32>
    %788 = arith.addf %787, %786 : vector<2x128xf32>
    %789 = arith.divf %787, %788 : vector<2x128xf32>
    %790 = vector.extract_strided_slice %789 {offsets = [0, 0], sizes = [2, 64], strides = [1, 1]} : vector<2x128xf32> to vector<2x64xf32>
    %791 = vector.extract_strided_slice %789 {offsets = [0, 64], sizes = [2, 64], strides = [1, 1]} : vector<2x128xf32> to vector<2x64xf32>
    %792 = vector.extract_strided_slice %779 {offsets = [0, 128], sizes = [2, 64], strides = [1, 1]} : vector<2x192xf32> to vector<2x64xf32>
    %793 = vector.extract_strided_slice %781 {offsets = [0, 128], sizes = [2, 64], strides = [1, 1]} : vector<2x192xf32> to vector<2x64xf32>
    %794 = vector.broadcast %180 : vector<1x64xf32> to vector<2x64xf32>
    %795 = arith.addf %793, %794 : vector<2x64xf32>
    %796 = arith.mulf %790, %795 : vector<2x64xf32>
    %797 = arith.addf %792, %796 : vector<2x64xf32>
    %798 = math.tanh %797 : vector<2x64xf32>
    %cst_203 = arith.constant 1.000000e+00 : f32
    %799 = vector.broadcast %cst_203 : f32 to vector<2x64xf32>
    %800 = arith.subf %799, %791 : vector<2x64xf32>
    %801 = arith.mulf %800, %798 : vector<2x64xf32>
    %802 = arith.mulf %791, %776 : vector<2x64xf32>
    %803 = arith.addf %801, %802 : vector<2x64xf32>
    %c42 = arith.constant 42 : index
    %c0_204 = arith.constant 0 : index
    %804 = vector.load %arg12[%c42, %c0_204] : memref<64x64xf32, #tpu.memory_space<vmem>>, vector<2x64xf32>
    tpu.vector_store %arg12[%c42, %c0_204], %803 {strides = array<i32>} : memref<64x64xf32, #tpu.memory_space<vmem>>, vector<2x64xf32>,
    %c22_205 = arith.constant 22 : index
    %c0_206 = arith.constant 0 : index
    %c0_207 = arith.constant 0 : index
    %805 = vector.load %arg11[%c22_205, %c0_206, %c0_207] : memref<32x2x192xf32, #tpu.memory_space<vmem>>, vector<1x2x192xf32>
    %806 = vector.shape_cast %805 : vector<1x2x192xf32> to vector<2x192xf32>
    %807 = arith.truncf %803 : vector<2x64xf32> to vector<2x64xbf16>
    %cst_208 = arith.constant dense<0.000000e+00> : vector<2x192xf32>
    %808 = tpu.matmul %807, %209, %cst_208 {dimension_numbers = #tpu.dot_dimension_numbers<[1], [0], [0], [1], [0, 0, 1, 1], [], []>} : vector<2x64xbf16>, vector<64x192xbf16>, vector<2x192xf32> -> vector<2x192xf32>
    %809 = vector.extract_strided_slice %806 {offsets = [0, 0], sizes = [2, 128], strides = [1, 1]} : vector<2x192xf32> to vector<2x128xf32>
    %810 = vector.extract_strided_slice %808 {offsets = [0, 0], sizes = [2, 128], strides = [1, 1]} : vector<2x192xf32> to vector<2x128xf32>
    %811 = arith.addf %809, %810 : vector<2x128xf32>
    %812 = arith.negf %811 : vector<2x128xf32>
    %813 = math.exp %812 : vector<2x128xf32>
    %cst_209 = arith.constant 1.000000e+00 : f32
    %814 = vector.broadcast %cst_209 : f32 to vector<2x128xf32>
    %815 = arith.addf %814, %813 : vector<2x128xf32>
    %816 = arith.divf %814, %815 : vector<2x128xf32>
    %817 = vector.extract_strided_slice %816 {offsets = [0, 0], sizes = [2, 64], strides = [1, 1]} : vector<2x128xf32> to vector<2x64xf32>
    %818 = vector.extract_strided_slice %816 {offsets = [0, 64], sizes = [2, 64], strides = [1, 1]} : vector<2x128xf32> to vector<2x64xf32>
    %819 = vector.extract_strided_slice %806 {offsets = [0, 128], sizes = [2, 64], strides = [1, 1]} : vector<2x192xf32> to vector<2x64xf32>
    %820 = vector.extract_strided_slice %808 {offsets = [0, 128], sizes = [2, 64], strides = [1, 1]} : vector<2x192xf32> to vector<2x64xf32>
    %821 = vector.broadcast %180 : vector<1x64xf32> to vector<2x64xf32>
    %822 = arith.addf %820, %821 : vector<2x64xf32>
    %823 = arith.mulf %817, %822 : vector<2x64xf32>
    %824 = arith.addf %819, %823 : vector<2x64xf32>
    %825 = math.tanh %824 : vector<2x64xf32>
    %cst_210 = arith.constant 1.000000e+00 : f32
    %826 = vector.broadcast %cst_210 : f32 to vector<2x64xf32>
    %827 = arith.subf %826, %818 : vector<2x64xf32>
    %828 = arith.mulf %827, %825 : vector<2x64xf32>
    %829 = arith.mulf %818, %803 : vector<2x64xf32>
    %830 = arith.addf %828, %829 : vector<2x64xf32>
    %c44 = arith.constant 44 : index
    %c0_211 = arith.constant 0 : index
    %831 = vector.load %arg12[%c44, %c0_211] : memref<64x64xf32, #tpu.memory_space<vmem>>, vector<2x64xf32>
    tpu.vector_store %arg12[%c44, %c0_211], %830 {strides = array<i32>} : memref<64x64xf32, #tpu.memory_space<vmem>>, vector<2x64xf32>,
    %c23 = arith.constant 23 : index
    %c0_212 = arith.constant 0 : index
    %c0_213 = arith.constant 0 : index
    %832 = vector.load %arg11[%c23, %c0_212, %c0_213] : memref<32x2x192xf32, #tpu.memory_space<vmem>>, vector<1x2x192xf32>
    %833 = vector.shape_cast %832 : vector<1x2x192xf32> to vector<2x192xf32>
    %834 = arith.truncf %830 : vector<2x64xf32> to vector<2x64xbf16>
    %cst_214 = arith.constant dense<0.000000e+00> : vector<2x192xf32>
    %835 = tpu.matmul %834, %209, %cst_214 {dimension_numbers = #tpu.dot_dimension_numbers<[1], [0], [0], [1], [0, 0, 1, 1], [], []>} : vector<2x64xbf16>, vector<64x192xbf16>, vector<2x192xf32> -> vector<2x192xf32>
    %836 = vector.extract_strided_slice %833 {offsets = [0, 0], sizes = [2, 128], strides = [1, 1]} : vector<2x192xf32> to vector<2x128xf32>
    %837 = vector.extract_strided_slice %835 {offsets = [0, 0], sizes = [2, 128], strides = [1, 1]} : vector<2x192xf32> to vector<2x128xf32>
    %838 = arith.addf %836, %837 : vector<2x128xf32>
    %839 = arith.negf %838 : vector<2x128xf32>
    %840 = math.exp %839 : vector<2x128xf32>
    %cst_215 = arith.constant 1.000000e+00 : f32
    %841 = vector.broadcast %cst_215 : f32 to vector<2x128xf32>
    %842 = arith.addf %841, %840 : vector<2x128xf32>
    %843 = arith.divf %841, %842 : vector<2x128xf32>
    %844 = vector.extract_strided_slice %843 {offsets = [0, 0], sizes = [2, 64], strides = [1, 1]} : vector<2x128xf32> to vector<2x64xf32>
    %845 = vector.extract_strided_slice %843 {offsets = [0, 64], sizes = [2, 64], strides = [1, 1]} : vector<2x128xf32> to vector<2x64xf32>
    %846 = vector.extract_strided_slice %833 {offsets = [0, 128], sizes = [2, 64], strides = [1, 1]} : vector<2x192xf32> to vector<2x64xf32>
    %847 = vector.extract_strided_slice %835 {offsets = [0, 128], sizes = [2, 64], strides = [1, 1]} : vector<2x192xf32> to vector<2x64xf32>
    %848 = vector.broadcast %180 : vector<1x64xf32> to vector<2x64xf32>
    %849 = arith.addf %847, %848 : vector<2x64xf32>
    %850 = arith.mulf %844, %849 : vector<2x64xf32>
    %851 = arith.addf %846, %850 : vector<2x64xf32>
    %852 = math.tanh %851 : vector<2x64xf32>
    %cst_216 = arith.constant 1.000000e+00 : f32
    %853 = vector.broadcast %cst_216 : f32 to vector<2x64xf32>
    %854 = arith.subf %853, %845 : vector<2x64xf32>
    %855 = arith.mulf %854, %852 : vector<2x64xf32>
    %856 = arith.mulf %845, %830 : vector<2x64xf32>
    %857 = arith.addf %855, %856 : vector<2x64xf32>
    %c46 = arith.constant 46 : index
    %c0_217 = arith.constant 0 : index
    %858 = vector.load %arg12[%c46, %c0_217] : memref<64x64xf32, #tpu.memory_space<vmem>>, vector<2x64xf32>
    tpu.vector_store %arg12[%c46, %c0_217], %857 {strides = array<i32>} : memref<64x64xf32, #tpu.memory_space<vmem>>, vector<2x64xf32>,
    %c24_218 = arith.constant 24 : index
    %c0_219 = arith.constant 0 : index
    %c0_220 = arith.constant 0 : index
    %859 = vector.load %arg11[%c24_218, %c0_219, %c0_220] : memref<32x2x192xf32, #tpu.memory_space<vmem>>, vector<1x2x192xf32>
    %860 = vector.shape_cast %859 : vector<1x2x192xf32> to vector<2x192xf32>
    %861 = arith.truncf %857 : vector<2x64xf32> to vector<2x64xbf16>
    %cst_221 = arith.constant dense<0.000000e+00> : vector<2x192xf32>
    %862 = tpu.matmul %861, %209, %cst_221 {dimension_numbers = #tpu.dot_dimension_numbers<[1], [0], [0], [1], [0, 0, 1, 1], [], []>} : vector<2x64xbf16>, vector<64x192xbf16>, vector<2x192xf32> -> vector<2x192xf32>
    %863 = vector.extract_strided_slice %860 {offsets = [0, 0], sizes = [2, 128], strides = [1, 1]} : vector<2x192xf32> to vector<2x128xf32>
    %864 = vector.extract_strided_slice %862 {offsets = [0, 0], sizes = [2, 128], strides = [1, 1]} : vector<2x192xf32> to vector<2x128xf32>
    %865 = arith.addf %863, %864 : vector<2x128xf32>
    %866 = arith.negf %865 : vector<2x128xf32>
    %867 = math.exp %866 : vector<2x128xf32>
    %cst_222 = arith.constant 1.000000e+00 : f32
    %868 = vector.broadcast %cst_222 : f32 to vector<2x128xf32>
    %869 = arith.addf %868, %867 : vector<2x128xf32>
    %870 = arith.divf %868, %869 : vector<2x128xf32>
    %871 = vector.extract_strided_slice %870 {offsets = [0, 0], sizes = [2, 64], strides = [1, 1]} : vector<2x128xf32> to vector<2x64xf32>
    %872 = vector.extract_strided_slice %870 {offsets = [0, 64], sizes = [2, 64], strides = [1, 1]} : vector<2x128xf32> to vector<2x64xf32>
    %873 = vector.extract_strided_slice %860 {offsets = [0, 128], sizes = [2, 64], strides = [1, 1]} : vector<2x192xf32> to vector<2x64xf32>
    %874 = vector.extract_strided_slice %862 {offsets = [0, 128], sizes = [2, 64], strides = [1, 1]} : vector<2x192xf32> to vector<2x64xf32>
    %875 = vector.broadcast %180 : vector<1x64xf32> to vector<2x64xf32>
    %876 = arith.addf %874, %875 : vector<2x64xf32>
    %877 = arith.mulf %871, %876 : vector<2x64xf32>
    %878 = arith.addf %873, %877 : vector<2x64xf32>
    %879 = math.tanh %878 : vector<2x64xf32>
    %cst_223 = arith.constant 1.000000e+00 : f32
    %880 = vector.broadcast %cst_223 : f32 to vector<2x64xf32>
    %881 = arith.subf %880, %872 : vector<2x64xf32>
    %882 = arith.mulf %881, %879 : vector<2x64xf32>
    %883 = arith.mulf %872, %857 : vector<2x64xf32>
    %884 = arith.addf %882, %883 : vector<2x64xf32>
    %c48 = arith.constant 48 : index
    %c0_224 = arith.constant 0 : index
    %885 = vector.load %arg12[%c48, %c0_224] : memref<64x64xf32, #tpu.memory_space<vmem>>, vector<2x64xf32>
    tpu.vector_store %arg12[%c48, %c0_224], %884 {strides = array<i32>} : memref<64x64xf32, #tpu.memory_space<vmem>>, vector<2x64xf32>,
    %c25 = arith.constant 25 : index
    %c0_225 = arith.constant 0 : index
    %c0_226 = arith.constant 0 : index
    %886 = vector.load %arg11[%c25, %c0_225, %c0_226] : memref<32x2x192xf32, #tpu.memory_space<vmem>>, vector<1x2x192xf32>
    %887 = vector.shape_cast %886 : vector<1x2x192xf32> to vector<2x192xf32>
    %888 = arith.truncf %884 : vector<2x64xf32> to vector<2x64xbf16>
    %cst_227 = arith.constant dense<0.000000e+00> : vector<2x192xf32>
    %889 = tpu.matmul %888, %209, %cst_227 {dimension_numbers = #tpu.dot_dimension_numbers<[1], [0], [0], [1], [0, 0, 1, 1], [], []>} : vector<2x64xbf16>, vector<64x192xbf16>, vector<2x192xf32> -> vector<2x192xf32>
    %890 = vector.extract_strided_slice %887 {offsets = [0, 0], sizes = [2, 128], strides = [1, 1]} : vector<2x192xf32> to vector<2x128xf32>
    %891 = vector.extract_strided_slice %889 {offsets = [0, 0], sizes = [2, 128], strides = [1, 1]} : vector<2x192xf32> to vector<2x128xf32>
    %892 = arith.addf %890, %891 : vector<2x128xf32>
    %893 = arith.negf %892 : vector<2x128xf32>
    %894 = math.exp %893 : vector<2x128xf32>
    %cst_228 = arith.constant 1.000000e+00 : f32
    %895 = vector.broadcast %cst_228 : f32 to vector<2x128xf32>
    %896 = arith.addf %895, %894 : vector<2x128xf32>
    %897 = arith.divf %895, %896 : vector<2x128xf32>
    %898 = vector.extract_strided_slice %897 {offsets = [0, 0], sizes = [2, 64], strides = [1, 1]} : vector<2x128xf32> to vector<2x64xf32>
    %899 = vector.extract_strided_slice %897 {offsets = [0, 64], sizes = [2, 64], strides = [1, 1]} : vector<2x128xf32> to vector<2x64xf32>
    %900 = vector.extract_strided_slice %887 {offsets = [0, 128], sizes = [2, 64], strides = [1, 1]} : vector<2x192xf32> to vector<2x64xf32>
    %901 = vector.extract_strided_slice %889 {offsets = [0, 128], sizes = [2, 64], strides = [1, 1]} : vector<2x192xf32> to vector<2x64xf32>
    %902 = vector.broadcast %180 : vector<1x64xf32> to vector<2x64xf32>
    %903 = arith.addf %901, %902 : vector<2x64xf32>
    %904 = arith.mulf %898, %903 : vector<2x64xf32>
    %905 = arith.addf %900, %904 : vector<2x64xf32>
    %906 = math.tanh %905 : vector<2x64xf32>
    %cst_229 = arith.constant 1.000000e+00 : f32
    %907 = vector.broadcast %cst_229 : f32 to vector<2x64xf32>
    %908 = arith.subf %907, %899 : vector<2x64xf32>
    %909 = arith.mulf %908, %906 : vector<2x64xf32>
    %910 = arith.mulf %899, %884 : vector<2x64xf32>
    %911 = arith.addf %909, %910 : vector<2x64xf32>
    %c50 = arith.constant 50 : index
    %c0_230 = arith.constant 0 : index
    %912 = vector.load %arg12[%c50, %c0_230] : memref<64x64xf32, #tpu.memory_space<vmem>>, vector<2x64xf32>
    tpu.vector_store %arg12[%c50, %c0_230], %911 {strides = array<i32>} : memref<64x64xf32, #tpu.memory_space<vmem>>, vector<2x64xf32>,
    %c26_231 = arith.constant 26 : index
    %c0_232 = arith.constant 0 : index
    %c0_233 = arith.constant 0 : index
    %913 = vector.load %arg11[%c26_231, %c0_232, %c0_233] : memref<32x2x192xf32, #tpu.memory_space<vmem>>, vector<1x2x192xf32>
    %914 = vector.shape_cast %913 : vector<1x2x192xf32> to vector<2x192xf32>
    %915 = arith.truncf %911 : vector<2x64xf32> to vector<2x64xbf16>
    %cst_234 = arith.constant dense<0.000000e+00> : vector<2x192xf32>
    %916 = tpu.matmul %915, %209, %cst_234 {dimension_numbers = #tpu.dot_dimension_numbers<[1], [0], [0], [1], [0, 0, 1, 1], [], []>} : vector<2x64xbf16>, vector<64x192xbf16>, vector<2x192xf32> -> vector<2x192xf32>
    %917 = vector.extract_strided_slice %914 {offsets = [0, 0], sizes = [2, 128], strides = [1, 1]} : vector<2x192xf32> to vector<2x128xf32>
    %918 = vector.extract_strided_slice %916 {offsets = [0, 0], sizes = [2, 128], strides = [1, 1]} : vector<2x192xf32> to vector<2x128xf32>
    %919 = arith.addf %917, %918 : vector<2x128xf32>
    %920 = arith.negf %919 : vector<2x128xf32>
    %921 = math.exp %920 : vector<2x128xf32>
    %cst_235 = arith.constant 1.000000e+00 : f32
    %922 = vector.broadcast %cst_235 : f32 to vector<2x128xf32>
    %923 = arith.addf %922, %921 : vector<2x128xf32>
    %924 = arith.divf %922, %923 : vector<2x128xf32>
    %925 = vector.extract_strided_slice %924 {offsets = [0, 0], sizes = [2, 64], strides = [1, 1]} : vector<2x128xf32> to vector<2x64xf32>
    %926 = vector.extract_strided_slice %924 {offsets = [0, 64], sizes = [2, 64], strides = [1, 1]} : vector<2x128xf32> to vector<2x64xf32>
    %927 = vector.extract_strided_slice %914 {offsets = [0, 128], sizes = [2, 64], strides = [1, 1]} : vector<2x192xf32> to vector<2x64xf32>
    %928 = vector.extract_strided_slice %916 {offsets = [0, 128], sizes = [2, 64], strides = [1, 1]} : vector<2x192xf32> to vector<2x64xf32>
    %929 = vector.broadcast %180 : vector<1x64xf32> to vector<2x64xf32>
    %930 = arith.addf %928, %929 : vector<2x64xf32>
    %931 = arith.mulf %925, %930 : vector<2x64xf32>
    %932 = arith.addf %927, %931 : vector<2x64xf32>
    %933 = math.tanh %932 : vector<2x64xf32>
    %cst_236 = arith.constant 1.000000e+00 : f32
    %934 = vector.broadcast %cst_236 : f32 to vector<2x64xf32>
    %935 = arith.subf %934, %926 : vector<2x64xf32>
    %936 = arith.mulf %935, %933 : vector<2x64xf32>
    %937 = arith.mulf %926, %911 : vector<2x64xf32>
    %938 = arith.addf %936, %937 : vector<2x64xf32>
    %c52 = arith.constant 52 : index
    %c0_237 = arith.constant 0 : index
    %939 = vector.load %arg12[%c52, %c0_237] : memref<64x64xf32, #tpu.memory_space<vmem>>, vector<2x64xf32>
    tpu.vector_store %arg12[%c52, %c0_237], %938 {strides = array<i32>} : memref<64x64xf32, #tpu.memory_space<vmem>>, vector<2x64xf32>,
    %c27 = arith.constant 27 : index
    %c0_238 = arith.constant 0 : index
    %c0_239 = arith.constant 0 : index
    %940 = vector.load %arg11[%c27, %c0_238, %c0_239] : memref<32x2x192xf32, #tpu.memory_space<vmem>>, vector<1x2x192xf32>
    %941 = vector.shape_cast %940 : vector<1x2x192xf32> to vector<2x192xf32>
    %942 = arith.truncf %938 : vector<2x64xf32> to vector<2x64xbf16>
    %cst_240 = arith.constant dense<0.000000e+00> : vector<2x192xf32>
    %943 = tpu.matmul %942, %209, %cst_240 {dimension_numbers = #tpu.dot_dimension_numbers<[1], [0], [0], [1], [0, 0, 1, 1], [], []>} : vector<2x64xbf16>, vector<64x192xbf16>, vector<2x192xf32> -> vector<2x192xf32>
    %944 = vector.extract_strided_slice %941 {offsets = [0, 0], sizes = [2, 128], strides = [1, 1]} : vector<2x192xf32> to vector<2x128xf32>
    %945 = vector.extract_strided_slice %943 {offsets = [0, 0], sizes = [2, 128], strides = [1, 1]} : vector<2x192xf32> to vector<2x128xf32>
    %946 = arith.addf %944, %945 : vector<2x128xf32>
    %947 = arith.negf %946 : vector<2x128xf32>
    %948 = math.exp %947 : vector<2x128xf32>
    %cst_241 = arith.constant 1.000000e+00 : f32
    %949 = vector.broadcast %cst_241 : f32 to vector<2x128xf32>
    %950 = arith.addf %949, %948 : vector<2x128xf32>
    %951 = arith.divf %949, %950 : vector<2x128xf32>
    %952 = vector.extract_strided_slice %951 {offsets = [0, 0], sizes = [2, 64], strides = [1, 1]} : vector<2x128xf32> to vector<2x64xf32>
    %953 = vector.extract_strided_slice %951 {offsets = [0, 64], sizes = [2, 64], strides = [1, 1]} : vector<2x128xf32> to vector<2x64xf32>
    %954 = vector.extract_strided_slice %941 {offsets = [0, 128], sizes = [2, 64], strides = [1, 1]} : vector<2x192xf32> to vector<2x64xf32>
    %955 = vector.extract_strided_slice %943 {offsets = [0, 128], sizes = [2, 64], strides = [1, 1]} : vector<2x192xf32> to vector<2x64xf32>
    %956 = vector.broadcast %180 : vector<1x64xf32> to vector<2x64xf32>
    %957 = arith.addf %955, %956 : vector<2x64xf32>
    %958 = arith.mulf %952, %957 : vector<2x64xf32>
    %959 = arith.addf %954, %958 : vector<2x64xf32>
    %960 = math.tanh %959 : vector<2x64xf32>
    %cst_242 = arith.constant 1.000000e+00 : f32
    %961 = vector.broadcast %cst_242 : f32 to vector<2x64xf32>
    %962 = arith.subf %961, %953 : vector<2x64xf32>
    %963 = arith.mulf %962, %960 : vector<2x64xf32>
    %964 = arith.mulf %953, %938 : vector<2x64xf32>
    %965 = arith.addf %963, %964 : vector<2x64xf32>
    %c54 = arith.constant 54 : index
    %c0_243 = arith.constant 0 : index
    %966 = vector.load %arg12[%c54, %c0_243] : memref<64x64xf32, #tpu.memory_space<vmem>>, vector<2x64xf32>
    tpu.vector_store %arg12[%c54, %c0_243], %965 {strides = array<i32>} : memref<64x64xf32, #tpu.memory_space<vmem>>, vector<2x64xf32>,
    %c28_244 = arith.constant 28 : index
    %c0_245 = arith.constant 0 : index
    %c0_246 = arith.constant 0 : index
    %967 = vector.load %arg11[%c28_244, %c0_245, %c0_246] : memref<32x2x192xf32, #tpu.memory_space<vmem>>, vector<1x2x192xf32>
    %968 = vector.shape_cast %967 : vector<1x2x192xf32> to vector<2x192xf32>
    %969 = arith.truncf %965 : vector<2x64xf32> to vector<2x64xbf16>
    %cst_247 = arith.constant dense<0.000000e+00> : vector<2x192xf32>
    %970 = tpu.matmul %969, %209, %cst_247 {dimension_numbers = #tpu.dot_dimension_numbers<[1], [0], [0], [1], [0, 0, 1, 1], [], []>} : vector<2x64xbf16>, vector<64x192xbf16>, vector<2x192xf32> -> vector<2x192xf32>
    %971 = vector.extract_strided_slice %968 {offsets = [0, 0], sizes = [2, 128], strides = [1, 1]} : vector<2x192xf32> to vector<2x128xf32>
    %972 = vector.extract_strided_slice %970 {offsets = [0, 0], sizes = [2, 128], strides = [1, 1]} : vector<2x192xf32> to vector<2x128xf32>
    %973 = arith.addf %971, %972 : vector<2x128xf32>
    %974 = arith.negf %973 : vector<2x128xf32>
    %975 = math.exp %974 : vector<2x128xf32>
    %cst_248 = arith.constant 1.000000e+00 : f32
    %976 = vector.broadcast %cst_248 : f32 to vector<2x128xf32>
    %977 = arith.addf %976, %975 : vector<2x128xf32>
    %978 = arith.divf %976, %977 : vector<2x128xf32>
    %979 = vector.extract_strided_slice %978 {offsets = [0, 0], sizes = [2, 64], strides = [1, 1]} : vector<2x128xf32> to vector<2x64xf32>
    %980 = vector.extract_strided_slice %978 {offsets = [0, 64], sizes = [2, 64], strides = [1, 1]} : vector<2x128xf32> to vector<2x64xf32>
    %981 = vector.extract_strided_slice %968 {offsets = [0, 128], sizes = [2, 64], strides = [1, 1]} : vector<2x192xf32> to vector<2x64xf32>
    %982 = vector.extract_strided_slice %970 {offsets = [0, 128], sizes = [2, 64], strides = [1, 1]} : vector<2x192xf32> to vector<2x64xf32>
    %983 = vector.broadcast %180 : vector<1x64xf32> to vector<2x64xf32>
    %984 = arith.addf %982, %983 : vector<2x64xf32>
    %985 = arith.mulf %979, %984 : vector<2x64xf32>
    %986 = arith.addf %981, %985 : vector<2x64xf32>
    %987 = math.tanh %986 : vector<2x64xf32>
    %cst_249 = arith.constant 1.000000e+00 : f32
    %988 = vector.broadcast %cst_249 : f32 to vector<2x64xf32>
    %989 = arith.subf %988, %980 : vector<2x64xf32>
    %990 = arith.mulf %989, %987 : vector<2x64xf32>
    %991 = arith.mulf %980, %965 : vector<2x64xf32>
    %992 = arith.addf %990, %991 : vector<2x64xf32>
    %c56 = arith.constant 56 : index
    %c0_250 = arith.constant 0 : index
    %993 = vector.load %arg12[%c56, %c0_250] : memref<64x64xf32, #tpu.memory_space<vmem>>, vector<2x64xf32>
    tpu.vector_store %arg12[%c56, %c0_250], %992 {strides = array<i32>} : memref<64x64xf32, #tpu.memory_space<vmem>>, vector<2x64xf32>,
    %c29 = arith.constant 29 : index
    %c0_251 = arith.constant 0 : index
    %c0_252 = arith.constant 0 : index
    %994 = vector.load %arg11[%c29, %c0_251, %c0_252] : memref<32x2x192xf32, #tpu.memory_space<vmem>>, vector<1x2x192xf32>
    %995 = vector.shape_cast %994 : vector<1x2x192xf32> to vector<2x192xf32>
    %996 = arith.truncf %992 : vector<2x64xf32> to vector<2x64xbf16>
    %cst_253 = arith.constant dense<0.000000e+00> : vector<2x192xf32>
    %997 = tpu.matmul %996, %209, %cst_253 {dimension_numbers = #tpu.dot_dimension_numbers<[1], [0], [0], [1], [0, 0, 1, 1], [], []>} : vector<2x64xbf16>, vector<64x192xbf16>, vector<2x192xf32> -> vector<2x192xf32>
    %998 = vector.extract_strided_slice %995 {offsets = [0, 0], sizes = [2, 128], strides = [1, 1]} : vector<2x192xf32> to vector<2x128xf32>
    %999 = vector.extract_strided_slice %997 {offsets = [0, 0], sizes = [2, 128], strides = [1, 1]} : vector<2x192xf32> to vector<2x128xf32>
    %1000 = arith.addf %998, %999 : vector<2x128xf32>
    %1001 = arith.negf %1000 : vector<2x128xf32>
    %1002 = math.exp %1001 : vector<2x128xf32>
    %cst_254 = arith.constant 1.000000e+00 : f32
    %1003 = vector.broadcast %cst_254 : f32 to vector<2x128xf32>
    %1004 = arith.addf %1003, %1002 : vector<2x128xf32>
    %1005 = arith.divf %1003, %1004 : vector<2x128xf32>
    %1006 = vector.extract_strided_slice %1005 {offsets = [0, 0], sizes = [2, 64], strides = [1, 1]} : vector<2x128xf32> to vector<2x64xf32>
    %1007 = vector.extract_strided_slice %1005 {offsets = [0, 64], sizes = [2, 64], strides = [1, 1]} : vector<2x128xf32> to vector<2x64xf32>
    %1008 = vector.extract_strided_slice %995 {offsets = [0, 128], sizes = [2, 64], strides = [1, 1]} : vector<2x192xf32> to vector<2x64xf32>
    %1009 = vector.extract_strided_slice %997 {offsets = [0, 128], sizes = [2, 64], strides = [1, 1]} : vector<2x192xf32> to vector<2x64xf32>
    %1010 = vector.broadcast %180 : vector<1x64xf32> to vector<2x64xf32>
    %1011 = arith.addf %1009, %1010 : vector<2x64xf32>
    %1012 = arith.mulf %1006, %1011 : vector<2x64xf32>
    %1013 = arith.addf %1008, %1012 : vector<2x64xf32>
    %1014 = math.tanh %1013 : vector<2x64xf32>
    %cst_255 = arith.constant 1.000000e+00 : f32
    %1015 = vector.broadcast %cst_255 : f32 to vector<2x64xf32>
    %1016 = arith.subf %1015, %1007 : vector<2x64xf32>
    %1017 = arith.mulf %1016, %1014 : vector<2x64xf32>
    %1018 = arith.mulf %1007, %992 : vector<2x64xf32>
    %1019 = arith.addf %1017, %1018 : vector<2x64xf32>
    %c58 = arith.constant 58 : index
    %c0_256 = arith.constant 0 : index
    %1020 = vector.load %arg12[%c58, %c0_256] : memref<64x64xf32, #tpu.memory_space<vmem>>, vector<2x64xf32>
    tpu.vector_store %arg12[%c58, %c0_256], %1019 {strides = array<i32>} : memref<64x64xf32, #tpu.memory_space<vmem>>, vector<2x64xf32>,
    %c30_257 = arith.constant 30 : index
    %c0_258 = arith.constant 0 : index
    %c0_259 = arith.constant 0 : index
    %1021 = vector.load %arg11[%c30_257, %c0_258, %c0_259] : memref<32x2x192xf32, #tpu.memory_space<vmem>>, vector<1x2x192xf32>
    %1022 = vector.shape_cast %1021 : vector<1x2x192xf32> to vector<2x192xf32>
    %1023 = arith.truncf %1019 : vector<2x64xf32> to vector<2x64xbf16>
    %cst_260 = arith.constant dense<0.000000e+00> : vector<2x192xf32>
    %1024 = tpu.matmul %1023, %209, %cst_260 {dimension_numbers = #tpu.dot_dimension_numbers<[1], [0], [0], [1], [0, 0, 1, 1], [], []>} : vector<2x64xbf16>, vector<64x192xbf16>, vector<2x192xf32> -> vector<2x192xf32>
    %1025 = vector.extract_strided_slice %1022 {offsets = [0, 0], sizes = [2, 128], strides = [1, 1]} : vector<2x192xf32> to vector<2x128xf32>
    %1026 = vector.extract_strided_slice %1024 {offsets = [0, 0], sizes = [2, 128], strides = [1, 1]} : vector<2x192xf32> to vector<2x128xf32>
    %1027 = arith.addf %1025, %1026 : vector<2x128xf32>
    %1028 = arith.negf %1027 : vector<2x128xf32>
    %1029 = math.exp %1028 : vector<2x128xf32>
    %cst_261 = arith.constant 1.000000e+00 : f32
    %1030 = vector.broadcast %cst_261 : f32 to vector<2x128xf32>
    %1031 = arith.addf %1030, %1029 : vector<2x128xf32>
    %1032 = arith.divf %1030, %1031 : vector<2x128xf32>
    %1033 = vector.extract_strided_slice %1032 {offsets = [0, 0], sizes = [2, 64], strides = [1, 1]} : vector<2x128xf32> to vector<2x64xf32>
    %1034 = vector.extract_strided_slice %1032 {offsets = [0, 64], sizes = [2, 64], strides = [1, 1]} : vector<2x128xf32> to vector<2x64xf32>
    %1035 = vector.extract_strided_slice %1022 {offsets = [0, 128], sizes = [2, 64], strides = [1, 1]} : vector<2x192xf32> to vector<2x64xf32>
    %1036 = vector.extract_strided_slice %1024 {offsets = [0, 128], sizes = [2, 64], strides = [1, 1]} : vector<2x192xf32> to vector<2x64xf32>
    %1037 = vector.broadcast %180 : vector<1x64xf32> to vector<2x64xf32>
    %1038 = arith.addf %1036, %1037 : vector<2x64xf32>
    %1039 = arith.mulf %1033, %1038 : vector<2x64xf32>
    %1040 = arith.addf %1035, %1039 : vector<2x64xf32>
    %1041 = math.tanh %1040 : vector<2x64xf32>
    %cst_262 = arith.constant 1.000000e+00 : f32
    %1042 = vector.broadcast %cst_262 : f32 to vector<2x64xf32>
    %1043 = arith.subf %1042, %1034 : vector<2x64xf32>
    %1044 = arith.mulf %1043, %1041 : vector<2x64xf32>
    %1045 = arith.mulf %1034, %1019 : vector<2x64xf32>
    %1046 = arith.addf %1044, %1045 : vector<2x64xf32>
    %c60 = arith.constant 60 : index
    %c0_263 = arith.constant 0 : index
    %1047 = vector.load %arg12[%c60, %c0_263] : memref<64x64xf32, #tpu.memory_space<vmem>>, vector<2x64xf32>
    tpu.vector_store %arg12[%c60, %c0_263], %1046 {strides = array<i32>} : memref<64x64xf32, #tpu.memory_space<vmem>>, vector<2x64xf32>,
    %c31 = arith.constant 31 : index
    %c0_264 = arith.constant 0 : index
    %c0_265 = arith.constant 0 : index
    %1048 = vector.load %arg11[%c31, %c0_264, %c0_265] : memref<32x2x192xf32, #tpu.memory_space<vmem>>, vector<1x2x192xf32>
    %1049 = vector.shape_cast %1048 : vector<1x2x192xf32> to vector<2x192xf32>
    %1050 = arith.truncf %1046 : vector<2x64xf32> to vector<2x64xbf16>
    %cst_266 = arith.constant dense<0.000000e+00> : vector<2x192xf32>
    %1051 = tpu.matmul %1050, %209, %cst_266 {dimension_numbers = #tpu.dot_dimension_numbers<[1], [0], [0], [1], [0, 0, 1, 1], [], []>} : vector<2x64xbf16>, vector<64x192xbf16>, vector<2x192xf32> -> vector<2x192xf32>
    %1052 = vector.extract_strided_slice %1049 {offsets = [0, 0], sizes = [2, 128], strides = [1, 1]} : vector<2x192xf32> to vector<2x128xf32>
    %1053 = vector.extract_strided_slice %1051 {offsets = [0, 0], sizes = [2, 128], strides = [1, 1]} : vector<2x192xf32> to vector<2x128xf32>
    %1054 = arith.addf %1052, %1053 : vector<2x128xf32>
    %1055 = arith.negf %1054 : vector<2x128xf32>
    %1056 = math.exp %1055 : vector<2x128xf32>
    %cst_267 = arith.constant 1.000000e+00 : f32
    %1057 = vector.broadcast %cst_267 : f32 to vector<2x128xf32>
    %1058 = arith.addf %1057, %1056 : vector<2x128xf32>
    %1059 = arith.divf %1057, %1058 : vector<2x128xf32>
    %1060 = vector.extract_strided_slice %1059 {offsets = [0, 0], sizes = [2, 64], strides = [1, 1]} : vector<2x128xf32> to vector<2x64xf32>
    %1061 = vector.extract_strided_slice %1059 {offsets = [0, 64], sizes = [2, 64], strides = [1, 1]} : vector<2x128xf32> to vector<2x64xf32>
    %1062 = vector.extract_strided_slice %1049 {offsets = [0, 128], sizes = [2, 64], strides = [1, 1]} : vector<2x192xf32> to vector<2x64xf32>
    %1063 = vector.extract_strided_slice %1051 {offsets = [0, 128], sizes = [2, 64], strides = [1, 1]} : vector<2x192xf32> to vector<2x64xf32>
    %1064 = vector.broadcast %180 : vector<1x64xf32> to vector<2x64xf32>
    %1065 = arith.addf %1063, %1064 : vector<2x64xf32>
    %1066 = arith.mulf %1060, %1065 : vector<2x64xf32>
    %1067 = arith.addf %1062, %1066 : vector<2x64xf32>
    %1068 = math.tanh %1067 : vector<2x64xf32>
    %cst_268 = arith.constant 1.000000e+00 : f32
    %1069 = vector.broadcast %cst_268 : f32 to vector<2x64xf32>
    %1070 = arith.subf %1069, %1061 : vector<2x64xf32>
    %1071 = arith.mulf %1070, %1068 : vector<2x64xf32>
    %1072 = arith.mulf %1061, %1046 : vector<2x64xf32>
    %1073 = arith.addf %1071, %1072 : vector<2x64xf32>
    %c62 = arith.constant 62 : index
    %c0_269 = arith.constant 0 : index
    %1074 = vector.load %arg12[%c62, %c0_269] : memref<64x64xf32, #tpu.memory_space<vmem>>, vector<2x64xf32>
    tpu.vector_store %arg12[%c62, %c0_269], %1073 {strides = array<i32>} : memref<64x64xf32, #tpu.memory_space<vmem>>, vector<2x64xf32>,
    %c0_270 = arith.constant 0 : index
    %c0_271 = arith.constant 0 : index
    %1075 = vector.load %arg12[%c0_270, %c0_271] : memref<64x64xf32, #tpu.memory_space<vmem>>, vector<64x64xf32>
    %1076 = arith.truncf %1075 : vector<64x64xf32> to vector<64x64xbf16>
    %c0_272 = arith.constant 0 : index
    %c0_273 = arith.constant 0 : index
    %1077 = vector.load %arg8[%c0_272, %c0_273] : memref<64x192xbf16, #tpu.memory_space<vmem>>, vector<64x192xbf16>
    %cst_274 = arith.constant dense<0.000000e+00> : vector<64x192xf32>
    %1078 = tpu.matmul %1076, %1077, %cst_274 {dimension_numbers = #tpu.dot_dimension_numbers<[1], [0], [0], [1], [0, 0, 1, 1], [], []>} : vector<64x64xbf16>, vector<64x192xbf16>, vector<64x192xf32> -> vector<64x192xf32>
    %1079 = tpu.iota {dimensions = array<i32: 0>} : vector<64x192xi32>
    %1080 = tpu.iota {dimensions = array<i32: 1>} : vector<64x192xi32>
    %c1_i32_275 = arith.constant 1 : i32
    %1081 = vector.broadcast %c1_i32_275 : i32 to vector<64x192xi32>
    %1082 = arith.shrsi %1079, %1081 : vector<64x192xi32>
    %c31_i32_276 = arith.constant 31 : i32
    %1083 = vector.broadcast %c31_i32_276 : i32 to vector<64x192xi32>
    %1084 = arith.andi %1080, %1083 : vector<64x192xi32>
    %1085 = arith.cmpi eq, %1082, %1084 : vector<64x192xi32>
    %cst_277 = arith.constant 0.000000e+00 : f32
    %1086 = vector.broadcast %cst_277 : f32 to vector<64x192xf32>
    %1087 = arith.select %1085, %1078, %1086 : vector<64x192xi1>, vector<64x192xf32>
    %1088 = tpu.iota {dimensions = array<i32: 0>} : vector<2x64xi32>
    %1089 = tpu.iota {dimensions = array<i32: 1>} : vector<2x64xi32>
    %c1_i32_278 = arith.constant 1 : i32
    %1090 = vector.broadcast %c1_i32_278 : i32 to vector<2x64xi32>
    %1091 = arith.andi %1089, %1090 : vector<2x64xi32>
    %1092 = arith.cmpi eq, %1091, %1088 : vector<2x64xi32>
    %cst_279 = arith.constant 1.000000e+00 : f32
    %cst_280 = arith.constant 0.000000e+00 : f32
    %1093 = vector.broadcast %cst_279 : f32 to vector<2x64xf32>
    %1094 = vector.broadcast %cst_280 : f32 to vector<2x64xf32>
    %1095 = arith.select %1092, %1093, %1094 : vector<2x64xi1>, vector<2x64xf32>
    %cst_281 = arith.constant dense<0.000000e+00> : vector<2x192xf32>
    %1096 = tpu.matmul %1095, %1087, %cst_281 {dimension_numbers = #tpu.dot_dimension_numbers<[1], [0], [0], [1], [0, 0, 1, 1], [], []>} : vector<2x64xf32>, vector<64x192xf32>, vector<2x192xf32> -> vector<2x192xf32>
    %1097 = tpu.iota {dimensions = array<i32: 0>} : vector<192x6xi32>
    %1098 = tpu.iota {dimensions = array<i32: 1>} : vector<192x6xi32>
    %c32_i32 = arith.constant 32 : i32
    %1099 = vector.broadcast %c32_i32 : i32 to vector<192x6xi32>
    %1100 = arith.muli %1098, %1099 : vector<192x6xi32>
    %1101 = arith.cmpi sge, %1097, %1100 : vector<192x6xi32>
    %c1_i32_282 = arith.constant 1 : i32
    %1102 = vector.broadcast %c1_i32_282 : i32 to vector<192x6xi32>
    %1103 = arith.addi %1098, %1102 : vector<192x6xi32>
    %c32_i32_283 = arith.constant 32 : i32
    %1104 = vector.broadcast %c32_i32_283 : i32 to vector<192x6xi32>
    %1105 = arith.muli %1103, %1104 : vector<192x6xi32>
    %1106 = arith.cmpi slt, %1097, %1105 : vector<192x6xi32>
    %1107 = arith.andi %1101, %1106 : vector<192x6xi1>
    %cst_284 = arith.constant 1.000000e+00 : f32
    %cst_285 = arith.constant 0.000000e+00 : f32
    %1108 = vector.broadcast %cst_284 : f32 to vector<192x6xf32>
    %1109 = vector.broadcast %cst_285 : f32 to vector<192x6xf32>
    %1110 = arith.select %1107, %1108, %1109 : vector<192x6xi1>, vector<192x6xf32>
    %cst_286 = arith.constant dense<0.000000e+00> : vector<2x6xf32>
    %1111 = tpu.matmul %1096, %1110, %cst_286 {dimension_numbers = #tpu.dot_dimension_numbers<[1], [0], [0], [1], [0, 0, 1, 1], [], []>} : vector<2x192xf32>, vector<192x6xf32>, vector<2x6xf32> -> vector<2x6xf32>
    %c0_287 = arith.constant 0 : index
    %c0_288 = arith.constant 0 : index
    %1112 = vector.load %arg9[%c0_287, %c0_288] : memref<1x6xf32, #tpu.memory_space<vmem>>, vector<1x6xf32>
    %1113 = vector.broadcast %1112 : vector<1x6xf32> to vector<2x6xf32>
    %1114 = arith.addf %1111, %1113 : vector<2x6xf32>
    %c0_289 = arith.constant 0 : index
    %c0_290 = arith.constant 0 : index
    %1115 = vector.load %arg10[%c0_289, %c0_290] : memref<2x6xf32, #tpu.memory_space<vmem>>, vector<2x6xf32>
    tpu.vector_store %arg10[%c0_289, %c0_290], %1114 {strides = array<i32>} : memref<2x6xf32, #tpu.memory_space<vmem>>, vector<2x6xf32>,
    return
  }
  func.func @transform_0(%arg0: i32) -> (i32, i32) {
    %c0_i32 = arith.constant 0 : i32
    %c0_i32_0 = arith.constant 0 : i32
    %c0_i32_1 = arith.constant 0 : i32
    return %c0_i32, %c0_i32_0 : i32, i32
  }
  func.func @transform_1(%arg0: i32) -> (i32, i32) {
    %c0_i32 = arith.constant 0 : i32
    %c0_i32_0 = arith.constant 0 : i32
    %c0_i32_1 = arith.constant 0 : i32
    return %c0_i32, %c0_i32_0 : i32, i32
  }
  func.func @transform_2(%arg0: i32) -> (i32, i32) {
    %c0_i32 = arith.constant 0 : i32
    %c0_i32_0 = arith.constant 0 : i32
    %c0_i32_1 = arith.constant 0 : i32
    return %c0_i32, %c0_i32_0 : i32, i32
  }
  func.func @transform_3(%arg0: i32) -> (i32, i32) {
    %c0_i32 = arith.constant 0 : i32
    %c0_i32_0 = arith.constant 0 : i32
    %c0_i32_1 = arith.constant 0 : i32
    return %c0_i32, %c0_i32_0 : i32, i32
  }
  func.func @transform_4(%arg0: i32) -> (i32, i32) {
    %c0_i32 = arith.constant 0 : i32
    %c0_i32_0 = arith.constant 0 : i32
    %c0_i32_1 = arith.constant 0 : i32
    return %c0_i32, %c0_i32_0 : i32, i32
  }
  func.func @transform_5(%arg0: i32) -> (i32, i32) {
    %c0_i32 = arith.constant 0 : i32
    %c0_i32_0 = arith.constant 0 : i32
    %c0_i32_1 = arith.constant 0 : i32
    return %c0_i32, %c0_i32_0 : i32, i32
  }
  func.func @transform_6(%arg0: i32) -> (i32, i32) {
    %c0_i32 = arith.constant 0 : i32
    %c0_i32_0 = arith.constant 0 : i32
    %c0_i32_1 = arith.constant 0 : i32
    return %c0_i32, %c0_i32_0 : i32, i32
  }
  func.func @transform_7(%arg0: i32) -> (i32, i32) {
    %c0_i32 = arith.constant 0 : i32
    %c0_i32_0 = arith.constant 0 : i32
    %c0_i32_1 = arith.constant 0 : i32
    return %c0_i32, %c0_i32_0 : i32, i32
  }
  func.func @transform_8(%arg0: i32) -> (i32, i32) {
    %c0_i32 = arith.constant 0 : i32
    %c0_i32_0 = arith.constant 0 : i32
    %c0_i32_1 = arith.constant 0 : i32
    return %c0_i32, %c0_i32_0 : i32, i32
  }
  func.func @transform_9(%arg0: i32) -> (i32, i32) {
    %c0_i32 = arith.constant 0 : i32
    %c0_i32_0 = arith.constant 0 : i32
    %c0_i32_1 = arith.constant 0 : i32
    return %c0_i32, %c0_i32_0 : i32, i32
  }
}

</mosaic_0001>

<bundles_post_ra>
// kernel: forward.1
= control target key start
LH: loop header
LB: loop body
LE: loop exit
PB: predicated region body
PF: predicated region fallthrough
CT: control target
= control target key end

     0   :  { %14 = vsyncpa [#allocation5], 0  ;;  %s8187_s0 = inlined_call_operand.vmem [shape: f32[4,256], index: 0, kind: input, shape index: {}]   ;;  %s8188_s1 = inlined_call_operand.hbm [shape: bf16[40,44], index: 1, kind: input, shape index: {}]   ;;  %s8189_s2 = inlined_call_operand.vmem [shape: f32[40,1], index: 2, kind: input, shape index: {}]   ;;  %s8190_s3 = inlined_call_operand.vmem [shape: bf16[32,200], index: 3, kind: input, shape index: {}]   ;;  %s8191_s4 = inlined_call_operand.vmem [shape: f32[32,1], index: 4, kind: input, shape index: {}]   ;;  %s8192_s5 = inlined_call_operand.vmem [shape: bf16[64,192], index: 5, kind: input, shape index: {}]   ;;  %s8193_s6 = inlined_call_operand.hbm [shape: f32[4,192], index: 6, kind: input, shape index: {}]   ;;  %s8194_s7 = inlined_call_operand.hbm [shape: bf16[64,192], index: 7, kind: input, shape index: {}]   ;;  %s8195_s8 = inlined_call_operand.hbm [shape: f32[1,6], index: 8, kind: input, shape index: {}]   ;;  %s8196_s9 = inlined_call_operand.hbm [shape: f32[2,6], index: 9, kind: output, shape index: {}]  }
   0x1   :  { %15 = vsyncpa [#allocation8], 0 }
   0x2   :  { %16 = vsyncpa [#allocation11], 0 }
   0x3   :  { %17 = vsyncpa [#allocation6], 0  ;;  %s5922_s30 = smov [#allocation7]   ;;  %s5923_s11 = smov [#allocation4]  }
   0x4   :  { %s46_s10 = sshll.u32 %s5922_s30, 4  ;;  %s25_s12 = sshll.u32 %s5923_s11, 4  ;;  %s47_s10 = int_to_ptr.vmem [resolvable:$true] %s46_s10  ;;  %s6006_s12 = int_to_ptr.vmem [resolvable:$true] %s25_s12 }
   0x5   :  { %s5804_s15 = scalar_lea.hbm %s8193_s6, 128 }
   0x6   :  { %p5805_p0 = scmp.ne.s32.totalorder %s8193_s6, %s5804_s15  ;;  %p5808_p1 = scmp.lt.u32.totalorder %s5804_s15, %s8193_s6 }
   0x8   :  { %p5810_p2 = pnand %p5808_p1, %p5805_p0 }
   0xa   :  { %5813 = shalt.err (!%p5810_p2)
}
   0xb   :  { %s5814_s20 = scalar_lea.vmem %s47_s10, 128  ;;  %p5819_p4 = scmp.lt.s32.totalorder %s47_s10, %s47_s10 }
   0xc   :  { %p5815_p3 = scmp.ne.s32.totalorder %s47_s10, %s5814_s20  ;;  %p5820_p5 = scmp.lt.s32.totalorder %s5814_s20, %s5814_s20 }
   0xe   :  { %p5821_p6 = por %p5820_p5, %p5819_p4 }
  0x10   :  { %p5822_p7 = pnand %p5821_p6, %p5815_p3 }
  0x12   :  { %5825 = shalt.err (!%p5822_p7)
}
  0x13   :  { %49 = dma.hbm_to_vmem [thread:$0]  %s8193_s6, 128, %s47_s10, [#allocation8]  }
  0x14   :  { %s5826_s25 = scalar_lea.hbm %s8188_s1, 320 }
  0x15   :  { %p5827_p8 = scmp.ne.s32.totalorder %s8188_s1, %s5826_s25  ;;  %p5830_p9 = scmp.lt.u32.totalorder %s5826_s25, %s8188_s1 }
  0x17   :  { %p5832_p10 = pnand %p5830_p9, %p5827_p8 }
  0x19   :  { %5835 = shalt.err (!%p5832_p10)
}
  0x1a   :  { %s5836_s30 = scalar_lea.vmem %s6006_s12, 320  ;;  %p5841_p12 = scmp.lt.s32.totalorder %s6006_s12, %s6006_s12 }
  0x1b   :  { %p5837_p11 = scmp.ne.s32.totalorder %s6006_s12, %s5836_s30  ;;  %p5842_p13 = scmp.lt.s32.totalorder %s5836_s30, %s5836_s30 }
  0x1d   :  { %p5843_p0 = por %p5842_p13, %p5841_p12 }
  0x1f   :  { %p5844_p1 = pnand %p5843_p0, %p5837_p11 }
  0x21   :  { %5847 = shalt.err (!%p5844_p1)
}
  0x22   :  { %s5924_s6 = smov 64   ;;  %s5925_s10 = smov 4  }
  0x23   :  { %31 = dma.hbm_to_vmem [thread:$0]  %s8188_s1, 320, %s6006_s12, [#allocation5], %s5924_s6, %s5924_s6, %s5925_s10  }
  0x24   :  { %s5926_s14 = smov [#allocation9]   ;;  %s5848_s18 = scalar_lea.hbm %s8194_s7, 1024 }
  0x25   :  { %s55_s15 = sshll.u32 %s5926_s14, 4  ;;  %p5849_p2 = scmp.ne.s32.totalorder %s8194_s7, %s5848_s18  ;;  %s56_s15 = int_to_ptr.vmem [resolvable:$true] %s55_s15 }
  0x26   :  { %p5852_p3 = scmp.lt.u32.totalorder %s5848_s18, %s8194_s7 }
  0x28   :  { %p5854_p4 = pnand %p5852_p3, %p5849_p2 }
  0x2a   :  { %5857 = shalt.err (!%p5854_p4)
}
  0x2b   :  { %s5858_s23 = scalar_lea.vmem %s56_s15, 1024  ;;  %p5863_p6 = scmp.lt.s32.totalorder %s56_s15, %s56_s15 }
  0x2c   :  { %p5859_p5 = scmp.ne.s32.totalorder %s56_s15, %s5858_s23  ;;  %p5864_p7 = scmp.lt.s32.totalorder %s5858_s23, %s5858_s23 }
  0x2e   :  { %p5865_p8 = por %p5864_p7, %p5863_p6 }
  0x30   :  { %p5866_p9 = pnand %p5865_p8, %p5859_p5 }
  0x32   :  { %5869 = shalt.err (!%p5866_p9)
}
  0x33   :  { %s5927_s1 = smov 128   ;;  %s5928_s12 = smov 8  }
  0x34   :  { %61 = dma.hbm_to_vmem [thread:$0]  %s8194_s7, 1024, %s56_s15, [#allocation8], %s5927_s1, %s5927_s1, %s5928_s12  }
  0x35   :  { %s5929_s26 = smov [#allocation10]   ;;  %s5870_s30 = scalar_lea.hbm %s8195_s8, 16 }
  0x36   :  { %s68_s27 = sshll.u32 %s5929_s26, 4  ;;  %p5871_p10 = scmp.ne.s32.totalorder %s8195_s8, %s5870_s30  ;;  %s69_s27 = int_to_ptr.vmem [resolvable:$true] %s68_s27 }
  0x37   :  { %p5874_p11 = scmp.lt.u32.totalorder %s5870_s30, %s8195_s8 }
  0x39   :  { %p5876_p12 = pnand %p5874_p11, %p5871_p10 }
  0x3b   :  { %5879 = shalt.err (!%p5876_p12)
}
  0x3c   :  { %s5880_s17 = scalar_lea.vmem %s69_s27, 16  ;;  %s5884_s7 = scalar_lea.vmem %s69_s27, 32 }
  0x3d   :  { %p5881_p13 = scmp.ne.s32.totalorder %s69_s27, %s5880_s17  ;;  %p5885_p0 = scmp.lt.s32.totalorder %s69_s27, %s69_s27 }
  0x3e   :  { %p5886_p1 = scmp.lt.s32.totalorder %s5884_s7, %s5880_s17 }
  0x40   :  { %p5887_p2 = por %p5886_p1, %p5885_p0 }
  0x42   :  { %p5888_p3 = pnand %p5887_p2, %p5881_p13 }
  0x44   :  { %5891 = shalt.err (!%p5888_p3)
}
  0x45   :  { %71 = dma.hbm_to_vmem [thread:$0]  %s8195_s8, 16, %s69_s27, [#allocation11]  }
  0x46   :  { %5914 = dma.done.wait [#allocation5], 320  }
  0x47   :  { %5915 = vsyncadd [#allocation5], 4294966976 }
  0x48   :  { %5916 = dma.done.wait [#allocation8], 1152  }
  0x49   :  { %5917 = vsyncadd [#allocation8], 4294966144 }
  0x4a   :  { %5918 = dma.done.wait [#allocation11], 16  }
  0x4b   :  { %5919 = vsyncadd [#allocation11], 4294967280  ;;  %v110_v0 = vlaneseq  ;;  %v8201_v1 = vmov 0   ;;  %v87_v6 = vld [vmem:[%s8187_s0] sm:$0xff]  ;;  %s5931_s0 = smov 5   ;;  %s5932_s20 = smov 1  }
  0x4c   :  { %669 = vmatprep.mubr.bf16.mxu0 %v8201_v1  ;;  %5548 = vset.pattern.permute.xlu0 %v8201_v1  ;;  %v91_v8 = vpack.c.bf16 %v87_v6, %v87_v6  ;;  %v89_v9 = vcombine.high %v87_v6, %v87_v6  ;;  %s5933_s21 = smov 2   ;;  %s5934_s22 = smov 3  }
  0x4d   :  { %v6068_v2 = vand.u32 127, %v110_v0  ;;  %5549 = vset.pattern.permute.xlu1 %v8201_v1  ;;  %v6072_v3 = vshrl.u32 %v110_v0, 7  ;;  %s5935_s23 = smov 6   ;;  %s5936_s1 = smov 7  }
  0x4e   :  { %95 = vrot.lane.b32.xlu1 %v91_v8, %s5931_s0  ;;  %v92_v12 = vpack.c.bf16 %v89_v9, %v89_v9  ;;  %s5937_s24 = smov 9   ;;  %s5938_s25 = smov 10  }
  0x4f   :  { %v6075_v4 = vadd.s32 128, %v6068_v2  ;;  %vm135_vm0 = vcmp.ge.s32.totalorder %v6068_v2, 4  ;;  %v6085_v7 = vsub.s32 0, %v6072_v3  ;;  %vm163_vm1 = vcmp.ge.s32.totalorder %v6068_v2, 3  ;;  %s5940_s26 = smov 124   ;;  %s5941_s27 = smov 120  }
  0x50   :  { %v6091_v10 = vsub.s32 4, %v6072_v3  ;;  %vm191_vm5 = vcmp.ge.s32.totalorder %v6068_v2, 2  ;;  %vm249_vm9 = vcmp.lt.s32.totalorder %v6068_v2, 127  ;;  %vm115_vm11 = vcmp.ge.s32.totalorder %v6068_v2, 5  ;;  %s5942_s28 = smov 127   ;;  %s5943_s29 = smov 126  }
  0x51   :  { %v6078_v5 = vand.u32 127, %v6075_v4  ;;  %vm219_vm14 = vcmp.ge.s32.totalorder %v6068_v2, 1  ;;  %s5944_s30 = smov 125   ;;  %s5945_s11 = smov 122  }
  0x52   :  { %97 = vrot.lane.b32.xlu1 %v92_v12, %s5931_s0  ;;  %s5946_s13 = smov 121   ;;  %s5947_s14 = smov 119  }
  0x53   :  { %vm136_vm2 = vcmp.ge.s32.totalorder %v6078_v5, 4  ;;  %vm164_vm3 = vcmp.ge.s32.totalorder %v6078_v5, 3  ;;  %vm192_vm6 = vcmp.ge.s32.totalorder %v6078_v5, 2  ;;  %vm250_vm10 = vcmp.lt.s32.totalorder %v6078_v5, 127  ;;  %s5948_s16 = smov 118  }
  0x54   :  { %vm141_vm4 = vmpackc.low %vm136_vm2, %vm135_vm0  ;;  %vm116_vm12 = vcmp.ge.s32.totalorder %v6078_v5, 5  ;;  %vm220_vm15 = vcmp.ge.s32.totalorder %v6078_v5, 1  ;;  %vm277_vm2 = vcmp.lt.s32.totalorder %v6068_v2, 126 }
  0x55   :  { %v142_v11 = vsel %vm141_vm4, 65537, %v8201_v1  ;;  %vm169_vm7 = vmpackc.low %vm164_vm3, %vm163_vm1  ;;  %vm278_vm3 = vcmp.lt.s32.totalorder %v6078_v5, 126 }
  0x56   :  { %v146_v13 = vrot.slane %v142_v11, %v6085_v7  ;;  %v170_v14 = vsel %vm169_vm7, 65537, %v8201_v1  ;;  %vm197_vm8 = vmpackc.low %vm192_vm6, %vm191_vm5  ;;  %v150_v15 = vrot.slane %v142_v11, %v6091_v10  ;;  %vm333_vm5 = vcmp.lt.s32.totalorder %v6068_v2, 124 }
  0x57   :  { %v178_v16 = vrot.slane %v170_v14, %v6091_v10  ;;  %v198_v17 = vsel %vm197_vm8, 65537, %v8201_v1  ;;  %vm253_vm13 = vmpackc.low %vm250_vm10, %vm249_vm9  ;;  %v174_v18 = vrot.slane %v170_v14, %v6085_v7  ;;  %vm334_vm6 = vcmp.lt.s32.totalorder %v6078_v5, 124 }
  0x58   :  { %151 = vrot.lane.b32.xlu0 %v146_v13, %s5932_s20  ;;  %v6112_v19 = vrot.slane %v198_v17, %v6091_v10  ;;  %vm121_vm0 = vmpackc.low %vm116_vm12, %vm115_vm11  ;;  %v254_v20 = vsel %vm253_vm13, 65537, %v8201_v1  ;;  %v6119_v23 = vrot.slane %v198_v17, %v6085_v7  ;;  %vm361_vm8 = vcmp.lt.s32.totalorder %v6068_v2, 123 }
  0x59   :  { %181 = vrot.lane.b32.xlu1 %v178_v16, %s5933_s21  ;;  %v122_v21 = vsel %vm121_vm0, 65537, %v8201_v1  ;;  %vm225_vm1 = vmpackc.low %vm220_vm15, %vm219_vm14  ;;  %v6126_v24 = vrot.slane %v254_v20, %v6091_v10  ;;  %v6132_v26 = vrot.slane %v254_v20, %v6085_v7  ;;  %vm362_vm9 = vcmp.lt.s32.totalorder %v6078_v5, 123 }
  0x5a   :  { %v130_v22 = vrot.slane %v122_v21, %v6091_v10  ;;  %v226_v25 = vsel %vm225_vm1, 65537, %v8201_v1  ;;  %vm281_vm4 = vmpackc.low %vm278_vm3, %vm277_vm2  ;;  %vm305_vm11 = vcmp.lt.s32.totalorder %v6068_v2, 125  ;;  %vm306_vm12 = vcmp.lt.s32.totalorder %v6078_v5, 125 }
  0x5b   :  { %v6138_v27 = vrot.slane %v226_v25, %v6091_v10  ;;  %v282_v28 = vsel %vm281_vm4, 65537, %v8201_v1  ;;  %vm337_vm7 = vmpackc.low %vm334_vm6, %vm333_vm5  ;;  %v6143_v29 = vrot.slane %v226_v25, %v6085_v7  ;;  %v126_v41 = vrot.slane %v122_v21, %v6085_v7 }
  0x5c   :  { %153 = vrot.lane.b32.xlu0 %v150_v15, %s5932_s20  ;;  %v6150_v30 = vrot.slane %v282_v28, %v6091_v10  ;;  %v338_v31 = vsel %vm337_vm7, 65537, %v8201_v1  ;;  %vm365_vm10 = vmpackc.low %vm362_vm9, %vm361_vm8  ;;  %v6156_v32 = vrot.slane %v282_v28, %v6085_v7  ;;  %vm99_vm14 = vcmask 39936  }
  0x5d   :  { %209 = vrot.lane.b32.xlu1 %v6112_v19, %s5934_s22  ;;  %v346_v33 = vrot.slane %v338_v31, %v6091_v10  ;;  %v366_v34 = vsel %vm365_vm10, 65537, %v8201_v1  ;;  %vm309_vm13 = vmpackc.low %vm306_vm12, %vm305_vm11  ;;  %v342_v35 = vrot.slane %v338_v31, %v6085_v7  ;;  %vm6173_vm15 = vcmp.ne.s16.totalorder %v126_v41, 0 }
  0x5e   :  { %v374_v36 = vrot.slane %v366_v34, %v6091_v10  ;;  %v310_v37 = vsel %vm309_vm13, 65537, %v8201_v1  ;;  %v370_v38 = vrot.slane %v366_v34, %v6085_v7  ;;  %vm6186_vm0 = vcmp.ne.s16.totalorder %v130_v22, 0 }
  0x5f   :  { %v318_v39 = vrot.slane %v310_v37, %v6091_v10  ;;  %v314_v40 = vrot.slane %v310_v37, %v6085_v7  ;;  %vm323_vm3 = vcmask 64512   ;;  %vm239_vm6 = vcmask 31744  }
  0x60   :  { %179 = vrot.lane.b32.xlu0 %v174_v18, %s5933_s21 }
  0x61   :  { %265 = vrot.lane.b32.xlu1 %v6126_v24, %s5935_s23 }
  0x64   :  { %207 = vrot.lane.b32.xlu0 %v6119_v23, %s5934_s22 }
  0x65   :  { %237 = vrot.lane.b32.xlu1 %v6138_v27, %s5925_s10 }
  0x68   :  { %263 = vrot.lane.b32.xlu0 %v6132_v26, %s5935_s23 }
  0x69   :  { %293 = vrot.lane.b32.xlu1 %v6150_v30, %s5936_s1 }
  0x6c   :  { %235 = vrot.lane.b32.xlu0 %v6143_v29, %s5925_s10 }
  0x6d   :  { %349 = vrot.lane.b32.xlu1 %v346_v33, %s5937_s24 }
  0x70   :  { %291 = vrot.lane.b32.xlu0 %v6156_v32, %s5936_s1 }
  0x71   :  { %377 = vrot.lane.b32.xlu1 %v374_v36, %s5938_s25 }
  0x74   :  { %347 = vrot.lane.b32.xlu0 %v342_v35, %s5937_s24 }
  0x75   :  { %321 = vrot.lane.b32.xlu1 %v318_v39, %s5928_s12 }
  0x78   :  { %375 = vrot.lane.b32.xlu0 %v370_v38, %s5938_s25 }
  0x7c   :  { %319 = vrot.lane.b32.xlu0 %v314_v40, %s5928_s12  ;;  %s5939_s12 = smov 123  }
  0xc0   :  { %v96_v43 = vpop.permute.xlu1 %95 }
  0xc1   :  { %v6178_v44 = vsel %vm99_vm14, 0, %v96_v43 }
  0xc2   :  { %v446_v45 = vrot.slane %v6178_v44, 6  ;;  %v133_v46 = vsel %vm6173_vm15, %v6178_v44, 0  ;;  %vm497_vm15 = vcmask 982016  }
  0xc4   :  { %v98_v49 = vpop.permute.xlu1 %97  ;;  %449 = vrot.lane.b32.xlu0 %v446_v45, %s5939_s12 }
  0xc5   :  { %v6191_v50 = vsel %vm99_vm14, %v96_v43, %v98_v49  ;;  %v6212_v61 = vsel %vm99_vm14, %v98_v49, 0 }
  0xc6   :  { %v447_v51 = vrot.slane %v6191_v50, 6  ;;  %v134_v52 = vsel %vm6186_vm0, %v6191_v50, 0  ;;  %v448_v8 = vrot.slane %v6212_v61, 6  ;;  %vm512_vm0 = vcmask 973824  }
  0xc8   :  { %451 = vrot.lane.b32.xlu1 %v447_v51, %s5939_s12 }
  0xca   :  { %v6184_v47 = vpop.permute.xlu0 %151 }
  0xcb   :  { %v6199_v54 = vpop.permute.xlu1 %181  ;;  %vm157_vm4 = vcmp.ne.s16.totalorder %v6184_v47, 0 }
  0xcc   :  { %v160_v20 = vsel %vm157_vm4, %v6178_v44, 0  ;;  %vm187_vm9 = vcmp.ne.s16.totalorder %v6199_v54, 0 }
  0xcd   :  { %v390_v25 = vrot.slane %v160_v20, 6  ;;  %v190_v28 = vsel %vm187_vm9, %v6212_v61, 0  ;;  %vm183_vm9 = vcmask 15360  }
  0xce   :  { %v6197_v53 = vpop.permute.xlu0 %153  ;;  %v407_v33 = vrot.slane %v190_v28, 4 }
  0xcf   :  { %v6203_v56 = vpop.permute.xlu1 %209  ;;  %vm159_vm10 = vcmp.ne.s16.totalorder %v6197_v53, 0 }
  0xd0   :  { %v162_v34 = vsel %vm159_vm10, %v6212_v61, 0  ;;  %vm211_vm10 = vcmask 23552  }
  0xd1   :  { %v392_v36 = vrot.slane %v162_v34, 6 }
  0xd2   :  { %v6201_v55 = vpop.permute.xlu0 %179 }
  0xd3   :  { %v6207_v58 = vpop.permute.xlu1 %265  ;;  %vm185_vm13 = vcmp.ne.s16.totalorder %v6201_v55, 0 }
  0xd4   :  { %vm271_vm14 = vcmp.ne.s16.totalorder %v6207_v58, 0  ;;  %v188_v38 = vsel %vm185_vm13, %v6178_v44, 0  ;;  %vm267_vm13 = vcmask 48128  }
  0xd5   :  { %v274_v39 = vsel %vm271_vm14, %v6212_v61, 0  ;;  %v405_v40 = vrot.slane %v188_v38, 4  ;;  %vm295_vm14 = vcmask 56320   ;;  %v582_v38 = vld [vmem:[%s8189_s2 + $0x10] sm:$0xff] }
  0xd6   :  { %v6205_v57 = vpop.permute.xlu0 %207  ;;  %v463_v41 = vrot.slane %v274_v39, 4  ;;  %v584_v39 = vld [vmem:[%s8189_s2 + $0x20] sm:$0xff] }
  0xd7   :  { %v238_v60 = vpop.permute.xlu1 %237  ;;  %vm213_vm12 = vcmp.ne.s16.totalorder %v6205_v57, 0 }
  0xd8   :  { %vm243_vm1 = vcmp.ne.s16.totalorder %v238_v60, 0  ;;  %v216_v35 = vsel %vm213_vm12, %v6178_v44, 0 }
  0xd9   :  { %v246_v62 = vsel %vm243_vm1, %v6212_v61, 0  ;;  %v420_v37 = vrot.slane %v216_v35, 2  ;;  %vm215_vm1 = vcmp.ne.s16.totalorder %v6203_v56, 0 }
  0xda   :  { %v6209_v59 = vpop.permute.xlu0 %263  ;;  %439 = vrot.lane.b32.xlu0 %v246_v62, %s5940_s26  ;;  %v218_v43 = vsel %vm215_vm1, %v6212_v61, 0 }
  0xdb   :  { %v6216_v5 = vpop.permute.xlu1 %293  ;;  %v422_v49 = vrot.slane %v218_v43, 2 }
  0xde   :  { %v236_v63 = vpop.permute.xlu0 %235  ;;  %453 = vrot.lane.b32.xlu0 %v448_v8, %s5939_s12 }
  0xdf   :  { %vm241_vm2 = vcmp.ne.s16.totalorder %v236_v63, 0  ;;  %v6223_v10 = vpop.permute.xlu1 %349  ;;  %v240_v21 = vsel %vm239_vm6, %v236_v63, %v238_v60 }
  0xe0   :  { %v244_v6 = vsel %vm241_vm2, %v6178_v44, 0  ;;  %vm242_vm11 = vcmp.ne.s16.totalorder %v240_v21, 0 }
  0xe1   :  { %435 = vrot.lane.b32.xlu1 %v244_v6, %s5940_s26  ;;  %v245_v31 = vsel %vm242_vm11, %v6191_v50, 0 }
  0xe2   :  { %v6221_v9 = vpop.permute.xlu0 %291 }
  0xe3   :  { %v6227_v12 = vpop.permute.xlu1 %377  ;;  %vm297_vm2 = vcmp.ne.s16.totalorder %v6221_v9, 0 }
  0xe4   :  { %v300_v45 = vsel %vm297_vm2, %v6178_v44, 0 }
  0xe5   :  { %v476_v51 = vrot.slane %v300_v45, 2 }
  0xe6   :  { %v6225_v11 = vpop.permute.xlu0 %347 }
  0xe7   :  { %v322_v14 = vpop.permute.xlu1 %321  ;;  %vm353_vm4 = vcmp.ne.s16.totalorder %v6225_v11, 0 }
  0xe8   :  { %vm327_vm8 = vcmp.ne.s16.totalorder %v322_v14, 0  ;;  %v356_v62 = vsel %vm353_vm4, %v6178_v44, 0  ;;  %vm379_vm4 = vcmask 80896  }
  0xe9   :  { %v330_v22 = vsel %vm327_vm8, %v6212_v61, 0  ;;  %vm355_vm8 = vcmp.ne.s16.totalorder %v6223_v10, 0  ;;  %v503_v8 = vrot.slane %v356_v62, 6 }
  0xea   :  { %v6229_v13 = vpop.permute.xlu0 %375 }
  0xeb   :  { %vm381_vm11 = vcmp.ne.s16.totalorder %v6229_v13, 0 }
  0xee   :  { %v320_v15 = vpop.permute.xlu0 %319 }
  0xef   :  { %vm325_vm5 = vcmp.ne.s16.totalorder %v320_v15, 0  ;;  %v324_v16 = vsel %vm323_vm3, %v320_v15, %v322_v14  ;;  %vm269_vm3 = vcmp.ne.s16.totalorder %v6209_v59, 0  ;;  %v358_v15 = vsel %vm355_vm8, %v6212_v61, 0 }
  0xf0   :  { %v328_v17 = vsel %vm325_vm5, %v6178_v44, 0  ;;  %vm326_vm7 = vcmp.ne.s16.totalorder %v324_v16, 0  ;;  %vm155_vm5 = vcmask 7168   ;;  %v272_v60 = vsel %vm269_vm3, %v6178_v44, 0 }
  0xf1   :  { %491 = vrot.lane.b32.xlu1 %v328_v17, %s5941_s27  ;;  %v329_v18 = vsel %vm326_vm7, %v6191_v50, 0  ;;  %vm299_vm7 = vcmp.ne.s16.totalorder %v6216_v5, 0  ;;  %v156_v63 = vsel %vm155_vm5, %v6184_v47, %v6197_v53  ;;  %v461_v6 = vrot.slane %v272_v60, 4 }
  0xf2   :  { %493 = vrot.lane.b32.xlu0 %v329_v18, %s5941_s27  ;;  %v302_v14 = vsel %vm299_vm7, %v6212_v61, 0  ;;  %vm158_vm12 = vcmp.ne.s16.totalorder %v156_v63, 0  ;;  %v184_v16 = vsel %vm183_vm9, %v6201_v55, %v6199_v54  ;;  %v212_v47 = vsel %vm211_vm10, %v6205_v57, %v6203_v56 }
  0xf3   :  { %v478_v53 = vrot.slane %v302_v14, 2  ;;  %v505_v17 = vrot.slane %v358_v15, 6  ;;  %v384_v18 = vsel %vm381_vm11, %v6178_v44, 0  ;;  %vm186_vm1 = vcmp.ne.s16.totalorder %v184_v16, 0 }
  0xf4   :  { %v161_v20 = vsel %vm158_vm12, %v6191_v50, 0  ;;  %vm214_vm2 = vcmp.ne.s16.totalorder %v212_v47, 0  ;;  %v268_v54 = vsel %vm267_vm13, %v6209_v59, %v6207_v58  ;;  %v296_v55 = vsel %vm295_vm14, %v6221_v9, %v6216_v5 }
  0xf5   :  { %495 = vrot.lane.b32.xlu1 %v330_v22, %s5941_s27  ;;  %vm351_vm3 = vcmask 72704   ;;  %v518_v56 = vrot.slane %v384_v18, 4  ;;  %v391_v57 = vrot.slane %v161_v20, 6  ;;  %v189_v21 = vsel %vm186_vm1, %v6191_v50, 0 }
  0xf6   :  { %393 = vrot.lane.b32.xlu0 %v390_v25, %s5942_s28  ;;  %vm270_vm7 = vcmp.ne.s16.totalorder %v268_v54, 0  ;;  %v217_v22 = vsel %vm214_vm2, %v6191_v50, 0  ;;  %vm298_vm8 = vcmp.ne.s16.totalorder %v296_v55, 0  ;;  %v352_v58 = vsel %vm351_vm3, %v6225_v11, %v6223_v10 }
  0xf7   :  { %v380_v59 = vsel %vm379_vm4, %v6229_v13, %v6227_v12  ;;  %v406_v5 = vrot.slane %v189_v21, 4  ;;  %v421_v9 = vrot.slane %v217_v22, 2  ;;  %v273_v25 = vsel %vm270_vm7, %v6191_v50, 0 }
  0xf8   :  { %vm354_vm11 = vcmp.ne.s16.totalorder %v352_v58, 0  ;;  %v301_v28 = vsel %vm298_vm8, %v6191_v50, 0  ;;  %vm382_vm12 = vcmp.ne.s16.totalorder %v380_v59, 0  ;;  %vm383_vm13 = vcmp.ne.s16.totalorder %v6227_v12, 0  ;;  %v581_v12 = vld [vmem:[%s8189_s2 + $0x8] sm:$0xff] }
  0xf9   :  { %437 = vrot.lane.b32.xlu1 %v245_v31, %s5940_s26  ;;  %v462_v31 = vrot.slane %v273_v25, 4  ;;  %v357_v10 = vsel %vm354_vm11, %v6191_v50, 0  ;;  %v385_v11 = vsel %vm382_vm12, %v6191_v50, 0  ;;  %v386_v35 = vsel %vm383_vm13, %v6212_v61, 0  ;;  %v583_v61 = vld [vmem:[%s8189_s2 + $0x18] sm:$0xff] }
  0xfa   :  { %412 = vrot.lane.b32.xlu0 %v407_v33, %s5943_s29  ;;  %v477_v33 = vrot.slane %v301_v28, 2  ;;  %v504_v13 = vrot.slane %v357_v10, 6  ;;  %v519_v34 = vrot.slane %v385_v11, 4  ;;  %vm399_vm14 = vcmask 1039360  }
  0xfb   :  { %vm441_vm1 = vcmask 1014784   ;;  %vm414_vm2 = vcmask 1031168   ;;  %vm455_vm3 = vcmask 1006592   ;;  %vm530_vm4 = vcmask 1041408  }
  0xfc   :  { %vm429_vm7 = vcmask 1022976   ;;  %vm537_vm8 = vcmask 1043456   ;;  %vm542_vm11 = vcmask 1045504   ;;  %vm470_vm12 = vcmask 998400  }
  0xfd   :  { %397 = vrot.lane.b32.xlu1 %v392_v36, %s5942_s28  ;;  %v520_v36 = vrot.slane %v386_v35, 4  ;;  %vm485_vm13 = vcmask 990208  }
  0xfe   :  { %423 = vrot.lane.b32.xlu0 %v420_v37, %s5944_s30  ;;  %v580_v37 = vld [vmem:[%s8189_s2] sm:$0xff] }
 0x101   :  { %408 = vrot.lane.b32.xlu1 %v405_v40, %s5943_s29 }
 0x102   :  { %468 = vrot.lane.b32.xlu0 %v463_v41, %s5945_s11 }
 0x105   :  { %427 = vrot.lane.b32.xlu1 %v422_v49, %s5944_s30 }
 0x106   :  { %479 = vrot.lane.b32.xlu0 %v476_v51, %s5946_s13 }
 0x109   :  { %464 = vrot.lane.b32.xlu1 %v461_v6, %s5945_s11 }
 0x10a   :  { %506 = vrot.lane.b32.xlu0 %v503_v8, %s5947_s14 }
 0x10d   :  { %483 = vrot.lane.b32.xlu1 %v478_v53, %s5946_s13 }
 0x10e   :  { %510 = vrot.lane.b32.xlu0 %v505_v17, %s5947_s14 }
 0x111   :  { %521 = vrot.lane.b32.xlu1 %v518_v56, %s5948_s16 }
 0x112   :  { %395 = vrot.lane.b32.xlu0 %v391_v57, %s5942_s28 }
 0x115   :  { %410 = vrot.lane.b32.xlu1 %v406_v5, %s5943_s29 }
 0x116   :  { %425 = vrot.lane.b32.xlu0 %v421_v9, %s5944_s30 }
 0x119   :  { %466 = vrot.lane.b32.xlu1 %v462_v31, %s5945_s11 }
 0x11a   :  { %481 = vrot.lane.b32.xlu0 %v477_v33, %s5946_s13 }
 0x11d   :  { %508 = vrot.lane.b32.xlu1 %v504_v13, %s5947_s14 }
 0x11e   :  { %523 = vrot.lane.b32.xlu0 %v519_v34, %s5948_s16 }
 0x121   :  { %525 = vrot.lane.b32.xlu1 %v520_v36, %s5948_s16 }
 0x122   :  { %587 = vperm.xlu0 %5548, %v580_v37  }
 0x125   :  { %592 = vperm.xlu1 %5549, %v581_v12  }
 0x126   :  { %602 = vperm.xlu0 %5548, %v583_v61  }
 0x129   :  { %597 = vperm.xlu1 %5549, %v582_v38  }
 0x12a   :  { %765 = vrot.lane.b32.xlu0 %v6143_v29, %s5932_s20 }
 0x12d   :  { %607 = vperm.xlu1 %5549, %v584_v39  }
 0x131   :  { %767 = vrot.lane.b32.xlu1 %v6138_v27, %s5932_s20 }
 0x136   :  { %v450_v40 = vpop.permute.xlu0 %449 }
 0x13a   :  { %v452_v43 = vpop.permute.xlu1 %451 }
 0x14c   :  { %v440_v41 = vpop.permute.xlu0 %439 }
 0x150   :  { %v454_v49 = vpop.permute.xlu0 %453 }
 0x151   :  { %v457_v42 = vsel %vm455_vm3, %v452_v43, %v454_v49 }
 0x153   :  { %v436_v45 = vpop.permute.xlu1 %435 }
 0x163   :  { %v6326_v51 = vpop.permute.xlu1 %491 }
 0x164   :  { %v6328_v60 = vpop.permute.xlu0 %493 }
 0x167   :  { %v6330_v62 = vpop.permute.xlu1 %495 }
 0x168   :  { %v394_v63 = vpop.permute.xlu0 %393 }
 0x16b   :  { %v438_v6 = vpop.permute.xlu1 %437 }
 0x16c   :  { %v413_v8 = vpop.permute.xlu0 %412  ;;  %v442_v21 = vsel %vm441_vm1, %v436_v45, %v438_v6  ;;  %v443_v22 = vsel %vm441_vm1, %v438_v6, %v440_v41 }
 0x16d   :  { %v554_v13 = vsel %vm530_vm4, %v443_v22, %v457_v42 }
 0x16f   :  { %v398_v14 = vpop.permute.xlu1 %397 }
 0x170   :  { %v424_v15 = vpop.permute.xlu0 %423 }
 0x173   :  { %v409_v29 = vpop.permute.xlu1 %408 }
 0x174   :  { %v469_v16 = vpop.permute.xlu0 %468 }
 0x177   :  { %v428_v47 = vpop.permute.xlu1 %427 }
 0x178   :  { %v480_v27 = vpop.permute.xlu0 %479 }
 0x17b   :  { %v465_v53 = vpop.permute.xlu1 %464 }
 0x17c   :  { %v507_v17 = vpop.permute.xlu0 %506 }
 0x17f   :  { %v484_v18 = vpop.permute.xlu1 %483 }
 0x180   :  { %v511_v20 = vpop.permute.xlu0 %510 }
 0x183   :  { %v522_v54 = vpop.permute.xlu1 %521 }
 0x184   :  { %v396_v55 = vpop.permute.xlu0 %395 }
 0x185   :  { %v400_v56 = vsel %vm399_vm14, %v394_v63, %v396_v55  ;;  %v401_v57 = vsel %vm399_vm14, %v396_v55, %v398_v14  ;;  %v499_v14 = vsel %vm497_vm15, %v6328_v60, %v6330_v62 }
 0x186   :  { %v536_v25 = vsel %vm530_vm4, %v134_v52, %v401_v57  ;;  %v533_v28 = vsel %vm530_vm4, %v133_v46, %v400_v56  ;;  %v456_v52 = vsel %vm455_vm3, %v450_v40, %v452_v43  ;;  %vm527_vm3 = vcmask 965632  }
 0x187   :  { %v411_v58 = vpop.permute.xlu1 %410  ;;  %v551_v46 = vsel %vm530_vm4, %v442_v21, %v456_v52  ;;  %v498_v43 = vsel %vm497_vm15, %v6326_v51, %v6328_v60  ;;  %v5563_v60 = vld [vmem:[#allocation4 + $0x10] ss:$0 sps:$4 sm:$0xff]  }
 0x188   :  { %v415_v59 = vsel %vm414_vm2, %v409_v29, %v411_v58  ;;  %v416_v5 = vsel %vm414_vm2, %v411_v58, %v413_v8  ;;  %v426_v9 = vpop.permute.xlu0 %425 }
 0x189   :  { %v431_v31 = vsel %vm429_vm7, %v426_v9, %v428_v47  ;;  %v541_v33 = vsel %vm537_vm8, %v536_v25, %v416_v5  ;;  %v430_v10 = vsel %vm429_vm7, %v424_v15, %v426_v9  ;;  %v539_v11 = vsel %vm537_vm8, %v533_v28, %v415_v59 }
 0x18a   :  { %v547_v48 = vsel %vm542_vm11, %v541_v33, %v431_v31  ;;  %v544_v50 = vsel %vm542_vm11, %v539_v11, %v430_v10 }
 0x18b   :  { %637 = vmatprep.subr.bf16.mxu0 %v547_v48  ;;  %v467_v44 = vpop.permute.xlu1 %466 }
 0x18c   :  { %v471_v34 = vsel %vm470_vm12, %v465_v53, %v467_v44  ;;  %v472_v35 = vsel %vm470_vm12, %v467_v44, %v469_v16  ;;  %v482_v36 = vpop.permute.xlu0 %481  ;;  %638 = vmatpush1.bf16.msra.mxu0 %v544_v50  ;;  %v5561_v53 = vld [vmem:[#allocation4] sm:$0xff]   ;;  %vm623_vm12 = vcmask 359424  }
 0x18d   :  { %v486_v37 = vsel %vm485_vm13, %v480_v27, %v482_v36  ;;  %v487_v12 = vsel %vm485_vm13, %v482_v36, %v484_v18  ;;  %v558_v38 = vsel %vm537_vm8, %v554_v13, %v472_v35  ;;  %v556_v61 = vsel %vm537_vm8, %v551_v46, %v471_v34 }
 0x18e   :  { %v563_v39 = vsel %vm542_vm11, %v558_v38, %v487_v12  ;;  %v560_v40 = vsel %vm542_vm11, %v556_v61, %v486_v37  ;;  %vm758_vm13 = vcmp.ne.s16.totalorder %v6112_v19, 0 }
 0x18f   :  { %639 = vmatprep.subr.bf16.mxu0 %v563_v39  ;;  %v509_v41 = vpop.permute.xlu1 %508 }
 0x190   :  { %v513_v45 = vsel %vm512_vm0, %v507_v17, %v509_v41  ;;  %v524_v49 = vpop.permute.xlu0 %523  ;;  %640 = vmatpush1.bf16.msra.mxu0 %v560_v40  ;;  %v514_v63 = vsel %vm512_vm0, %v509_v41, %v511_v20  ;;  %v5562_v17 = vld [vmem:[#allocation4 + $0x8] sm:$0xff]  }
 0x191   :  { %v528_v6 = vsel %vm527_vm3, %v522_v54, %v524_v49  ;;  %v567_v8 = vsel %vm530_vm4, %v498_v43, %v513_v45  ;;  %v570_v47 = vsel %vm530_vm4, %v499_v14, %v514_v63 }
 0x192   :  { %v572_v29 = vsel %vm537_vm8, %v567_v8, %v528_v6 }
 0x193   :  { %v526_v15 = vpop.permute.xlu1 %525  ;;  %v633_v27 = vsel %vm542_vm11, %v572_v29, 0 }
 0x194   :  { %v529_v16 = vsel %vm527_vm3, %v524_v49, %v526_v15 }
 0x195   :  { %v574_v51 = vsel %vm537_vm8, %v570_v47, %v529_v16 }
 0x196   :  { %5280 = vmatprep.subr.msk.bf16.mxu0 %vm542_vm11, %v574_v51  ;;  %vm757_vm11 = vcmp.ne.s16.totalorder %v6119_v23, 0 }
 0x197   :  { %642 = vmatpush1.bf16.msra.mxu0 %v633_v27 }
 0x19a   :  { %5281 = vmatmul.mubr.msk.bf16.vlgmr.msra.gmra.mrb[0].mxu0 %vm623_vm12, %v5561_v53 }
 0x19b   :  { %679 = vmatprep.mubr.bf16.mxu0 %v8201_v1 }
 0x1a1   :  { %v588_v62 = vpop.permute.xlu0 %587 }
 0x1a2   :  { %5282 = vmatmul.mubr.msk.bf16.gmra.mrb[4].mxu0 %vm623_vm12, %v5562_v17 }
 0x1a3   :  { %689 = vmatprep.mubr.bf16.mxu0 %v8201_v1 }
 0x1a4   :  { %v593_v20 = vpop.permute.xlu1 %592 }
 0x1a5   :  { %v603_v11 = vpop.permute.xlu0 %602 }
 0x1a8   :  { %v598_v31 = vpop.permute.xlu1 %597 }
 0x1a9   :  { %v6394_v15 = vpop.permute.xlu0 %765 }
 0x1aa   :  { %5283 = vmatmul.mubr.msk.bf16.gmra.mrb[8].mxu0 %vm623_vm12, %v5563_v60  ;;  %vm770_vm4 = vcmp.ne.s16.totalorder %v6394_v15, 0 }
 0x1ac   :  { %v608_v38 = vpop.permute.xlu1 %607 }
 0x1b0   :  { %v6396_v29 = vpop.permute.xlu1 %767 }
 0x1b1   :  { %vm772_vm15 = vcmp.ne.s16.totalorder %v6396_v29, 0 }
 0x26d   :  { %v671_v18 = vpop.f32.mrb[0].mxu0 }
 0x26e   :  { %v672_v54 = vadd.f32 %v671_v18, %v588_v62  ;;  %v673_v55 = vpop.f32.mrb[1].mxu0 }
 0x26f   :  { %v674_v56 = vadd.f32 %v673_v55, %v588_v62  ;;  %v675_v57 = vpop.f32.mrb[2].mxu0 }
 0x270   :  { %v676_v21 = vadd.f32 %v675_v57, %v593_v20  ;;  %v677_v22 = vpop.f32.mrb[3].mxu0  ;;  %v698_v59 = vmax.f32 %v672_v54, 0.0 }
 0x271   :  { %v678_v58 = vadd.f32 %v677_v22, %v593_v20  ;;  %v699_v9 = vmax.f32 %v674_v56, 0.0 }
 0x272   :  { %v700_v5 = vmax.f32 %v676_v21, 0.0 }
 0x273   :  { %v701_v25 = vmax.f32 %v678_v58, 0.0 }
 0x274   :  { %v708_v28 = vpack.c.bf16 %v700_v5, %v698_v59 }
 0x275   :  { %v709_v33 = vpack.c.bf16 %v701_v25, %v699_v9  ;;  %v681_v10 = vpop.f32.mrb[4].mxu0 }
 0x276   :  { %v682_v48 = vadd.f32 %v681_v10, %v598_v31  ;;  %v683_v50 = vpop.f32.mrb[5].mxu0  ;;  %720 = vrot.lane.b32.xlu0 %v708_v28, %s5933_s21 }
 0x277   :  { %v684_v52 = vadd.f32 %v683_v50, %v598_v31  ;;  %v685_v42 = vpop.f32.mrb[6].mxu0  ;;  %722 = vrot.lane.b32.xlu1 %v709_v33, %s5933_s21 }
 0x278   :  { %v686_v44 = vadd.f32 %v685_v42, %v603_v11  ;;  %v687_v46 = vpop.f32.mrb[7].mxu0  ;;  %v702_v34 = vmax.f32 %v682_v48, 0.0 }
 0x279   :  { %v688_v13 = vadd.f32 %v687_v46, %v603_v11  ;;  %v703_v36 = vmax.f32 %v684_v52, 0.0 }
 0x27a   :  { %v704_v35 = vmax.f32 %v686_v44, 0.0 }
 0x27b   :  { %v705_v37 = vmax.f32 %v688_v13, 0.0 }
 0x27c   :  { %v710_v12 = vpack.c.bf16 %v704_v35, %v702_v34 }
 0x27d   :  { %v711_v61 = vpack.c.bf16 %v705_v37, %v703_v36  ;;  %v691_v39 = vpop.f32.mrb[8].mxu0 }
 0x27e   :  { %v692_v40 = vadd.f32 %v691_v39, %v608_v38  ;;  %v693_v41 = vpop.f32.mrb[9].mxu0  ;;  %724 = vrot.lane.b32.xlu0 %v710_v12, %s5933_s21 }
 0x27f   :  { %v694_v43 = vadd.f32 %v693_v41, %v608_v38  ;;  %v695_v45 = vpop.f32.mrb[10].mxu0  ;;  %726 = vrot.lane.b32.xlu1 %v711_v61, %s5933_s21 }
 0x280   :  { %v706_v49 = vmax.f32 %v692_v40, 0.0  ;;  %v696_v63 = vpop.f32.mrb[11].mxu0 }
 0x281   :  { %v707_v6 = vmax.f32 %v694_v43, 0.0 }
 0x282   :  { %v712_v8 = vpack.c.bf16 %v706_v49, %v706_v49 }
 0x283   :  { %v713_v14 = vpack.c.bf16 %v707_v6, %v707_v6 }
 0x284   :  { %728 = vrot.lane.b32.xlu0 %v712_v8, %s5933_s21 }
 0x285   :  { %730 = vrot.lane.b32.xlu1 %v713_v14, %s5933_s21 }
 0x288   :  { %782 = vrot.lane.b32.xlu0 %v6132_v26, %s5934_s22  ;;  %v6403_v26 = vsel %vm155_vm5, %v6394_v15, %v6396_v29 }
 0x289   :  { %784 = vrot.lane.b32.xlu1 %v6126_v24, %s5934_s22  ;;  %vm771_vm0 = vcmp.ne.s16.totalorder %v6403_v26, 0 }
 0x28c   :  { %799 = vrot.lane.b32.xlu0 %v6156_v32, %s5925_s10 }
 0x28d   :  { %801 = vrot.lane.b32.xlu1 %v6150_v30, %s5925_s10 }
 0x2e8   :  { %v721_v24 = vpop.permute.xlu0 %720 }
 0x2e9   :  { %v6408_v30 = vsel %vm183_vm9, 0, %v721_v24  ;;  %v723_v32 = vpop.permute.xlu1 %722 }
 0x2ea   :  { %v6411_v16 = vsel %vm183_vm9, %v721_v24, %v723_v32  ;;  %875 = vrot.lane.b32.xlu1 %v6408_v30, %s5943_s29  ;;  %v6416_v47 = vsel %vm183_vm9, %v723_v32, 0  ;;  %v759_v51 = vsel %vm757_vm11, %v6408_v30, 0  ;;  %v773_v27 = vsel %vm770_vm4, %v6408_v30, 0 }
 0x2eb   :  { %879 = vrot.lane.b32.xlu0 %v6416_v47, %s5943_s29  ;;  %5288 = vmatprep.subr.msk.bf16.mxu1 %vm758_vm13, %v6411_v16  ;;  %v826_v53 = vrot.slane %v773_v27, 4  ;;  %v775_v17 = vsel %vm772_vm15, %v6416_v47, 0  ;;  %v774_v60 = vsel %vm771_vm0, %v6411_v16, 0 }
 0x2ec   :  { %1068 = vmatpush1.bf16.msra.mxu1 %v759_v51  ;;  %v828_v18 = vrot.slane %v775_v17, 4  ;;  %v827_v55 = vrot.slane %v774_v60, 4 }
 0x2ee   :  { %877 = vrot.lane.b32.xlu1 %v6411_v16, %s5943_s29 }
 0x2ef   :  { %841 = vrot.lane.b32.xlu0 %v826_v53, %s5942_s28 }
 0x2f0   :  { %v725_v62 = vpop.permute.xlu0 %724 }
 0x2f1   :  { %v6440_v20 = vsel %vm183_vm9, 0, %v725_v62  ;;  %v727_v54 = vpop.permute.xlu1 %726 }
 0x2f2   :  { %v6443_v56 = vsel %vm183_vm9, %v725_v62, %v727_v54  ;;  %845 = vrot.lane.b32.xlu1 %v828_v18, %s5942_s28  ;;  %v761_v57 = vsel %vm757_vm11, %v6440_v20, 0  ;;  %v6486_v11 = vsel %vm183_vm9, %v727_v54, 0  ;;  %v776_v48 = vsel %vm770_vm4, %v6440_v20, 0 }
 0x2f3   :  { %843 = vrot.lane.b32.xlu0 %v827_v55, %s5942_s28  ;;  %5289 = vmatprep.subr.msk.bf16.mxu1 %vm758_vm13, %v6443_v56  ;;  %v829_v50 = vrot.slane %v776_v48, 4  ;;  %v778_v52 = vsel %vm772_vm15, %v6486_v11, 0  ;;  %v777_v42 = vsel %vm771_vm0, %v6443_v56, 0 }
 0x2f4   :  { %1070 = vmatpush1.bf16.msra.mxu1 %v761_v57  ;;  %v833_v44 = vrot.slane %v778_v52, 4  ;;  %v831_v13 = vrot.slane %v777_v42, 4 }
 0x2f5   :  { %v830_v46 = vsel %vm537_vm8, %v826_v53, %v829_v50 }
 0x2f6   :  { %v729_v21 = vpop.permute.xlu0 %728  ;;  %v834_v34 = vsel %vm537_vm8, %v828_v18, %v833_v44  ;;  %v832_v35 = vsel %vm537_vm8, %v827_v55, %v831_v13 }
 0x2f7   :  { %v6454_v22 = vsel %vm183_vm9, 0, %v729_v21  ;;  %v731_v58 = vpop.permute.xlu1 %730 }
 0x2f8   :  { %v6457_v59 = vsel %vm183_vm9, %v729_v21, %v731_v58  ;;  %v6462_v5 = vsel %vm757_vm11, %v6454_v22, 0  ;;  %v779_v36 = vsel %vm770_vm4, %v6454_v22, 0  ;;  %v6513_v37 = vsel %vm183_vm9, %v731_v58, 0 }
 0x2f9   :  { %v6467_v9 = vsel %vm758_vm13, %v6457_v59, 0  ;;  %v835_v12 = vrot.slane %v779_v36, 4  ;;  %v780_v38 = vsel %vm771_vm0, %v6457_v59, 0  ;;  %v781_v61 = vsel %vm772_vm15, %v6513_v37, 0 }
 0x2fa   :  { %v783_v25 = vpop.permute.xlu0 %782  ;;  %v837_v40 = vrot.slane %v780_v38, 4  ;;  %v839_v41 = vrot.slane %v781_v61, 4  ;;  %vm1054_vm11 = vcmask 588800   ;;  %vm8203_vm13 = vcmask 523264  }
 0x2fb   :  { %v6469_v28 = vpop.permute.xlu1 %784  ;;  %v836_v39 = vsel %vm537_vm8, %v829_v50, %v835_v12  ;;  %vm787_vm9 = vcmp.ne.s16.totalorder %v783_v25, 0  ;;  %vm2189_vm15 = vcmask 517120  }
 0x2fc   :  { %v6473_v31 = vsel %vm211_vm10, %v783_v25, %v6469_v28  ;;  %vm789_vm3 = vcmp.ne.s16.totalorder %v6469_v28, 0  ;;  %v838_v45 = vsel %vm537_vm8, %v831_v13, %v837_v40  ;;  %v790_v49 = vsel %vm787_vm9, %v6408_v30, 0 }
 0x2fd   :  { %vm788_vm12 = vcmp.ne.s16.totalorder %v6473_v31, 0  ;;  %v792_v23 = vsel %vm789_vm3, %v6416_v47, 0  ;;  %v840_v63 = vsel %vm537_vm8, %v833_v44, %v839_v41  ;;  %v795_v8 = vsel %vm789_vm3, %v6486_v11, 0 }
 0x2fe   :  { %v914_v33 = vrot.slane %v792_v23, 4  ;;  %v791_v19 = vsel %vm788_vm12, %v6411_v16, 0  ;;  %v794_v43 = vsel %vm788_vm12, %v6443_v56, 0  ;;  %v793_v14 = vsel %vm787_vm9, %v6440_v20, 0  ;;  %v800_v29 = vpop.permute.xlu0 %799 }
 0x2ff   :  { %v913_v10 = vrot.slane %v791_v19, 4  ;;  %v917_v6 = vrot.slane %v794_v43, 4  ;;  %v912_v15 = vrot.slane %v790_v49, 4  ;;  %v802_v26 = vpop.permute.xlu1 %801  ;;  %v919_v24 = vrot.slane %v795_v8, 4 }
 0x300   :  { %931 = vrot.lane.b32.xlu0 %v914_v33, %s5944_s30  ;;  %v796_v32 = vsel %vm787_vm9, %v6454_v22, 0  ;;  %v915_v51 = vrot.slane %v793_v14, 4  ;;  %v803_v53 = vsel %vm239_vm6, %v800_v29, %v802_v26  ;;  %v797_v54 = vsel %vm788_vm12, %v6457_v59, 0 }
 0x301   :  { %929 = vrot.lane.b32.xlu1 %v913_v10, %s5944_s30  ;;  %v918_v27 = vsel %vm537_vm8, %v913_v10, %v917_v6  ;;  %v921_v17 = vrot.slane %v796_v32, 4  ;;  %v920_v60 = vsel %vm537_vm8, %v914_v33, %v919_v24  ;;  %vm805_vm10 = vcmp.ne.s16.totalorder %v803_v53, 0 }
 0x302   :  { %v916_v62 = vsel %vm537_vm8, %v912_v15, %v915_v51  ;;  %vm806_vm4 = vcmp.ne.s16.totalorder %v802_v26, 0  ;;  %v808_v55 = vsel %vm805_vm10, %v6411_v16, 0  ;;  %vm804_vm6 = vcmp.ne.s16.totalorder %v800_v29, 0 }
 0x303   :  { %v922_v18 = vsel %vm537_vm8, %v915_v51, %v921_v17  ;;  %v798_v57 = vsel %vm789_vm3, %v6513_v37, 0  ;;  %v809_v21 = vsel %vm806_vm4, %v6416_v47, 0  ;;  %v923_v58 = vrot.slane %v797_v54, 4  ;;  %v5566_v47 = vld [vmem:[%s8190_s3 + $0x4] ss:$8 sps:$4 sm:$0xff]  }
 0x304   :  { %881 = vrot.lane.b32.xlu0 %v6440_v20, %s5943_s29  ;;  %v807_v25 = vsel %vm804_vm6, %v6408_v30, 0  ;;  %v925_v31 = vrot.slane %v798_v57, 4  ;;  %v811_v28 = vsel %vm805_vm10, %v6443_v56, 0  ;;  %v812_v30 = vsel %vm806_vm4, %v6486_v11, 0  ;;  %5291 = vmatprep.mubr.msk.bf16.mxu1 %vm1054_vm11, %v5566_v47 }
 0x305   :  { %885 = vrot.lane.b32.xlu1 %v6486_v11, %s5943_s29  ;;  %v924_v16 = vsel %vm537_vm8, %v917_v6, %v923_v58  ;;  %v810_v33 = vsel %vm804_vm6, %v6440_v20, 0  ;;  %v813_v19 = vsel %vm804_vm6, %v6454_v22, 0  ;;  %v815_v10 = vsel %vm806_vm4, %v6513_v37, 0  ;;  %v1012_v20 = vld [vmem:[%s8191_s4] sm:$0xff]  ;;  %v1015_v11 = vld [vmem:[%s8191_s4 + $0x18] sm:$0xff] }
 0x306   :  { %v926_v23 = vsel %vm537_vm8, %v919_v24, %v925_v31 }
 0x308   :  { %883 = vrot.lane.b32.xlu0 %v6443_v56, %s5943_s29  ;;  %v814_v56 = vsel %vm805_vm10, %v6457_v59, 0 }
 0x309   :  { %847 = vrot.lane.b32.xlu1 %v830_v46, %s5942_s28 }
 0x30c   :  { %851 = vrot.lane.b32.xlu0 %v834_v34, %s5942_s28 }
 0x30d   :  { %849 = vrot.lane.b32.xlu1 %v832_v35, %s5942_s28 }
 0x310   :  { %891 = vrot.lane.b32.xlu0 %v6513_v37, %s5943_s29 }
 0x311   :  { %887 = vrot.lane.b32.xlu1 %v6454_v22, %s5943_s29  ;;  %v1013_v22 = vld [vmem:[%s8191_s4 + $0x8] sm:$0xff] }
 0x314   :  { %853 = vrot.lane.b32.xlu0 %v836_v39, %s5942_s28 }
 0x315   :  { %889 = vrot.lane.b32.xlu1 %v6457_v59, %s5943_s29  ;;  %v1014_v59 = vld [vmem:[%s8191_s4 + $0x10] sm:$0xff] }
 0x318   :  { %855 = vrot.lane.b32.xlu0 %v838_v45, %s5942_s28 }
 0x319   :  { %857 = vrot.lane.b32.xlu1 %v840_v63, %s5942_s28 }
 0x31c   :  { %927 = vrot.lane.b32.xlu0 %v912_v15, %s5944_s30 }
 0x31d   :  { %935 = vrot.lane.b32.xlu1 %v918_v27, %s5944_s30 }
 0x320   :  { %937 = vrot.lane.b32.xlu0 %v920_v60, %s5944_s30 }
 0x321   :  { %933 = vrot.lane.b32.xlu1 %v916_v62, %s5944_s30 }
 0x324   :  { %939 = vrot.lane.b32.xlu0 %v922_v18, %s5944_s30 }
 0x325   :  { %966 = vrot.lane.b32.xlu1 %v808_v55, %s5940_s26 }
 0x328   :  { %968 = vrot.lane.b32.xlu0 %v809_v21, %s5940_s26 }
 0x329   :  { %964 = vrot.lane.b32.xlu1 %v807_v25, %s5940_s26 }
 0x32c   :  { %941 = vrot.lane.b32.xlu0 %v924_v16, %s5944_s30 }
 0x32d   :  { %943 = vrot.lane.b32.xlu1 %v926_v23, %s5944_s30 }
 0x330   :  { %972 = vrot.lane.b32.xlu0 %v811_v28, %s5940_s26 }
 0x331   :  { %974 = vrot.lane.b32.xlu1 %v812_v30, %s5940_s26 }
 0x334   :  { %970 = vrot.lane.b32.xlu0 %v810_v33, %s5940_s26 }
 0x335   :  { %976 = vrot.lane.b32.xlu1 %v813_v19, %s5940_s26 }
 0x338   :  { %978 = vrot.lane.b32.xlu0 %v814_v56, %s5940_s26 }
 0x339   :  { %980 = vrot.lane.b32.xlu1 %v815_v10, %s5940_s26 }
 0x33c   :  { %1018 = vperm.xlu0 %5548, %v1012_v20  }
 0x33d   :  { %1023 = vperm.xlu1 %5549, %v1013_v22  }
 0x340   :  { %1028 = vperm.xlu0 %5548, %v1014_v59  }
 0x341   :  { %1033 = vperm.xlu1 %5549, %v1015_v11  }
 0x35c   :  { %v876_v48 = vpop.permute.xlu1 %875 }
 0x35d   :  { %v880_v50 = vpop.permute.xlu0 %879 }
 0x360   :  { %v878_v52 = vpop.permute.xlu1 %877 }
 0x361   :  { %v842_v42 = vpop.permute.xlu0 %841  ;;  %v894_v24 = vsel %vm414_vm2, %v878_v52, %v880_v50  ;;  %v893_v51 = vsel %vm414_vm2, %v876_v48, %v878_v52 }
 0x364   :  { %v846_v44 = vpop.permute.xlu1 %845 }
 0x365   :  { %v844_v46 = vpop.permute.xlu0 %843 }
 0x366   :  { %v859_v13 = vsel %vm399_vm14, %v842_v42, %v844_v46  ;;  %v860_v34 = vsel %vm399_vm14, %v844_v46, %v846_v44 }
 0x367   :  { %v998_v35 = vsel %vm537_vm8, %v6467_v9, %v860_v34  ;;  %v994_v36 = vsel %vm537_vm8, %v6462_v5, %v859_v13  ;;  %v5564_v34 = vld [vmem:[%s8190_s3] ss:$8 sps:$4 sm:$0xff]  }
 0x368   :  { %1071 = vmatprep.subr.bf16.mxu1 %v998_v35  ;;  %v5567_v35 = vld [vmem:[%s8190_s3 + $0x14] ss:$8 sps:$4 sm:$0xff]  }
 0x369   :  { %1072 = vmatpush1.bf16.msra.mxu1 %v994_v36  ;;  %v5569_v36 = vld [vmem:[%s8190_s3 + $0x10] ss:$8 sps:$4 sm:$0xff]  }
 0x372   :  { %v932_v37 = vpop.permute.xlu0 %931 }
 0x373   :  { %v930_v12 = vpop.permute.xlu1 %929 }
 0x374   :  { %v946_v62 = vsel %vm429_vm7, %v930_v12, %v932_v37 }
 0x376   :  { %v882_v38 = vpop.permute.xlu0 %881 }
 0x377   :  { %v886_v61 = vpop.permute.xlu1 %885 }
 0x37a   :  { %v884_v39 = vpop.permute.xlu0 %883 }
 0x37b   :  { %v848_v40 = vpop.permute.xlu1 %847  ;;  %v896_v53 = vsel %vm414_vm2, %v884_v39, %v886_v61  ;;  %v895_v18 = vsel %vm414_vm2, %v882_v38, %v884_v39 }
 0x37e   :  { %v852_v41 = vpop.permute.xlu0 %851 }
 0x37f   :  { %v850_v43 = vpop.permute.xlu1 %849 }
 0x380   :  { %v862_v45 = vsel %vm399_vm14, %v850_v43, %v852_v41  ;;  %v861_v49 = vsel %vm399_vm14, %v848_v40, %v850_v43 }
 0x381   :  { %1073 = vmatprep.subr.bf16.mxu1 %v862_v45 }
 0x382   :  { %v892_v63 = vpop.permute.xlu0 %891  ;;  %1074 = vmatpush1.bf16.msra.mxu1 %v861_v49 }
 0x383   :  { %v888_v9 = vpop.permute.xlu1 %887 }
 0x386   :  { %v854_v6 = vpop.permute.xlu0 %853 }
 0x387   :  { %v890_v5 = vpop.permute.xlu1 %889 }
 0x388   :  { %v898_v17 = vsel %vm414_vm2, %v890_v5, %v892_v63  ;;  %v897_v58 = vsel %vm414_vm2, %v888_v9, %v890_v5 }
 0x389   :  { %v1006_v57 = vsel %vm537_vm8, %v898_v17, %v946_v62 }
 0x38a   :  { %v856_v8 = vpop.permute.xlu0 %855 }
 0x38b   :  { %v858_v14 = vpop.permute.xlu1 %857  ;;  %v863_v29 = vsel %vm399_vm14, %v854_v6, %v856_v8 }
 0x38c   :  { %v864_v15 = vsel %vm399_vm14, %v856_v8, %v858_v14  ;;  %vm1175_vm14 = vcmask 261120  }
 0x38d   :  { %1075 = vmatprep.subr.bf16.mxu1 %v864_v15 }
 0x38e   :  { %v928_v26 = vpop.permute.xlu0 %927  ;;  %1076 = vmatpush1.bf16.msra.mxu1 %v863_v29 }
 0x38f   :  { %1077 = vmatprep.subr.bf16.mxu1 %v894_v24  ;;  %v936_v32 = vpop.permute.xlu1 %935  ;;  %v945_v54 = vsel %vm429_vm7, %v928_v26, %v930_v12 }
 0x390   :  { %v1002_v25 = vsel %vm537_vm8, %v897_v58, %v945_v54  ;;  %v1163_v54 = vadd.s32 %v6072_v3, %v6068_v2 }
 0x392   :  { %v938_v27 = vpop.permute.xlu0 %937  ;;  %1078 = vmatpush1.bf16.msra.mxu1 %v893_v51 }
 0x393   :  { %1079 = vmatprep.subr.bf16.mxu1 %v896_v53  ;;  %v934_v60 = vpop.permute.xlu1 %933  ;;  %v948_v16 = vsel %vm429_vm7, %v936_v32, %v938_v27 }
 0x394   :  { %v947_v47 = vsel %vm429_vm7, %v934_v60, %v936_v32 }
 0x396   :  { %v940_v55 = vpop.permute.xlu0 %939  ;;  %1080 = vmatpush1.bf16.msra.mxu1 %v895_v18 }
 0x397   :  { %1081 = vmatprep.subr.bf16.mxu1 %v1006_v57  ;;  %v967_v21 = vpop.permute.xlu1 %966 }
 0x39a   :  { %v969_v31 = vpop.permute.xlu0 %968  ;;  %1082 = vmatpush1.bf16.msra.mxu1 %v1002_v25 }
 0x39b   :  { %1083 = vmatprep.subr.bf16.mxu1 %v948_v16  ;;  %v965_v23 = vpop.permute.xlu1 %964  ;;  %v983_v10 = vsel %vm441_vm1, %v967_v21, %v969_v31 }
 0x39c   :  { %v982_v22 = vsel %vm441_vm1, %v965_v23, %v967_v21 }
 0x39e   :  { %v942_v28 = vpop.permute.xlu0 %941  ;;  %1084 = vmatpush1.bf16.msra.mxu1 %v947_v47 }
 0x39f   :  { %v944_v30 = vpop.permute.xlu1 %943  ;;  %v949_v19 = vsel %vm429_vm7, %v940_v55, %v942_v28  ;;  %v8197_v55 = vmov 0.0  }
 0x3a0   :  { %v950_v33 = vsel %vm429_vm7, %v942_v28, %v944_v30 }
 0x3a1   :  { %1085 = vmatprep.subr.bf16.mxu1 %v950_v33 }
 0x3a2   :  { %v973_v56 = vpop.permute.xlu0 %972  ;;  %1086 = vmatpush1.bf16.msra.mxu1 %v949_v19 }
 0x3a3   :  { %1087 = vmatprep.subr.bf16.mxu1 %v983_v10  ;;  %v975_v20 = vpop.permute.xlu1 %974 }
 0x3a4   :  { %v985_v11 = vsel %vm441_vm1, %v973_v56, %v975_v20 }
 0x3a6   :  { %v971_v59 = vpop.permute.xlu0 %970  ;;  %1088 = vmatpush1.bf16.msra.mxu1 %v982_v22 }
 0x3a7   :  { %1089 = vmatprep.subr.bf16.mxu1 %v985_v11  ;;  %v977_v48 = vpop.permute.xlu1 %976  ;;  %v984_v50 = vsel %vm441_vm1, %v971_v59, %v973_v56  ;;  %v8199_v56 = vmov 1   ;;  %v6662_v59 = vadd.s32 8, %v6072_v3  ;;  %v6667_v11 = vld [vmem:[%s8192_s5 + $0x4] ss:$8 sps:$4 sm:$0xff]  }
 0x3aa   :  { %v979_v52 = vpop.permute.xlu0 %978  ;;  %1090 = vmatpush1.bf16.msra.mxu1 %v984_v50 }
 0x3ab   :  { %v981_v42 = vpop.permute.xlu1 %980  ;;  %v986_v44 = vsel %vm441_vm1, %v977_v48, %v979_v52  ;;  %v6672_v48 = vld [vmem:[%s8192_s5] ss:$8 sps:$4 sm:$0xff]  }
 0x3ac   :  { %v987_v46 = vsel %vm441_vm1, %v979_v52, %v981_v42  ;;  %v1062_v13 = vsel %vm537_vm8, %v986_v44, 0  ;;  %vm1167_vm1 = vcmp.eq.s32.totalorder %v1163_v54, 31  ;;  %v6677_v52 = vld [vmem:[%s8192_s5 + $0x14] ss:$8 sps:$4 sm:$0xff]   ;;  %v6680_v42 = vadd.s32 16, %v6072_v3 }
 0x3ad   :  { %5290 = vmatprep.subr.msk.bf16.mxu1 %vm537_vm8, %v987_v46  ;;  %v1171_v57 = vsel %vm1167_vm1, 1.0, %v8197_v55  ;;  %v1164_v46 = vadd.s32 %v6662_v59, %v6068_v2  ;;  %vm6806_vm8 = vcmp.lt.s32.totalorder %v110_v0, 192 }
 0x3ae   :  { %1092 = vmatpush1.bf16.msra.mxu1 %v1062_v13  ;;  %5440 = vmatprep.mubr.msk.f32.mxu0 %vm1175_vm14, %v1171_v57  ;;  %v6686_v13 = vadd.s32 24, %v6072_v3 }
 0x3af   :  { %2452 = vmatprep.subr.bf16.mxu1 %v6667_v11  ;;  %vm1168_vm2 = vcmp.eq.s32.totalorder %v1164_v46, 31 }
 0x3b1   :  { %1100 = vmatmul.mubr.bf16.vlgmr.msra.gmra.mrb[0].mxu1 %v5564_v34 }
 0x3b2   :  { %5292 = vmatprep.mubr.msk.bf16.mxu1 %vm1054_vm11, %v5567_v35  ;;  %2453 = vmatpush1.bf16.msra.mxu1 %v6672_v48 }
 0x3b3   :  { %2454 = vmatprep.subr.bf16.mxu1 %v6677_v52 }
 0x3b9   :  { %1110 = vmatmul.mubr.bf16.gmra.mrb[4].mxu1 %v5569_v36 }
 0x3ba   :  { %2484 = vmatprep.mubr.bf16.mxu1 %v8201_v1 }
 0x3bb   :  { %v1019_v37 = vpop.permute.xlu0 %1018 }
 0x3bc   :  { %v1024_v39 = vpop.permute.xlu1 %1023 }
 0x3bf   :  { %v1029_v5 = vpop.permute.xlu0 %1028 }
 0x3c0   :  { %v1034_v29 = vpop.permute.xlu1 %1033 }
 0x484   :  { %v1101_v12 = vpop.f32.mrb[0].mxu1 }
 0x485   :  { %v1102_v38 = vadd.f32 %v1101_v12, %v1019_v37  ;;  %v1103_v61 = vpop.f32.mrb[1].mxu1  ;;  %v6695_v12 = vld [vmem:[%s8192_s5 + $0x10] ss:$8 sps:$4 sm:$0xff]  }
 0x486   :  { %v1105_v40 = vpop.f32.mrb[2].mxu1  ;;  %v1104_v43 = vadd.f32 %v1103_v61, %v1019_v37  ;;  %v1165_v37 = vadd.s32 %v6680_v42, %v6068_v2  ;;  %2455 = vmatpush1.bf16.msra.mxu1 %v6695_v12 }
 0x487   :  { %v1120_v41 = vmax.f32 %v1102_v38, 0.0  ;;  %v1106_v45 = vadd.f32 %v1105_v40, %v1024_v39  ;;  %v1107_v49 = vpop.f32.mrb[3].mxu1 }
 0x488   :  { %v1121_v9 = vmax.f32 %v1104_v43, 0.0  ;;  %v1108_v6 = vadd.f32 %v1107_v49, %v1024_v39  ;;  %v6706_v39 = vld [vmem:[%s8192_s5 + $0x24] ss:$8 sps:$4 sm:$0xff]   ;;  %vm1169_vm7 = vcmp.eq.s32.totalorder %v1165_v37, 31  ;;  %v6717_v43 = vld [vmem:[%s8192_s5 + $0x20] ss:$8 sps:$4 sm:$0xff]  }
 0x489   :  { %v1122_v63 = vmax.f32 %v1106_v45, 0.0  ;;  %1128 = vadd.xlane.f32.xlu0 %v1120_v41  ;;  %v1166_v41 = vadd.s32 %v6686_v13, %v6068_v2  ;;  %2456 = vmatprep.subr.bf16.mxu1 %v6706_v39  ;;  %v1172_v45 = vsel %vm1168_vm2, 1.0, %v8197_v55  ;;  %v6723_v49 = vld [vmem:[%s8192_s5 + $0x34] ss:$8 sps:$4 sm:$0xff]  }
 0x48a   :  { %v1123_v24 = vmax.f32 %v1108_v6, 0.0  ;;  %2457 = vmatpush1.bf16.msra.mxu1 %v6717_v43 }
 0x48b   :  { %1130 = vadd.xlane.f32.xlu1 %v1122_v63  ;;  %v1173_v63 = vsel %vm1169_vm7, 1.0, %v8197_v55  ;;  %2458 = vmatprep.subr.bf16.mxu1 %v6723_v49 }
 0x48c   :  { %v1111_v8 = vpop.f32.mrb[4].mxu1 }
 0x48d   :  { %v1112_v14 = vadd.f32 %v1111_v8, %v1029_v5  ;;  %v1113_v15 = vpop.f32.mrb[5].mxu1  ;;  %1141 = vadd.xlane.f32.xlu0 %v1121_v9  ;;  %v6733_v9 = vld [vmem:[%s8192_s5 + $0x30] ss:$8 sps:$4 sm:$0xff]  }
 0x48e   :  { %v1115_v26 = vpop.f32.mrb[6].mxu1  ;;  %v1114_v51 = vadd.f32 %v1113_v15, %v1029_v5  ;;  %2459 = vmatpush1.bf16.msra.mxu1 %v6733_v9 }
 0x48f   :  { %v1124_v32 = vmax.f32 %v1112_v14, 0.0  ;;  %v1116_v27 = vadd.f32 %v1115_v26, %v1034_v29  ;;  %v1117_v53 = vpop.f32.mrb[7].mxu1  ;;  %2620 = vmatprep.subr.bf16.mxu1 %v6667_v11 }
 0x490   :  { %v1125_v17 = vmax.f32 %v1114_v51, 0.0  ;;  %v1118_v62 = vadd.f32 %v1117_v53, %v1034_v29  ;;  %v1273_v53 = vld [vmem:[#allocation7] ss:$4 sm:$0x3] }
 0x491   :  { %1143 = vadd.xlane.f32.xlu0 %v1123_v24  ;;  %1132 = vadd.xlane.f32.xlu1 %v1124_v32  ;;  %v1126_v60 = vmax.f32 %v1116_v27, 0.0  ;;  %v1306_v27 = vsub.s32 1, %v6072_v3 }
 0x492   :  { %v1127_v18 = vmax.f32 %v1118_v62, 0.0 }
 0x493   :  { %v6774_v54 = vrot.slane %v1273_v53, %v1306_v27 }
 0x495   :  { %1145 = vadd.xlane.f32.xlu1 %v1125_v17  ;;  %1134 = vadd.xlane.f32.xlu0 %v1126_v60  ;;  %v1275_v17 = vld [vmem:[#allocation7 + $0x1] ss:$4 sm:$0x3]  ;;  %v5951_v60 = vmov 1966171168  }
 0x496   :  { %v1395_v62 = vunpack.c.l.s4 %v5951_v60 }
 0x499   :  { %1147 = vadd.xlane.f32.xlu0 %v1127_v18  ;;  %v6772_v18 = vrot.slane %v1273_v53, %v6085_v7 }
 0x516   :  { %v1129_v21 = vpop.xlane.xlu0 %1128 }
 0x517   :  { %v1137_v31 = vmul.f32 0.0078125, %v1129_v21  ;;  %v1277_v21 = vld [vmem:[#allocation7 + $0x2] ss:$4 sm:$0x3] }
 0x518   :  { %v1131_v58 = vpop.xlane.xlu1 %1130 }
 0x519   :  { %v1138_v30 = vmul.f32 0.0078125, %v1131_v58  ;;  %v6777_v58 = vrot.slane %v1275_v17, %v6085_v7 }
 0x51a   :  { %v1142_v25 = vpop.xlane.xlu0 %1141 }
 0x51b   :  { %v1149_v16 = vmul.f32 0.0078125, %v1142_v25  ;;  %v6779_v25 = vrot.slane %v1275_v17, %v1306_v27 }
 0x51d   :  { %v1154_v23 = vsel %vm155_vm5, %v1137_v31, %v1149_v16  ;;  %v6782_v31 = vrot.slane %v1277_v21, %v6085_v7  ;;  %v6784_v16 = vrot.slane %v1277_v21, %v1306_v27 }
 0x51e   :  { %v1144_v47 = vpop.xlane.xlu0 %1143  ;;  %1281 = vperm.xlu1 %5549, %v1154_v23   ;;  %v1133_v28 = vpop.xlane.xlu1 %1132 }
 0x51f   :  { %v1150_v33 = vmul.f32 0.0078125, %v1144_v47  ;;  %v1139_v34 = vmul.f32 0.0078125, %v1133_v28 }
 0x521   :  { %v6657_v19 = vsel %vm155_vm5, %v1138_v30, %v1150_v33 }
 0x522   :  { %5550 = vset.pattern.permute.xlu1 %v8199_v56  ;;  %v1135_v10 = vpop.xlane.xlu0 %1134  ;;  %v1146_v20 = vpop.xlane.xlu1 %1145  ;;  %v5446_v22 = vpack.c.bf16 %v6657_v19, %v1154_v23 }
 0x523   :  { %1692 = vperm.xlu1 %5550, %v1154_v23   ;;  %v1151_v50 = vmul.f32 0.0078125, %v1146_v20  ;;  %v1140_v35 = vmul.f32 0.0078125, %v1135_v10  ;;  %v1396_v23 = vunpack.c.0.s8 %v1395_v62 }
 0x524   :  { %5447 = vmatprep.subr.bf16.mxu0 %v5446_v22 }
 0x525   :  { %5449 = vmatpush3.bf16.msra.mxu0 %v5446_v22  ;;  %v6698_v38 = vsel %vm155_vm5, %v1139_v34, %v1151_v50  ;;  %v6795_v37 = vsub.s32 %v1396_v23, %v6072_v3 }
 0x526   :  { %v1148_v44 = vpop.xlane.xlu0 %1147 }
 0x527   :  { %v1152_v36 = vmul.f32 0.0078125, %v1148_v44 }
 0x529   :  { %v6701_v61 = vsel %vm155_vm5, %v1140_v35, %v1152_v36  ;;  %vm1170_vm5 = vcmp.eq.s32.totalorder %v1166_v41, 31 }
 0x52a   :  { %v5450_v40 = vpack.c.bf16 %v6701_v61, %v6698_v38  ;;  %v1174_v6 = vsel %vm1170_vm5, 1.0, %v8197_v55 }
 0x52c   :  { %5451 = vmatprep.subr.bf16.mxu0 %v5450_v40 }
 0x52d   :  { %5453 = vmatpush3.bf16.msra.mxu0 %v5450_v40 }
 0x52e   :  { %2111 = vmatprep.subr.bf16.mxu0 %v6667_v11 }
 0x530   :  { %5441 = vmatmul.mubr.msk.f32.vlgmr.msra.gmra.mrb[12].mxu0 %vm1175_vm14, %v1172_v45 }
 0x531   :  { %2112 = vmatpush1.bf16.msra.mxu0 %v6672_v48  ;;  %5443 = vmatprep.mubr.msk.f32.mxu0 %vm1175_vm14, %v1173_v63 }
 0x532   :  { %2113 = vmatprep.subr.bf16.mxu0 %v6677_v52 }
 0x534   :  { %5444 = vmatmul.mubr.msk.f32.gmra.mrb[14].mxu0 %vm1175_vm14, %v1174_v6 }
 0x535   :  { %2114 = vmatpush1.bf16.msra.mxu0 %v6695_v12  ;;  %2143 = vmatprep.mubr.bf16.mxu0 %v8201_v1 }
 0x536   :  { %2115 = vmatprep.subr.bf16.mxu0 %v6706_v39 }
 0x539   :  { %2116 = vmatpush1.bf16.msra.mxu0 %v6717_v43 }
 0x53a   :  { %2117 = vmatprep.subr.bf16.mxu0 %v6723_v49 }
 0x53d   :  { %2118 = vmatpush1.bf16.msra.mxu0 %v6733_v9 }
 0x53e   :  { %2200 = vmatprep.subr.bf16.mxu0 %v6667_v11 }
 0x540   :  { %2144 = vmatmul.mubr.bf16.vlgmr.msra.gmra.mrb[16].mxu0 %v8201_v1 }
 0x541   :  { %2201 = vmatpush1.bf16.msra.mxu0 %v6672_v48  ;;  %2232 = vmatprep.mubr.bf16.mxu0 %v8201_v1 }
 0x542   :  { %2202 = vmatprep.subr.bf16.mxu0 %v6677_v52 }
 0x545   :  { %2203 = vmatpush1.bf16.msra.mxu0 %v6695_v12 }
 0x546   :  { %2204 = vmatprep.subr.bf16.mxu0 %v6706_v39 }
 0x549   :  { %2205 = vmatpush1.bf16.msra.mxu0 %v6717_v43 }
 0x54a   :  { %2206 = vmatprep.subr.bf16.mxu0 %v6723_v49 }
 0x54d   :  { %2207 = vmatpush1.bf16.msra.mxu0 %v6733_v9 }
 0x54e   :  { %2284 = vmatprep.subr.bf16.mxu0 %v6667_v11 }
 0x59d   :  { %v1282_v51 = vpop.permute.xlu1 %1281 }
 0x59e   :  { %v1310_v47 = vmul.f32 %v6772_v18, %v1282_v51  ;;  %v1311_v28 = vmul.f32 %v6774_v54, %v1282_v51 }
 0x5a2   :  { %v1693_v57 = vpop.permute.xlu1 %1692 }
 0x5a3   :  { %v1707_v30 = vmul.f32 %v1693_v57, %v6772_v18  ;;  %v1708_v33 = vmul.f32 %v1693_v57, %v6774_v54 }
 0x603   :  { %v6759_v5 = vpop.f32.mrb[12].mxu0 }
 0x604   :  { %v1254_v8 = vpop.f32.mrb[13].mxu0 }
 0x605   :  { %1716 = vperm.xlu1 %5550, %v1254_v8   ;;  %1320 = vperm.xlu0 %5548, %v1254_v8  }
 0x607   :  { %v6762_v14 = vpop.f32.mrb[14].mxu0 }
 0x608   :  { %v6764_v15 = vpop.f32.mrb[15].mxu0 }
 0x609   :  { %5551 = vset.pattern.permute.xlu1 %v8201_v1 }
 0x613   :  { %v6766_v29 = vpop.f32.mrb[16].mxu0 }
 0x614   :  { %v6768_v26 = vpop.f32.mrb[17].mxu0 }
 0x615   :  { %v2149_v24 = vpop.f32.mrb[18].mxu0 }
 0x616   :  { %v2150_v32 = vpop.f32.mrb[19].mxu0 }
 0x684   :  { %v1321_v10 = vpop.permute.xlu0 %1320  ;;  %v1717_v20 = vpop.permute.xlu1 %1716 }
 0x685   :  { %v1349_v22 = vmul.f32 %v6777_v58, %v1321_v10  ;;  %v1350_v50 = vmul.f32 %v6779_v25, %v1321_v10  ;;  %v1731_v7 = vmul.f32 %v1717_v20, %v6777_v58  ;;  %v1732_v44 = vmul.f32 %v1717_v20, %v6779_v25 }
 0x687   :  { %v1357_v46 = vadd.f32 %v1349_v22, %v1310_v47  ;;  %v1358_v34 = vadd.f32 %v1350_v50, %v1311_v28  ;;  %v1739_v35 = vadd.f32 %v1731_v7, %v1707_v30  ;;  %v1740_v36 = vadd.f32 %v1732_v44, %v1708_v33 }
 0x689   :  { %v1376_v40 = vadd.f32 %v6782_v31, %v1357_v46  ;;  %v1377_v41 = vadd.f32 %v6784_v16, %v1358_v34  ;;  %v1747_v45 = vadd.f32 %v1739_v35, %v6782_v31  ;;  %v1748_v63 = vadd.f32 %v1740_v36, %v6784_v16 }
 0x68b   :  { %v1392_v6 = vcombine.low %v1376_v40, %v1377_v41  ;;  %v1393_v8 = vcombine.high %v1376_v40, %v1377_v41  ;;  %v1763_v24 = vcombine.low %v1747_v45, %v1748_v63  ;;  %v1764_v32 = vcombine.high %v1747_v45, %v1748_v63 }
 0x68d   :  { %v1400_v51 = vrot.slane %v1392_v6, %v6795_v37  ;;  %v1407_v27 = vrot.slane %v1393_v8, %v6795_v37  ;;  %v1771_v53 = vrot.slane %v1763_v24, %v6795_v37  ;;  %v1778_v17 = vrot.slane %v1764_v32, %v6795_v37  ;;  %v6851_v24 = vld [vmem:[#allocation7 + $0x7] ss:$0 sm:$0xff] }
 0x68e   :  { %v2163_v32 = vadd.f32 %v6851_v24, %v6768_v26 }
 0x68f   :  { %v1408_v62 = vcombine.high %v1400_v51, %v1400_v51  ;;  %v1409_v57 = vcombine.high %v1407_v27, %v1407_v27  ;;  %v1416_v21 = vrot.slane %v1400_v51, %v6795_v37  ;;  %v1423_v23 = vrot.slane %v1407_v27, %v6795_v37 }
 0x690   :  { %v1779_v47 = vcombine.high %v1771_v53, %v1771_v53  ;;  %v1780_v28 = vcombine.high %v1778_v17, %v1778_v17  ;;  %v1787_v30 = vrot.slane %v1771_v53, %v6795_v37  ;;  %v1794_v33 = vrot.slane %v1778_v17, %v6795_v37 }
 0x691   :  { %v1430_v10 = vrot.slane %v1408_v62, %v6795_v37  ;;  %v1437_v20 = vrot.slane %v1409_v57, %v6795_v37  ;;  %v1438_v0 = vcombine.high %v1416_v21, %v1416_v21  ;;  %v1439_v22 = vcombine.high %v1423_v23, %v1423_v23  ;;  %1628 = vst.msk [vmem:[#allocation2] ss:$2 sm:$0x3] %vm6806_vm8, %v1416_v21 }
 0x692   :  { %1636 = vst.msk [vmem:[#allocation2 + $0x10] ss:$2 sm:$0x3] %vm6806_vm8, %v1423_v23  ;;  %v1801_v50 = vrot.slane %v1779_v47, %v6795_v37  ;;  %v1808_v7 = vrot.slane %v1780_v28, %v6795_v37  ;;  %v1809_v44 = vcombine.high %v1787_v30, %v1787_v30  ;;  %v1810_v46 = vcombine.high %v1794_v33, %v1794_v33 }
 0x693   :  { %1996 = vst.msk [vmem:[#allocation2 + $0x1] ss:$2 sm:$0x3] %vm6806_vm8, %v1787_v30  ;;  %2004 = vst.msk [vmem:[#allocation2 + $0x11] ss:$2 sm:$0x3] %vm6806_vm8, %v1794_v33  ;;  %v1440_v34 = vcombine.high %v1430_v10, %v1430_v10  ;;  %v1441_v35 = vcombine.high %v1437_v20, %v1437_v20 }
 0x694   :  { %1630 = vst.msk [vmem:[#allocation2 + $0x4] ss:$2 sm:$0x3] %vm6806_vm8, %v1430_v10  ;;  %1632 = vst.msk [vmem:[#allocation2 + $0x8] ss:$2 sm:$0x3] %vm6806_vm8, %v1438_v0  ;;  %v1811_v36 = vcombine.high %v1801_v50, %v1801_v50  ;;  %v1812_v40 = vcombine.high %v1808_v7, %v1808_v7 }
 0x695   :  { %1638 = vst.msk [vmem:[#allocation2 + $0x14] ss:$2 sm:$0x3] %vm6806_vm8, %v1437_v20  ;;  %1640 = vst.msk [vmem:[#allocation2 + $0x18] ss:$2 sm:$0x3] %vm6806_vm8, %v1439_v22 }
 0x696   :  { %1998 = vst.msk [vmem:[#allocation2 + $0x5] ss:$2 sm:$0x3] %vm6806_vm8, %v1801_v50  ;;  %2000 = vst.msk [vmem:[#allocation2 + $0x9] ss:$2 sm:$0x3] %vm6806_vm8, %v1809_v44 }
 0x697   :  { %2006 = vst.msk [vmem:[#allocation2 + $0x15] ss:$2 sm:$0x3] %vm6806_vm8, %v1808_v7  ;;  %2008 = vst.msk [vmem:[#allocation2 + $0x19] ss:$2 sm:$0x3] %vm6806_vm8, %v1810_v46 }
 0x698   :  { %1634 = vst.msk [vmem:[#allocation2 + $0xc] ss:$2 sm:$0x3] %vm6806_vm8, %v1440_v34  ;;  %1642 = vst.msk [vmem:[#allocation2 + $0x1c] ss:$2 sm:$0x3] %vm6806_vm8, %v1441_v35 }
 0x699   :  { %2002 = vst.msk [vmem:[#allocation2 + $0xd] ss:$2 sm:$0x3] %vm6806_vm8, %v1811_v36  ;;  %2010 = vst.msk [vmem:[#allocation2 + $0x1d] ss:$2 sm:$0x3] %vm6806_vm8, %v1812_v40 }
 0x69a   :  { %v2067_v41 = vld [vmem:[#allocation2] sm:$0xf] }
 0x69b   :  { %v2152_v45 = vadd.f32 %v6766_v29, %v2067_v41  ;;  %v2166_v27 = vrot.slane %v2067_v41, 2 }
 0x69d   :  { %v5305_v63 = vmul.f32 -1.442695, %v2152_v45  ;;  %v2192_v30 = vld [vmem:[#allocation2 + $0x4] sm:$0xf] }
 0x69e   :  { %v2251_v35 = vrot.slane %v2192_v30, 2 }
 0x69f   :  { %5594 = vpow2.f32 %v5305_v63 }
 0x6a9   :  { %v5595_v6 = vpop.eup %5594 }
 0x6aa   :  { %v2156_v8 = vadd.f32 1.0, %v5595_v6 }
 0x6ac   :  { %5596 = vrcp.f32 %v2156_v8 }
 0x6b6   :  { %v5597_v51 = vpop.eup %5596 }
 0x6b7   :  { %v2164_v53 = vmul.f32 %v5597_v51, %v2163_v32  ;;  %v2170_v57 = vsub.f32 1.0, %v5597_v51  ;;  %v2176_v21 = vmul.f32 0.0, %v5597_v51 }
 0x6b9   :  { %v2168_v17 = vadd.f32 %v2166_v27, %v2164_v53  ;;  %v2276_v53 = vld [vmem:[#allocation2 + $0x8] sm:$0xf] }
 0x6bb   :  { %5598 = vtanh.f32 %v2168_v17 }
 0x6c5   :  { %v5599_v62 = vpop.eup %5598 }
 0x6c6   :  { %2172 = vrot.lane.b32.xlu0 %v5599_v62, %s5924_s6 }
 0x738   :  { %v2173_v29 = vpop.permute.xlu0 %2172 }
 0x739   :  { %v2175_v23 = vmul.f32 %v2173_v29, %v2170_v57 }
 0x73b   :  { %v6856_v47 = vadd.f32 %v2176_v21, %v2175_v23 }
 0x73d   :  { %v2193_v28 = vpack.c.bf16 %v6856_v47, %v6856_v47 }
 0x73f   :  { %2195 = vrot.lane.b32.xlu1 %v2193_v28, %s5924_s6 }
 0x7b1   :  { %v2196_v26 = vpop.permute.xlu1 %2195 }
 0x7b2   :  { %5307 = vmatmul.mubr.msk.bf16.vlgmr.msra.gmra.mrb[20].mxu0 %vm8203_vm13, %v2196_v26 }
 0x7b3   :  { %2285 = vmatpush1.bf16.msra.mxu0 %v6672_v48  ;;  %2316 = vmatprep.mubr.bf16.mxu0 %v8201_v1 }
 0x7b4   :  { %2286 = vmatprep.subr.bf16.mxu0 %v6677_v52 }
 0x7b7   :  { %2287 = vmatpush1.bf16.msra.mxu0 %v6695_v12 }
 0x7b8   :  { %2288 = vmatprep.subr.bf16.mxu0 %v6706_v39 }
 0x7bb   :  { %2289 = vmatpush1.bf16.msra.mxu0 %v6717_v43 }
 0x7bc   :  { %2290 = vmatprep.subr.bf16.mxu0 %v6723_v49 }
 0x7bf   :  { %2291 = vmatpush1.bf16.msra.mxu0 %v6733_v9 }
 0x7c0   :  { %2368 = vmatprep.subr.bf16.mxu0 %v6667_v11 }
 0x885   :  { %v2234_v33 = vpop.f32.mrb[20].mxu0 }
 0x886   :  { %v2241_v10 = vadd.f32 %v2234_v33, %v2192_v30  ;;  %v2236_v20 = vpop.f32.mrb[21].mxu0 }
 0x887   :  { %v2238_v0 = vpop.f32.mrb[22].mxu0  ;;  %v2248_v46 = vadd.f32 %v6851_v24, %v2236_v20 }
 0x888   :  { %v5308_v22 = vmul.f32 -1.442695, %v2241_v10  ;;  %v2239_v50 = vpop.f32.mrb[23].mxu0  ;;  %v2335_v10 = vrot.slane %v2276_v53, 2 }
 0x88a   :  { %5600 = vpow2.f32 %v5308_v22 }
 0x894   :  { %v5601_v7 = vpop.eup %5600 }
 0x895   :  { %v2245_v44 = vadd.f32 1.0, %v5601_v7 }
 0x897   :  { %5602 = vrcp.f32 %v2245_v44 }
 0x8a1   :  { %v5603_v34 = vpop.eup %5602 }
 0x8a2   :  { %v2249_v36 = vmul.f32 %v5603_v34, %v2248_v46  ;;  %v2255_v45 = vsub.f32 1.0, %v5603_v34  ;;  %v2261_v6 = vmul.f32 %v5603_v34, %v6856_v47 }
 0x8a4   :  { %v2253_v40 = vadd.f32 %v2251_v35, %v2249_v36 }
 0x8a6   :  { %5604 = vtanh.f32 %v2253_v40  ;;  %v2360_v40 = vld [vmem:[#allocation2 + $0xc] sm:$0xf] }
 0x8b0   :  { %v5605_v41 = vpop.eup %5604 }
 0x8b1   :  { %2257 = vrot.lane.b32.xlu0 %v5605_v41, %s5924_s6 }
 0x923   :  { %v2258_v63 = vpop.permute.xlu0 %2257 }
 0x924   :  { %v2260_v8 = vmul.f32 %v2258_v63, %v2255_v45 }
 0x926   :  { %v6874_v32 = vadd.f32 %v2261_v6, %v2260_v8 }
 0x928   :  { %v2277_v51 = vpack.c.bf16 %v6874_v32, %v6874_v32 }
 0x92a   :  { %2279 = vrot.lane.b32.xlu1 %v2277_v51, %s5924_s6 }
 0x99c   :  { %v2280_v27 = vpop.permute.xlu1 %2279 }
 0x99d   :  { %5309 = vmatmul.mubr.msk.bf16.vlgmr.msra.gmra.mrb[24].mxu0 %vm8203_vm13, %v2280_v27 }
 0x99e   :  { %2369 = vmatpush1.bf16.msra.mxu0 %v6672_v48  ;;  %2400 = vmatprep.mubr.bf16.mxu0 %v8201_v1 }
 0x99f   :  { %2370 = vmatprep.subr.bf16.mxu0 %v6677_v52 }
 0x9a2   :  { %2371 = vmatpush1.bf16.msra.mxu0 %v6695_v12 }
 0x9a3   :  { %2372 = vmatprep.subr.bf16.mxu0 %v6706_v39 }
 0x9a6   :  { %2373 = vmatpush1.bf16.msra.mxu0 %v6717_v43 }
 0x9a7   :  { %2374 = vmatprep.subr.bf16.mxu0 %v6723_v49 }
 0x9aa   :  { %2375 = vmatpush1.bf16.msra.mxu0 %v6733_v9 }
 0x9ab   :  { %2536 = vmatprep.subr.bf16.mxu0 %v6667_v11 }
 0xa70   :  { %v2318_v17 = vpop.f32.mrb[24].mxu0 }
 0xa71   :  { %v2325_v62 = vadd.f32 %v2318_v17, %v2276_v53  ;;  %v2320_v57 = vpop.f32.mrb[25].mxu0 }
 0xa72   :  { %v2322_v29 = vpop.f32.mrb[26].mxu0  ;;  %v2332_v30 = vadd.f32 %v6851_v24, %v2320_v57  ;;  %v2419_v57 = vrot.slane %v2360_v40, 2 }
 0xa73   :  { %v5310_v21 = vmul.f32 -1.442695, %v2325_v62  ;;  %v2323_v23 = vpop.f32.mrb[27].mxu0 }
 0xa75   :  { %5606 = vpow2.f32 %v5310_v21 }
 0xa7f   :  { %v5607_v28 = vpop.eup %5606 }
 0xa80   :  { %v2329_v26 = vadd.f32 1.0, %v5607_v28 }
 0xa82   :  { %5608 = vrcp.f32 %v2329_v26 }
 0xa8c   :  { %v5609_v33 = vpop.eup %5608 }
 0xa8d   :  { %v2333_v20 = vmul.f32 %v5609_v33, %v2332_v30  ;;  %v2339_v50 = vsub.f32 1.0, %v5609_v33  ;;  %v2345_v44 = vmul.f32 %v5609_v33, %v6874_v32 }
 0xa8f   :  { %v2337_v0 = vadd.f32 %v2335_v10, %v2333_v20 }
 0xa91   :  { %5610 = vtanh.f32 %v2337_v0 }
 0xa9b   :  { %v5611_v22 = vpop.eup %5610 }
 0xa9c   :  { %2341 = vrot.lane.b32.xlu0 %v5611_v22, %s5924_s6  ;;  %v2444_v22 = vld [vmem:[#allocation2 + $0x10] sm:$0xf] }
 0xb0e   :  { %v2342_v7 = vpop.permute.xlu0 %2341 }
 0xb0f   :  { %v2344_v46 = vmul.f32 %v2342_v7, %v2339_v50 }
 0xb11   :  { %v6892_v34 = vadd.f32 %v2345_v44, %v2344_v46 }
 0xb13   :  { %v2361_v35 = vpack.c.bf16 %v6892_v34, %v6892_v34 }
 0xb15   :  { %2363 = vrot.lane.b32.xlu1 %v2361_v35, %s5924_s6 }
 0xb87   :  { %v2364_v36 = vpop.permute.xlu1 %2363 }
 0xb88   :  { %5311 = vmatmul.mubr.msk.bf16.vlgmr.msra.gmra.mrb[28].mxu0 %vm8203_vm13, %v2364_v36 }
 0xb89   :  { %2537 = vmatpush1.bf16.msra.mxu0 %v6672_v48  ;;  %2568 = vmatprep.mubr.bf16.mxu0 %v8201_v1 }
 0xb8a   :  { %2538 = vmatprep.subr.bf16.mxu0 %v6677_v52 }
 0xb8d   :  { %2539 = vmatpush1.bf16.msra.mxu0 %v6695_v12 }
 0xb8e   :  { %2540 = vmatprep.subr.bf16.mxu0 %v6706_v39 }
 0xb91   :  { %2541 = vmatpush1.bf16.msra.mxu0 %v6717_v43 }
 0xb92   :  { %2542 = vmatprep.subr.bf16.mxu0 %v6723_v49 }
 0xb95   :  { %2543 = vmatpush1.bf16.msra.mxu0 %v6733_v9 }
 0xb96   :  { %2704 = vmatprep.subr.bf16.mxu0 %v6667_v11 }
 0xc5b   :  { %v2402_v41 = vpop.f32.mrb[28].mxu0 }
 0xc5c   :  { %v2409_v45 = vadd.f32 %v2402_v41, %v2360_v40  ;;  %v2404_v63 = vpop.f32.mrb[29].mxu0 }
 0xc5d   :  { %v2406_v6 = vpop.f32.mrb[30].mxu0  ;;  %v2416_v17 = vadd.f32 %v6851_v24, %v2404_v63 }
 0xc5e   :  { %v5312_v8 = vmul.f32 -1.442695, %v2409_v45  ;;  %v2407_v51 = vpop.f32.mrb[31].mxu0  ;;  %v2503_v6 = vrot.slane %v2444_v22, 2 }
 0xc60   :  { %5612 = vpow2.f32 %v5312_v8 }
 0xc6a   :  { %v5613_v27 = vpop.eup %5612 }
 0xc6b   :  { %v2413_v53 = vadd.f32 1.0, %v5613_v27 }
 0xc6d   :  { %5614 = vrcp.f32 %v2413_v53 }
 0xc77   :  { %v5615_v62 = vpop.eup %5614 }
 0xc78   :  { %v2417_v29 = vmul.f32 %v5615_v62, %v2416_v17  ;;  %v2423_v28 = vsub.f32 1.0, %v5615_v62  ;;  %v2429_v30 = vmul.f32 %v5615_v62, %v6892_v34 }
 0xc7a   :  { %v2421_v21 = vadd.f32 %v2419_v57, %v2417_v29 }
 0xc7c   :  { %5616 = vtanh.f32 %v2421_v21 }
 0xc86   :  { %v5617_v23 = vpop.eup %5616 }
 0xc87   :  { %2425 = vrot.lane.b32.xlu0 %v5617_v23, %s5924_s6 }
 0xcf9   :  { %v2426_v26 = vpop.permute.xlu0 %2425 }
 0xcfa   :  { %v2428_v33 = vmul.f32 %v2426_v26, %v2423_v28  ;;  %v2528_v28 = vld [vmem:[#allocation2 + $0x14] sm:$0xf] }
 0xcfc   :  { %v6910_v10 = vadd.f32 %v2429_v30, %v2428_v33 }
 0xcfe   :  { %v2445_v20 = vpack.c.bf16 %v6910_v10, %v6910_v10 }
 0xd00   :  { %2447 = vrot.lane.b32.xlu1 %v2445_v20, %s5924_s6 }
 0xd72   :  { %v2448_v0 = vpop.permute.xlu1 %2447 }
 0xd73   :  { %5313 = vmatmul.mubr.msk.bf16.vlgmr.msra.gmra.mrb[8].mxu1 %vm8203_vm13, %v2448_v0 }
 0xd74   :  { %2621 = vmatpush1.bf16.msra.mxu1 %v6672_v48  ;;  %2652 = vmatprep.mubr.bf16.mxu1 %v8201_v1 }
 0xd75   :  { %2622 = vmatprep.subr.bf16.mxu1 %v6677_v52 }
 0xd78   :  { %2623 = vmatpush1.bf16.msra.mxu1 %v6695_v12 }
 0xd79   :  { %2624 = vmatprep.subr.bf16.mxu1 %v6706_v39 }
 0xd7c   :  { %2625 = vmatpush1.bf16.msra.mxu1 %v6717_v43 }
 0xd7d   :  { %2626 = vmatprep.subr.bf16.mxu1 %v6723_v49 }
 0xd80   :  { %2627 = vmatpush1.bf16.msra.mxu1 %v6733_v9 }
 0xd81   :  { %2788 = vmatprep.subr.bf16.mxu1 %v6667_v11 }
 0xe46   :  { %v2486_v50 = vpop.f32.mrb[8].mxu1 }
 0xe47   :  { %v2493_v7 = vadd.f32 %v2486_v50, %v2444_v22  ;;  %v2488_v44 = vpop.f32.mrb[9].mxu1 }
 0xe48   :  { %v2490_v46 = vpop.f32.mrb[10].mxu1  ;;  %v2500_v45 = vadd.f32 %v6851_v24, %v2488_v44 }
 0xe49   :  { %v5314_v35 = vmul.f32 -1.442695, %v2493_v7  ;;  %v2491_v36 = vpop.f32.mrb[11].mxu1 }
 0xe4b   :  { %5618 = vpow2.f32 %v5314_v35  ;;  %v2587_v35 = vrot.slane %v2528_v28, 2 }
 0xe55   :  { %v5619_v40 = vpop.eup %5618 }
 0xe56   :  { %v2497_v41 = vadd.f32 1.0, %v5619_v40 }
 0xe58   :  { %5620 = vrcp.f32 %v2497_v41 }
 0xe62   :  { %v5621_v63 = vpop.eup %5620 }
 0xe63   :  { %v2501_v8 = vmul.f32 %v5621_v63, %v2500_v45  ;;  %v2507_v53 = vsub.f32 1.0, %v5621_v63  ;;  %v2513_v62 = vmul.f32 %v5621_v63, %v6910_v10 }
 0xe65   :  { %v2505_v51 = vadd.f32 %v2503_v6, %v2501_v8 }
 0xe67   :  { %5622 = vtanh.f32 %v2505_v51 }
 0xe71   :  { %v5623_v27 = vpop.eup %5622 }
 0xe72   :  { %2509 = vrot.lane.b32.xlu0 %v5623_v27, %s5924_s6 }
 0xee4   :  { %v2510_v17 = vpop.permute.xlu0 %2509 }
 0xee5   :  { %v2512_v57 = vmul.f32 %v2510_v17, %v2507_v53  ;;  %v2612_v17 = vld [vmem:[#allocation2 + $0x18] sm:$0xf] }
 0xee7   :  { %v6928_v29 = vadd.f32 %v2513_v62, %v2512_v57 }
 0xee9   :  { %v2529_v21 = vpack.c.bf16 %v6928_v29, %v6928_v29 }
 0xeeb   :  { %2531 = vrot.lane.b32.xlu1 %v2529_v21, %s5924_s6 }
 0xf5d   :  { %v2532_v23 = vpop.permute.xlu1 %2531 }
 0xf5e   :  { %5315 = vmatmul.mubr.msk.bf16.vlgmr.msra.gmra.mrb[32].mxu0 %vm8203_vm13, %v2532_v23 }
 0xf5f   :  { %2705 = vmatpush1.bf16.msra.mxu0 %v6672_v48  ;;  %2736 = vmatprep.mubr.bf16.mxu0 %v8201_v1 }
 0xf60   :  { %2706 = vmatprep.subr.bf16.mxu0 %v6677_v52 }
 0xf63   :  { %2707 = vmatpush1.bf16.msra.mxu0 %v6695_v12 }
 0xf64   :  { %2708 = vmatprep.subr.bf16.mxu0 %v6706_v39 }
 0xf67   :  { %2709 = vmatpush1.bf16.msra.mxu0 %v6717_v43 }
 0xf68   :  { %2710 = vmatprep.subr.bf16.mxu0 %v6723_v49 }
 0xf6b   :  { %2711 = vmatpush1.bf16.msra.mxu0 %v6733_v9 }
 0xf6c   :  { %2872 = vmatprep.subr.bf16.mxu0 %v6667_v11 }
0x1031   :  { %v2570_v26 = vpop.f32.mrb[32].mxu0 }
0x1032   :  { %v2577_v30 = vadd.f32 %v2570_v26, %v2528_v28  ;;  %v2572_v33 = vpop.f32.mrb[33].mxu0 }
0x1033   :  { %v2574_v20 = vpop.f32.mrb[34].mxu0  ;;  %v2584_v44 = vadd.f32 %v6851_v24, %v2572_v33 }
0x1034   :  { %v5316_v0 = vmul.f32 -1.442695, %v2577_v30  ;;  %v2575_v22 = vpop.f32.mrb[35].mxu0 }
0x1035   :  { %v2671_v22 = vrot.slane %v2612_v17, 2 }
0x1036   :  { %5624 = vpow2.f32 %v5316_v0 }
0x1040   :  { %v5625_v50 = vpop.eup %5624 }
0x1041   :  { %v2581_v7 = vadd.f32 1.0, %v5625_v50 }
0x1043   :  { %5626 = vrcp.f32 %v2581_v7 }
0x104d   :  { %v5627_v46 = vpop.eup %5626 }
0x104e   :  { %v2585_v36 = vmul.f32 %v5627_v46, %v2584_v44  ;;  %v2591_v45 = vsub.f32 1.0, %v5627_v46  ;;  %v2597_v6 = vmul.f32 %v5627_v46, %v6928_v29 }
0x1050   :  { %v2589_v40 = vadd.f32 %v2587_v35, %v2585_v36 }
0x1052   :  { %5628 = vtanh.f32 %v2589_v40 }
0x105c   :  { %v5629_v41 = vpop.eup %5628 }
0x105d   :  { %2593 = vrot.lane.b32.xlu0 %v5629_v41, %s5924_s6 }
0x10cf   :  { %v2594_v63 = vpop.permute.xlu0 %2593 }
0x10d0   :  { %v2596_v8 = vmul.f32 %v2594_v63, %v2591_v45 }
0x10d2   :  { %v6946_v51 = vadd.f32 %v2597_v6, %v2596_v8  ;;  %v2696_v6 = vld [vmem:[#allocation2 + $0x1c] sm:$0xf] }
0x10d4   :  { %v2613_v27 = vpack.c.bf16 %v6946_v51, %v6946_v51 }
0x10d6   :  { %2615 = vrot.lane.b32.xlu1 %v2613_v27, %s5924_s6 }
0x1148   :  { %v2616_v53 = vpop.permute.xlu1 %2615 }
0x1149   :  { %5317 = vmatmul.mubr.msk.bf16.vlgmr.msra.gmra.mrb[12].mxu1 %vm8203_vm13, %v2616_v53 }
0x114a   :  { %2789 = vmatpush1.bf16.msra.mxu1 %v6672_v48  ;;  %2820 = vmatprep.mubr.bf16.mxu1 %v8201_v1 }
0x114b   :  { %2790 = vmatprep.subr.bf16.mxu1 %v6677_v52 }
0x114e   :  { %2791 = vmatpush1.bf16.msra.mxu1 %v6695_v12 }
0x114f   :  { %2792 = vmatprep.subr.bf16.mxu1 %v6706_v39 }
0x1152   :  { %2793 = vmatpush1.bf16.msra.mxu1 %v6717_v43 }
0x1153   :  { %2794 = vmatprep.subr.bf16.mxu1 %v6723_v49 }
0x1156   :  { %2795 = vmatpush1.bf16.msra.mxu1 %v6733_v9 }
0x1157   :  { %2956 = vmatprep.subr.bf16.mxu1 %v6667_v11 }
0x121c   :  { %v2654_v62 = vpop.f32.mrb[12].mxu1 }
0x121d   :  { %v2661_v57 = vadd.f32 %v2654_v62, %v2612_v17  ;;  %v2656_v21 = vpop.f32.mrb[13].mxu1 }
0x121e   :  { %v2658_v23 = vpop.f32.mrb[14].mxu1  ;;  %v2668_v20 = vadd.f32 %v6851_v24, %v2656_v21 }
0x121f   :  { %v5318_v28 = vmul.f32 -1.442695, %v2661_v57  ;;  %v2659_v26 = vpop.f32.mrb[15].mxu1 }
0x1221   :  { %5630 = vpow2.f32 %v5318_v28 }
0x122b   :  { %v5631_v30 = vpop.eup %5630 }
0x122c   :  { %v2665_v33 = vadd.f32 1.0, %v5631_v30  ;;  %v2755_v30 = vrot.slane %v2696_v6, 2 }
0x122e   :  { %5632 = vrcp.f32 %v2665_v33 }
0x1238   :  { %v5633_v0 = vpop.eup %5632 }
0x1239   :  { %v2669_v50 = vmul.f32 %v5633_v0, %v2668_v20  ;;  %v2675_v46 = vsub.f32 1.0, %v5633_v0  ;;  %v2681_v36 = vmul.f32 %v5633_v0, %v6946_v51 }
0x123b   :  { %v2673_v7 = vadd.f32 %v2671_v22, %v2669_v50 }
0x123d   :  { %5634 = vtanh.f32 %v2673_v7 }
0x1247   :  { %v5635_v44 = vpop.eup %5634 }
0x1248   :  { %2677 = vrot.lane.b32.xlu0 %v5635_v44, %s5924_s6 }
0x12ba   :  { %v2678_v35 = vpop.permute.xlu0 %2677 }
0x12bb   :  { %v2680_v40 = vmul.f32 %v2678_v35, %v2675_v46 }
0x12bd   :  { %v6964_v41 = vadd.f32 %v2681_v36, %v2680_v40 }
0x12bf   :  { %v2697_v45 = vpack.c.bf16 %v6964_v41, %v6964_v41 }
0x12c1   :  { %2699 = vrot.lane.b32.xlu1 %v2697_v45, %s5924_s6 }
0x1333   :  { %v2700_v63 = vpop.permute.xlu1 %2699 }
0x1334   :  { %5319 = vmatmul.mubr.msk.bf16.vlgmr.msra.gmra.mrb[36].mxu0 %vm8203_vm13, %v2700_v63 }
0x1335   :  { %2873 = vmatpush1.bf16.msra.mxu0 %v6672_v48  ;;  %2904 = vmatprep.mubr.bf16.mxu0 %v8201_v1 }
0x1336   :  { %2874 = vmatprep.subr.bf16.mxu0 %v6677_v52 }
0x1339   :  { %2875 = vmatpush1.bf16.msra.mxu0 %v6695_v12 }
0x133a   :  { %2876 = vmatprep.subr.bf16.mxu0 %v6706_v39 }
0x133d   :  { %2877 = vmatpush1.bf16.msra.mxu0 %v6717_v43 }
0x133e   :  { %2878 = vmatprep.subr.bf16.mxu0 %v6723_v49 }
0x1341   :  { %2879 = vmatpush1.bf16.msra.mxu0 %v6733_v9 }
0x1342   :  { %3040 = vmatprep.subr.bf16.mxu0 %v6667_v11 }
0x1407   :  { %v2738_v8 = vpop.f32.mrb[36].mxu0 }
0x1408   :  { %v2745_v27 = vadd.f32 %v2738_v8, %v2696_v6  ;;  %v2740_v53 = vpop.f32.mrb[37].mxu0 }
0x1409   :  { %v2742_v17 = vpop.f32.mrb[38].mxu0  ;;  %v2752_v28 = vadd.f32 %v6851_v24, %v2740_v53 }
0x140a   :  { %v5320_v62 = vmul.f32 -1.442695, %v2745_v27  ;;  %v2743_v57 = vpop.f32.mrb[39].mxu0 }
0x140c   :  { %5636 = vpow2.f32 %v5320_v62 }
0x1416   :  { %v5637_v21 = vpop.eup %5636 }
0x1417   :  { %v2749_v23 = vadd.f32 1.0, %v5637_v21 }
0x1419   :  { %5638 = vrcp.f32 %v2749_v23 }
0x1423   :  { %v5639_v26 = vpop.eup %5638 }
0x1424   :  { %v2753_v33 = vmul.f32 %v5639_v26, %v2752_v28  ;;  %v2759_v22 = vsub.f32 1.0, %v5639_v26  ;;  %v2765_v7 = vmul.f32 %v5639_v26, %v6964_v41 }
0x1426   :  { %v2757_v20 = vadd.f32 %v2755_v30, %v2753_v33 }
0x1428   :  { %5640 = vtanh.f32 %v2757_v20 }
0x1432   :  { %v5641_v0 = vpop.eup %5640 }
0x1433   :  { %2761 = vrot.lane.b32.xlu0 %v5641_v0, %s5924_s6 }
0x1437   :  { %1286 = vperm.xlu0 %5548, %v6657_v19  }
0x143b   :  { %5552 = vset.pattern.permute.xlu0 %v8199_v56 }
0x143c   :  { %1696 = vperm.xlu0 %5552, %v6657_v19  }
0x1440   :  { %5555 = vset.pattern.permute.xlu0 %v8201_v1 }
0x14a5   :  { %v2762_v50 = vpop.permute.xlu0 %2761 }
0x14a6   :  { %v2764_v44 = vmul.f32 %v2762_v50, %v2759_v22 }
0x14a8   :  { %v6986_v46 = vadd.f32 %v2765_v7, %v2764_v44 }
0x14aa   :  { %v2781_v35 = vpack.c.bf16 %v6986_v46, %v6986_v46 }
0x14ac   :  { %2783 = vrot.lane.b32.xlu1 %v2781_v35, %s5924_s6 }
0x14b0   :  { %1325 = vperm.xlu1 %5551, %v6759_v5  }
0x14b4   :  { %5553 = vset.pattern.permute.xlu1 %v8199_v56 }
0x14b5   :  { %1720 = vperm.xlu1 %5553, %v6759_v5  }
0x14b6   :  { %v1287_v5 = vpop.permute.xlu0 %1286 }
0x14b7   :  { %v1313_v40 = vmul.f32 %v6774_v54, %v1287_v5 }
0x14b9   :  { %5554 = vset.pattern.permute.xlu1 %v8201_v1 }
0x14bb   :  { %v1697_v45 = vpop.permute.xlu0 %1696 }
0x151e   :  { %v2784_v19 = vpop.permute.xlu1 %2783 }
0x151f   :  { %5321 = vmatmul.mubr.msk.bf16.vlgmr.msra.gmra.mrb[16].mxu1 %vm8203_vm13, %v2784_v19 }
0x1520   :  { %2957 = vmatpush1.bf16.msra.mxu1 %v6672_v48  ;;  %2988 = vmatprep.mubr.bf16.mxu1 %v8201_v1  ;;  %v1312_v48 = vmul.f32 %v6772_v18, %v1287_v5 }
0x1521   :  { %2958 = vmatprep.subr.bf16.mxu1 %v6677_v52 }
0x1524   :  { %2959 = vmatpush1.bf16.msra.mxu1 %v6695_v12 }
0x1525   :  { %2960 = vmatprep.subr.bf16.mxu1 %v6706_v39 }
0x1528   :  { %2961 = vmatpush1.bf16.msra.mxu1 %v6717_v43 }
0x1529   :  { %2962 = vmatprep.subr.bf16.mxu1 %v6723_v49 }
0x152c   :  { %2963 = vmatpush1.bf16.msra.mxu1 %v6733_v9  ;;  %v1709_v9 = vmul.f32 %v1697_v45, %v6772_v18 }
0x152d   :  { %3124 = vmatprep.subr.bf16.mxu1 %v6667_v11  ;;  %v1710_v11 = vmul.f32 %v1697_v45, %v6774_v54 }
0x152f   :  { %v1326_v36 = vpop.permute.xlu1 %1325 }
0x1530   :  { %v1351_v52 = vmul.f32 %v6777_v58, %v1326_v36  ;;  %v1352_v12 = vmul.f32 %v6779_v25, %v1326_v36 }
0x1532   :  { %v1359_v39 = vadd.f32 %v1351_v52, %v1312_v48  ;;  %v1360_v63 = vadd.f32 %v1352_v12, %v1313_v40 }
0x1534   :  { %v1378_v43 = vadd.f32 %v6782_v31, %v1359_v39  ;;  %v1379_v49 = vadd.f32 %v6784_v16, %v1360_v63  ;;  %v1721_v6 = vpop.permute.xlu1 %1720 }
0x1535   :  { %v1733_v8 = vmul.f32 %v1721_v6, %v6777_v58  ;;  %v1734_v27 = vmul.f32 %v1721_v6, %v6779_v25 }
0x1536   :  { %v1442_v53 = vcombine.low %v1378_v43, %v1379_v49  ;;  %v1443_v17 = vcombine.high %v1378_v43, %v1379_v49 }
0x1537   :  { %v1741_v62 = vadd.f32 %v1733_v8, %v1709_v9  ;;  %v1742_v57 = vadd.f32 %v1734_v27, %v1710_v11 }
0x1538   :  { %v1450_v21 = vrot.slane %v1442_v53, %v6795_v37  ;;  %v1457_v23 = vrot.slane %v1443_v17, %v6795_v37 }
0x1539   :  { %v1749_v28 = vadd.f32 %v1741_v62, %v6782_v31  ;;  %v1750_v26 = vadd.f32 %v1742_v57, %v6784_v16 }
0x153a   :  { %v1458_v30 = vcombine.high %v1450_v21, %v1450_v21  ;;  %v1459_v33 = vcombine.high %v1457_v23, %v1457_v23  ;;  %v1466_v20 = vrot.slane %v1450_v21, %v6795_v37  ;;  %v1473_v0 = vrot.slane %v1457_v23, %v6795_v37 }
0x153b   :  { %v1813_v22 = vcombine.low %v1749_v28, %v1750_v26  ;;  %v1814_v50 = vcombine.high %v1749_v28, %v1750_v26 }
0x153c   :  { %v1480_v7 = vrot.slane %v1458_v30, %v6795_v37  ;;  %v1487_v44 = vrot.slane %v1459_v33, %v6795_v37  ;;  %v1488_v35 = vcombine.high %v1466_v20, %v1466_v20  ;;  %v1489_v19 = vcombine.high %v1473_v0, %v1473_v0  ;;  %1644 = vst.msk [vmem:[#allocation2 + $0x20] ss:$2 sm:$0x3] %vm6806_vm8, %v1466_v20 }
0x153d   :  { %1652 = vst.msk [vmem:[#allocation2 + $0x30] ss:$2 sm:$0x3] %vm6806_vm8, %v1473_v0  ;;  %v1821_v5 = vrot.slane %v1813_v22, %v6795_v37  ;;  %v1828_v36 = vrot.slane %v1814_v50, %v6795_v37 }
0x153e   :  { %v1490_v48 = vcombine.high %v1480_v7, %v1480_v7  ;;  %v1491_v40 = vcombine.high %v1487_v44, %v1487_v44  ;;  %1646 = vst.msk [vmem:[#allocation2 + $0x24] ss:$2 sm:$0x3] %vm6806_vm8, %v1480_v7  ;;  %1648 = vst.msk [vmem:[#allocation2 + $0x28] ss:$2 sm:$0x3] %vm6806_vm8, %v1488_v35 }
0x153f   :  { %1654 = vst.msk [vmem:[#allocation2 + $0x34] ss:$2 sm:$0x3] %vm6806_vm8, %v1487_v44  ;;  %1656 = vst.msk [vmem:[#allocation2 + $0x38] ss:$2 sm:$0x3] %vm6806_vm8, %v1489_v19  ;;  %v1829_v52 = vcombine.high %v1821_v5, %v1821_v5  ;;  %v1830_v12 = vcombine.high %v1828_v36, %v1828_v36  ;;  %v1837_v45 = vrot.slane %v1821_v5, %v6795_v37 }
0x1540   :  { %v1844_v39 = vrot.slane %v1828_v36, %v6795_v37  ;;  %1650 = vst.msk [vmem:[#allocation2 + $0x2c] ss:$2 sm:$0x3] %vm6806_vm8, %v1490_v48  ;;  %1658 = vst.msk [vmem:[#allocation2 + $0x3c] ss:$2 sm:$0x3] %vm6806_vm8, %v1491_v40 }
0x1541   :  { %v1851_v63 = vrot.slane %v1829_v52, %v6795_v37  ;;  %v1858_v43 = vrot.slane %v1830_v12, %v6795_v37  ;;  %v1859_v49 = vcombine.high %v1837_v45, %v1837_v45  ;;  %2012 = vst.msk [vmem:[#allocation2 + $0x21] ss:$2 sm:$0x3] %vm6806_vm8, %v1837_v45  ;;  %v7073_v48 = vld [vmem:[%s8192_s5] ss:$8 sps:$4 sm:$0xff]  }
0x1542   :  { %v1860_v6 = vcombine.high %v1844_v39, %v1844_v39  ;;  %2020 = vst.msk [vmem:[#allocation2 + $0x31] ss:$2 sm:$0x3] %vm6806_vm8, %v1844_v39  ;;  %v7080_v40 = vld [vmem:[%s8192_s5 + $0x14] ss:$8 sps:$4 sm:$0xff]  }
0x1543   :  { %v1861_v9 = vcombine.high %v1851_v63, %v1851_v63  ;;  %v1862_v11 = vcombine.high %v1858_v43, %v1858_v43  ;;  %2014 = vst.msk [vmem:[#allocation2 + $0x25] ss:$2 sm:$0x3] %vm6806_vm8, %v1851_v63  ;;  %2016 = vst.msk [vmem:[#allocation2 + $0x29] ss:$2 sm:$0x3] %vm6806_vm8, %v1859_v49 }
0x1544   :  { %2022 = vst.msk [vmem:[#allocation2 + $0x35] ss:$2 sm:$0x3] %vm6806_vm8, %v1858_v43  ;;  %2024 = vst.msk [vmem:[#allocation2 + $0x39] ss:$2 sm:$0x3] %vm6806_vm8, %v1860_v6 }
0x1545   :  { %2018 = vst.msk [vmem:[#allocation2 + $0x2d] ss:$2 sm:$0x3] %vm6806_vm8, %v1861_v9  ;;  %2026 = vst.msk [vmem:[#allocation2 + $0x3d] ss:$2 sm:$0x3] %vm6806_vm8, %v1862_v11 }
0x1546   :  { %v7086_v52 = vld [vmem:[%s8192_s5 + $0x10] ss:$8 sps:$4 sm:$0xff]   ;;  %v7092_v12 = vld [vmem:[%s8192_s5 + $0x24] ss:$8 sps:$4 sm:$0xff]   ;;  %v7098_v45 = vld [vmem:[%s8192_s5 + $0x20] ss:$8 sps:$4 sm:$0xff]  }
0x1547   :  { %v7104_v39 = vld [vmem:[%s8192_s5 + $0x34] ss:$8 sps:$4 sm:$0xff]   ;;  %v7110_v63 = vld [vmem:[%s8192_s5 + $0x30] ss:$8 sps:$4 sm:$0xff]   ;;  %v7116_v43 = vld [vmem:[%s8192_s5 + $0x4] ss:$8 sps:$4 sm:$0xff]  }
0x1548   :  { %v2780_v8 = vld [vmem:[#allocation2 + $0x20] sm:$0xf] }
0x1549   :  { %v2839_v33 = vrot.slane %v2780_v8, 2 }
0x154a   :  { %v2864_v49 = vld [vmem:[#allocation2 + $0x24] sm:$0xf] }
0x15f2   :  { %v2822_v27 = vpop.f32.mrb[16].mxu1 }
0x15f3   :  { %v2829_v53 = vadd.f32 %v2822_v27, %v2780_v8  ;;  %v2824_v17 = vpop.f32.mrb[17].mxu1 }
0x15f4   :  { %v2826_v62 = vpop.f32.mrb[18].mxu1  ;;  %v2836_v26 = vadd.f32 %v6851_v24, %v2824_v17 }
0x15f5   :  { %v5322_v57 = vmul.f32 -1.442695, %v2829_v53  ;;  %v2827_v21 = vpop.f32.mrb[19].mxu1 }
0x15f7   :  { %5642 = vpow2.f32 %v5322_v57 }
0x1601   :  { %v5643_v23 = vpop.eup %5642 }
0x1602   :  { %v2833_v28 = vadd.f32 1.0, %v5643_v23  ;;  %v2923_v23 = vrot.slane %v2864_v49, 2 }
0x1604   :  { %5644 = vrcp.f32 %v2833_v28 }
0x160e   :  { %v5645_v30 = vpop.eup %5644 }
0x160f   :  { %v2837_v20 = vmul.f32 %v5645_v30, %v2836_v26  ;;  %v2843_v50 = vsub.f32 1.0, %v5645_v30  ;;  %v2849_v44 = vmul.f32 %v5645_v30, %v6986_v46 }
0x1611   :  { %v2841_v0 = vadd.f32 %v2839_v33, %v2837_v20 }
0x1613   :  { %5646 = vtanh.f32 %v2841_v0 }
0x161d   :  { %v5647_v22 = vpop.eup %5646 }
0x161e   :  { %2845 = vrot.lane.b32.xlu1 %v5647_v22, %s5924_s6 }
0x1690   :  { %v2846_v7 = vpop.permute.xlu1 %2845 }
0x1691   :  { %v2848_v35 = vmul.f32 %v2846_v7, %v2843_v50 }
0x1693   :  { %v7064_v19 = vadd.f32 %v2849_v44, %v2848_v35  ;;  %v2948_v35 = vld [vmem:[#allocation2 + $0x28] sm:$0xf] }
0x1695   :  { %v2865_v5 = vpack.c.bf16 %v7064_v19, %v7064_v19 }
0x1697   :  { %2867 = vrot.lane.b32.xlu0 %v2865_v5, %s5924_s6 }
0x1709   :  { %v2868_v36 = vpop.permute.xlu0 %2867 }
0x170a   :  { %5323 = vmatmul.mubr.msk.bf16.vlgmr.msra.gmra.mrb[40].mxu0 %vm8203_vm13, %v2868_v36 }
0x170b   :  { %3041 = vmatpush1.bf16.msra.mxu0 %v7073_v48  ;;  %3072 = vmatprep.mubr.bf16.mxu0 %v8201_v1 }
0x170c   :  { %3042 = vmatprep.subr.bf16.mxu0 %v7080_v40 }
0x170f   :  { %3043 = vmatpush1.bf16.msra.mxu0 %v7086_v52 }
0x1710   :  { %3044 = vmatprep.subr.bf16.mxu0 %v7092_v12 }
0x1713   :  { %3045 = vmatpush1.bf16.msra.mxu0 %v7098_v45 }
0x1714   :  { %3046 = vmatprep.subr.bf16.mxu0 %v7104_v39 }
0x1717   :  { %3047 = vmatpush1.bf16.msra.mxu0 %v7110_v63 }
0x1718   :  { %3208 = vmatprep.subr.bf16.mxu0 %v7116_v43 }
0x17dd   :  { %v2906_v6 = vpop.f32.mrb[40].mxu0 }
0x17de   :  { %v2913_v9 = vadd.f32 %v2906_v6, %v2864_v49  ;;  %v2908_v11 = vpop.f32.mrb[41].mxu0 }
0x17df   :  { %v2910_v8 = vpop.f32.mrb[42].mxu0  ;;  %v2920_v57 = vadd.f32 %v6851_v24, %v2908_v11 }
0x17e0   :  { %v5324_v27 = vmul.f32 -1.442695, %v2913_v9  ;;  %v2911_v53 = vpop.f32.mrb[43].mxu0 }
0x17e2   :  { %5648 = vpow2.f32 %v5324_v27 }
0x17ec   :  { %v5649_v17 = vpop.eup %5648 }
0x17ed   :  { %v2917_v62 = vadd.f32 1.0, %v5649_v17 }
0x17ef   :  { %5650 = vrcp.f32 %v2917_v62  ;;  %v3007_v62 = vrot.slane %v2948_v35, 2 }
0x17f9   :  { %v5651_v21 = vpop.eup %5650 }
0x17fa   :  { %v2921_v28 = vmul.f32 %v5651_v21, %v2920_v57  ;;  %v2927_v33 = vsub.f32 1.0, %v5651_v21  ;;  %v2933_v0 = vmul.f32 %v5651_v21, %v7064_v19 }
0x17fc   :  { %v2925_v26 = vadd.f32 %v2923_v23, %v2921_v28 }
0x17fe   :  { %5652 = vtanh.f32 %v2925_v26 }
0x1808   :  { %v5653_v30 = vpop.eup %5652 }
0x1809   :  { %2929 = vrot.lane.b32.xlu1 %v5653_v30, %s5924_s6 }
0x187b   :  { %v2930_v20 = vpop.permute.xlu1 %2929 }
0x187c   :  { %v2932_v22 = vmul.f32 %v2930_v20, %v2927_v33 }
0x187e   :  { %v7122_v50 = vadd.f32 %v2933_v0, %v2932_v22 }
0x1880   :  { %v2949_v7 = vpack.c.bf16 %v7122_v50, %v7122_v50 }
0x1882   :  { %2951 = vrot.lane.b32.xlu0 %v2949_v7, %s5924_s6  ;;  %v3032_v7 = vld [vmem:[#allocation2 + $0x2c] sm:$0xf] }
0x18f4   :  { %v2952_v44 = vpop.permute.xlu0 %2951 }
0x18f5   :  { %5325 = vmatmul.mubr.msk.bf16.vlgmr.msra.gmra.mrb[20].mxu1 %vm8203_vm13, %v2952_v44 }
0x18f6   :  { %3125 = vmatpush1.bf16.msra.mxu1 %v7073_v48  ;;  %3156 = vmatprep.mubr.bf16.mxu1 %v8201_v1 }
0x18f7   :  { %3126 = vmatprep.subr.bf16.mxu1 %v7080_v40 }
0x18fa   :  { %3127 = vmatpush1.bf16.msra.mxu1 %v7086_v52 }
0x18fb   :  { %3128 = vmatprep.subr.bf16.mxu1 %v7092_v12 }
0x18fe   :  { %3129 = vmatpush1.bf16.msra.mxu1 %v7098_v45 }
0x18ff   :  { %3130 = vmatprep.subr.bf16.mxu1 %v7104_v39 }
0x1902   :  { %3131 = vmatpush1.bf16.msra.mxu1 %v7110_v63 }
0x1903   :  { %3292 = vmatprep.subr.bf16.mxu1 %v7116_v43 }
0x19c8   :  { %v2990_v5 = vpop.f32.mrb[20].mxu1 }
0x19c9   :  { %v2997_v36 = vadd.f32 %v2990_v5, %v2948_v35  ;;  %v2992_v49 = vpop.f32.mrb[21].mxu1 }
0x19ca   :  { %v2994_v6 = vpop.f32.mrb[22].mxu1  ;;  %v3004_v53 = vadd.f32 %v6851_v24, %v2992_v49 }
0x19cb   :  { %v5326_v9 = vmul.f32 -1.442695, %v2997_v36  ;;  %v2995_v11 = vpop.f32.mrb[23].mxu1 }
0x19cd   :  { %5654 = vpow2.f32 %v5326_v9 }
0x19d7   :  { %v5655_v8 = vpop.eup %5654 }
0x19d8   :  { %v3001_v27 = vadd.f32 1.0, %v5655_v8 }
0x19da   :  { %5656 = vrcp.f32 %v3001_v27 }
0x19e4   :  { %v5657_v17 = vpop.eup %5656 }
0x19e5   :  { %v3005_v57 = vmul.f32 %v5657_v17, %v3004_v53  ;;  %v3011_v28 = vsub.f32 1.0, %v5657_v17  ;;  %v3017_v30 = vmul.f32 %v5657_v17, %v7122_v50  ;;  %v3091_v53 = vrot.slane %v3032_v7, 2 }
0x19e7   :  { %v3009_v21 = vadd.f32 %v3007_v62, %v3005_v57 }
0x19e9   :  { %5658 = vtanh.f32 %v3009_v21 }
0x19f3   :  { %v5659_v23 = vpop.eup %5658 }
0x19f4   :  { %3013 = vrot.lane.b32.xlu1 %v5659_v23, %s5924_s6 }
0x1a66   :  { %v3014_v26 = vpop.permute.xlu1 %3013 }
0x1a67   :  { %v3016_v33 = vmul.f32 %v3014_v26, %v3011_v28 }
0x1a69   :  { %v7140_v20 = vadd.f32 %v3017_v30, %v3016_v33 }
0x1a6b   :  { %v3033_v0 = vpack.c.bf16 %v7140_v20, %v7140_v20 }
0x1a6d   :  { %3035 = vrot.lane.b32.xlu0 %v3033_v0, %s5924_s6  ;;  %v3116_v0 = vld [vmem:[#allocation2 + $0x30] sm:$0xf] }
0x1adf   :  { %v3036_v22 = vpop.permute.xlu0 %3035 }
0x1ae0   :  { %5327 = vmatmul.mubr.msk.bf16.vlgmr.msra.gmra.mrb[44].mxu0 %vm8203_vm13, %v3036_v22 }
0x1ae1   :  { %3209 = vmatpush1.bf16.msra.mxu0 %v7073_v48  ;;  %3240 = vmatprep.mubr.bf16.mxu0 %v8201_v1 }
0x1ae2   :  { %3210 = vmatprep.subr.bf16.mxu0 %v7080_v40 }
0x1ae5   :  { %3211 = vmatpush1.bf16.msra.mxu0 %v7086_v52 }
0x1ae6   :  { %3212 = vmatprep.subr.bf16.mxu0 %v7092_v12 }
0x1ae9   :  { %3213 = vmatpush1.bf16.msra.mxu0 %v7098_v45 }
0x1aea   :  { %3214 = vmatprep.subr.bf16.mxu0 %v7104_v39 }
0x1aed   :  { %3215 = vmatpush1.bf16.msra.mxu0 %v7110_v63 }
0x1aee   :  { %3376 = vmatprep.subr.bf16.mxu0 %v7116_v43 }
0x1bb3   :  { %v3074_v44 = vpop.f32.mrb[44].mxu0 }
0x1bb4   :  { %v3081_v35 = vadd.f32 %v3074_v44, %v3032_v7  ;;  %v3076_v5 = vpop.f32.mrb[45].mxu0 }
0x1bb5   :  { %v3078_v36 = vpop.f32.mrb[46].mxu0  ;;  %v3088_v8 = vadd.f32 %v6851_v24, %v3076_v5 }
0x1bb6   :  { %v5328_v49 = vmul.f32 -1.442695, %v3081_v35  ;;  %v3079_v6 = vpop.f32.mrb[47].mxu0 }
0x1bb8   :  { %5660 = vpow2.f32 %v5328_v49 }
0x1bc2   :  { %v5661_v9 = vpop.eup %5660 }
0x1bc3   :  { %v3085_v11 = vadd.f32 1.0, %v5661_v9  ;;  %v7173_v9 = vld [vmem:[#allocation7 + $0x7] ss:$0 sm:$0xff] }
0x1bc5   :  { %5662 = vrcp.f32 %v3085_v11 }
0x1bcf   :  { %v5663_v27 = vpop.eup %5662 }
0x1bd0   :  { %v3089_v17 = vmul.f32 %v5663_v27, %v3088_v8  ;;  %v3095_v21 = vsub.f32 1.0, %v5663_v27  ;;  %v3101_v28 = vmul.f32 %v5663_v27, %v7140_v20  ;;  %v3175_v27 = vrot.slane %v3116_v0, 2 }
0x1bd2   :  { %v3093_v62 = vadd.f32 %v3091_v53, %v3089_v17 }
0x1bd4   :  { %5664 = vtanh.f32 %v3093_v62 }
0x1bde   :  { %v5665_v57 = vpop.eup %5664 }
0x1bdf   :  { %3097 = vrot.lane.b32.xlu1 %v5665_v57, %s5924_s6 }
0x1c51   :  { %v3098_v23 = vpop.permute.xlu1 %3097 }
0x1c52   :  { %v3100_v26 = vmul.f32 %v3098_v23, %v3095_v21 }
0x1c54   :  { %v7158_v30 = vadd.f32 %v3101_v28, %v3100_v26 }
0x1c56   :  { %v3117_v33 = vpack.c.bf16 %v7158_v30, %v7158_v30 }
0x1c58   :  { %3119 = vrot.lane.b32.xlu0 %v3117_v33, %s5924_s6 }
0x1cca   :  { %v3120_v24 = vpop.permute.xlu0 %3119 }
0x1ccb   :  { %5329 = vmatmul.mubr.msk.bf16.vlgmr.msra.gmra.mrb[24].mxu1 %vm8203_vm13, %v3120_v24 }
0x1ccc   :  { %3293 = vmatpush1.bf16.msra.mxu1 %v7073_v48  ;;  %3324 = vmatprep.mubr.bf16.mxu1 %v8201_v1 }
0x1ccd   :  { %3294 = vmatprep.subr.bf16.mxu1 %v7080_v40 }
0x1cd0   :  { %3295 = vmatpush1.bf16.msra.mxu1 %v7086_v52 }
0x1cd1   :  { %3296 = vmatprep.subr.bf16.mxu1 %v7092_v12 }
0x1cd4   :  { %3297 = vmatpush1.bf16.msra.mxu1 %v7098_v45 }
0x1cd5   :  { %3298 = vmatprep.subr.bf16.mxu1 %v7104_v39 }
0x1cd8   :  { %3299 = vmatpush1.bf16.msra.mxu1 %v7110_v63 }
0x1cd9   :  { %3460 = vmatprep.subr.bf16.mxu1 %v7116_v43 }
0x1d9e   :  { %v3158_v22 = vpop.f32.mrb[24].mxu1 }
0x1d9f   :  { %v3165_v7 = vadd.f32 %v3158_v22, %v3116_v0  ;;  %v3160_v44 = vpop.f32.mrb[25].mxu1  ;;  %v3200_v0 = vld [vmem:[#allocation2 + $0x34] sm:$0xf] }
0x1da0   :  { %v3162_v35 = vpop.f32.mrb[26].mxu1  ;;  %v3172_v11 = vadd.f32 %v7173_v9, %v3160_v44 }
0x1da1   :  { %v5330_v5 = vmul.f32 -1.442695, %v3165_v7  ;;  %v3163_v36 = vpop.f32.mrb[27].mxu1 }
0x1da3   :  { %5666 = vpow2.f32 %v5330_v5 }
0x1dad   :  { %v5667_v49 = vpop.eup %5666 }
0x1dae   :  { %v3169_v6 = vadd.f32 1.0, %v5667_v49 }
0x1db0   :  { %5668 = vrcp.f32 %v3169_v6 }
0x1dba   :  { %v5669_v8 = vpop.eup %5668 }
0x1dbb   :  { %v3173_v53 = vmul.f32 %v5669_v8, %v3172_v11  ;;  %v3179_v57 = vsub.f32 1.0, %v5669_v8  ;;  %v3185_v23 = vmul.f32 %v5669_v8, %v7158_v30 }
0x1dbd   :  { %v3177_v17 = vadd.f32 %v3175_v27, %v3173_v53  ;;  %v3259_v27 = vrot.slane %v3200_v0, 2 }
0x1dbf   :  { %5670 = vtanh.f32 %v3177_v17 }
0x1dc9   :  { %v5671_v62 = vpop.eup %5670 }
0x1dca   :  { %3181 = vrot.lane.b32.xlu1 %v5671_v62, %s5924_s6 }
0x1e3c   :  { %v3182_v21 = vpop.permute.xlu1 %3181 }
0x1e3d   :  { %v3184_v28 = vmul.f32 %v3182_v21, %v3179_v57 }
0x1e3f   :  { %v7178_v26 = vadd.f32 %v3185_v23, %v3184_v28 }
0x1e41   :  { %v3201_v33 = vpack.c.bf16 %v7178_v26, %v7178_v26 }
0x1e43   :  { %3203 = vrot.lane.b32.xlu0 %v3201_v33, %s5924_s6 }
0x1eb5   :  { %v3204_v24 = vpop.permute.xlu0 %3203 }
0x1eb6   :  { %5331 = vmatmul.mubr.msk.bf16.vlgmr.msra.gmra.mrb[48].mxu0 %vm8203_vm13, %v3204_v24 }
0x1eb7   :  { %3377 = vmatpush1.bf16.msra.mxu0 %v7073_v48  ;;  %3408 = vmatprep.mubr.bf16.mxu0 %v8201_v1 }
0x1eb8   :  { %3378 = vmatprep.subr.bf16.mxu0 %v7080_v40 }
0x1ebb   :  { %3379 = vmatpush1.bf16.msra.mxu0 %v7086_v52 }
0x1ebc   :  { %3380 = vmatprep.subr.bf16.mxu0 %v7092_v12 }
0x1ebf   :  { %3381 = vmatpush1.bf16.msra.mxu0 %v7098_v45 }
0x1ec0   :  { %3382 = vmatprep.subr.bf16.mxu0 %v7104_v39 }
0x1ec3   :  { %3383 = vmatpush1.bf16.msra.mxu0 %v7110_v63 }
0x1ec4   :  { %3544 = vmatprep.subr.bf16.mxu0 %v7116_v43 }
0x1f89   :  { %v3242_v22 = vpop.f32.mrb[48].mxu0 }
0x1f8a   :  { %v3249_v7 = vadd.f32 %v3242_v22, %v3200_v0  ;;  %v3244_v44 = vpop.f32.mrb[49].mxu0  ;;  %v3284_v0 = vld [vmem:[#allocation2 + $0x38] sm:$0xf] }
0x1f8b   :  { %v3246_v35 = vpop.f32.mrb[50].mxu0  ;;  %v3256_v11 = vadd.f32 %v7173_v9, %v3244_v44 }
0x1f8c   :  { %v5332_v5 = vmul.f32 -1.442695, %v3249_v7  ;;  %v3247_v36 = vpop.f32.mrb[51].mxu0 }
0x1f8e   :  { %5672 = vpow2.f32 %v5332_v5 }
0x1f98   :  { %v5673_v49 = vpop.eup %5672 }
0x1f99   :  { %v3253_v6 = vadd.f32 1.0, %v5673_v49 }
0x1f9b   :  { %5674 = vrcp.f32 %v3253_v6 }
0x1fa5   :  { %v5675_v8 = vpop.eup %5674 }
0x1fa6   :  { %v3257_v53 = vmul.f32 %v5675_v8, %v3256_v11  ;;  %v3263_v57 = vsub.f32 1.0, %v5675_v8  ;;  %v3269_v23 = vmul.f32 %v5675_v8, %v7178_v26 }
0x1fa8   :  { %v3261_v17 = vadd.f32 %v3259_v27, %v3257_v53  ;;  %v3343_v53 = vrot.slane %v3284_v0, 2 }
0x1faa   :  { %5676 = vtanh.f32 %v3261_v17 }
0x1fb4   :  { %v5677_v62 = vpop.eup %5676 }
0x1fb5   :  { %3265 = vrot.lane.b32.xlu1 %v5677_v62, %s5924_s6 }
0x2027   :  { %v3266_v21 = vpop.permute.xlu1 %3265 }
0x2028   :  { %v3268_v28 = vmul.f32 %v3266_v21, %v3263_v57 }
0x202a   :  { %v7196_v33 = vadd.f32 %v3269_v23, %v3268_v28 }
0x202c   :  { %v3285_v24 = vpack.c.bf16 %v7196_v33, %v7196_v33 }
0x202e   :  { %3287 = vrot.lane.b32.xlu0 %v3285_v24, %s5924_s6 }
0x20a0   :  { %v3288_v22 = vpop.permute.xlu0 %3287 }
0x20a1   :  { %5333 = vmatmul.mubr.msk.bf16.vlgmr.msra.gmra.mrb[28].mxu1 %vm8203_vm13, %v3288_v22 }
0x20a2   :  { %3461 = vmatpush1.bf16.msra.mxu1 %v7073_v48  ;;  %3492 = vmatprep.mubr.bf16.mxu1 %v8201_v1 }
0x20a3   :  { %3462 = vmatprep.subr.bf16.mxu1 %v7080_v40 }
0x20a6   :  { %3463 = vmatpush1.bf16.msra.mxu1 %v7086_v52 }
0x20a7   :  { %3464 = vmatprep.subr.bf16.mxu1 %v7092_v12 }
0x20aa   :  { %3465 = vmatpush1.bf16.msra.mxu1 %v7098_v45 }
0x20ab   :  { %3466 = vmatprep.subr.bf16.mxu1 %v7104_v39 }
0x20ae   :  { %3467 = vmatpush1.bf16.msra.mxu1 %v7110_v63 }
0x20af   :  { %3628 = vmatprep.subr.bf16.mxu1 %v7116_v43 }
0x2174   :  { %v3326_v7 = vpop.f32.mrb[28].mxu1 }
0x2175   :  { %v3333_v44 = vadd.f32 %v3326_v7, %v3284_v0  ;;  %v3328_v35 = vpop.f32.mrb[29].mxu1  ;;  %v3368_v0 = vld [vmem:[#allocation2 + $0x3c] sm:$0xf] }
0x2176   :  { %v3330_v5 = vpop.f32.mrb[30].mxu1  ;;  %v3340_v8 = vadd.f32 %v7173_v9, %v3328_v35 }
0x2177   :  { %v5334_v36 = vmul.f32 -1.442695, %v3333_v44  ;;  %v3331_v49 = vpop.f32.mrb[31].mxu1 }
0x2179   :  { %5678 = vpow2.f32 %v5334_v36 }
0x2183   :  { %v5679_v6 = vpop.eup %5678 }
0x2184   :  { %v3337_v11 = vadd.f32 1.0, %v5679_v6 }
0x2186   :  { %5680 = vrcp.f32 %v3337_v11 }
0x2190   :  { %v5681_v27 = vpop.eup %5680 }
0x2191   :  { %v3341_v17 = vmul.f32 %v5681_v27, %v3340_v8  ;;  %v3347_v21 = vsub.f32 1.0, %v5681_v27  ;;  %v3353_v28 = vmul.f32 %v5681_v27, %v7196_v33 }
0x2193   :  { %v3345_v62 = vadd.f32 %v3343_v53, %v3341_v17 }
0x2195   :  { %5682 = vtanh.f32 %v3345_v62  ;;  %v3427_v62 = vrot.slane %v3368_v0, 2 }
0x219f   :  { %v5683_v57 = vpop.eup %5682 }
0x21a0   :  { %3349 = vrot.lane.b32.xlu1 %v5683_v57, %s5924_s6 }
0x2212   :  { %v3350_v23 = vpop.permute.xlu1 %3349 }
0x2213   :  { %v3352_v24 = vmul.f32 %v3350_v23, %v3347_v21 }
0x2215   :  { %v7214_v22 = vadd.f32 %v3353_v28, %v3352_v24 }
0x2217   :  { %v3369_v7 = vpack.c.bf16 %v7214_v22, %v7214_v22 }
0x2219   :  { %3371 = vrot.lane.b32.xlu0 %v3369_v7, %s5924_s6 }
0x228b   :  { %v3372_v44 = vpop.permute.xlu0 %3371 }
0x228c   :  { %5335 = vmatmul.mubr.msk.bf16.vlgmr.msra.gmra.mrb[52].mxu0 %vm8203_vm13, %v3372_v44 }
0x228d   :  { %3545 = vmatpush1.bf16.msra.mxu0 %v7073_v48  ;;  %3576 = vmatprep.mubr.bf16.mxu0 %v8201_v1 }
0x228e   :  { %3546 = vmatprep.subr.bf16.mxu0 %v7080_v40 }
0x2291   :  { %3547 = vmatpush1.bf16.msra.mxu0 %v7086_v52 }
0x2292   :  { %3548 = vmatprep.subr.bf16.mxu0 %v7092_v12 }
0x2295   :  { %3549 = vmatpush1.bf16.msra.mxu0 %v7098_v45 }
0x2296   :  { %3550 = vmatprep.subr.bf16.mxu0 %v7104_v39 }
0x2299   :  { %3551 = vmatpush1.bf16.msra.mxu0 %v7110_v63 }
0x229a   :  { %3712 = vmatprep.subr.bf16.mxu0 %v7116_v43 }
0x235f   :  { %v3410_v35 = vpop.f32.mrb[52].mxu0 }
0x2360   :  { %v3417_v5 = vadd.f32 %v3410_v35, %v3368_v0  ;;  %v3412_v36 = vpop.f32.mrb[53].mxu0 }
0x2361   :  { %v3414_v49 = vpop.f32.mrb[54].mxu0  ;;  %v3424_v53 = vadd.f32 %v7173_v9, %v3412_v36 }
0x2362   :  { %v5336_v6 = vmul.f32 -1.442695, %v3417_v5  ;;  %v3415_v11 = vpop.f32.mrb[55].mxu0 }
0x2364   :  { %5684 = vpow2.f32 %v5336_v6 }
0x236e   :  { %v5685_v8 = vpop.eup %5684 }
0x236f   :  { %v3421_v27 = vadd.f32 1.0, %v5685_v8 }
0x2371   :  { %5686 = vrcp.f32 %v3421_v27 }
0x237b   :  { %v5687_v17 = vpop.eup %5686 }
0x237c   :  { %v3425_v57 = vmul.f32 %v5687_v17, %v3424_v53  ;;  %v3431_v28 = vsub.f32 1.0, %v5687_v17  ;;  %v3437_v7 = vmul.f32 %v5687_v17, %v7214_v22 }
0x237e   :  { %v3429_v21 = vadd.f32 %v3427_v62, %v3425_v57 }
0x2380   :  { %5688 = vtanh.f32 %v3429_v21 }
0x238a   :  { %v5689_v23 = vpop.eup %5688 }
0x238b   :  { %3433 = vrot.lane.b32.xlu1 %v5689_v23, %s5924_s6 }
0x238f   :  { %1291 = vperm.xlu1 %5554, %v6698_v38  }
0x2393   :  { %5556 = vset.pattern.permute.xlu1 %v8199_v56 }
0x2394   :  { %1700 = vperm.xlu1 %5556, %v6698_v38  }
0x2398   :  { %1724 = vperm.xlu1 %5556, %v6764_v15  }
0x239c   :  { %5557 = vset.pattern.permute.xlu1 %v8201_v1 }
0x23fd   :  { %v3434_v24 = vpop.permute.xlu1 %3433 }
0x23fe   :  { %v3436_v44 = vmul.f32 %v3434_v24, %v3431_v28 }
0x2400   :  { %v7237_v0 = vadd.f32 %v3437_v7, %v3436_v44 }
0x2402   :  { %v3453_v35 = vpack.c.bf16 %v7237_v0, %v7237_v0 }
0x2404   :  { %3455 = vrot.lane.b32.xlu0 %v3453_v35, %s5924_s6 }
0x2408   :  { %1330 = vperm.xlu0 %5555, %v6764_v15  }
0x240e   :  { %v1292_v5 = vpop.permute.xlu1 %1291 }
0x2413   :  { %v1701_v38 = vpop.permute.xlu1 %1700 }
0x2414   :  { %v1711_v49 = vmul.f32 %v1701_v38, %v6772_v18  ;;  %v1712_v6 = vmul.f32 %v1701_v38, %v6774_v54 }
0x2417   :  { %v1725_v36 = vpop.permute.xlu1 %1724 }
0x2418   :  { %v1735_v11 = vmul.f32 %v1725_v36, %v6777_v58  ;;  %v1736_v8 = vmul.f32 %v1725_v36, %v6779_v25 }
0x241a   :  { %v1743_v27 = vadd.f32 %v1735_v11, %v1711_v49  ;;  %v1744_v53 = vadd.f32 %v1736_v8, %v1712_v6 }
0x241c   :  { %v1751_v17 = vadd.f32 %v1743_v27, %v6782_v31  ;;  %v1752_v62 = vadd.f32 %v1744_v53, %v6784_v16  ;;  %v1314_v53 = vmul.f32 %v6772_v18, %v1292_v5 }
0x241e   :  { %v1863_v57 = vcombine.low %v1751_v17, %v1752_v62  ;;  %v1864_v21 = vcombine.high %v1751_v17, %v1752_v62  ;;  %v1315_v17 = vmul.f32 %v6774_v54, %v1292_v5 }
0x2420   :  { %v1871_v15 = vrot.slane %v1863_v57, %v6795_v37  ;;  %v1878_v23 = vrot.slane %v1864_v21, %v6795_v37 }
0x2422   :  { %v1879_v28 = vcombine.high %v1871_v15, %v1871_v15  ;;  %v1880_v24 = vcombine.high %v1878_v23, %v1878_v23  ;;  %v1887_v7 = vrot.slane %v1871_v15, %v6795_v37  ;;  %v1894_v44 = vrot.slane %v1878_v23, %v6795_v37 }
0x2424   :  { %v1901_v35 = vrot.slane %v1879_v28, %v6795_v37  ;;  %v1908_v38 = vrot.slane %v1880_v24, %v6795_v37  ;;  %v1909_v36 = vcombine.high %v1887_v7, %v1887_v7  ;;  %v1910_v49 = vcombine.high %v1894_v44, %v1894_v44  ;;  %2028 = vst.msk [vmem:[#allocation2 + $0x41] ss:$2 sm:$0x3] %vm6806_vm8, %v1887_v7 }
0x2425   :  { %2036 = vst.msk [vmem:[#allocation2 + $0x51] ss:$2 sm:$0x3] %vm6806_vm8, %v1894_v44 }
0x2426   :  { %v1911_v6 = vcombine.high %v1901_v35, %v1901_v35  ;;  %v1912_v11 = vcombine.high %v1908_v38, %v1908_v38  ;;  %2030 = vst.msk [vmem:[#allocation2 + $0x45] ss:$2 sm:$0x3] %vm6806_vm8, %v1901_v35  ;;  %2032 = vst.msk [vmem:[#allocation2 + $0x49] ss:$2 sm:$0x3] %vm6806_vm8, %v1909_v36 }
0x2427   :  { %2038 = vst.msk [vmem:[#allocation2 + $0x55] ss:$2 sm:$0x3] %vm6806_vm8, %v1908_v38  ;;  %2040 = vst.msk [vmem:[#allocation2 + $0x59] ss:$2 sm:$0x3] %vm6806_vm8, %v1910_v49 }
0x2428   :  { %2034 = vst.msk [vmem:[#allocation2 + $0x4d] ss:$2 sm:$0x3] %vm6806_vm8, %v1911_v6  ;;  %2042 = vst.msk [vmem:[#allocation2 + $0x5d] ss:$2 sm:$0x3] %vm6806_vm8, %v1912_v11 }
0x2476   :  { %v3456_v8 = vpop.permute.xlu0 %3455 }
0x2477   :  { %5337 = vmatmul.mubr.msk.bf16.vlgmr.msra.gmra.mrb[32].mxu1 %vm8203_vm13, %v3456_v8 }
0x2478   :  { %3629 = vmatpush1.bf16.msra.mxu1 %v7073_v48  ;;  %3660 = vmatprep.mubr.bf16.mxu1 %v8201_v1 }
0x2479   :  { %3630 = vmatprep.subr.bf16.mxu1 %v7080_v40 }
0x247c   :  { %3631 = vmatpush1.bf16.msra.mxu1 %v7086_v52 }
0x247d   :  { %3632 = vmatprep.subr.bf16.mxu1 %v7092_v12 }
0x2480   :  { %3633 = vmatpush1.bf16.msra.mxu1 %v7098_v45 }
0x2481   :  { %3634 = vmatprep.subr.bf16.mxu1 %v7104_v39 }
0x2484   :  { %3635 = vmatpush1.bf16.msra.mxu1 %v7110_v63 }
0x2485   :  { %3796 = vmatprep.subr.bf16.mxu1 %v7116_v43 }
0x2487   :  { %v1331_v27 = vpop.permute.xlu0 %1330 }
0x2488   :  { %v1353_v62 = vmul.f32 %v6777_v58, %v1331_v27  ;;  %v1354_v57 = vmul.f32 %v6779_v25, %v1331_v27 }
0x248a   :  { %v1361_v21 = vadd.f32 %v1353_v62, %v1314_v53  ;;  %v1362_v15 = vadd.f32 %v1354_v57, %v1315_v17 }
0x248c   :  { %v1380_v23 = vadd.f32 %v6782_v31, %v1361_v21  ;;  %v1381_v28 = vadd.f32 %v6784_v16, %v1362_v15 }
0x248e   :  { %v1492_v24 = vcombine.low %v1380_v23, %v1381_v28  ;;  %v1493_v7 = vcombine.high %v1380_v23, %v1381_v28 }
0x2490   :  { %v1500_v44 = vrot.slane %v1492_v24, %v6795_v37  ;;  %v1507_v35 = vrot.slane %v1493_v7, %v6795_v37 }
0x2492   :  { %v1508_v38 = vcombine.high %v1500_v44, %v1500_v44  ;;  %v1509_v36 = vcombine.high %v1507_v35, %v1507_v35  ;;  %v1516_v5 = vrot.slane %v1500_v44, %v6795_v37  ;;  %v1523_v49 = vrot.slane %v1507_v35, %v6795_v37 }
0x2494   :  { %v1530_v6 = vrot.slane %v1508_v38, %v6795_v37  ;;  %v1537_v11 = vrot.slane %v1509_v36, %v6795_v37  ;;  %v1538_v8 = vcombine.high %v1516_v5, %v1516_v5  ;;  %v1539_v27 = vcombine.high %v1523_v49, %v1523_v49  ;;  %1660 = vst.msk [vmem:[#allocation2 + $0x40] ss:$2 sm:$0x3] %vm6806_vm8, %v1516_v5 }
0x2495   :  { %1668 = vst.msk [vmem:[#allocation2 + $0x50] ss:$2 sm:$0x3] %vm6806_vm8, %v1523_v49 }
0x2496   :  { %v1540_v53 = vcombine.high %v1530_v6, %v1530_v6  ;;  %v1541_v17 = vcombine.high %v1537_v11, %v1537_v11  ;;  %1662 = vst.msk [vmem:[#allocation2 + $0x44] ss:$2 sm:$0x3] %vm6806_vm8, %v1530_v6  ;;  %1664 = vst.msk [vmem:[#allocation2 + $0x48] ss:$2 sm:$0x3] %vm6806_vm8, %v1538_v8 }
0x2497   :  { %1670 = vst.msk [vmem:[#allocation2 + $0x54] ss:$2 sm:$0x3] %vm6806_vm8, %v1537_v11  ;;  %1672 = vst.msk [vmem:[#allocation2 + $0x58] ss:$2 sm:$0x3] %vm6806_vm8, %v1539_v27 }
0x2498   :  { %1666 = vst.msk [vmem:[#allocation2 + $0x4c] ss:$2 sm:$0x3] %vm6806_vm8, %v1540_v53  ;;  %1674 = vst.msk [vmem:[#allocation2 + $0x5c] ss:$2 sm:$0x3] %vm6806_vm8, %v1541_v17 }
0x249b   :  { %v3452_v62 = vld [vmem:[#allocation2 + $0x40] sm:$0xf] }
0x249c   :  { %v3511_v36 = vrot.slane %v3452_v62, 2 }
0x254a   :  { %v3494_v57 = vpop.f32.mrb[32].mxu1 }
0x254b   :  { %v3501_v21 = vadd.f32 %v3494_v57, %v3452_v62  ;;  %v3496_v15 = vpop.f32.mrb[33].mxu1  ;;  %v3536_v62 = vld [vmem:[#allocation2 + $0x44] sm:$0xf] }
0x254c   :  { %v3498_v23 = vpop.f32.mrb[34].mxu1  ;;  %v3508_v35 = vadd.f32 %v7173_v9, %v3496_v15 }
0x254d   :  { %v5338_v28 = vmul.f32 -1.442695, %v3501_v21  ;;  %v3499_v24 = vpop.f32.mrb[35].mxu1 }
0x254f   :  { %5690 = vpow2.f32 %v5338_v28 }
0x2559   :  { %v5691_v7 = vpop.eup %5690 }
0x255a   :  { %v3505_v44 = vadd.f32 1.0, %v5691_v7 }
0x255c   :  { %5692 = vrcp.f32 %v3505_v44 }
0x2566   :  { %v5693_v38 = vpop.eup %5692 }
0x2567   :  { %v3509_v5 = vmul.f32 %v5693_v38, %v3508_v35  ;;  %v3515_v11 = vsub.f32 1.0, %v5693_v38  ;;  %v3521_v27 = vmul.f32 %v5693_v38, %v7237_v0 }
0x2569   :  { %v3513_v49 = vadd.f32 %v3511_v36, %v3509_v5 }
0x256b   :  { %5694 = vtanh.f32 %v3513_v49  ;;  %v3595_v49 = vrot.slane %v3536_v62, 2 }
0x2575   :  { %v5695_v6 = vpop.eup %5694 }
0x2576   :  { %3517 = vrot.lane.b32.xlu0 %v5695_v6, %s5924_s6 }
0x25e8   :  { %v3518_v8 = vpop.permute.xlu0 %3517 }
0x25e9   :  { %v3520_v53 = vmul.f32 %v3518_v8, %v3515_v11 }
0x25eb   :  { %v7312_v17 = vadd.f32 %v3521_v27, %v3520_v53 }
0x25ed   :  { %v3537_v57 = vpack.c.bf16 %v7312_v17, %v7312_v17 }
0x25ef   :  { %3539 = vrot.lane.b32.xlu1 %v3537_v57, %s5924_s6 }
0x2661   :  { %v3540_v21 = vpop.permute.xlu1 %3539 }
0x2662   :  { %5339 = vmatmul.mubr.msk.bf16.vlgmr.msra.gmra.mrb[56].mxu0 %vm8203_vm13, %v3540_v21 }
0x2663   :  { %3713 = vmatpush1.bf16.msra.mxu0 %v7073_v48  ;;  %3744 = vmatprep.mubr.bf16.mxu0 %v8201_v1 }
0x2664   :  { %3714 = vmatprep.subr.bf16.mxu0 %v7080_v40 }
0x2667   :  { %3715 = vmatpush1.bf16.msra.mxu0 %v7086_v52 }
0x2668   :  { %3716 = vmatprep.subr.bf16.mxu0 %v7092_v12 }
0x266b   :  { %3717 = vmatpush1.bf16.msra.mxu0 %v7098_v45 }
0x266c   :  { %3718 = vmatprep.subr.bf16.mxu0 %v7104_v39 }
0x266f   :  { %3719 = vmatpush1.bf16.msra.mxu0 %v7110_v63 }
0x2670   :  { %3880 = vmatprep.subr.bf16.mxu0 %v7116_v43 }
0x2735   :  { %v3578_v15 = vpop.f32.mrb[56].mxu0 }
0x2736   :  { %v3585_v23 = vadd.f32 %v3578_v15, %v3536_v62  ;;  %v3580_v28 = vpop.f32.mrb[57].mxu0  ;;  %v3620_v62 = vld [vmem:[#allocation2 + $0x48] sm:$0xf] }
0x2737   :  { %v3582_v24 = vpop.f32.mrb[58].mxu0  ;;  %v3592_v36 = vadd.f32 %v7173_v9, %v3580_v28 }
0x2738   :  { %v5340_v7 = vmul.f32 -1.442695, %v3585_v23  ;;  %v3583_v44 = vpop.f32.mrb[59].mxu0 }
0x273a   :  { %5696 = vpow2.f32 %v5340_v7 }
0x2744   :  { %v5697_v35 = vpop.eup %5696 }
0x2745   :  { %v3589_v38 = vadd.f32 1.0, %v5697_v35 }
0x2747   :  { %5698 = vrcp.f32 %v3589_v38 }
0x2751   :  { %v5699_v5 = vpop.eup %5698 }
0x2752   :  { %v3593_v6 = vmul.f32 %v5699_v5, %v3592_v36  ;;  %v3599_v27 = vsub.f32 1.0, %v5699_v5  ;;  %v3605_v57 = vmul.f32 %v5699_v5, %v7312_v17 }
0x2754   :  { %v3597_v11 = vadd.f32 %v3595_v49, %v3593_v6 }
0x2756   :  { %5700 = vtanh.f32 %v3597_v11 }
0x2760   :  { %v5701_v8 = vpop.eup %5700 }
0x2761   :  { %3601 = vrot.lane.b32.xlu0 %v5701_v8, %s5924_s6  ;;  %v3679_v8 = vrot.slane %v3620_v62, 2 }
0x27d3   :  { %v3602_v53 = vpop.permute.xlu0 %3601 }
0x27d4   :  { %v3604_v21 = vmul.f32 %v3602_v53, %v3599_v27 }
0x27d6   :  { %v7330_v15 = vadd.f32 %v3605_v57, %v3604_v21 }
0x27d8   :  { %v3621_v23 = vpack.c.bf16 %v7330_v15, %v7330_v15 }
0x27da   :  { %3623 = vrot.lane.b32.xlu1 %v3621_v23, %s5924_s6 }
0x284c   :  { %v3624_v28 = vpop.permute.xlu1 %3623 }
0x284d   :  { %5341 = vmatmul.mubr.msk.bf16.vlgmr.msra.gmra.mrb[36].mxu1 %vm8203_vm13, %v3624_v28 }
0x284e   :  { %3797 = vmatpush1.bf16.msra.mxu1 %v7073_v48  ;;  %3828 = vmatprep.mubr.bf16.mxu1 %v8201_v1 }
0x284f   :  { %3798 = vmatprep.subr.bf16.mxu1 %v7080_v40 }
0x2852   :  { %3799 = vmatpush1.bf16.msra.mxu1 %v7086_v52 }
0x2853   :  { %3800 = vmatprep.subr.bf16.mxu1 %v7092_v12 }
0x2856   :  { %3801 = vmatpush1.bf16.msra.mxu1 %v7098_v45 }
0x2857   :  { %3802 = vmatprep.subr.bf16.mxu1 %v7104_v39 }
0x285a   :  { %3803 = vmatpush1.bf16.msra.mxu1 %v7110_v63 }
0x285b   :  { %3964 = vmatprep.subr.bf16.mxu1 %v7116_v43 }
0x2920   :  { %v3662_v24 = vpop.f32.mrb[36].mxu1 }
0x2921   :  { %v3669_v7 = vadd.f32 %v3662_v24, %v3620_v62  ;;  %v3664_v44 = vpop.f32.mrb[37].mxu1  ;;  %v3704_v62 = vld [vmem:[#allocation2 + $0x4c] sm:$0xf] }
0x2922   :  { %v3666_v35 = vpop.f32.mrb[38].mxu1  ;;  %v3676_v6 = vadd.f32 %v7173_v9, %v3664_v44 }
0x2923   :  { %v5342_v38 = vmul.f32 -1.442695, %v3669_v7  ;;  %v3667_v36 = vpop.f32.mrb[39].mxu1 }
0x2925   :  { %5702 = vpow2.f32 %v5342_v38 }
0x292f   :  { %v5703_v5 = vpop.eup %5702 }
0x2930   :  { %v3673_v49 = vadd.f32 1.0, %v5703_v5 }
0x2932   :  { %5704 = vrcp.f32 %v3673_v49 }
0x293c   :  { %v5705_v11 = vpop.eup %5704 }
0x293d   :  { %v3677_v27 = vmul.f32 %v5705_v11, %v3676_v6  ;;  %v3683_v21 = vsub.f32 1.0, %v5705_v11  ;;  %v3689_v28 = vmul.f32 %v5705_v11, %v7330_v15 }
0x293f   :  { %v3681_v53 = vadd.f32 %v3679_v8, %v3677_v27 }
0x2941   :  { %5706 = vtanh.f32 %v3681_v53 }
0x294b   :  { %v5707_v57 = vpop.eup %5706 }
0x294c   :  { %3685 = vrot.lane.b32.xlu0 %v5707_v57, %s5924_s6 }
0x29be   :  { %v3686_v23 = vpop.permute.xlu0 %3685 }
0x29bf   :  { %v3688_v24 = vmul.f32 %v3686_v23, %v3683_v21  ;;  %v3763_v21 = vrot.slane %v3704_v62, 2 }
0x29c1   :  { %v7348_v7 = vadd.f32 %v3689_v28, %v3688_v24 }
0x29c3   :  { %v3705_v35 = vpack.c.bf16 %v7348_v7, %v7348_v7 }
0x29c5   :  { %3707 = vrot.lane.b32.xlu1 %v3705_v35, %s5924_s6 }
0x2a37   :  { %v3708_v44 = vpop.permute.xlu1 %3707 }
0x2a38   :  { %5343 = vmatmul.mubr.msk.bf16.vlgmr.msra.gmra.mrb[60].mxu0 %vm8203_vm13, %v3708_v44 }
0x2a39   :  { %3881 = vmatpush1.bf16.msra.mxu0 %v7073_v48  ;;  %3912 = vmatprep.mubr.bf16.mxu0 %v8201_v1 }
0x2a3a   :  { %3882 = vmatprep.subr.bf16.mxu0 %v7080_v40 }
0x2a3d   :  { %3883 = vmatpush1.bf16.msra.mxu0 %v7086_v52 }
0x2a3e   :  { %3884 = vmatprep.subr.bf16.mxu0 %v7092_v12 }
0x2a41   :  { %3885 = vmatpush1.bf16.msra.mxu0 %v7098_v45 }
0x2a42   :  { %3886 = vmatprep.subr.bf16.mxu0 %v7104_v39 }
0x2a45   :  { %3887 = vmatpush1.bf16.msra.mxu0 %v7110_v63 }
0x2a46   :  { %4048 = vmatprep.subr.bf16.mxu0 %v7116_v43 }
0x2b0b   :  { %v3746_v38 = vpop.f32.mrb[60].mxu0 }
0x2b0c   :  { %v3753_v36 = vadd.f32 %v3746_v38, %v3704_v62  ;;  %v3748_v5 = vpop.f32.mrb[61].mxu0  ;;  %v3788_v62 = vld [vmem:[#allocation2 + $0x50] sm:$0xf] }
0x2b0d   :  { %v3750_v49 = vpop.f32.mrb[62].mxu0  ;;  %v3760_v53 = vadd.f32 %v7173_v9, %v3748_v5 }
0x2b0e   :  { %v5344_v6 = vmul.f32 -1.442695, %v3753_v36  ;;  %v3751_v11 = vpop.f32.mrb[63].mxu0 }
0x2b10   :  { %5708 = vpow2.f32 %v5344_v6 }
0x2b1a   :  { %v5709_v8 = vpop.eup %5708 }
0x2b1b   :  { %v3757_v27 = vadd.f32 1.0, %v5709_v8 }
0x2b1d   :  { %5710 = vrcp.f32 %v3757_v27 }
0x2b27   :  { %v5711_v57 = vpop.eup %5710 }
0x2b28   :  { %v3761_v23 = vmul.f32 %v5711_v57, %v3760_v53  ;;  %v3767_v35 = vsub.f32 1.0, %v5711_v57  ;;  %v3773_v38 = vmul.f32 %v5711_v57, %v7348_v7 }
0x2b2a   :  { %v3765_v28 = vadd.f32 %v3763_v21, %v3761_v23  ;;  %v3847_v21 = vrot.slane %v3788_v62, 2 }
0x2b2c   :  { %5712 = vtanh.f32 %v3765_v28 }
0x2b36   :  { %v5713_v24 = vpop.eup %5712 }
0x2b37   :  { %3769 = vrot.lane.b32.xlu0 %v5713_v24, %s5924_s6 }
0x2ba9   :  { %v3770_v44 = vpop.permute.xlu0 %3769 }
0x2baa   :  { %v3772_v36 = vmul.f32 %v3770_v44, %v3767_v35 }
0x2bac   :  { %v7366_v49 = vadd.f32 %v3773_v38, %v3772_v36 }
0x2bae   :  { %v3789_v6 = vpack.c.bf16 %v7366_v49, %v7366_v49 }
0x2bb0   :  { %3791 = vrot.lane.b32.xlu1 %v3789_v6, %s5924_s6  ;;  %v7393_v6 = vld [vmem:[%s8192_s5] ss:$8 sps:$4 sm:$0xff]  }
0x2c22   :  { %v3792_v5 = vpop.permute.xlu1 %3791 }
0x2c23   :  { %5345 = vmatmul.mubr.msk.bf16.vlgmr.msra.gmra.mrb[40].mxu1 %vm8203_vm13, %v3792_v5  ;;  %v7400_v5 = vld [vmem:[%s8192_s5 + $0x14] ss:$8 sps:$4 sm:$0xff]  }
0x2c24   :  { %3965 = vmatpush1.bf16.msra.mxu1 %v7073_v48  ;;  %3996 = vmatprep.mubr.bf16.mxu1 %v8201_v1 }
0x2c25   :  { %3966 = vmatprep.subr.bf16.mxu1 %v7080_v40 }
0x2c28   :  { %3967 = vmatpush1.bf16.msra.mxu1 %v7086_v52 }
0x2c29   :  { %3968 = vmatprep.subr.bf16.mxu1 %v7092_v12 }
0x2c2c   :  { %3969 = vmatpush1.bf16.msra.mxu1 %v7098_v45 }
0x2c2d   :  { %3970 = vmatprep.subr.bf16.mxu1 %v7104_v39 }
0x2c30   :  { %3971 = vmatpush1.bf16.msra.mxu1 %v7110_v63 }
0x2c31   :  { %4132 = vmatprep.subr.bf16.mxu1 %v7116_v43 }
0x2cf6   :  { %v3830_v11 = vpop.f32.mrb[40].mxu1 }
0x2cf7   :  { %v3837_v8 = vadd.f32 %v3830_v11, %v3788_v62  ;;  %v3832_v48 = vpop.f32.mrb[41].mxu1  ;;  %v7406_v62 = vld [vmem:[%s8192_s5 + $0x10] ss:$8 sps:$4 sm:$0xff]   ;;  %v7412_v11 = vld [vmem:[%s8192_s5 + $0x24] ss:$8 sps:$4 sm:$0xff]  }
0x2cf8   :  { %v3834_v27 = vpop.f32.mrb[42].mxu1  ;;  %v3844_v12 = vadd.f32 %v7173_v9, %v3832_v48  ;;  %v7424_v48 = vld [vmem:[%s8192_s5 + $0x34] ss:$8 sps:$4 sm:$0xff]  }
0x2cf9   :  { %v5346_v53 = vmul.f32 -1.442695, %v3837_v8  ;;  %v3835_v57 = vpop.f32.mrb[43].mxu1  ;;  %v7418_v8 = vld [vmem:[%s8192_s5 + $0x20] ss:$8 sps:$4 sm:$0xff]  }
0x2cfa   :  { %v7430_v27 = vld [vmem:[%s8192_s5 + $0x30] ss:$8 sps:$4 sm:$0xff]   ;;  %v3872_v57 = vld [vmem:[#allocation2 + $0x54] sm:$0xf] }
0x2cfb   :  { %5714 = vpow2.f32 %v5346_v53  ;;  %v7436_v53 = vld [vmem:[%s8192_s5 + $0x4] ss:$8 sps:$4 sm:$0xff]   ;;  %s5955_s5 = smov [#allocation12]  }
0x2d05   :  { %v5715_v40 = vpop.eup %5714 }
0x2d06   :  { %v3841_v52 = vadd.f32 1.0, %v5715_v40 }
0x2d08   :  { %5716 = vrcp.f32 %v3841_v52 }
0x2d12   :  { %v5717_v45 = vpop.eup %5716 }
0x2d13   :  { %v3845_v39 = vmul.f32 %v5717_v45, %v3844_v12  ;;  %v3851_v43 = vsub.f32 1.0, %v5717_v45  ;;  %v3857_v24 = vmul.f32 %v5717_v45, %v7366_v49 }
0x2d15   :  { %v3849_v23 = vadd.f32 %v3847_v21, %v3845_v39 }
0x2d17   :  { %5718 = vtanh.f32 %v3849_v23 }
0x2d21   :  { %v5719_v63 = vpop.eup %5718 }
0x2d22   :  { %3853 = vrot.lane.b32.xlu0 %v5719_v63, %s5924_s6 }
0x2d94   :  { %v3854_v28 = vpop.permute.xlu0 %3853 }
0x2d95   :  { %v3856_v35 = vmul.f32 %v3854_v28, %v3851_v43 }
0x2d97   :  { %v7384_v44 = vadd.f32 %v3857_v24, %v3856_v35  ;;  %v3931_v24 = vrot.slane %v3872_v57, 2 }
0x2d99   :  { %v3873_v38 = vpack.c.bf16 %v7384_v44, %v7384_v44 }
0x2d9b   :  { %3875 = vrot.lane.b32.xlu1 %v3873_v38, %s5924_s6 }
0x2e0d   :  { %v3876_v36 = vpop.permute.xlu1 %3875 }
0x2e0e   :  { %5347 = vmatmul.mubr.msk.bf16.vlgmr.msra.gmra.mrb[64].mxu0 %vm8203_vm13, %v3876_v36 }
0x2e0f   :  { %4049 = vmatpush1.bf16.msra.mxu0 %v7393_v6  ;;  %4080 = vmatprep.mubr.bf16.mxu0 %v8201_v1 }
0x2e10   :  { %4050 = vmatprep.subr.bf16.mxu0 %v7400_v5 }
0x2e13   :  { %4051 = vmatpush1.bf16.msra.mxu0 %v7406_v62 }
0x2e14   :  { %4052 = vmatprep.subr.bf16.mxu0 %v7412_v11 }
0x2e17   :  { %4053 = vmatpush1.bf16.msra.mxu0 %v7418_v8 }
0x2e18   :  { %4054 = vmatprep.subr.bf16.mxu0 %v7424_v48 }
0x2e1b   :  { %4055 = vmatpush1.bf16.msra.mxu0 %v7430_v27 }
0x2e1c   :  { %4216 = vmatprep.subr.bf16.mxu0 %v7436_v53 }
0x2ee1   :  { %v3914_v40 = vpop.f32.mrb[64].mxu0 }
0x2ee2   :  { %v3921_v52 = vadd.f32 %v3914_v40, %v3872_v57  ;;  %v3916_v12 = vpop.f32.mrb[65].mxu0 }
0x2ee3   :  { %v3918_v45 = vpop.f32.mrb[66].mxu0  ;;  %v3928_v43 = vadd.f32 %v7173_v9, %v3916_v12 }
0x2ee4   :  { %v5348_v21 = vmul.f32 -1.442695, %v3921_v52  ;;  %v3919_v39 = vpop.f32.mrb[67].mxu0 }
0x2ee6   :  { %5720 = vpow2.f32 %v5348_v21 }
0x2ef0   :  { %v5721_v23 = vpop.eup %5720 }
0x2ef1   :  { %v3925_v63 = vadd.f32 1.0, %v5721_v23 }
0x2ef3   :  { %5722 = vrcp.f32 %v3925_v63 }
0x2efd   :  { %v5723_v28 = vpop.eup %5722 }
0x2efe   :  { %v3929_v35 = vmul.f32 %v5723_v28, %v3928_v43  ;;  %v3935_v55 = vsub.f32 1.0, %v5723_v28  ;;  %v3941_v45 = vmul.f32 %v5723_v28, %v7384_v44 }
0x2f00   :  { %v3933_v38 = vadd.f32 %v3931_v24, %v3929_v35 }
0x2f02   :  { %5724 = vtanh.f32 %v3933_v38 }
0x2f0c   :  { %v5725_v36 = vpop.eup %5724 }
0x2f0d   :  { %3937 = vrot.lane.b32.xlu0 %v5725_v36, %s5924_s6 }
0x2f7f   :  { %v3938_v40 = vpop.permute.xlu0 %3937 }
0x2f80   :  { %v3940_v52 = vmul.f32 %v3938_v40, %v3935_v55  ;;  %v3956_v55 = vld [vmem:[#allocation2 + $0x58] sm:$0xf] }
0x2f82   :  { %v7442_v39 = vadd.f32 %v3941_v45, %v3940_v52  ;;  %v4015_v45 = vrot.slane %v3956_v55, 2 }
0x2f84   :  { %v3957_v21 = vpack.c.bf16 %v7442_v39, %v7442_v39 }
0x2f86   :  { %3959 = vrot.lane.b32.xlu1 %v3957_v21, %s5924_s6 }
0x2ff8   :  { %v3960_v12 = vpop.permute.xlu1 %3959 }
0x2ff9   :  { %5349 = vmatmul.mubr.msk.bf16.vlgmr.msra.gmra.mrb[44].mxu1 %vm8203_vm13, %v3960_v12 }
0x2ffa   :  { %4133 = vmatpush1.bf16.msra.mxu1 %v7393_v6  ;;  %4164 = vmatprep.mubr.bf16.mxu1 %v8201_v1 }
0x2ffb   :  { %4134 = vmatprep.subr.bf16.mxu1 %v7400_v5 }
0x2ffe   :  { %4135 = vmatpush1.bf16.msra.mxu1 %v7406_v62 }
0x2fff   :  { %4136 = vmatprep.subr.bf16.mxu1 %v7412_v11 }
0x3002   :  { %4137 = vmatpush1.bf16.msra.mxu1 %v7418_v8 }
0x3003   :  { %4138 = vmatprep.subr.bf16.mxu1 %v7424_v48 }
0x3006   :  { %4139 = vmatpush1.bf16.msra.mxu1 %v7430_v27 }
0x3007   :  { %4300 = vmatprep.subr.bf16.mxu1 %v7436_v53 }
0x30cc   :  { %v3998_v57 = vpop.f32.mrb[44].mxu1 }
0x30cd   :  { %v4005_v23 = vadd.f32 %v3998_v57, %v3956_v55  ;;  %v4000_v63 = vpop.f32.mrb[45].mxu1 }
0x30ce   :  { %v4002_v43 = vpop.f32.mrb[46].mxu1  ;;  %v4012_v36 = vadd.f32 %v7173_v9, %v4000_v63 }
0x30cf   :  { %v5350_v28 = vmul.f32 -1.442695, %v4005_v23  ;;  %v4003_v24 = vpop.f32.mrb[47].mxu1 }
0x30d1   :  { %5726 = vpow2.f32 %v5350_v28 }
0x30db   :  { %v5727_v35 = vpop.eup %5726 }
0x30dc   :  { %v4009_v38 = vadd.f32 1.0, %v5727_v35 }
0x30de   :  { %5728 = vrcp.f32 %v4009_v38 }
0x30e8   :  { %v5729_v40 = vpop.eup %5728 }
0x30e9   :  { %v4013_v52 = vmul.f32 %v5729_v40, %v4012_v36  ;;  %v4019_v56 = vsub.f32 1.0, %v5729_v40  ;;  %v4025_v43 = vmul.f32 %v5729_v40, %v7442_v39 }
0x30eb   :  { %v4017_v21 = vadd.f32 %v4015_v45, %v4013_v52 }
0x30ed   :  { %5730 = vtanh.f32 %v4017_v21 }
0x30f7   :  { %v5731_v12 = vpop.eup %5730 }
0x30f8   :  { %4021 = vrot.lane.b32.xlu0 %v5731_v12, %s5924_s6 }
0x316a   :  { %v4022_v57 = vpop.permute.xlu0 %4021 }
0x316b   :  { %v4024_v23 = vmul.f32 %v4022_v57, %v4019_v56  ;;  %v4040_v56 = vld [vmem:[#allocation2 + $0x5c] sm:$0xf] }
0x316d   :  { %v7460_v24 = vadd.f32 %v4025_v43, %v4024_v23  ;;  %v4099_v43 = vrot.slane %v4040_v56, 2 }
0x316f   :  { %v4041_v28 = vpack.c.bf16 %v7460_v24, %v7460_v24 }
0x3171   :  { %4043 = vrot.lane.b32.xlu1 %v4041_v28, %s5924_s6 }
0x31e3   :  { %v4044_v63 = vpop.permute.xlu1 %4043 }
0x31e4   :  { %5351 = vmatmul.mubr.msk.bf16.vlgmr.msra.gmra.mrb[68].mxu0 %vm8203_vm13, %v4044_v63 }
0x31e5   :  { %4217 = vmatpush1.bf16.msra.mxu0 %v7393_v6  ;;  %4248 = vmatprep.mubr.bf16.mxu0 %v8201_v1 }
0x31e6   :  { %4218 = vmatprep.subr.bf16.mxu0 %v7400_v5 }
0x31e9   :  { %4219 = vmatpush1.bf16.msra.mxu0 %v7406_v62 }
0x31ea   :  { %4220 = vmatprep.subr.bf16.mxu0 %v7412_v11 }
0x31ed   :  { %4221 = vmatpush1.bf16.msra.mxu0 %v7418_v8 }
0x31ee   :  { %4222 = vmatprep.subr.bf16.mxu0 %v7424_v48 }
0x31f1   :  { %4223 = vmatpush1.bf16.msra.mxu0 %v7430_v27 }
0x31f2   :  { %4384 = vmatprep.subr.bf16.mxu0 %v7436_v53 }
0x32b7   :  { %v4082_v55 = vpop.f32.mrb[68].mxu0 }
0x32b8   :  { %v4089_v35 = vadd.f32 %v4082_v55, %v4040_v56  ;;  %v4084_v38 = vpop.f32.mrb[69].mxu0  ;;  %v8216_v55 = vmov 1  }
0x32b9   :  { %v4086_v36 = vpop.f32.mrb[70].mxu0  ;;  %v4096_v12 = vadd.f32 %v7173_v9, %v4084_v38 }
0x32ba   :  { %v5352_v40 = vmul.f32 -1.442695, %v4089_v35  ;;  %v4087_v45 = vpop.f32.mrb[71].mxu0 }
0x32bc   :  { %5732 = vpow2.f32 %v5352_v40 }
0x32c6   :  { %v5733_v52 = vpop.eup %5732 }
0x32c7   :  { %v4093_v21 = vadd.f32 1.0, %v5733_v52 }
0x32c9   :  { %5734 = vrcp.f32 %v4093_v21 }
0x32d3   :  { %v5735_v57 = vpop.eup %5734 }
0x32d4   :  { %v4097_v23 = vmul.f32 %v5735_v57, %v4096_v12  ;;  %v4103_v35 = vsub.f32 1.0, %v5735_v57  ;;  %v4109_v40 = vmul.f32 %v5735_v57, %v7460_v24 }
0x32d6   :  { %v4101_v28 = vadd.f32 %v4099_v43, %v4097_v23 }
0x32d8   :  { %5736 = vtanh.f32 %v4101_v28 }
0x32e2   :  { %v5737_v63 = vpop.eup %5736 }
0x32e3   :  { %4105 = vrot.lane.b32.xlu0 %v5737_v63, %s5924_s6 }
0x32e7   :  { %1296 = vperm.xlu0 %5555, %v6701_v61  }
0x32eb   :  { %5558 = vset.pattern.permute.xlu0 %v8216_v55 }
0x32ec   :  { %1704 = vperm.xlu0 %5558, %v6701_v61  }
0x3355   :  { %v4106_v36 = vpop.permute.xlu0 %4105 }
0x3356   :  { %v4108_v45 = vmul.f32 %v4106_v36, %v4103_v35 }
0x3358   :  { %v7481_v9 = vadd.f32 %v4109_v40, %v4108_v45 }
0x335a   :  { %v4125_v56 = vpack.c.bf16 %v7481_v9, %v7481_v9 }
0x335c   :  { %4127 = vrot.lane.b32.xlu1 %v4125_v56, %s5924_s6 }
0x3360   :  { %1335 = vperm.xlu1 %5557, %v6762_v14  }
0x3364   :  { %5559 = vset.pattern.permute.xlu1 %v8216_v55 }
0x3365   :  { %1728 = vperm.xlu1 %5559, %v6762_v14  }
0x3366   :  { %v1297_v61 = vpop.permute.xlu0 %1296 }
0x3367   :  { %v1316_v52 = vmul.f32 %v6772_v18, %v1297_v61  ;;  %v1317_v21 = vmul.f32 %v6774_v54, %v1297_v61 }
0x336b   :  { %v1705_v43 = vpop.permute.xlu0 %1704 }
0x336c   :  { %v1713_v36 = vmul.f32 %v1705_v43, %v6772_v18  ;;  %v1714_v40 = vmul.f32 %v1705_v43, %v6774_v54 }
0x33ce   :  { %v4128_v38 = vpop.permute.xlu1 %4127 }
0x33cf   :  { %5353 = vmatmul.mubr.msk.bf16.vlgmr.msra.gmra.mrb[48].mxu1 %vm8203_vm13, %v4128_v38 }
0x33d0   :  { %4301 = vmatpush1.bf16.msra.mxu1 %v7393_v6  ;;  %4332 = vmatprep.mubr.bf16.mxu1 %v8201_v1 }
0x33d1   :  { %4302 = vmatprep.subr.bf16.mxu1 %v7400_v5 }
0x33d4   :  { %4303 = vmatpush1.bf16.msra.mxu1 %v7406_v62 }
0x33d5   :  { %4304 = vmatprep.subr.bf16.mxu1 %v7412_v11 }
0x33d8   :  { %4305 = vmatpush1.bf16.msra.mxu1 %v7418_v8 }
0x33d9   :  { %4306 = vmatprep.subr.bf16.mxu1 %v7424_v48 }
0x33dc   :  { %4307 = vmatpush1.bf16.msra.mxu1 %v7430_v27 }
0x33dd   :  { %4468 = vmatprep.subr.bf16.mxu1 %v7436_v53 }
0x33df   :  { %v1336_v14 = vpop.permute.xlu1 %1335 }
0x33e0   :  { %v1355_v12 = vmul.f32 %v6777_v58, %v1336_v14  ;;  %v1356_v57 = vmul.f32 %v6779_v25, %v1336_v14 }
0x33e2   :  { %v1363_v23 = vadd.f32 %v1355_v12, %v1316_v52  ;;  %v1364_v28 = vadd.f32 %v1356_v57, %v1317_v21 }
0x33e4   :  { %v1382_v63 = vadd.f32 %v6782_v31, %v1363_v23  ;;  %v1383_v55 = vadd.f32 %v6784_v16, %v1364_v28  ;;  %v1729_v35 = vpop.permute.xlu1 %1728 }
0x33e5   :  { %v1737_v45 = vmul.f32 %v1729_v35, %v6777_v58  ;;  %v1738_v56 = vmul.f32 %v1729_v35, %v6779_v25 }
0x33e6   :  { %v1542_v38 = vcombine.low %v1382_v63, %v1383_v55  ;;  %v1543_v61 = vcombine.high %v1382_v63, %v1383_v55 }
0x33e7   :  { %v1745_v1 = vadd.f32 %v1737_v45, %v1713_v36  ;;  %v1746_v14 = vadd.f32 %v1738_v56, %v1714_v40 }
0x33e8   :  { %v1550_v52 = vrot.slane %v1542_v38, %v6795_v37  ;;  %v1557_v21 = vrot.slane %v1543_v61, %v6795_v37 }
0x33e9   :  { %v1753_v12 = vadd.f32 %v1745_v1, %v6782_v31  ;;  %v1754_v57 = vadd.f32 %v1746_v14, %v6784_v16 }
0x33ea   :  { %v1558_v23 = vcombine.high %v1550_v52, %v1550_v52  ;;  %v1559_v18 = vcombine.high %v1557_v21, %v1557_v21  ;;  %v1566_v54 = vrot.slane %v1550_v52, %v6795_v37  ;;  %v1573_v58 = vrot.slane %v1557_v21, %v6795_v37 }
0x33eb   :  { %v1913_v43 = vcombine.low %v1753_v12, %v1754_v57  ;;  %v1914_v25 = vcombine.high %v1753_v12, %v1754_v57 }
0x33ec   :  { %v1580_v28 = vrot.slane %v1558_v23, %v6795_v37  ;;  %v1587_v63 = vrot.slane %v1559_v18, %v6795_v37  ;;  %v1588_v55 = vcombine.high %v1566_v54, %v1566_v54  ;;  %v1589_v35 = vcombine.high %v1573_v58, %v1573_v58  ;;  %1676 = vst.msk [vmem:[#allocation2 + $0x60] ss:$2 sm:$0x3] %vm6806_vm8, %v1566_v54 }
0x33ed   :  { %1684 = vst.msk [vmem:[#allocation2 + $0x70] ss:$2 sm:$0x3] %vm6806_vm8, %v1573_v58  ;;  %v1921_v1 = vrot.slane %v1913_v43, %v6795_v37  ;;  %v1928_v31 = vrot.slane %v1914_v25, %v6795_v37 }
0x33ee   :  { %v1590_v16 = vcombine.high %v1580_v28, %v1580_v28  ;;  %v1591_v36 = vcombine.high %v1587_v63, %v1587_v63  ;;  %1678 = vst.msk [vmem:[#allocation2 + $0x64] ss:$2 sm:$0x3] %vm6806_vm8, %v1580_v28  ;;  %1680 = vst.msk [vmem:[#allocation2 + $0x68] ss:$2 sm:$0x3] %vm6806_vm8, %v1588_v55 }
0x33ef   :  { %1686 = vst.msk [vmem:[#allocation2 + $0x74] ss:$2 sm:$0x3] %vm6806_vm8, %v1587_v63  ;;  %1688 = vst.msk [vmem:[#allocation2 + $0x78] ss:$2 sm:$0x3] %vm6806_vm8, %v1589_v35  ;;  %v1929_v40 = vcombine.high %v1921_v1, %v1921_v1  ;;  %v1930_v45 = vcombine.high %v1928_v31, %v1928_v31  ;;  %v1937_v56 = vrot.slane %v1921_v1, %v6795_v37 }
0x33f0   :  { %v1944_v38 = vrot.slane %v1928_v31, %v6795_v37  ;;  %1682 = vst.msk [vmem:[#allocation2 + $0x6c] ss:$2 sm:$0x3] %vm6806_vm8, %v1590_v16  ;;  %1690 = vst.msk [vmem:[#allocation2 + $0x7c] ss:$2 sm:$0x3] %vm6806_vm8, %v1591_v36 }
0x33f1   :  { %v1951_v61 = vrot.slane %v1929_v40, %v6795_v37  ;;  %v1958_v14 = vrot.slane %v1930_v45, %v6795_v37  ;;  %v1959_v52 = vcombine.high %v1937_v56, %v1937_v56  ;;  %2044 = vst.msk [vmem:[#allocation2 + $0x61] ss:$2 sm:$0x3] %vm6806_vm8, %v1937_v56  ;;  %v7555_v55 = vld [vmem:[#allocation7 + $0x7] ss:$0 sm:$0xff] }
0x33f2   :  { %v1960_v21 = vcombine.high %v1944_v38, %v1944_v38  ;;  %2052 = vst.msk [vmem:[#allocation2 + $0x71] ss:$2 sm:$0x3] %vm6806_vm8, %v1944_v38 }
0x33f3   :  { %v1961_v12 = vcombine.high %v1951_v61, %v1951_v61  ;;  %v1962_v57 = vcombine.high %v1958_v14, %v1958_v14  ;;  %2046 = vst.msk [vmem:[#allocation2 + $0x65] ss:$2 sm:$0x3] %vm6806_vm8, %v1951_v61  ;;  %2048 = vst.msk [vmem:[#allocation2 + $0x69] ss:$2 sm:$0x3] %vm6806_vm8, %v1959_v52 }
0x33f4   :  { %2054 = vst.msk [vmem:[#allocation2 + $0x75] ss:$2 sm:$0x3] %vm6806_vm8, %v1958_v14  ;;  %2056 = vst.msk [vmem:[#allocation2 + $0x79] ss:$2 sm:$0x3] %vm6806_vm8, %v1960_v21 }
0x33f5   :  { %2050 = vst.msk [vmem:[#allocation2 + $0x6d] ss:$2 sm:$0x3] %vm6806_vm8, %v1961_v12  ;;  %2058 = vst.msk [vmem:[#allocation2 + $0x7d] ss:$2 sm:$0x3] %vm6806_vm8, %v1962_v57 }
0x33f6   :  { %v8217_v21 = vmov 0  }
0x33f8   :  { %v4124_v37 = vld [vmem:[#allocation2 + $0x60] sm:$0xf] }
0x33f9   :  { %v4183_v31 = vrot.slane %v4124_v37, 2 }
0x33fa   :  { %v4208_v12 = vld [vmem:[#allocation2 + $0x64] sm:$0xf] }
0x34a2   :  { %v4166_v23 = vpop.f32.mrb[48].mxu1 }
0x34a3   :  { %v4173_v18 = vadd.f32 %v4166_v23, %v4124_v37  ;;  %v4168_v54 = vpop.f32.mrb[49].mxu1 }
0x34a4   :  { %v4170_v58 = vpop.f32.mrb[50].mxu1  ;;  %v4180_v35 = vadd.f32 %v7555_v55, %v4168_v54 }
0x34a5   :  { %v5354_v43 = vmul.f32 -1.442695, %v4173_v18  ;;  %v4171_v25 = vpop.f32.mrb[51].mxu1 }
0x34a7   :  { %5738 = vpow2.f32 %v5354_v43 }
0x34b1   :  { %v5739_v28 = vpop.eup %5738 }
0x34b2   :  { %v4177_v63 = vadd.f32 1.0, %v5739_v28 }
0x34b4   :  { %5740 = vrcp.f32 %v4177_v63 }
0x34be   :  { %v5741_v1 = vpop.eup %5740 }
0x34bf   :  { %v4181_v16 = vmul.f32 %v5741_v1, %v4180_v35  ;;  %v4187_v40 = vsub.f32 1.0, %v5741_v1  ;;  %v4193_v56 = vmul.f32 %v5741_v1, %v7481_v9  ;;  %v4267_v35 = vrot.slane %v4208_v12, 2 }
0x34c1   :  { %v4185_v60 = vadd.f32 %v4183_v31, %v4181_v16 }
0x34c3   :  { %5742 = vtanh.f32 %v4185_v60 }
0x34cd   :  { %v5743_v36 = vpop.eup %5742 }
0x34ce   :  { %4189 = vrot.lane.b32.xlu1 %v5743_v36, %s5924_s6 }
0x3540   :  { %v4190_v45 = vpop.permute.xlu1 %4189 }
0x3541   :  { %v4192_v38 = vmul.f32 %v4190_v45, %v4187_v40 }
0x3543   :  { %v7560_v61 = vadd.f32 %v4193_v56, %v4192_v38 }
0x3545   :  { %v4209_v14 = vpack.c.bf16 %v7560_v61, %v7560_v61 }
0x3547   :  { %4211 = vrot.lane.b32.xlu0 %v4209_v14, %s5924_s6 }
0x35b9   :  { %v4212_v52 = vpop.permute.xlu0 %4211 }
0x35ba   :  { %5355 = vmatmul.mubr.msk.bf16.vlgmr.msra.gmra.mrb[72].mxu0 %vm8203_vm13, %v4212_v52  ;;  %v4292_v52 = vld [vmem:[#allocation2 + $0x68] sm:$0xf] }
0x35bb   :  { %4385 = vmatpush1.bf16.msra.mxu0 %v7393_v6  ;;  %4416 = vmatprep.mubr.bf16.mxu0 %v8217_v21 }
0x35bc   :  { %4386 = vmatprep.subr.bf16.mxu0 %v7400_v5 }
0x35bf   :  { %4387 = vmatpush1.bf16.msra.mxu0 %v7406_v62 }
0x35c0   :  { %4388 = vmatprep.subr.bf16.mxu0 %v7412_v11 }
0x35c3   :  { %4389 = vmatpush1.bf16.msra.mxu0 %v7418_v8 }
0x35c4   :  { %4390 = vmatprep.subr.bf16.mxu0 %v7424_v48 }
0x35c7   :  { %4391 = vmatpush1.bf16.msra.mxu0 %v7430_v27 }
0x35c8   :  { %4552 = vmatprep.subr.bf16.mxu0 %v7436_v53 }
0x368d   :  { %v4250_v57 = vpop.f32.mrb[72].mxu0 }
0x368e   :  { %v4257_v37 = vadd.f32 %v4250_v57, %v4208_v12  ;;  %v4252_v23 = vpop.f32.mrb[73].mxu0 }
0x368f   :  { %v4254_v18 = vpop.f32.mrb[74].mxu0  ;;  %v4264_v28 = vadd.f32 %v7555_v55, %v4252_v23 }
0x3690   :  { %v5356_v54 = vmul.f32 -1.442695, %v4257_v37  ;;  %v4255_v58 = vpop.f32.mrb[75].mxu0 }
0x3692   :  { %5744 = vpow2.f32 %v5356_v54 }
0x369c   :  { %v5745_v43 = vpop.eup %5744 }
0x369d   :  { %v4261_v25 = vadd.f32 1.0, %v5745_v43 }
0x369f   :  { %5746 = vrcp.f32 %v4261_v25 }
0x36a9   :  { %v5747_v63 = vpop.eup %5746 }
0x36aa   :  { %v4265_v1 = vmul.f32 %v5747_v63, %v4264_v28  ;;  %v4271_v60 = vsub.f32 1.0, %v5747_v63  ;;  %v4277_v40 = vmul.f32 %v5747_v63, %v7560_v61  ;;  %v4351_v63 = vrot.slane %v4292_v52, 2 }
0x36ac   :  { %v4269_v31 = vadd.f32 %v4267_v35, %v4265_v1 }
0x36ae   :  { %5748 = vtanh.f32 %v4269_v31 }
0x36b8   :  { %v5749_v16 = vpop.eup %5748 }
0x36b9   :  { %4273 = vrot.lane.b32.xlu1 %v5749_v16, %s5924_s6 }
0x372b   :  { %v4274_v36 = vpop.permute.xlu1 %4273 }
0x372c   :  { %v4276_v45 = vmul.f32 %v4274_v36, %v4271_v60 }
0x372e   :  { %v7578_v56 = vadd.f32 %v4277_v40, %v4276_v45 }
0x3730   :  { %v4293_v38 = vpack.c.bf16 %v7578_v56, %v7578_v56 }
0x3732   :  { %4295 = vrot.lane.b32.xlu0 %v4293_v38, %s5924_s6 }
0x37a4   :  { %v4296_v14 = vpop.permute.xlu0 %4295 }
0x37a5   :  { %5357 = vmatmul.mubr.msk.bf16.vlgmr.msra.gmra.mrb[52].mxu1 %vm8203_vm13, %v4296_v14 }
0x37a6   :  { %4469 = vmatpush1.bf16.msra.mxu1 %v7393_v6  ;;  %4500 = vmatprep.mubr.bf16.mxu1 %v8217_v21 }
0x37a7   :  { %4470 = vmatprep.subr.bf16.mxu1 %v7400_v5 }
0x37aa   :  { %4471 = vmatpush1.bf16.msra.mxu1 %v7406_v62 }
0x37ab   :  { %4472 = vmatprep.subr.bf16.mxu1 %v7412_v11 }
0x37ae   :  { %4473 = vmatpush1.bf16.msra.mxu1 %v7418_v8 }
0x37af   :  { %4474 = vmatprep.subr.bf16.mxu1 %v7424_v48 }
0x37b2   :  { %4475 = vmatpush1.bf16.msra.mxu1 %v7430_v27 }
0x37b3   :  { %4636 = vmatprep.subr.bf16.mxu1 %v7436_v53 }
0x3878   :  { %v4334_v12 = vpop.f32.mrb[52].mxu1 }
0x3879   :  { %v4341_v57 = vadd.f32 %v4334_v12, %v4292_v52  ;;  %v4336_v37 = vpop.f32.mrb[53].mxu1  ;;  %v4376_v52 = vld [vmem:[#allocation2 + $0x6c] sm:$0xf] }
0x387a   :  { %v4338_v23 = vpop.f32.mrb[54].mxu1  ;;  %v4348_v25 = vadd.f32 %v7555_v55, %v4336_v37 }
0x387b   :  { %v5358_v18 = vmul.f32 -1.442695, %v4341_v57  ;;  %v4339_v54 = vpop.f32.mrb[55].mxu1 }
0x387d   :  { %5750 = vpow2.f32 %v5358_v18 }
0x3887   :  { %v5751_v58 = vpop.eup %5750 }
0x3888   :  { %v4345_v43 = vadd.f32 1.0, %v5751_v58 }
0x388a   :  { %5752 = vrcp.f32 %v4345_v43 }
0x3894   :  { %v5753_v28 = vpop.eup %5752 }
0x3895   :  { %v4349_v35 = vmul.f32 %v5753_v28, %v4348_v25  ;;  %v4355_v16 = vsub.f32 1.0, %v5753_v28  ;;  %v4361_v36 = vmul.f32 %v5753_v28, %v7578_v56 }
0x3897   :  { %v4353_v1 = vadd.f32 %v4351_v63, %v4349_v35  ;;  %v4435_v63 = vrot.slane %v4376_v52, 2 }
0x3899   :  { %5754 = vtanh.f32 %v4353_v1 }
0x38a3   :  { %v5755_v31 = vpop.eup %5754 }
0x38a4   :  { %4357 = vrot.lane.b32.xlu1 %v5755_v31, %s5924_s6 }
0x3916   :  { %v4358_v60 = vpop.permute.xlu1 %4357 }
0x3917   :  { %v4360_v40 = vmul.f32 %v4358_v60, %v4355_v16 }
0x3919   :  { %v7596_v45 = vadd.f32 %v4361_v36, %v4360_v40 }
0x391b   :  { %v4377_v38 = vpack.c.bf16 %v7596_v45, %v7596_v45 }
0x391d   :  { %4379 = vrot.lane.b32.xlu0 %v4377_v38, %s5924_s6 }
0x398f   :  { %v4380_v14 = vpop.permute.xlu0 %4379 }
0x3990   :  { %5359 = vmatmul.mubr.msk.bf16.vlgmr.msra.gmra.mrb[76].mxu0 %vm8203_vm13, %v4380_v14 }
0x3991   :  { %4553 = vmatpush1.bf16.msra.mxu0 %v7393_v6  ;;  %4584 = vmatprep.mubr.bf16.mxu0 %v8217_v21 }
0x3992   :  { %4554 = vmatprep.subr.bf16.mxu0 %v7400_v5 }
0x3995   :  { %4555 = vmatpush1.bf16.msra.mxu0 %v7406_v62 }
0x3996   :  { %4556 = vmatprep.subr.bf16.mxu0 %v7412_v11 }
0x3999   :  { %4557 = vmatpush1.bf16.msra.mxu0 %v7418_v8 }
0x399a   :  { %4558 = vmatprep.subr.bf16.mxu0 %v7424_v48 }
0x399d   :  { %4559 = vmatpush1.bf16.msra.mxu0 %v7430_v27 }
0x399e   :  { %4720 = vmatprep.subr.bf16.mxu0 %v7436_v53 }
0x3a63   :  { %v4418_v12 = vpop.f32.mrb[76].mxu0 }
0x3a64   :  { %v4425_v57 = vadd.f32 %v4418_v12, %v4376_v52  ;;  %v4420_v37 = vpop.f32.mrb[77].mxu0  ;;  %v4460_v52 = vld [vmem:[#allocation2 + $0x70] sm:$0xf] }
0x3a65   :  { %v4422_v23 = vpop.f32.mrb[78].mxu0  ;;  %v4432_v25 = vadd.f32 %v7555_v55, %v4420_v37 }
0x3a66   :  { %v5360_v18 = vmul.f32 -1.442695, %v4425_v57  ;;  %v4423_v54 = vpop.f32.mrb[79].mxu0 }
0x3a68   :  { %5756 = vpow2.f32 %v5360_v18 }
0x3a72   :  { %v5757_v58 = vpop.eup %5756 }
0x3a73   :  { %v4429_v43 = vadd.f32 1.0, %v5757_v58 }
0x3a75   :  { %5758 = vrcp.f32 %v4429_v43 }
0x3a7f   :  { %v5759_v28 = vpop.eup %5758 }
0x3a80   :  { %v4433_v35 = vmul.f32 %v5759_v28, %v4432_v25  ;;  %v4439_v53 = vsub.f32 1.0, %v5759_v28  ;;  %v4445_v60 = vmul.f32 %v5759_v28, %v7596_v45 }
0x3a82   :  { %v4437_v1 = vadd.f32 %v4435_v63, %v4433_v35  ;;  %v4519_v63 = vrot.slane %v4460_v52, 2 }
0x3a84   :  { %5760 = vtanh.f32 %v4437_v1 }
0x3a8e   :  { %v5761_v31 = vpop.eup %5760 }
0x3a8f   :  { %4441 = vrot.lane.b32.xlu1 %v5761_v31, %s5924_s6 }
0x3b01   :  { %v4442_v16 = vpop.permute.xlu1 %4441 }
0x3b02   :  { %v4444_v36 = vmul.f32 %v4442_v16, %v4439_v53 }
0x3b04   :  { %v7614_v40 = vadd.f32 %v4445_v60, %v4444_v36 }
0x3b06   :  { %v4461_v38 = vpack.c.bf16 %v7614_v40, %v7614_v40 }
0x3b08   :  { %4463 = vrot.lane.b32.xlu0 %v4461_v38, %s5924_s6 }
0x3b7a   :  { %v4464_v14 = vpop.permute.xlu0 %4463 }
0x3b7b   :  { %5361 = vmatmul.mubr.msk.bf16.vlgmr.msra.gmra.mrb[56].mxu1 %vm8203_vm13, %v4464_v14 }
0x3b7c   :  { %4637 = vmatpush1.bf16.msra.mxu1 %v7393_v6  ;;  %4668 = vmatprep.mubr.bf16.mxu1 %v8217_v21 }
0x3b7d   :  { %4638 = vmatprep.subr.bf16.mxu1 %v7400_v5 }
0x3b80   :  { %4639 = vmatpush1.bf16.msra.mxu1 %v7406_v62 }
0x3b81   :  { %4640 = vmatprep.subr.bf16.mxu1 %v7412_v11 }
0x3b84   :  { %4641 = vmatpush1.bf16.msra.mxu1 %v7418_v8 }
0x3b85   :  { %4642 = vmatprep.subr.bf16.mxu1 %v7424_v48 }
0x3b88   :  { %4643 = vmatpush1.bf16.msra.mxu1 %v7430_v27 }
0x3c4e   :  { %v4502_v12 = vpop.f32.mrb[56].mxu1 }
0x3c4f   :  { %v4509_v57 = vadd.f32 %v4502_v12, %v4460_v52  ;;  %v4504_v37 = vpop.f32.mrb[57].mxu1  ;;  %v4544_v52 = vld [vmem:[#allocation2 + $0x74] sm:$0xf] }
0x3c50   :  { %v4506_v23 = vpop.f32.mrb[58].mxu1  ;;  %v4516_v25 = vadd.f32 %v7555_v55, %v4504_v37 }
0x3c51   :  { %v5362_v18 = vmul.f32 -1.442695, %v4509_v57  ;;  %v4507_v54 = vpop.f32.mrb[59].mxu1 }
0x3c53   :  { %5762 = vpow2.f32 %v5362_v18 }
0x3c5d   :  { %v5763_v58 = vpop.eup %5762 }
0x3c5e   :  { %v4513_v43 = vadd.f32 1.0, %v5763_v58 }
0x3c60   :  { %5764 = vrcp.f32 %v4513_v43  ;;  %v4603_v43 = vrot.slane %v4544_v52, 2 }
0x3c6a   :  { %v5765_v28 = vpop.eup %5764 }
0x3c6b   :  { %v4517_v35 = vmul.f32 %v5765_v28, %v4516_v25  ;;  %v4523_v53 = vsub.f32 1.0, %v5765_v28  ;;  %v4529_v60 = vmul.f32 %v5765_v28, %v7614_v40 }
0x3c6d   :  { %v4521_v1 = vadd.f32 %v4519_v63, %v4517_v35 }
0x3c6f   :  { %5766 = vtanh.f32 %v4521_v1 }
0x3c79   :  { %v5767_v31 = vpop.eup %5766 }
0x3c7a   :  { %4525 = vrot.lane.b32.xlu1 %v5767_v31, %s5924_s6 }
0x3cec   :  { %v4526_v16 = vpop.permute.xlu1 %4525 }
0x3ced   :  { %v4528_v36 = vmul.f32 %v4526_v16, %v4523_v53  ;;  %v4628_v16 = vld [vmem:[#allocation2 + $0x78] sm:$0xf] }
0x3cef   :  { %v7631_v38 = vadd.f32 %v4529_v60, %v4528_v36 }
0x3cf1   :  { %v4545_v14 = vpack.c.bf16 %v7631_v38, %v7631_v38 }
0x3cf3   :  { %4547 = vrot.lane.b32.xlu0 %v4545_v14, %s5924_s6 }
0x3d65   :  { %v4548_v12 = vpop.permute.xlu0 %4547 }
0x3d66   :  { %5363 = vmatmul.mubr.msk.bf16.vlgmr.msra.gmra.mrb[80].mxu0 %vm8203_vm13, %v4548_v12 }
0x3d67   :  { %4721 = vmatpush1.bf16.msra.mxu0 %v7393_v6  ;;  %4752 = vmatprep.mubr.bf16.mxu0 %v8217_v21 }
0x3d68   :  { %4722 = vmatprep.subr.bf16.mxu0 %v7400_v5 }
0x3d6b   :  { %4723 = vmatpush1.bf16.msra.mxu0 %v7406_v62 }
0x3d6c   :  { %4724 = vmatprep.subr.bf16.mxu0 %v7412_v11 }
0x3d6f   :  { %4725 = vmatpush1.bf16.msra.mxu0 %v7418_v8 }
0x3d70   :  { %4726 = vmatprep.subr.bf16.mxu0 %v7424_v48 }
0x3d73   :  { %4727 = vmatpush1.bf16.msra.mxu0 %v7430_v27 }
0x3e39   :  { %v4586_v57 = vpop.f32.mrb[80].mxu0 }
0x3e3a   :  { %v4593_v37 = vadd.f32 %v4586_v57, %v4544_v52  ;;  %v4588_v23 = vpop.f32.mrb[81].mxu0 }
0x3e3b   :  { %v4590_v18 = vpop.f32.mrb[82].mxu0  ;;  %v4600_v62 = vadd.f32 %v7555_v55, %v4588_v23 }
0x3e3c   :  { %v5364_v6 = vmul.f32 -1.442695, %v4593_v37  ;;  %v4591_v54 = vpop.f32.mrb[83].mxu0 }
0x3e3d   :  { %v4687_v54 = vrot.slane %v4628_v16, 2 }
0x3e3e   :  { %5768 = vpow2.f32 %v5364_v6 }
0x3e48   :  { %v5769_v58 = vpop.eup %5768 }
0x3e49   :  { %v4597_v5 = vadd.f32 1.0, %v5769_v58 }
0x3e4b   :  { %5770 = vrcp.f32 %v4597_v5 }
0x3e55   :  { %v5771_v11 = vpop.eup %5770 }
0x3e56   :  { %v4601_v8 = vmul.f32 %v5771_v11, %v4600_v62  ;;  %v4607_v27 = vsub.f32 1.0, %v5771_v11  ;;  %v4613_v63 = vmul.f32 %v5771_v11, %v7631_v38  ;;  %v5952_v11 = vmov 1983009808  }
0x3e58   :  { %v4605_v25 = vadd.f32 %v4603_v43, %v4601_v8  ;;  %v2180_v43 = vunpack.c.l.s4 %v5952_v11 }
0x3e5a   :  { %5772 = vtanh.f32 %v4605_v25 }
0x3e64   :  { %v5773_v48 = vpop.eup %5772 }
0x3e65   :  { %4609 = vrot.lane.b32.xlu1 %v5773_v48, %s5924_s6 }
0x3ed7   :  { %v4610_v28 = vpop.permute.xlu1 %4609 }
0x3ed8   :  { %v4612_v35 = vmul.f32 %v4610_v28, %v4607_v27  ;;  %v2181_v28 = vunpack.c.0.s8 %v2180_v43 }
0x3eda   :  { %v7648_v1 = vadd.f32 %v4613_v63, %v4612_v35 }
0x3edc   :  { %v4629_v31 = vpack.c.bf16 %v7648_v1, %v7648_v1 }
0x3ede   :  { %4631 = vrot.lane.b32.xlu0 %v4629_v31, %s5924_s6  ;;  %v7663_v31 = vsub.s32 %v2181_v28, %v6072_v3 }
0x3f50   :  { %v4632_v53 = vpop.permute.xlu0 %4631 }
0x3f51   :  { %5365 = vmatmul.mubr.msk.bf16.vlgmr.msra.gmra.mrb[60].mxu1 %vm8203_vm13, %v4632_v53  ;;  %v2185_v53 = vrot.slane %v6856_v47, %v7663_v31  ;;  %v2858_v47 = vrot.slane %v7064_v19, %v7663_v31  ;;  %v3530_v19 = vrot.slane %v7312_v17, %v7663_v31  ;;  %v4202_v17 = vrot.slane %v7560_v61, %v7663_v31 }
0x3f52   :  { %4899 = vmatprep.mubr.bf16.mxu1 %v8217_v21  ;;  %v8218_v61 = vmov 0.0  }
0x4024   :  { %v4670_v60 = vpop.f32.mrb[60].mxu1 }
0x4025   :  { %v4677_v36 = vadd.f32 %v4670_v60, %v4628_v16  ;;  %v4672_v14 = vpop.f32.mrb[61].mxu1  ;;  %v2354_v16 = vrot.slane %v6892_v34, %v7663_v31  ;;  %v2522_v60 = vrot.slane %v6928_v29, %v7663_v31  ;;  %v3026_v34 = vrot.slane %v7140_v20, %v7663_v31 }
0x4026   :  { %v4674_v12 = vpop.f32.mrb[62].mxu1  ;;  %v4684_v18 = vadd.f32 %v7555_v55, %v4672_v14  ;;  %v3194_v29 = vrot.slane %v7178_v26, %v7663_v31  ;;  %v3698_v20 = vrot.slane %v7348_v7, %v7663_v31  ;;  %v3866_v26 = vrot.slane %v7384_v44, %v7663_v31 }
0x4027   :  { %v5366_v52 = vmul.f32 -1.442695, %v4677_v36  ;;  %v4675_v57 = vpop.f32.mrb[63].mxu1  ;;  %v2690_v36 = vrot.slane %v6964_v41, %v7663_v31  ;;  %v3362_v41 = vrot.slane %v7214_v22, %v7663_v31  ;;  %v4034_v22 = vrot.slane %v7460_v24, %v7663_v31 }
0x4028   :  { %v4370_v7 = vrot.slane %v7596_v45, %v7663_v31  ;;  %v4538_v44 = vrot.slane %v7631_v38, %v7663_v31 }
0x4029   :  { %5774 = vpow2.f32 %v5366_v52 }
0x4033   :  { %v5775_v37 = vpop.eup %5774 }
0x4034   :  { %v4681_v23 = vadd.f32 1.0, %v5775_v37 }
0x4036   :  { %5776 = vrcp.f32 %v4681_v23 }
0x4040   :  { %v5777_v6 = vpop.eup %5776 }
0x4041   :  { %v4685_v58 = vmul.f32 %v5777_v6, %v4684_v18  ;;  %v4691_v8 = vsub.f32 1.0, %v5777_v6  ;;  %v4697_v48 = vmul.f32 %v5777_v6, %v7648_v1 }
0x4043   :  { %v4689_v5 = vadd.f32 %v4687_v54, %v4685_v58 }
0x4045   :  { %5778 = vtanh.f32 %v4689_v5 }
0x404f   :  { %v5779_v62 = vpop.eup %5778 }
0x4050   :  { %4693 = vrot.lane.b32.xlu1 %v5779_v62, %s5924_s6 }
0x40c2   :  { %v4694_v25 = vpop.permute.xlu1 %4693 }
0x40c3   :  { %v4696_v27 = vmul.f32 %v4694_v25, %v4691_v8  ;;  %v4712_v25 = vld [vmem:[#allocation2 + $0x7c] sm:$0xf] }
0x40c5   :  { %v7658_v63 = vadd.f32 %v4697_v48, %v4696_v27 }
0x40c7   :  { %v4713_v35 = vpack.c.bf16 %v7658_v63, %v7658_v63  ;;  %v4706_v24 = vrot.slane %v7658_v63, %v7663_v31 }
0x40c9   :  { %4715 = vrot.lane.b32.xlu0 %v4713_v35, %s5924_s6 }
0x40cd   :  { %2186 = vrot.lane.b32.xlu0 %v2185_v53, %s5924_s6 }
0x40d1   :  { %2355 = vrot.lane.b32.xlu0 %v2354_v16, %s5924_s6 }
0x40d5   :  { %2523 = vrot.lane.b32.xlu0 %v2522_v60, %s5924_s6 }
0x40d9   :  { %2691 = vrot.lane.b32.xlu0 %v2690_v36, %s5924_s6 }
0x40dd   :  { %2859 = vrot.lane.b32.xlu0 %v2858_v47, %s5924_s6 }
0x40e1   :  { %3027 = vrot.lane.b32.xlu0 %v3026_v34, %s5924_s6 }
0x40e5   :  { %3195 = vrot.lane.b32.xlu0 %v3194_v29, %s5924_s6  ;;  %v4771_v29 = vrot.slane %v4712_v25, 2 }
0x40e9   :  { %3363 = vrot.lane.b32.xlu0 %v3362_v41, %s5924_s6 }
0x40ed   :  { %3531 = vrot.lane.b32.xlu0 %v3530_v19, %s5924_s6 }
0x40f1   :  { %3699 = vrot.lane.b32.xlu0 %v3698_v20, %s5924_s6  ;;  %v5582_v20 = vld [vmem:[#allocation9] ss:$8 sps:$4 sm:$0xff]  }
0x40f5   :  { %3867 = vrot.lane.b32.xlu0 %v3866_v26, %s5924_s6  ;;  %v5584_v26 = vld [vmem:[#allocation9 + $0x4] ss:$8 sps:$4 sm:$0xff]  }
0x40f6   :  { %4867 = vmatprep.subr.bf16.mxu1 %v5584_v26 }
0x40f7   :  { %4868 = vmatpush1.bf16.msra.mxu1 %v5582_v20 }
0x40f9   :  { %4035 = vrot.lane.b32.xlu0 %v4034_v22, %s5924_s6 }
0x40fd   :  { %4203 = vrot.lane.b32.xlu0 %v4202_v17, %s5924_s6  ;;  %v5585_v17 = vld [vmem:[#allocation9 + $0x10] ss:$8 sps:$4 sm:$0xff]  }
0x4101   :  { %4371 = vrot.lane.b32.xlu0 %v4370_v7, %s5924_s6  ;;  %v5587_v7 = vld [vmem:[#allocation9 + $0x14] ss:$8 sps:$4 sm:$0xff]  }
0x4102   :  { %4869 = vmatprep.subr.bf16.mxu1 %v5587_v7  ;;  %v7810_v7 = vand.u32 31, %v6075_v4  ;;  %v8223_v4 = vmov 0 }
0x4103   :  { %4870 = vmatpush1.bf16.msra.mxu1 %v5585_v17  ;;  %v7807_v17 = vadd.s32 56, %v6072_v3 }
0x4105   :  { %4539 = vrot.lane.b32.xlu0 %v4538_v44, %s5924_s6  ;;  %v2270_v44 = vrot.slane %v6874_v32, %v7663_v31  ;;  %v2774_v32 = vrot.slane %v6986_v46, %v7663_v31  ;;  %v3446_v46 = vrot.slane %v7237_v0, %v7663_v31  ;;  %v4118_v0 = vrot.slane %v7481_v9, %v7663_v31 }
0x4109   :  { %4707 = vrot.lane.b32.xlu0 %v4706_v24, %s5924_s6  ;;  %v5590_v24 = vld [vmem:[#allocation9 + $0x24] ss:$8 sps:$4 sm:$0xff]  }
0x410a   :  { %4871 = vmatprep.subr.bf16.mxu1 %v5590_v24  ;;  %v8219_v24 = vmov 0 }
0x413b   :  { %v4716_v14 = vpop.permute.xlu0 %4715 }
0x413c   :  { %5367 = vmatmul.mubr.msk.bf16.vlgmr.msra.gmra.mrb[84].mxu0 %vm8203_vm13, %v4716_v14  ;;  %v2438_v14 = vrot.slane %v6910_v10, %v7663_v31  ;;  %v2942_v10 = vrot.slane %v7122_v50, %v7663_v31  ;;  %v3614_v50 = vrot.slane %v7330_v15, %v7663_v31  ;;  %v4286_v15 = vrot.slane %v7578_v56, %v7663_v31 }
0x413d   :  { %5056 = vmatprep.mubr.f32.mxu0 %v8218_v61 }
0x413f   :  { %v2187_v12 = vpop.permute.xlu0 %2186 }
0x4140   :  { %2190 = vst.msk [vmem:[#allocation3] sm:$0x3] %vm2189_vm15, %v2187_v12  ;;  %v5591_v12 = vld [vmem:[#allocation9 + $0x30] ss:$8 sps:$4 sm:$0xff]  }
0x4143   :  { %v2356_v45 = vpop.permute.xlu0 %2355 }
0x4144   :  { %2358 = vst.msk [vmem:[#allocation3 + $0x4] sm:$0x3] %vm2189_vm15, %v2356_v45  ;;  %v5593_v45 = vld [vmem:[#allocation9 + $0x34] ss:$8 sps:$4 sm:$0xff]  }
0x4147   :  { %v2524_v38 = vpop.permute.xlu0 %2523 }
0x4148   :  { %2526 = vst.msk [vmem:[#allocation3 + $0x8] sm:$0x3] %vm2189_vm15, %v2524_v38  ;;  %v2606_v38 = vrot.slane %v6946_v51, %v7663_v31  ;;  %v3278_v51 = vrot.slane %v7196_v33, %v7663_v31  ;;  %v3950_v33 = vrot.slane %v7442_v39, %v7663_v31  ;;  %v4622_v39 = vrot.slane %v7648_v1, %v7663_v31 }
0x414b   :  { %v2692_v52 = vpop.permute.xlu0 %2691 }
0x414c   :  { %2694 = vst.msk [vmem:[#allocation3 + $0xc] sm:$0x3] %vm2189_vm15, %v2692_v52  ;;  %v3110_v52 = vrot.slane %v7158_v30, %v7663_v31  ;;  %v3782_v30 = vrot.slane %v7366_v49, %v7663_v31  ;;  %v4454_v49 = vrot.slane %v7614_v40, %v7663_v31 }
0x414f   :  { %v2860_v57 = vpop.permute.xlu0 %2859 }
0x4150   :  { %2862 = vst.msk [vmem:[#allocation3 + $0x10] sm:$0x3] %vm2189_vm15, %v2860_v57 }
0x4153   :  { %v3028_v37 = vpop.permute.xlu0 %3027 }
0x4154   :  { %3030 = vst.msk [vmem:[#allocation3 + $0x14] sm:$0x3] %vm2189_vm15, %v3028_v37 }
0x4157   :  { %v3196_v23 = vpop.permute.xlu0 %3195 }
0x4158   :  { %3198 = vst.msk [vmem:[#allocation3 + $0x18] sm:$0x3] %vm2189_vm15, %v3196_v23 }
0x415b   :  { %v3364_v18 = vpop.permute.xlu0 %3363 }
0x415c   :  { %3366 = vst.msk [vmem:[#allocation3 + $0x1c] sm:$0x3] %vm2189_vm15, %v3364_v18 }
0x415f   :  { %v3532_v6 = vpop.permute.xlu0 %3531 }
0x4160   :  { %3534 = vst.msk [vmem:[#allocation3 + $0x20] sm:$0x3] %vm2189_vm15, %v3532_v6 }
0x4163   :  { %v3700_v54 = vpop.permute.xlu0 %3699 }
0x4164   :  { %3702 = vst.msk [vmem:[#allocation3 + $0x24] sm:$0x3] %vm2189_vm15, %v3700_v54 }
0x4167   :  { %v3868_v58 = vpop.permute.xlu0 %3867 }
0x4168   :  { %3870 = vst.msk [vmem:[#allocation3 + $0x28] sm:$0x3] %vm2189_vm15, %v3868_v58 }
0x416b   :  { %v4036_v5 = vpop.permute.xlu0 %4035 }
0x416c   :  { %4038 = vst.msk [vmem:[#allocation3 + $0x2c] sm:$0x3] %vm2189_vm15, %v4036_v5 }
0x416f   :  { %v4204_v62 = vpop.permute.xlu0 %4203 }
0x4170   :  { %4206 = vst.msk [vmem:[#allocation3 + $0x30] sm:$0x3] %vm2189_vm15, %v4204_v62 }
0x4173   :  { %v4372_v11 = vpop.permute.xlu0 %4371 }
0x4174   :  { %4374 = vst.msk [vmem:[#allocation3 + $0x34] sm:$0x3] %vm2189_vm15, %v4372_v11 }
0x4177   :  { %v4540_v43 = vpop.permute.xlu0 %4539 }
0x4178   :  { %4542 = vst.msk [vmem:[#allocation3 + $0x38] sm:$0x3] %vm2189_vm15, %v4540_v43 }
0x417b   :  { %v4708_v8 = vpop.permute.xlu0 %4707 }
0x417c   :  { %4710 = vst.msk [vmem:[#allocation3 + $0x3c] sm:$0x3] %vm2189_vm15, %v4708_v8 }
0x420f   :  { %v4754_v48 = vpop.f32.mrb[84].mxu0 }
0x4210   :  { %v4761_v27 = vadd.f32 %v4754_v48, %v4712_v25  ;;  %v4756_v28 = vpop.f32.mrb[85].mxu0 }
0x4211   :  { %v4758_v35 = vpop.f32.mrb[86].mxu0  ;;  %v4768_v47 = vadd.f32 %v7555_v55, %v4756_v28  ;;  %v5588_v55 = vld [vmem:[#allocation9 + $0x20] ss:$8 sps:$4 sm:$0xff]  }
0x4212   :  { %v5368_v53 = vmul.f32 -1.442695, %v4761_v27  ;;  %v4759_v16 = vpop.f32.mrb[87].mxu0  ;;  %4872 = vmatpush1.bf16.msra.mxu1 %v5588_v55  ;;  %v4951_v55 = vshra.s32 %v7807_v17, 1 }
0x4213   :  { %4873 = vmatprep.subr.bf16.mxu1 %v5593_v45  ;;  %v4944_v45 = vshra.s32 %v6072_v3, 1 }
0x4214   :  { %5780 = vpow2.f32 %v5368_v53  ;;  %vm7822_vm3 = vcmp.eq.s32.totalorder %v4951_v55, %v7810_v7 }
0x4215   :  { %vm7858_vm14 = vcmp.eq.s32.totalorder %v4944_v45, %v7810_v7 }
0x4216   :  { %4874 = vmatpush1.bf16.msra.mxu1 %v5591_v12  ;;  %v8225_v12 = vmov 0 }
0x421e   :  { %v5781_v60 = vpop.eup %5780 }
0x421f   :  { %v4765_v36 = vadd.f32 1.0, %v5781_v60 }
0x4221   :  { %5782 = vrcp.f32 %v4765_v36 }
0x422b   :  { %v5783_v34 = vpop.eup %5782 }
0x422c   :  { %v4769_v41 = vmul.f32 %v5783_v34, %v4768_v47  ;;  %v4775_v57 = vsub.f32 1.0, %v5783_v34  ;;  %v4781_v9 = vmul.f32 %v5783_v34, %v7658_v63 }
0x422e   :  { %v4773_v19 = vadd.f32 %v4771_v29, %v4769_v41 }
0x4230   :  { %5784 = vtanh.f32 %v4773_v19 }
0x423a   :  { %v5785_v22 = vpop.eup %5784 }
0x423b   :  { %4777 = vrot.lane.b32.xlu1 %v5785_v22, %s5924_s6  ;;  %v4942_v22 = vadd.s32 48, %v6072_v3 }
0x423f   :  { %2271 = vrot.lane.b32.xlu1 %v2270_v44, %s5924_s6  ;;  %v4950_v44 = vshra.s32 %v4942_v22, 1 }
0x4241   :  { %vm7817_vm0 = vcmp.eq.s32.totalorder %v4950_v44, %v7810_v7 }
0x4242   :  { %v8220_v24 = vsel %vm7817_vm0, 4294967295, %v8219_v24 }
0x4243   :  { %2439 = vrot.lane.b32.xlu1 %v2438_v14, %s5924_s6  ;;  %v8221_v14 = vmov 0 }
0x4244   :  { %v8222_v14 = vsel %vm7822_vm3, 4294967295, %v8221_v14 }
0x4247   :  { %2607 = vrot.lane.b32.xlu1 %v2606_v38, %s5924_s6  ;;  %v4945_v38 = vshra.s32 %v6662_v59, 1 }
0x4249   :  { %vm7863_vm1 = vcmp.eq.s32.totalorder %v4945_v38, %v7810_v7 }
0x424b   :  { %2775 = vrot.lane.b32.xlu1 %v2774_v32, %s5924_s6  ;;  %v7847_v32 = vmul.u32 32, %v6068_v2 }
0x424d   :  { %vm5080_vm6 = vcmp.ge.s32.totalorder %v6072_v3, %v7847_v32  ;;  %vm5081_vm11 = vcmp.ge.s32.totalorder %v6662_v59, %v7847_v32  ;;  %vm5086_vm3 = vcmp.ge.s32.totalorder %v4942_v22, %v7847_v32 }
0x424f   :  { %2943 = vrot.lane.b32.xlu1 %v2942_v10, %s5924_s6  ;;  %v5104_v10 = vadd.s32 1, %v6068_v2 }
0x4253   :  { %3111 = vrot.lane.b32.xlu1 %v3110_v52, %s5924_s6  ;;  %v5953_v52 = vmov 0.0|0.0  }
0x4254   :  { %5478 = vmatprep.subr.bf16.mxu1 %v5953_v52 }
0x4257   :  { %3279 = vrot.lane.b32.xlu1 %v3278_v51, %s5924_s6  ;;  %v7853_v51 = vmul.u32 32, %v5104_v10  ;;  %v5075_v10 = vadd.s32 160, %v6072_v3 }
0x4259   :  { %vm5106_vm2 = vcmp.lt.s32.totalorder %v6072_v3, %v7853_v51  ;;  %vm5107_vm7 = vcmp.lt.s32.totalorder %v6662_v59, %v7853_v51  ;;  %v7893_v59 = vadd.s32 40, %v6072_v3 }
0x425a   :  { %vm5130_vm8 = vmand %vm5080_vm6, %vm5106_vm2  ;;  %vm5109_vm6 = vcmp.lt.s32.totalorder %v6686_v13, %v7853_v51 }
0x425b   :  { %3447 = vrot.lane.b32.xlu1 %v3446_v46, %s5924_s6  ;;  %vm5131_vm10 = vmand %vm5081_vm11, %vm5107_vm7  ;;  %v5076_v46 = vadd.s32 168, %v6072_v3 }
0x425c   :  { %vm5479_vm2 = vmpackc.low %vm5131_vm10, %vm5130_vm8  ;;  %vm5112_vm10 = vcmp.lt.s32.totalorder %v4942_v22, %v7853_v51 }
0x425f   :  { %3615 = vrot.lane.b32.xlu1 %v3614_v50, %s5924_s6 }
0x4263   :  { %3783 = vrot.lane.b32.xlu1 %v3782_v30, %s5924_s6  ;;  %v4949_v30 = vshra.s32 %v7893_v59, 1 }
0x4267   :  { %3951 = vrot.lane.b32.xlu1 %v3950_v33, %s5924_s6 }
0x426b   :  { %4119 = vrot.lane.b32.xlu1 %v4118_v0, %s5924_s6  ;;  %v7886_v0 = vadd.s32 32, %v6072_v3 }
0x426d   :  { %vm5084_vm11 = vcmp.ge.s32.totalorder %v7886_v0, %v7847_v32  ;;  %vm5110_vm7 = vcmp.lt.s32.totalorder %v7886_v0, %v7853_v51  ;;  %v4948_v50 = vshra.s32 %v7886_v0, 1 }
0x426f   :  { %4287 = vrot.lane.b32.xlu1 %v4286_v15, %s5924_s6  ;;  %v5954_v15 = vmov 1.0|1.0  }
0x4273   :  { %4455 = vrot.lane.b32.xlu1 %v4454_v49, %s5924_s6  ;;  %v5063_v49 = vadd.s32 64, %v6072_v3 }
0x4277   :  { %4623 = vrot.lane.b32.xlu1 %v4622_v39, %s5924_s6 }
0x42ad   :  { %v4778_v37 = vpop.permute.xlu1 %4777 }
0x42ae   :  { %v4780_v23 = vmul.f32 %v4778_v37, %v4775_v57  ;;  %v5064_v57 = vadd.s32 72, %v6072_v3 }
0x42b0   :  { %v4782_v18 = vadd.f32 %v4781_v9, %v4780_v23  ;;  %v5065_v23 = vadd.s32 80, %v6072_v3 }
0x42b1   :  { %v2272_v6 = vpop.permute.xlu1 %2271 }
0x42b2   :  { %2274 = vst.msk [vmem:[#allocation3 + $0x2] sm:$0x3] %vm2189_vm15, %v2272_v6  ;;  %v4790_v56 = vrot.slane %v4782_v18, %v7663_v31 }
0x42b4   :  { %4791 = vrot.lane.b32.xlu1 %v4790_v56, %s5924_s6  ;;  %v5066_v56 = vadd.s32 88, %v6072_v3  ;;  %s5266_s6 = sshll.u32 %s5955_s5, 4  ;;  %s5267_s6 = int_to_ptr.vmem [resolvable:$true] %s5266_s6 }
0x42b5   :  { %v2440_v40 = vpop.permute.xlu1 %2439  ;;  %s5892_s28 = scalar_lea.vmem %s5267_s6, 32  ;;  %p5897_p5 = scmp.lt.s32.totalorder %s5267_s6, %s5267_s6 }
0x42b6   :  { %2442 = vst.msk [vmem:[#allocation3 + $0x6] sm:$0x3] %vm2189_vm15, %v2440_v40  ;;  %p5893_p4 = scmp.ne.s32.totalorder %s5267_s6, %s5892_s28  ;;  %p5898_p6 = scmp.lt.s32.totalorder %s5892_s28, %s5892_s28 }
0x42b8   :  { %p5899_p7 = por %p5898_p6, %p5897_p5 }
0x42b9   :  { %v2608_v54 = vpop.permute.xlu1 %2607 }
0x42ba   :  { %2610 = vst.msk [vmem:[#allocation3 + $0xa] sm:$0x3] %vm2189_vm15, %v2608_v54  ;;  %v5078_v54 = vadd.s32 184, %v6072_v3  ;;  %p5900_p8 = pnand %p5899_p7, %p5893_p4 }
0x42bd   :  { %v2776_v1 = vpop.permute.xlu1 %2775  ;;  %v4795_v5 = vld [vmem:[#allocation3] sm:$0xff] }
0x42be   :  { %2778 = vst.msk [vmem:[#allocation3 + $0xe] sm:$0x3] %vm2189_vm15, %v2776_v1 }
0x42c1   :  { %v2944_v58 = vpop.permute.xlu1 %2943 }
0x42c2   :  { %2946 = vst.msk [vmem:[#allocation3 + $0x12] sm:$0x3] %vm2189_vm15, %v2944_v58 }
0x42c5   :  { %v3112_v63 = vpop.permute.xlu1 %3111  ;;  %v4796_v62 = vld [vmem:[#allocation3 + $0x8] sm:$0xff] }
0x42c6   :  { %3114 = vst.msk [vmem:[#allocation3 + $0x16] sm:$0x3] %vm2189_vm15, %v3112_v63  ;;  %v4803_v31 = vpack.c.bf16 %v4796_v62, %v4795_v5  ;;  %v5067_v62 = vadd.s32 96, %v6072_v3 }
0x42c8   :  { %5377 = vmatmul.mubr.msk.bf16.vlgmr.msra.gmra.mrb[64].mxu1 %vm8203_vm13, %v4803_v31 }
0x42c9   :  { %v3280_v11 = vpop.permute.xlu1 %3279  ;;  %4909 = vmatprep.mubr.bf16.mxu1 %v8217_v21  ;;  %5480 = vmatpush1.bf16.msk.msra.mxu1 %vm5479_vm2, %v5954_v15  ;;  %vm7914_vm2 = vmand %vm5084_vm11, %vm5110_vm7  ;;  %vm5088_vm7 = vcmp.ge.s32.totalorder %v5063_v49, %v7847_v32 }
0x42ca   :  { %3282 = vst.msk [vmem:[#allocation3 + $0x1a] sm:$0x3] %vm2189_vm15, %v3280_v11  ;;  %5481 = vmatprep.subr.bf16.mxu1 %v5953_v52  ;;  %v5068_v11 = vadd.s32 104, %v6072_v3 }
0x42cd   :  { %v3448_v43 = vpop.permute.xlu1 %3447  ;;  %v4797_v48 = vld [vmem:[#allocation3 + $0x10] sm:$0xff] }
0x42ce   :  { %3450 = vst.msk [vmem:[#allocation3 + $0x1e] sm:$0x3] %vm2189_vm15, %v3448_v43  ;;  %v4946_v43 = vshra.s32 %v6680_v42, 1 }
0x42d1   :  { %v3616_v8 = vpop.permute.xlu1 %3615 }
0x42d2   :  { %3618 = vst.msk [vmem:[#allocation3 + $0x22] sm:$0x3] %vm2189_vm15, %v3616_v8  ;;  %v4947_v8 = vshra.s32 %v6686_v13, 1 }
0x42d5   :  { %v3784_v25 = vpop.permute.xlu1 %3783  ;;  %v4798_v27 = vld [vmem:[#allocation3 + $0x18] sm:$0xff] }
0x42d6   :  { %3786 = vst.msk [vmem:[#allocation3 + $0x26] sm:$0x3] %vm2189_vm15, %v3784_v25  ;;  %v4804_v28 = vpack.c.bf16 %v4798_v27, %v4797_v48  ;;  %v5069_v25 = vadd.s32 112, %v6072_v3 }
0x42d8   :  { %5378 = vmatmul.mubr.msk.bf16.gmra.mrb[68].mxu1 %vm8203_vm13, %v4804_v28  ;;  %v5070_v28 = vadd.s32 120, %v6072_v3 }
0x42d9   :  { %v3952_v35 = vpop.permute.xlu1 %3951  ;;  %4919 = vmatprep.mubr.bf16.mxu1 %v8217_v21 }
0x42da   :  { %3954 = vst.msk [vmem:[#allocation3 + $0x2a] sm:$0x3] %vm2189_vm15, %v3952_v35  ;;  %v8258_v35 = vmov 0 }
0x42dd   :  { %v4120_v53 = vpop.permute.xlu1 %4119  ;;  %v4799_v36 = vld [vmem:[#allocation3 + $0x20] sm:$0xff] }
0x42de   :  { %4122 = vst.msk [vmem:[#allocation3 + $0x2e] sm:$0x3] %vm2189_vm15, %v4120_v53  ;;  %v8260_v53 = vmov 0 }
0x42e1   :  { %v4288_v16 = vpop.permute.xlu1 %4287 }
0x42e2   :  { %4290 = vst.msk [vmem:[#allocation3 + $0x32] sm:$0x3] %vm2189_vm15, %v4288_v16 }
0x42e5   :  { %v4456_v60 = vpop.permute.xlu1 %4455  ;;  %v4800_v47 = vld [vmem:[#allocation3 + $0x28] sm:$0xff] }
0x42e6   :  { %4458 = vst.msk [vmem:[#allocation3 + $0x36] sm:$0x3] %vm2189_vm15, %v4456_v60  ;;  %v4805_v34 = vpack.c.bf16 %v4800_v47, %v4799_v36  ;;  %v5071_v60 = vadd.s32 128, %v6072_v3  ;;  %v5072_v47 = vadd.s32 136, %v6072_v3 }
0x42e8   :  { %5379 = vmatmul.mubr.msk.bf16.gmra.mrb[72].mxu1 %vm8203_vm13, %v4805_v34 }
0x42e9   :  { %v4624_v29 = vpop.permute.xlu1 %4623  ;;  %4929 = vmatprep.mubr.bf16.mxu1 %v8217_v21  ;;  %v7813_v21 = vand.u32 31, %v6068_v2 }
0x42ea   :  { %4626 = vst.msk [vmem:[#allocation3 + $0x3a] sm:$0x3] %vm2189_vm15, %v4624_v29 }
0x42eb   :  { %vm7827_vm12 = vcmp.eq.s32.totalorder %v4950_v44, %v7813_v21  ;;  %vm7832_vm9 = vcmp.eq.s32.totalorder %v4951_v55, %v7813_v21  ;;  %vm7872_vm5 = vcmp.eq.s32.totalorder %v4944_v45, %v7813_v21  ;;  %vm7881_vm4 = vcmp.eq.s32.totalorder %v4945_v38, %v7813_v21 }
0x42ec   :  { %v8224_v4 = vsel %vm7827_vm12, 4294967295, %v8223_v4  ;;  %v8226_v12 = vsel %vm7832_vm9, 4294967295, %v8225_v12  ;;  %vm5083_vm12 = vcmp.ge.s32.totalorder %v6686_v13, %v7847_v32  ;;  %vm5085_vm9 = vcmp.ge.s32.totalorder %v7893_v59, %v7847_v32 }
0x42ed   :  { %v4801_v19 = vld [vmem:[#allocation3 + $0x30] sm:$0xff]  ;;  %vm5133_vm8 = vmand %vm5083_vm12, %vm5109_vm6  ;;  %vm5113_vm6 = vcmp.lt.s32.totalorder %v7807_v17, %v7853_v51 }
0x4326   :  { %v4792_v41 = vpop.permute.xlu1 %4791 }
0x4327   :  { %4794 = vst.msk [vmem:[#allocation3 + $0x3e] sm:$0x3] %vm2189_vm15, %v4792_v41  ;;  %vm5082_vm15 = vcmp.ge.s32.totalorder %v6680_v42, %v7847_v32  ;;  %v5073_v41 = vadd.s32 144, %v6072_v3 }
0x432e   :  { %v4802_v20 = vld [vmem:[#allocation3 + $0x38] sm:$0xff] }
0x432f   :  { %v4806_v26 = vpack.c.bf16 %v4802_v20, %v4801_v19 }
0x4331   :  { %5380 = vmatmul.mubr.msk.bf16.gmra.mrb[76].mxu1 %vm8203_vm13, %v4806_v26  ;;  %vm5108_vm13 = vcmp.lt.s32.totalorder %v6680_v42, %v7853_v51  ;;  %v5074_v26 = vadd.s32 152, %v6072_v3 }
0x4332   :  { %vm5132_vm0 = vmand %vm5082_vm15, %vm5108_vm13  ;;  %vm5111_vm13 = vcmp.lt.s32.totalorder %v7893_v59, %v7853_v51 }
0x4333   :  { %vm5482_vm15 = vmpackc.low %vm5133_vm8, %vm5132_vm0  ;;  %vm5087_vm0 = vcmp.ge.s32.totalorder %v7807_v17, %v7847_v32  ;;  %vm5114_vm8 = vcmp.lt.s32.totalorder %v5063_v49, %v7853_v51 }
0x4334   :  { %5483 = vmatpush1.bf16.msk.msra.mxu1 %vm5482_vm15, %v5954_v15  ;;  %vm7922_vm12 = vmand %vm5085_vm9, %vm5111_vm13  ;;  %vm5089_vm15 = vcmp.ge.s32.totalorder %v5064_v57, %v7847_v32 }
0x4335   :  { %5484 = vmatprep.subr.bf16.mxu1 %v5953_v52  ;;  %vm5485_vm11 = vmpackc.low %vm7922_vm12, %vm7914_vm2  ;;  %vm5115_vm2 = vcmp.lt.s32.totalorder %v5064_v57, %v7853_v51  ;;  %vm5090_vm12 = vcmp.ge.s32.totalorder %v5065_v23, %v7847_v32 }
0x4336   :  { %vm7936_vm9 = vmand %vm5086_vm3, %vm5112_vm10  ;;  %vm5117_vm3 = vcmp.lt.s32.totalorder %v5066_v56, %v7853_v51 }
0x4337   :  { %vm7943_vm13 = vmand %vm5087_vm0, %vm5113_vm6  ;;  %vm5116_vm0 = vcmp.lt.s32.totalorder %v5065_v23, %v7853_v51  ;;  %v4986_v23 = vand.u32 1, %v6068_v2 }
0x4338   :  { %5486 = vmatpush1.bf16.msk.msra.mxu1 %vm5485_vm11, %v5954_v15  ;;  %vm7955_vm10 = vmand %vm5088_vm7, %vm5114_vm8  ;;  %vm5091_vm11 = vcmp.ge.s32.totalorder %v5066_v56, %v7847_v32 }
0x4339   :  { %5487 = vmatprep.subr.bf16.mxu1 %v5953_v52  ;;  %vm7962_vm6 = vmand %vm5089_vm15, %vm5115_vm2 }
0x433a   :  { %vm8247_vm7 = vmpackc.low %vm7863_vm1, %vm7858_vm14 }
0x433b   :  { %vm5491_vm8 = vmpackc.low %vm7962_vm6, %vm7955_vm10  ;;  %vm5094_vm6 = vcmp.ge.s32.totalorder %v5069_v25, %v7847_v32  ;;  %vm5096_vm10 = vcmp.ge.s32.totalorder %v5071_v60, %v7847_v32 }
0x433c   :  { %vm8248_vm15 = vmpackc.low %vm7881_vm4, %vm7872_vm5  ;;  %vm5092_vm4 = vcmp.ge.s32.totalorder %v5067_v62, %v7847_v32  ;;  %vm5118_vm5 = vcmp.lt.s32.totalorder %v5067_v62, %v7853_v51 }
0x433d   :  { %vm8249_vm14 = vmpackc.low %vm7943_vm13, %vm7936_vm9  ;;  %vm8006_vm9 = vcmp.eq.s32.totalorder %v4946_v43, %v7810_v7  ;;  %vm8011_vm13 = vcmp.eq.s32.totalorder %v4947_v8, %v7810_v7 }
0x433e   :  { %5489 = vmatpush1.bf16.msk.msra.mxu1 %vm8249_vm14, %v5954_v15  ;;  %vm7991_vm1 = vmand %vm5090_vm12, %vm5116_vm0  ;;  %vm8021_vm12 = vcmp.eq.s32.totalorder %v4946_v43, %v7813_v21  ;;  %vm8026_vm0 = vcmp.eq.s32.totalorder %v4947_v8, %v7813_v21 }
0x433f   :  { %5490 = vmatprep.subr.bf16.mxu1 %v5953_v52  ;;  %vm7996_vm2 = vmand %vm5091_vm11, %vm5117_vm3  ;;  %v8259_v35 = vsel %vm8021_vm12, 4294967295, %v8258_v35  ;;  %v8261_v53 = vsel %vm8026_vm0, 4294967295, %v8260_v53  ;;  %vm5097_vm0 = vcmp.ge.s32.totalorder %v5072_v47, %v7847_v32 }
0x4340   :  { %vm5494_vm3 = vmpackc.low %vm7996_vm2, %vm7991_vm1  ;;  %vm5123_vm1 = vcmp.lt.s32.totalorder %v5072_v47, %v7853_v51 }
0x4341   :  { %vm8036_vm11 = vmand %vm5092_vm4, %vm5118_vm5  ;;  %vm5095_vm5 = vcmp.ge.s32.totalorder %v5070_v28, %v7847_v32  ;;  %vm5122_vm4 = vcmp.lt.s32.totalorder %v5071_v60, %v7853_v51 }
0x4342   :  { %5492 = vmatpush1.bf16.msk.msra.mxu1 %vm5491_vm8, %v5954_v15  ;;  %vm5120_vm8 = vcmp.lt.s32.totalorder %v5069_v25, %v7853_v51 }
0x4343   :  { %5493 = vmatprep.subr.bf16.mxu1 %v5953_v52  ;;  %vm8072_vm12 = vmand %vm5094_vm6, %vm5120_vm8  ;;  %vm5098_vm8 = vcmp.ge.s32.totalorder %v5073_v41, %v7847_v32 }
0x4344   :  { %vm8094_vm6 = vmand %vm5097_vm0, %vm5123_vm1 }
0x4345   :  { %vm8274_vm0 = vmpackc.low %vm8011_vm13, %vm8006_vm9  ;;  %vm5100_vm13 = vcmp.ge.s32.totalorder %v5075_v10, %v7847_v32 }
0x4346   :  { %5495 = vmatpush1.bf16.msk.msra.mxu1 %vm5494_vm3, %v5954_v15  ;;  %vm8084_vm3 = vmand %vm5096_vm10, %vm5122_vm4  ;;  %vm5124_vm4 = vcmp.lt.s32.totalorder %v5073_v41, %v7853_v51 }
0x4347   :  { %5496 = vmatprep.subr.bf16.mxu1 %v5953_v52  ;;  %vm5148_vm1 = vmand %vm5098_vm8, %vm5124_vm4  ;;  %vm8139_vm4 = vcmp.eq.s32.totalorder %v4948_v50, %v7810_v7 }
0x439b   :  { %v4901_v9 = vpop.f32.mrb[64].mxu1 }
0x439c   :  { %v4903_v18 = vpop.f32.mrb[65].mxu1 }
0x439d   :  { %v4905_v40 = vpop.f32.mrb[66].mxu1 }
0x439e   :  { %v5457_v1 = vpack.c.bf16 %v4905_v40, %v4901_v9  ;;  %v4907_v58 = vpop.f32.mrb[67].mxu1 }
0x439f   :  { %v5454_v63 = vpack.c.bf16 %v4907_v58, %v4903_v18 }
0x43a1   :  { %5456 = vmatprep.subr.msk.bf16.mxu0 %vm8247_vm7, %v5454_v63  ;;  %vm5093_vm7 = vcmp.ge.s32.totalorder %v5068_v11, %v7847_v32 }
0x43a2   :  { %5459 = vmatpush1.bf16.msk.msra.mxu0 %vm8248_vm15, %v5457_v1  ;;  %vm5119_vm15 = vcmp.lt.s32.totalorder %v5068_v11, %v7853_v51 }
0x43a3   :  { %vm8042_vm14 = vmand %vm5093_vm7, %vm5119_vm15  ;;  %vm5121_vm7 = vcmp.lt.s32.totalorder %v5070_v28, %v7853_v51 }
0x43a4   :  { %vm5497_vm15 = vmpackc.low %vm8042_vm14, %vm8036_vm11  ;;  %vm5125_vm11 = vcmp.lt.s32.totalorder %v5074_v26, %v7853_v51  ;;  %vm8275_vm14 = vnez %v8261_v53 }
0x43a5   :  { %vm8079_vm2 = vmand %vm5095_vm5, %vm5121_vm7  ;;  %5498 = vmatpush1.bf16.msk.msra.mxu1 %vm5497_vm15, %v5954_v15  ;;  %vm5099_vm5 = vcmp.ge.s32.totalorder %v5074_v26, %v7847_v32  ;;  %vm8276_vm7 = vnez %v8259_v35 }
0x43a6   :  { %5499 = vmatprep.subr.bf16.mxu1 %v5953_v52  ;;  %vm5500_vm10 = vmpackc.low %vm8079_vm2, %vm8072_vm12  ;;  %vm5126_vm2 = vcmp.lt.s32.totalorder %v5075_v10, %v7853_v51 }
0x43a7   :  { %vm5503_vm12 = vmpackc.low %vm8094_vm6, %vm8084_vm3  ;;  %vm5101_vm3 = vcmp.ge.s32.totalorder %v5076_v46, %v7847_v32  ;;  %vm5127_vm6 = vcmp.lt.s32.totalorder %v5076_v46, %v7853_v51 }
0x43a8   :  { %vm8277_vm15 = vmpackc.low %vm8275_vm14, %vm8276_vm7  ;;  %vm4964_vm14 = vcmp.eq.s32.totalorder %v4949_v30, %v7813_v21 }
0x43a9   :  { %5501 = vmatpush1.bf16.msk.msra.mxu1 %vm5500_vm10, %v5954_v15  ;;  %vm5149_vm9 = vmand %vm5099_vm5, %vm5125_vm11  ;;  %vm4965_vm5 = vcmp.eq.s32.totalorder %v4949_v30, %v7810_v7 }
0x43aa   :  { %5502 = vmatprep.subr.bf16.mxu1 %v5953_v52  ;;  %vm8133_vm10 = vmand %vm5100_vm13, %vm5126_vm2  ;;  %vm8283_vm13 = vnez %v8220_v24 }
0x43ab   :  { %v4911_v34 = vpop.f32.mrb[68].mxu1  ;;  %vm5151_vm8 = vmand %vm5101_vm3, %vm5127_vm6  ;;  %vm8285_vm3 = vnez %v8226_v12  ;;  %vm8286_vm6 = vnez %v8224_v4 }
0x43ac   :  { %v4913_v19 = vpop.f32.mrb[69].mxu1  ;;  %vm5509_vm11 = vmpackc.low %vm5151_vm8, %vm8133_vm10  ;;  %vm8288_vm10 = vcmask 523264  }
0x43ad   :  { %v4915_v22 = vpop.f32.mrb[70].mxu1  ;;  %5504 = vmatpush1.bf16.msk.msra.mxu1 %vm5503_vm12, %v5954_v15  ;;  %vm4962_vm12 = vcmp.eq.s32.totalorder %v4948_v50, %v7813_v21  ;;  %vm5467_vm7 = vmpackc.low %vm4965_vm5, %vm8139_vm4  ;;  %vm5103_vm4 = vcmp.ge.s32.totalorder %v5078_v54, %v7847_v32 }
0x43ae   :  { %v5463_v44 = vpack.c.bf16 %v4915_v22, %v4911_v34  ;;  %v4917_v55 = vpop.f32.mrb[71].mxu1  ;;  %5505 = vmatprep.subr.bf16.mxu1 %v5953_v52 }
0x43af   :  { %v5460_v38 = vpack.c.bf16 %v4917_v55, %v4913_v19 }
0x43b1   :  { %5462 = vmatprep.subr.msk.bf16.mxu0 %vm8274_vm0, %v5460_v38  ;;  %vm5506_vm0 = vmpackc.low %vm5149_vm9, %vm5148_vm1  ;;  %vm4987_vm1 = vcmp.eq.s32.totalorder %v4986_v23, %v6072_v3  ;;  %vm8282_vm9 = vnez %v8222_v14  ;;  %v5398_v14 = vld [vmem:[#allocation10] ss:$0 sm:$0xff] }
0x43b2   :  { %5465 = vmatpush1.bf16.msk.msra.mxu0 %vm8277_vm15, %v5463_v44  ;;  %5507 = vmatpush1.bf16.msk.msra.mxu1 %vm5506_vm0, %v5954_v15  ;;  %vm5470_vm15 = vmpackc.low %vm4964_vm14, %vm4962_vm12  ;;  %v4988_v2 = vsel %vm4987_vm1, 1.0, %v8218_v61  ;;  %vm5258_vm1 = vcmask 41984  }
0x43b3   :  { %5508 = vmatprep.subr.bf16.mxu1 %v5953_v52  ;;  %vm8284_vm2 = vmpackc.low %vm8282_vm9, %vm8283_vm13 }
0x43b4   :  { %vm8287_vm0 = vmpackc.low %vm8285_vm3, %vm8286_vm6 }
0x43b6   :  { %5510 = vmatpush1.bf16.msk.msra.mxu1 %vm5509_vm11, %v5954_v15  ;;  %vm5129_vm11 = vcmp.lt.s32.totalorder %v5078_v54, %v7853_v51 }
0x43b7   :  { %5511 = vmatprep.subr.bf16.mxu1 %v5953_v52  ;;  %v5077_v52 = vadd.s32 176, %v6072_v3  ;;  %vm5153_vm14 = vmand %vm5103_vm4, %vm5129_vm11 }
0x43b9   :  { %vm5102_vm8 = vcmp.ge.s32.totalorder %v5077_v52, %v7847_v32  ;;  %vm5128_vm5 = vcmp.lt.s32.totalorder %v5077_v52, %v7853_v51 }
0x43ba   :  { %vm5152_vm12 = vmand %vm5102_vm8, %vm5128_vm5 }
0x43bb   :  { %v4921_v49 = vpop.f32.mrb[72].mxu1 }
0x43bc   :  { %v4923_v0 = vpop.f32.mrb[73].mxu1 }
0x43bd   :  { %v4925_v59 = vpop.f32.mrb[74].mxu1 }
0x43be   :  { %v5469_v57 = vpack.c.bf16 %v4925_v59, %v4921_v49  ;;  %v4927_v37 = vpop.f32.mrb[75].mxu1 }
0x43bf   :  { %v5466_v9 = vpack.c.bf16 %v4927_v37, %v4923_v0 }
0x43c1   :  { %5468 = vmatprep.subr.msk.bf16.mxu0 %vm5467_vm7, %v5466_v9  ;;  %vm5512_vm7 = vmpackc.low %vm5153_vm14, %vm5152_vm12 }
0x43c2   :  { %5471 = vmatpush1.bf16.msk.msra.mxu0 %vm5470_vm15, %v5469_v57  ;;  %5513 = vmatpush1.bf16.msk.msra.mxu1 %vm5512_vm7, %v5954_v15  ;;  %vm8289_vm15 = vmmov %vm8288_vm10 }
0x4404   :  { %v4931_v7 = vpop.f32.mrb[76].mxu1 }
0x4405   :  { %v4933_v18 = vpop.f32.mrb[77].mxu1 }
0x4406   :  { %v4935_v6 = vpop.f32.mrb[78].mxu1 }
0x4407   :  { %v5475_v21 = vpack.c.bf16 %v4935_v6, %v4931_v7  ;;  %v4937_v56 = vpop.f32.mrb[79].mxu1 }
0x4408   :  { %v5472_v40 = vpack.c.bf16 %v4937_v56, %v4933_v18 }
0x440a   :  { %5474 = vmatprep.subr.msk.bf16.mxu0 %vm8284_vm2, %v5472_v40 }
0x440b   :  { %5477 = vmatpush1.bf16.msk.msra.mxu0 %vm8287_vm0, %v5475_v21 }
0x440e   :  { %5397 = vmatmul.mubr.msk.f32.vlgmr.msra.gmra.mrb[88].mxu0 %vm8288_vm10, %v4988_v2 }
0x44e1   :  { %v5058_v61 = vpop.f32.mrb[88].mxu0 }
0x44e2   :  { %v5060_v24 = vpop.f32.mrb[89].mxu0 }
0x44e3   :  { %5423 = vmatprep.mubr.msk.f32.mxu1 %vm8289_vm15, %v5060_v24 }
0x44e4   :  { %5253 = vmatmul.mubr.f32.vlgmr.msra.gmra.mrb[80].mxu1 %v5058_v61 }
0x45b7   :  { %v5254_v3 = vpop.f32.mrb[80].mxu1 }
0x45b8   :  { %v5255_v4 = vadd.f32 %v5398_v14, %v5254_v3  ;;  %v5256_v12 = vpop.f32.mrb[81].mxu1 }
0x45ba   :  { %5259 = vst.msk [vmem:[#allocation12] sm:$0x3] %vm5258_vm1, %v5255_v4 }
0x45bb   :  { %5903 = shalt.err (!%p5900_p8)
}
0x45bc   :  { %s5904_s26 = scalar_lea.hbm %s8196_s9, 32 }
0x45bd   :  { %p5905_p9 = scmp.ne.s32.totalorder %s8196_s9, %s5904_s26  ;;  %p5908_p10 = scmp.lt.u32.totalorder %s5904_s26, %s8196_s9 }
0x45bf   :  { %p5910_p11 = pnand %p5908_p10, %p5905_p9 }
0x45c1   :  { %5913 = shalt.err (!%p5910_p11)
}
0x45c2   :  { %5269 = dma.vmem_to_hbm [thread:$0]  %s5267_s6, 32, %s8196_s9, [#allocation6]  }
0x45c3   :  { %5920 = dma.done.wait [#allocation6], 32  }
0x45c4   :  { %5921 = vsyncadd [#allocation6], 4294967264 }
0x45c5   :  { %5273 = vsyncpa [#allocation5], 1 }
0x45c6   :  { %5274 = vsyncpa [#allocation8], 1 }
0x45c7   :  { %5275 = vsyncpa [#allocation11], 1 }
0x45c8   :  { %5276 = vsyncpa [#allocation6], 1 }

</bundles_post_ra>
